<compile_context>
chip_gen: v7x
topology: tpu7x:2x2x1
jax: 0.10.0
libtpu: 0.0.40
codegen_flags: <defaults>
</compile_context>

<pallas_src>
import jax
import jax.numpy as jnp
from jax.experimental import pallas as pl
from jax.experimental.pallas import tpu as pltpu

# Architecture constants fixed by the PyTorch module (the hardcoded 7*7*64
# flatten forces conv1 -> 20x20, conv2 -> 9x9, conv3 -> 7x7).
P1 = 20                      # conv1 output spatial extent (stride == kernel)
PG = P1 // 2                 # 10: phase-grid side used for conv2's stride-2 access
O2 = 9                       # conv2 output spatial extent
O3 = 7                       # conv3 output spatial extent
T2 = (O2 - 1) * PG + O2      # 89: valid padded rows of the conv2 output
T3 = (O3 - 1) * PG + O3      # 67: valid padded rows of the conv3 output
T2P = 96                     # T2 padded to a multiple of 16 (bf16 sublane tile)
T3P = 80                     # T3 padded to a multiple of 16
C1, C2, C3 = 32, 64, 64      # conv channel counts
K2 = 16 * C1                 # 512: conv2 im2col depth
K3 = 9 * C2                  # 576: conv3 im2col depth
KF = O3 * O3 * C3            # 3136: fc1 depth
FC1_OUT = 256
LANE = 128


# ------------------------------ fused kernel ------------------------------- #

def _convqnet_fused_kernel(a1_ref, w1_ref, b1_ref, w2_ref, b2_ref,
                           w3_ref, b3_ref, wf1_ref, bf1_ref, wf2_ref, bf2_ref,
                           o_ref, y1_ref, x2_ref, y2_ref, x3_ref, y3_ref, x4_ref):
    f32 = jnp.float32
    bf16 = jnp.bfloat16
    B = a1_ref.shape[0]                       # batch tile (static)
    k1 = a1_ref.shape[2]

    # ---- conv1 (stride == kernel): one GEMM over the whole batch tile -------
    # a1 rows are phase-major: row = ((oh%2)*2 + (ow%2))*100 + (oh//2)*10 + (ow//2)
    x1 = a1_ref[...].reshape(B * P1 * P1, k1)                        # (B*400, 64)
    y1 = jnp.dot(x1, w1_ref[...], preferred_element_type=f32)        # (B*400, 32)
    y1 = jnp.maximum(y1 + b1_ref[...], 0.0)
    y1_ref[...] = y1.reshape(B, P1 * P1, C1).astype(bf16)

    # ---- conv2 (4x4/stride 2): im2col via 16 contiguous slice copies + GEMM -
    # Output rows kept padded: t2 = oh2*10 + ow2 (rows with ow2 == 9 and rows
    # >= 89 are garbage and never read downstream).
    for ki in range(4):
        for kj in range(4):
            ph = (ki % 2) * 2 + (kj % 2)
            start = ph * (PG * PG) + (ki // 2) * PG + (kj // 2)
            c0 = (ki * 4 + kj) * C1
            x2_ref[:, 0:T2, c0:c0 + C1] = y1_ref[:, start:start + T2, :]
    y2 = jnp.dot(x2_ref[...].reshape(B * T2P, K2), w2_ref[...],
                 preferred_element_type=f32)                         # (B*96, 64)
    y2 = jnp.maximum(y2 + b2_ref[...], 0.0)
    y2_ref[...] = y2.reshape(B, T2P, C2).astype(bf16)

    # ---- conv3 (3x3/stride 1): im2col via 9 slice copies + GEMM --------------
    for ki in range(3):
        for kj in range(3):
            c0 = (ki * 3 + kj) * C2
            off = ki * PG + kj
            x3_ref[:, 0:T3, c0:c0 + C2] = y2_ref[:, off:off + T3, :]
    y3 = jnp.dot(x3_ref[...].reshape(B * T3P, K3), w3_ref[...],
                 preferred_element_type=f32)                         # (B*80, 64)
    y3 = jnp.maximum(y3 + b3_ref[...], 0.0)
    y3_ref[...] = y3.reshape(B, T3P, C3).astype(bf16)

    # ---- fc1: gather the valid 7x7 rows into (B, 3136) and do one GEMM ------
    for hh in range(O3):
        rows = y3_ref[:, hh * PG:hh * PG + O3, :]                    # (B, 7, 64)
        for ww in range(O3):
            c0 = (hh * O3 + ww) * C3
            x4_ref[:, c0:c0 + C3] = rows[:, ww, :]
    out4 = jnp.dot(x4_ref[...], wf1_ref[...], preferred_element_type=f32)
    out4 = jnp.maximum(out4 + bf1_ref[...], 0.0)                     # (B, 256)

    # ---- fc2 (output padded to a full 128-lane unmasked store) --------------
    out = jnp.dot(out4.astype(bf16), wf2_ref[...],
                  preferred_element_type=f32) + bf2_ref[...]         # (B, 128)
    o_ref[...] = out[:, None, :]


# ------------------------------ param prep --------------------------------- #

def init_params(key, in_ch, na):
    """PyTorch-layout parameters (OIHW convs, (out,in) Linears)."""
    ks = jax.random.split(key, 10)

    def w(k, shape, scale):
        return scale * jax.random.normal(k, shape, jnp.float32)

    return {
        "conv1_w": w(ks[0], (C1, in_ch, 4, 4), 0.05),   # kernel = (80//20, 80//20)
        "conv1_b": w(ks[1], (C1,), 0.05),
        "conv2_w": w(ks[2], (C2, C1, 4, 4), 0.05),
        "conv2_b": w(ks[3], (C2,), 0.05),
        "conv3_w": w(ks[4], (C3, C2, 3, 3), 0.05),
        "conv3_b": w(ks[5], (C3,), 0.05),
        "fc1_w":   w(ks[6], (FC1_OUT, KF), 0.02),
        "fc1_b":   w(ks[7], (FC1_OUT,), 0.02),
        "fc2_w":   w(ks[8], (na, FC1_OUT), 0.05),
        "fc2_b":   w(ks[9], (na,), 0.05),
    }


def prepare_params(params, na):
    """One-time reorder / cast of weights into the kernel's GEMM layouts."""
    bf16, f32 = jnp.bfloat16, jnp.float32
    out_c, in_ch, kh, kw = params["conv1_w"].shape
    na_pad = ((na + LANE - 1) // LANE) * LANE

    # conv weights -> 2-D GEMM layouts; row order = (kh, kw, in_c), matching
    # the im2col column order built inside the kernel.
    w1 = params["conv1_w"].transpose(2, 3, 1, 0).reshape(kh * kw * in_ch, C1)
    w2 = params["conv2_w"].transpose(2, 3, 1, 0).reshape(K2, C2)
    w3 = params["conv3_w"].transpose(2, 3, 1, 0).reshape(K3, C3)
    # PyTorch flatten of the NCHW conv3 output is c*49 + h*7 + w; the kernel's
    # fc1 im2col uses (h, w, c) ordering -> reorder the weight rows to match.
    wf1 = params["fc1_w"].reshape(FC1_OUT, C3, O3, O3)
    wf1 = wf1.transpose(2, 3, 1, 0).reshape(KF, FC1_OUT)
    # fc2: pre-transposed + zero-padded to 128 output lanes.
    wf2 = jnp.zeros((FC1_OUT, na_pad), f32).at[:, :na].set(params["fc2_w"].T)
    bf2 = jnp.zeros((1, na_pad), f32).at[:, :na].set(params["fc2_b"][None, :])

    return {
        "w1": w1.astype(bf16), "b1": params["conv1_b"].reshape(1, C1).astype(f32),
        "w2": w2.astype(bf16), "b2": params["conv2_b"].reshape(1, C2).astype(f32),
        "w3": w3.astype(bf16), "b3": params["conv3_b"].reshape(1, C3).astype(f32),
        "wf1": wf1.astype(bf16),
        "bf1": params["fc1_b"].reshape(1, FC1_OUT).astype(f32),
        "wf2": wf2.astype(bf16), "bf2": bf2,
    }


# ------------------------------ forward ------------------------------------ #

def conv_qnet_forward(prepped, state_nhwc, na):
    N, H, W, C = state_nhwc.shape
    kh, kw = H // P1, W // P1
    assert H == kh * P1 and W == kw * P1 and kh == kw, (H, W)
    k1 = kh * kw * C
    na_pad = prepped["wf2"].shape[1]

    # conv1 patch extraction (stride == kernel -> free reshape/transpose).
    # Rows ordered phase-major so conv2's stride-2 taps become contiguous slices.
    a1 = state_nhwc.reshape(N, PG, 2, kh, PG, 2, kw, C)
    a1 = a1.transpose(0, 2, 5, 1, 4, 3, 6, 7).reshape(N, P1 * P1, k1)
    a1 = a1.astype(jnp.bfloat16)

    # Batch tile: fold several images into the GEMM M dimension per grid step,
    # but keep >= 2 grid steps so both v7x TensorCores get work.
    b_tile = max(1, min(8, N // 2))
    n_steps = pl.cdiv(N, b_tile)
    n_pad = n_steps * b_tile
    if n_pad != N:
        a1 = jnp.pad(a1, ((0, n_pad - N), (0, 0), (0, 0)))

    flops = 2 * n_pad * (P1 * P1 * k1 * C1 + T2P * K2 * C2 + T3P * K3 * C3
                         + KF * FC1_OUT + FC1_OUT * na_pad)
    bytes_accessed = int(a1.size * a1.dtype.itemsize + n_pad * na_pad * 4
                         + sum(int(v.size) * v.dtype.itemsize
                               for v in prepped.values()))

    grid_spec = pltpu.PrefetchScalarGridSpec(
        num_scalar_prefetch=0,
        grid=(n_steps,),
        in_specs=[
            pl.BlockSpec((b_tile, P1 * P1, k1), lambda i: (i, 0, 0)),  # a1
            pl.BlockSpec((k1, C1), lambda i: (0, 0)),                  # w1
            pl.BlockSpec((1, C1), lambda i: (0, 0)),                   # b1
            pl.BlockSpec((K2, C2), lambda i: (0, 0)),                  # w2
            pl.BlockSpec((1, C2), lambda i: (0, 0)),                   # b2
            pl.BlockSpec((K3, C3), lambda i: (0, 0)),                  # w3
            pl.BlockSpec((1, C3), lambda i: (0, 0)),                   # b3
            pl.BlockSpec((KF, FC1_OUT), lambda i: (0, 0)),             # wf1
            pl.BlockSpec((1, FC1_OUT), lambda i: (0, 0)),              # bf1
            pl.BlockSpec((FC1_OUT, na_pad), lambda i: (0, 0)),         # wf2
            pl.BlockSpec((1, na_pad), lambda i: (0, 0)),               # bf2
        ],
        out_specs=pl.BlockSpec((b_tile, 1, na_pad), lambda i: (i, 0, 0)),
        scratch_shapes=[
            pltpu.VMEM((b_tile, P1 * P1, C1), jnp.bfloat16),   # y1 (phase-major)
            pltpu.VMEM((b_tile, T2P, K2), jnp.bfloat16),       # conv2 im2col
            pltpu.VMEM((b_tile, T2P, C2), jnp.bfloat16),       # y2 (padded rows)
            pltpu.VMEM((b_tile, T3P, K3), jnp.bfloat16),       # conv3 im2col
            pltpu.VMEM((b_tile, T3P, C3), jnp.bfloat16),       # y3 (padded rows)
            pltpu.VMEM((b_tile, KF), jnp.bfloat16),            # fc1 im2col
        ],
    )

    out = pl.pallas_call(
        _convqnet_fused_kernel,
        out_shape=jax.ShapeDtypeStruct((n_pad, 1, na_pad), jnp.float32),
        grid_spec=grid_spec,
        compiler_params=pltpu.CompilerParams(dimension_semantics=("parallel",)),
        cost_estimate=pl.CostEstimate(flops=flops, transcendentals=0,
                                      bytes_accessed=bytes_accessed),
    )(a1, prepped["w1"], prepped["b1"], prepped["w2"], prepped["b2"],
      prepped["w3"], prepped["b3"], prepped["wf1"], prepped["bf1"],
      prepped["wf2"], prepped["bf2"])

    return out.reshape(n_pad, na_pad)[:N, :na]


# ------------------------------ reference ---------------------------------- #

def reference_forward(params, state_nhwc):
    """Pure-JAX f32 reference (matches PyTorch semantics) for validation."""
    x = jnp.transpose(state_nhwc, (0, 3, 1, 2))

    def conv(x, w, b, s):
        y = jax.lax.conv_general_dilated(
            x, w, (s, s), "VALID", dimension_numbers=("NCHW", "OIHW", "NCHW"))
        return jax.nn.relu(y + b[None, :, None, None])

    o1 = conv(x, params["conv1_w"], params["conv1_b"], state_nhwc.shape[1] // P1)
    o2 = conv(o1, params["conv2_w"], params["conv2_b"], 2)
    o3 = conv(o2, params["conv3_w"], params["conv3_b"], 1)
    flat = o3.reshape(o3.shape[0], -1)
    o4 = jax.nn.relu(flat @ params["fc1_w"].T + params["fc1_b"])
    return o4 @ params["fc2_w"].T + params["fc2_b"]


# -------------------------------- main -------------------------------------- #

if __name__ == "__main__":
    # The hardcoded 7*7*64 flatten forces 80x80 spatial
    # (80 ->conv1-> 20 ->conv2-> 9 ->conv3-> 7).  batch=2, C*state_history=4, 4 actions.
    N, H, W, CS, NA = 2, 80, 80, 4, 4

    key = jax.random.PRNGKey(0)
    k_x, k_p = jax.random.split(key)
    x = jax.random.normal(k_x, (N, H, W, CS), jnp.float32)
    params = init_params(k_p, CS, NA)
    prepped = prepare_params(params, NA)

    fwd = jax.jit(lambda p, s: conv_qnet_forward(p, s, NA))
    q = jax.block_until_ready(fwd(prepped, x))
    assert q.shape == (N, NA), q.shape

    q_ref = reference_forward(params, x)
    max_err = float(jnp.max(jnp.abs(q - q_ref)))
    # bf16 matmul operands with f32 accumulation -> loosened tolerance.
    assert jnp.allclose(q, q_ref, atol=2e-2, rtol=2e-2), max_err

    print("KERNEL_OK")
</pallas_src>

<mosaic_0001>
module attributes {stable_mosaic.version = 11 : i64} {
  func.func @_convqnet_fused_kernel(%arg0: i32, %arg1: memref<1x400x64xbf16, #tpu.memory_space<vmem>>, %arg2: memref<64x32xbf16, #tpu.memory_space<vmem>>, %arg3: memref<1x32xf32, #tpu.memory_space<vmem>>, %arg4: memref<512x64xbf16, #tpu.memory_space<vmem>>, %arg5: memref<1x64xf32, #tpu.memory_space<vmem>>, %arg6: memref<576x64xbf16, #tpu.memory_space<vmem>>, %arg7: memref<1x64xf32, #tpu.memory_space<vmem>>, %arg8: memref<3136x256xbf16, #tpu.memory_space<vmem>>, %arg9: memref<1x256xf32, #tpu.memory_space<vmem>>, %arg10: memref<256x128xbf16, #tpu.memory_space<vmem>>, %arg11: memref<1x128xf32, #tpu.memory_space<vmem>>, %arg12: memref<1x1x128xf32, #tpu.memory_space<vmem>>, %arg13: memref<1x400x32xbf16, #tpu.memory_space<vmem>>, %arg14: memref<1x96x512xbf16, #tpu.memory_space<vmem>>, %arg15: memref<1x96x64xbf16, #tpu.memory_space<vmem>>, %arg16: memref<1x80x576xbf16, #tpu.memory_space<vmem>>, %arg17: memref<1x80x64xbf16, #tpu.memory_space<vmem>>, %arg18: memref<1x3136xbf16, #tpu.memory_space<vmem>>) attributes {dimension_semantics = [#tpu.dimension_semantics<parallel>], iteration_bounds = array<i64: 2>, scalar_prefetch = 0 : i64, scratch_operands = 6 : i64, tpu.core_type = #tpu.core_type<tc>, window_params = [{transform_indices = @transform_0, window_bounds = array<i64: 1, 400, 64>}, {pipeline_mode = #tpu.pipeline_mode<synchronous>, transform_indices = @transform_1, window_bounds = array<i64: 64, 32>}, {pipeline_mode = #tpu.pipeline_mode<synchronous>, transform_indices = @transform_2, window_bounds = array<i64: 1, 32>}, {pipeline_mode = #tpu.pipeline_mode<synchronous>, transform_indices = @transform_3, window_bounds = array<i64: 512, 64>}, {pipeline_mode = #tpu.pipeline_mode<synchronous>, transform_indices = @transform_4, window_bounds = array<i64: 1, 64>}, {pipeline_mode = #tpu.pipeline_mode<synchronous>, transform_indices = @transform_5, window_bounds = array<i64: 576, 64>}, {pipeline_mode = #tpu.pipeline_mode<synchronous>, transform_indices = @transform_6, window_bounds = array<i64: 1, 64>}, {pipeline_mode = #tpu.pipeline_mode<synchronous>, transform_indices = @transform_7, window_bounds = array<i64: 3136, 256>}, {pipeline_mode = #tpu.pipeline_mode<synchronous>, transform_indices = @transform_8, window_bounds = array<i64: 1, 256>}, {pipeline_mode = #tpu.pipeline_mode<synchronous>, transform_indices = @transform_9, window_bounds = array<i64: 256, 128>}, {pipeline_mode = #tpu.pipeline_mode<synchronous>, transform_indices = @transform_10, window_bounds = array<i64: 1, 128>}, {transform_indices = @transform_11, window_bounds = array<i64: 1, 1, 128>}]} {
    %c0 = arith.constant 0 : index
    %c0_0 = arith.constant 0 : index
    %c0_1 = arith.constant 0 : index
    %0 = vector.load %arg1[%c0, %c0_0, %c0_1] : memref<1x400x64xbf16, #tpu.memory_space<vmem>>, vector<1x400x64xbf16>
    %1 = vector.shape_cast %0 : vector<1x400x64xbf16> to vector<400x64xbf16>
    %c0_2 = arith.constant 0 : index
    %c0_3 = arith.constant 0 : index
    %2 = vector.load %arg2[%c0_2, %c0_3] : memref<64x32xbf16, #tpu.memory_space<vmem>>, vector<64x32xbf16>
    %cst = arith.constant dense<0.000000e+00> : vector<400x32xf32>
    %3 = tpu.matmul %1, %2, %cst {dimension_numbers = #tpu.dot_dimension_numbers<[1], [0], [0], [1], [0, 0, 1, 1], [], []>} : vector<400x64xbf16>, vector<64x32xbf16>, vector<400x32xf32> -> vector<400x32xf32>
    %c0_4 = arith.constant 0 : index
    %c0_5 = arith.constant 0 : index
    %4 = vector.load %arg3[%c0_4, %c0_5] : memref<1x32xf32, #tpu.memory_space<vmem>>, vector<1x32xf32>
    %5 = vector.broadcast %4 : vector<1x32xf32> to vector<400x32xf32>
    %6 = arith.addf %3, %5 : vector<400x32xf32>
    %cst_6 = arith.constant 0.000000e+00 : f32
    %7 = vector.broadcast %cst_6 : f32 to vector<400x32xf32>
    %8 = arith.maximumf %6, %7 : vector<400x32xf32>
    %9 = vector.shape_cast %8 : vector<400x32xf32> to vector<1x400x32xf32>
    %10 = arith.truncf %9 : vector<1x400x32xf32> to vector<1x400x32xbf16>
    %c0_7 = arith.constant 0 : index
    %c0_8 = arith.constant 0 : index
    %c0_9 = arith.constant 0 : index
    %11 = vector.load %arg13[%c0_7, %c0_8, %c0_9] : memref<1x400x32xbf16, #tpu.memory_space<vmem>>, vector<1x400x32xbf16>
    tpu.vector_store %arg13[%c0_7, %c0_8, %c0_9], %10 {strides = array<i32>} : memref<1x400x32xbf16, #tpu.memory_space<vmem>>, vector<1x400x32xbf16>,
    %c0_10 = arith.constant 0 : index
    %c0_11 = arith.constant 0 : index
    %c0_12 = arith.constant 0 : index
    %12 = vector.load %arg13[%c0_10, %c0_11, %c0_12] : memref<1x400x32xbf16, #tpu.memory_space<vmem>>, vector<1x89x32xbf16>
    %c0_13 = arith.constant 0 : index
    %c0_14 = arith.constant 0 : index
    %c0_15 = arith.constant 0 : index
    %13 = vector.load %arg14[%c0_13, %c0_14, %c0_15] : memref<1x96x512xbf16, #tpu.memory_space<vmem>>, vector<1x89x32xbf16>
    tpu.vector_store %arg14[%c0_13, %c0_14, %c0_15], %12 {strides = array<i32>} : memref<1x96x512xbf16, #tpu.memory_space<vmem>>, vector<1x89x32xbf16>,
    %c0_16 = arith.constant 0 : index
    %c100 = arith.constant 100 : index
    %c0_17 = arith.constant 0 : index
    %14 = vector.load %arg13[%c0_16, %c100, %c0_17] : memref<1x400x32xbf16, #tpu.memory_space<vmem>>, vector<1x89x32xbf16>
    %c0_18 = arith.constant 0 : index
    %c0_19 = arith.constant 0 : index
    %c32 = arith.constant 32 : index
    %15 = vector.load %arg14[%c0_18, %c0_19, %c32] : memref<1x96x512xbf16, #tpu.memory_space<vmem>>, vector<1x89x32xbf16>
    tpu.vector_store %arg14[%c0_18, %c0_19, %c32], %14 {strides = array<i32>} : memref<1x96x512xbf16, #tpu.memory_space<vmem>>, vector<1x89x32xbf16>,
    %c0_20 = arith.constant 0 : index
    %c1 = arith.constant 1 : index
    %c0_21 = arith.constant 0 : index
    %16 = vector.load %arg13[%c0_20, %c1, %c0_21] : memref<1x400x32xbf16, #tpu.memory_space<vmem>>, vector<1x89x32xbf16>
    %c0_22 = arith.constant 0 : index
    %c0_23 = arith.constant 0 : index
    %c64 = arith.constant 64 : index
    %17 = vector.load %arg14[%c0_22, %c0_23, %c64] : memref<1x96x512xbf16, #tpu.memory_space<vmem>>, vector<1x89x32xbf16>
    tpu.vector_store %arg14[%c0_22, %c0_23, %c64], %16 {strides = array<i32>} : memref<1x96x512xbf16, #tpu.memory_space<vmem>>, vector<1x89x32xbf16>,
    %c0_24 = arith.constant 0 : index
    %c101 = arith.constant 101 : index
    %c0_25 = arith.constant 0 : index
    %18 = vector.load %arg13[%c0_24, %c101, %c0_25] : memref<1x400x32xbf16, #tpu.memory_space<vmem>>, vector<1x89x32xbf16>
    %c0_26 = arith.constant 0 : index
    %c0_27 = arith.constant 0 : index
    %c96 = arith.constant 96 : index
    %19 = vector.load %arg14[%c0_26, %c0_27, %c96] : memref<1x96x512xbf16, #tpu.memory_space<vmem>>, vector<1x89x32xbf16>
    tpu.vector_store %arg14[%c0_26, %c0_27, %c96], %18 {strides = array<i32>} : memref<1x96x512xbf16, #tpu.memory_space<vmem>>, vector<1x89x32xbf16>,
    %c0_28 = arith.constant 0 : index
    %c200 = arith.constant 200 : index
    %c0_29 = arith.constant 0 : index
    %20 = vector.load %arg13[%c0_28, %c200, %c0_29] : memref<1x400x32xbf16, #tpu.memory_space<vmem>>, vector<1x89x32xbf16>
    %c0_30 = arith.constant 0 : index
    %c0_31 = arith.constant 0 : index
    %c128 = arith.constant 128 : index
    %21 = vector.load %arg14[%c0_30, %c0_31, %c128] : memref<1x96x512xbf16, #tpu.memory_space<vmem>>, vector<1x89x32xbf16>
    tpu.vector_store %arg14[%c0_30, %c0_31, %c128], %20 {strides = array<i32>} : memref<1x96x512xbf16, #tpu.memory_space<vmem>>, vector<1x89x32xbf16>,
    %c0_32 = arith.constant 0 : index
    %c300 = arith.constant 300 : index
    %c0_33 = arith.constant 0 : index
    %22 = vector.load %arg13[%c0_32, %c300, %c0_33] : memref<1x400x32xbf16, #tpu.memory_space<vmem>>, vector<1x89x32xbf16>
    %c0_34 = arith.constant 0 : index
    %c0_35 = arith.constant 0 : index
    %c160 = arith.constant 160 : index
    %23 = vector.load %arg14[%c0_34, %c0_35, %c160] : memref<1x96x512xbf16, #tpu.memory_space<vmem>>, vector<1x89x32xbf16>
    tpu.vector_store %arg14[%c0_34, %c0_35, %c160], %22 {strides = array<i32>} : memref<1x96x512xbf16, #tpu.memory_space<vmem>>, vector<1x89x32xbf16>,
    %c0_36 = arith.constant 0 : index
    %c201 = arith.constant 201 : index
    %c0_37 = arith.constant 0 : index
    %24 = vector.load %arg13[%c0_36, %c201, %c0_37] : memref<1x400x32xbf16, #tpu.memory_space<vmem>>, vector<1x89x32xbf16>
    %c0_38 = arith.constant 0 : index
    %c0_39 = arith.constant 0 : index
    %c192 = arith.constant 192 : index
    %25 = vector.load %arg14[%c0_38, %c0_39, %c192] : memref<1x96x512xbf16, #tpu.memory_space<vmem>>, vector<1x89x32xbf16>
    tpu.vector_store %arg14[%c0_38, %c0_39, %c192], %24 {strides = array<i32>} : memref<1x96x512xbf16, #tpu.memory_space<vmem>>, vector<1x89x32xbf16>,
    %c0_40 = arith.constant 0 : index
    %c301 = arith.constant 301 : index
    %c0_41 = arith.constant 0 : index
    %26 = vector.load %arg13[%c0_40, %c301, %c0_41] : memref<1x400x32xbf16, #tpu.memory_space<vmem>>, vector<1x89x32xbf16>
    %c0_42 = arith.constant 0 : index
    %c0_43 = arith.constant 0 : index
    %c224 = arith.constant 224 : index
    %27 = vector.load %arg14[%c0_42, %c0_43, %c224] : memref<1x96x512xbf16, #tpu.memory_space<vmem>>, vector<1x89x32xbf16>
    tpu.vector_store %arg14[%c0_42, %c0_43, %c224], %26 {strides = array<i32>} : memref<1x96x512xbf16, #tpu.memory_space<vmem>>, vector<1x89x32xbf16>,
    %c0_44 = arith.constant 0 : index
    %c10 = arith.constant 10 : index
    %c0_45 = arith.constant 0 : index
    %28 = vector.load %arg13[%c0_44, %c10, %c0_45] : memref<1x400x32xbf16, #tpu.memory_space<vmem>>, vector<1x89x32xbf16>
    %c0_46 = arith.constant 0 : index
    %c0_47 = arith.constant 0 : index
    %c256 = arith.constant 256 : index
    %29 = vector.load %arg14[%c0_46, %c0_47, %c256] : memref<1x96x512xbf16, #tpu.memory_space<vmem>>, vector<1x89x32xbf16>
    tpu.vector_store %arg14[%c0_46, %c0_47, %c256], %28 {strides = array<i32>} : memref<1x96x512xbf16, #tpu.memory_space<vmem>>, vector<1x89x32xbf16>,
    %c0_48 = arith.constant 0 : index
    %c110 = arith.constant 110 : index
    %c0_49 = arith.constant 0 : index
    %30 = vector.load %arg13[%c0_48, %c110, %c0_49] : memref<1x400x32xbf16, #tpu.memory_space<vmem>>, vector<1x89x32xbf16>
    %c0_50 = arith.constant 0 : index
    %c0_51 = arith.constant 0 : index
    %c288 = arith.constant 288 : index
    %31 = vector.load %arg14[%c0_50, %c0_51, %c288] : memref<1x96x512xbf16, #tpu.memory_space<vmem>>, vector<1x89x32xbf16>
    tpu.vector_store %arg14[%c0_50, %c0_51, %c288], %30 {strides = array<i32>} : memref<1x96x512xbf16, #tpu.memory_space<vmem>>, vector<1x89x32xbf16>,
    %c0_52 = arith.constant 0 : index
    %c11 = arith.constant 11 : index
    %c0_53 = arith.constant 0 : index
    %32 = vector.load %arg13[%c0_52, %c11, %c0_53] : memref<1x400x32xbf16, #tpu.memory_space<vmem>>, vector<1x89x32xbf16>
    %c0_54 = arith.constant 0 : index
    %c0_55 = arith.constant 0 : index
    %c320 = arith.constant 320 : index
    %33 = vector.load %arg14[%c0_54, %c0_55, %c320] : memref<1x96x512xbf16, #tpu.memory_space<vmem>>, vector<1x89x32xbf16>
    tpu.vector_store %arg14[%c0_54, %c0_55, %c320], %32 {strides = array<i32>} : memref<1x96x512xbf16, #tpu.memory_space<vmem>>, vector<1x89x32xbf16>,
    %c0_56 = arith.constant 0 : index
    %c111 = arith.constant 111 : index
    %c0_57 = arith.constant 0 : index
    %34 = vector.load %arg13[%c0_56, %c111, %c0_57] : memref<1x400x32xbf16, #tpu.memory_space<vmem>>, vector<1x89x32xbf16>
    %c0_58 = arith.constant 0 : index
    %c0_59 = arith.constant 0 : index
    %c352 = arith.constant 352 : index
    %35 = vector.load %arg14[%c0_58, %c0_59, %c352] : memref<1x96x512xbf16, #tpu.memory_space<vmem>>, vector<1x89x32xbf16>
    tpu.vector_store %arg14[%c0_58, %c0_59, %c352], %34 {strides = array<i32>} : memref<1x96x512xbf16, #tpu.memory_space<vmem>>, vector<1x89x32xbf16>,
    %c0_60 = arith.constant 0 : index
    %c210 = arith.constant 210 : index
    %c0_61 = arith.constant 0 : index
    %36 = vector.load %arg13[%c0_60, %c210, %c0_61] : memref<1x400x32xbf16, #tpu.memory_space<vmem>>, vector<1x89x32xbf16>
    %c0_62 = arith.constant 0 : index
    %c0_63 = arith.constant 0 : index
    %c384 = arith.constant 384 : index
    %37 = vector.load %arg14[%c0_62, %c0_63, %c384] : memref<1x96x512xbf16, #tpu.memory_space<vmem>>, vector<1x89x32xbf16>
    tpu.vector_store %arg14[%c0_62, %c0_63, %c384], %36 {strides = array<i32>} : memref<1x96x512xbf16, #tpu.memory_space<vmem>>, vector<1x89x32xbf16>,
    %c0_64 = arith.constant 0 : index
    %c310 = arith.constant 310 : index
    %c0_65 = arith.constant 0 : index
    %38 = vector.load %arg13[%c0_64, %c310, %c0_65] : memref<1x400x32xbf16, #tpu.memory_space<vmem>>, vector<1x89x32xbf16>
    %c0_66 = arith.constant 0 : index
    %c0_67 = arith.constant 0 : index
    %c416 = arith.constant 416 : index
    %39 = vector.load %arg14[%c0_66, %c0_67, %c416] : memref<1x96x512xbf16, #tpu.memory_space<vmem>>, vector<1x89x32xbf16>
    tpu.vector_store %arg14[%c0_66, %c0_67, %c416], %38 {strides = array<i32>} : memref<1x96x512xbf16, #tpu.memory_space<vmem>>, vector<1x89x32xbf16>,
    %c0_68 = arith.constant 0 : index
    %c211 = arith.constant 211 : index
    %c0_69 = arith.constant 0 : index
    %40 = vector.load %arg13[%c0_68, %c211, %c0_69] : memref<1x400x32xbf16, #tpu.memory_space<vmem>>, vector<1x89x32xbf16>
    %c0_70 = arith.constant 0 : index
    %c0_71 = arith.constant 0 : index
    %c448 = arith.constant 448 : index
    %41 = vector.load %arg14[%c0_70, %c0_71, %c448] : memref<1x96x512xbf16, #tpu.memory_space<vmem>>, vector<1x89x32xbf16>
    tpu.vector_store %arg14[%c0_70, %c0_71, %c448], %40 {strides = array<i32>} : memref<1x96x512xbf16, #tpu.memory_space<vmem>>, vector<1x89x32xbf16>,
    %c0_72 = arith.constant 0 : index
    %c311 = arith.constant 311 : index
    %c0_73 = arith.constant 0 : index
    %42 = vector.load %arg13[%c0_72, %c311, %c0_73] : memref<1x400x32xbf16, #tpu.memory_space<vmem>>, vector<1x89x32xbf16>
    %c0_74 = arith.constant 0 : index
    %c0_75 = arith.constant 0 : index
    %c480 = arith.constant 480 : index
    %43 = vector.load %arg14[%c0_74, %c0_75, %c480] : memref<1x96x512xbf16, #tpu.memory_space<vmem>>, vector<1x89x32xbf16>
    tpu.vector_store %arg14[%c0_74, %c0_75, %c480], %42 {strides = array<i32>} : memref<1x96x512xbf16, #tpu.memory_space<vmem>>, vector<1x89x32xbf16>,
    %c0_76 = arith.constant 0 : index
    %c0_77 = arith.constant 0 : index
    %c0_78 = arith.constant 0 : index
    %44 = vector.load %arg14[%c0_76, %c0_77, %c0_78] : memref<1x96x512xbf16, #tpu.memory_space<vmem>>, vector<1x96x512xbf16>
    %45 = vector.shape_cast %44 : vector<1x96x512xbf16> to vector<96x512xbf16>
    %c0_79 = arith.constant 0 : index
    %c0_80 = arith.constant 0 : index
    %46 = vector.load %arg4[%c0_79, %c0_80] : memref<512x64xbf16, #tpu.memory_space<vmem>>, vector<512x64xbf16>
    %cst_81 = arith.constant dense<0.000000e+00> : vector<96x64xf32>
    %47 = tpu.matmul %45, %46, %cst_81 {dimension_numbers = #tpu.dot_dimension_numbers<[1], [0], [0], [1], [0, 0, 1, 1], [], []>} : vector<96x512xbf16>, vector<512x64xbf16>, vector<96x64xf32> -> vector<96x64xf32>
    %c0_82 = arith.constant 0 : index
    %c0_83 = arith.constant 0 : index
    %48 = vector.load %arg5[%c0_82, %c0_83] : memref<1x64xf32, #tpu.memory_space<vmem>>, vector<1x64xf32>
    %49 = vector.broadcast %48 : vector<1x64xf32> to vector<96x64xf32>
    %50 = arith.addf %47, %49 : vector<96x64xf32>
    %cst_84 = arith.constant 0.000000e+00 : f32
    %51 = vector.broadcast %cst_84 : f32 to vector<96x64xf32>
    %52 = arith.maximumf %50, %51 : vector<96x64xf32>
    %53 = vector.shape_cast %52 : vector<96x64xf32> to vector<1x96x64xf32>
    %54 = arith.truncf %53 : vector<1x96x64xf32> to vector<1x96x64xbf16>
    %c0_85 = arith.constant 0 : index
    %c0_86 = arith.constant 0 : index
    %c0_87 = arith.constant 0 : index
    %55 = vector.load %arg15[%c0_85, %c0_86, %c0_87] : memref<1x96x64xbf16, #tpu.memory_space<vmem>>, vector<1x96x64xbf16>
    tpu.vector_store %arg15[%c0_85, %c0_86, %c0_87], %54 {strides = array<i32>} : memref<1x96x64xbf16, #tpu.memory_space<vmem>>, vector<1x96x64xbf16>,
    %c0_88 = arith.constant 0 : index
    %c0_89 = arith.constant 0 : index
    %c0_90 = arith.constant 0 : index
    %56 = vector.load %arg15[%c0_88, %c0_89, %c0_90] : memref<1x96x64xbf16, #tpu.memory_space<vmem>>, vector<1x67x64xbf16>
    %c0_91 = arith.constant 0 : index
    %c0_92 = arith.constant 0 : index
    %c0_93 = arith.constant 0 : index
    %57 = vector.load %arg16[%c0_91, %c0_92, %c0_93] : memref<1x80x576xbf16, #tpu.memory_space<vmem>>, vector<1x67x64xbf16>
    tpu.vector_store %arg16[%c0_91, %c0_92, %c0_93], %56 {strides = array<i32>} : memref<1x80x576xbf16, #tpu.memory_space<vmem>>, vector<1x67x64xbf16>,
    %c0_94 = arith.constant 0 : index
    %c1_95 = arith.constant 1 : index
    %c0_96 = arith.constant 0 : index
    %58 = vector.load %arg15[%c0_94, %c1_95, %c0_96] : memref<1x96x64xbf16, #tpu.memory_space<vmem>>, vector<1x67x64xbf16>
    %c0_97 = arith.constant 0 : index
    %c0_98 = arith.constant 0 : index
    %c64_99 = arith.constant 64 : index
    %59 = vector.load %arg16[%c0_97, %c0_98, %c64_99] : memref<1x80x576xbf16, #tpu.memory_space<vmem>>, vector<1x67x64xbf16>
    tpu.vector_store %arg16[%c0_97, %c0_98, %c64_99], %58 {strides = array<i32>} : memref<1x80x576xbf16, #tpu.memory_space<vmem>>, vector<1x67x64xbf16>,
    %c0_100 = arith.constant 0 : index
    %c2 = arith.constant 2 : index
    %c0_101 = arith.constant 0 : index
    %60 = vector.load %arg15[%c0_100, %c2, %c0_101] : memref<1x96x64xbf16, #tpu.memory_space<vmem>>, vector<1x67x64xbf16>
    %c0_102 = arith.constant 0 : index
    %c0_103 = arith.constant 0 : index
    %c128_104 = arith.constant 128 : index
    %61 = vector.load %arg16[%c0_102, %c0_103, %c128_104] : memref<1x80x576xbf16, #tpu.memory_space<vmem>>, vector<1x67x64xbf16>
    tpu.vector_store %arg16[%c0_102, %c0_103, %c128_104], %60 {strides = array<i32>} : memref<1x80x576xbf16, #tpu.memory_space<vmem>>, vector<1x67x64xbf16>,
    %c0_105 = arith.constant 0 : index
    %c10_106 = arith.constant 10 : index
    %c0_107 = arith.constant 0 : index
    %62 = vector.load %arg15[%c0_105, %c10_106, %c0_107] : memref<1x96x64xbf16, #tpu.memory_space<vmem>>, vector<1x67x64xbf16>
    %c0_108 = arith.constant 0 : index
    %c0_109 = arith.constant 0 : index
    %c192_110 = arith.constant 192 : index
    %63 = vector.load %arg16[%c0_108, %c0_109, %c192_110] : memref<1x80x576xbf16, #tpu.memory_space<vmem>>, vector<1x67x64xbf16>
    tpu.vector_store %arg16[%c0_108, %c0_109, %c192_110], %62 {strides = array<i32>} : memref<1x80x576xbf16, #tpu.memory_space<vmem>>, vector<1x67x64xbf16>,
    %c0_111 = arith.constant 0 : index
    %c11_112 = arith.constant 11 : index
    %c0_113 = arith.constant 0 : index
    %64 = vector.load %arg15[%c0_111, %c11_112, %c0_113] : memref<1x96x64xbf16, #tpu.memory_space<vmem>>, vector<1x67x64xbf16>
    %c0_114 = arith.constant 0 : index
    %c0_115 = arith.constant 0 : index
    %c256_116 = arith.constant 256 : index
    %65 = vector.load %arg16[%c0_114, %c0_115, %c256_116] : memref<1x80x576xbf16, #tpu.memory_space<vmem>>, vector<1x67x64xbf16>
    tpu.vector_store %arg16[%c0_114, %c0_115, %c256_116], %64 {strides = array<i32>} : memref<1x80x576xbf16, #tpu.memory_space<vmem>>, vector<1x67x64xbf16>,
    %c0_117 = arith.constant 0 : index
    %c12 = arith.constant 12 : index
    %c0_118 = arith.constant 0 : index
    %66 = vector.load %arg15[%c0_117, %c12, %c0_118] : memref<1x96x64xbf16, #tpu.memory_space<vmem>>, vector<1x67x64xbf16>
    %c0_119 = arith.constant 0 : index
    %c0_120 = arith.constant 0 : index
    %c320_121 = arith.constant 320 : index
    %67 = vector.load %arg16[%c0_119, %c0_120, %c320_121] : memref<1x80x576xbf16, #tpu.memory_space<vmem>>, vector<1x67x64xbf16>
    tpu.vector_store %arg16[%c0_119, %c0_120, %c320_121], %66 {strides = array<i32>} : memref<1x80x576xbf16, #tpu.memory_space<vmem>>, vector<1x67x64xbf16>,
    %c0_122 = arith.constant 0 : index
    %c20 = arith.constant 20 : index
    %c0_123 = arith.constant 0 : index
    %68 = vector.load %arg15[%c0_122, %c20, %c0_123] : memref<1x96x64xbf16, #tpu.memory_space<vmem>>, vector<1x67x64xbf16>
    %c0_124 = arith.constant 0 : index
    %c0_125 = arith.constant 0 : index
    %c384_126 = arith.constant 384 : index
    %69 = vector.load %arg16[%c0_124, %c0_125, %c384_126] : memref<1x80x576xbf16, #tpu.memory_space<vmem>>, vector<1x67x64xbf16>
    tpu.vector_store %arg16[%c0_124, %c0_125, %c384_126], %68 {strides = array<i32>} : memref<1x80x576xbf16, #tpu.memory_space<vmem>>, vector<1x67x64xbf16>,
    %c0_127 = arith.constant 0 : index
    %c21 = arith.constant 21 : index
    %c0_128 = arith.constant 0 : index
    %70 = vector.load %arg15[%c0_127, %c21, %c0_128] : memref<1x96x64xbf16, #tpu.memory_space<vmem>>, vector<1x67x64xbf16>
    %c0_129 = arith.constant 0 : index
    %c0_130 = arith.constant 0 : index
    %c448_131 = arith.constant 448 : index
    %71 = vector.load %arg16[%c0_129, %c0_130, %c448_131] : memref<1x80x576xbf16, #tpu.memory_space<vmem>>, vector<1x67x64xbf16>
    tpu.vector_store %arg16[%c0_129, %c0_130, %c448_131], %70 {strides = array<i32>} : memref<1x80x576xbf16, #tpu.memory_space<vmem>>, vector<1x67x64xbf16>,
    %c0_132 = arith.constant 0 : index
    %c22 = arith.constant 22 : index
    %c0_133 = arith.constant 0 : index
    %72 = vector.load %arg15[%c0_132, %c22, %c0_133] : memref<1x96x64xbf16, #tpu.memory_space<vmem>>, vector<1x67x64xbf16>
    %c0_134 = arith.constant 0 : index
    %c0_135 = arith.constant 0 : index
    %c512 = arith.constant 512 : index
    %73 = vector.load %arg16[%c0_134, %c0_135, %c512] : memref<1x80x576xbf16, #tpu.memory_space<vmem>>, vector<1x67x64xbf16>
    tpu.vector_store %arg16[%c0_134, %c0_135, %c512], %72 {strides = array<i32>} : memref<1x80x576xbf16, #tpu.memory_space<vmem>>, vector<1x67x64xbf16>,
    %c0_136 = arith.constant 0 : index
    %c0_137 = arith.constant 0 : index
    %c0_138 = arith.constant 0 : index
    %74 = vector.load %arg16[%c0_136, %c0_137, %c0_138] : memref<1x80x576xbf16, #tpu.memory_space<vmem>>, vector<1x80x576xbf16>
    %75 = vector.shape_cast %74 : vector<1x80x576xbf16> to vector<80x576xbf16>
    %c0_139 = arith.constant 0 : index
    %c0_140 = arith.constant 0 : index
    %76 = vector.load %arg6[%c0_139, %c0_140] : memref<576x64xbf16, #tpu.memory_space<vmem>>, vector<576x64xbf16>
    %cst_141 = arith.constant dense<0.000000e+00> : vector<80x64xf32>
    %77 = tpu.matmul %75, %76, %cst_141 {dimension_numbers = #tpu.dot_dimension_numbers<[1], [0], [0], [1], [0, 0, 1, 1], [], []>} : vector<80x576xbf16>, vector<576x64xbf16>, vector<80x64xf32> -> vector<80x64xf32>
    %c0_142 = arith.constant 0 : index
    %c0_143 = arith.constant 0 : index
    %78 = vector.load %arg7[%c0_142, %c0_143] : memref<1x64xf32, #tpu.memory_space<vmem>>, vector<1x64xf32>
    %79 = vector.broadcast %78 : vector<1x64xf32> to vector<80x64xf32>
    %80 = arith.addf %77, %79 : vector<80x64xf32>
    %cst_144 = arith.constant 0.000000e+00 : f32
    %81 = vector.broadcast %cst_144 : f32 to vector<80x64xf32>
    %82 = arith.maximumf %80, %81 : vector<80x64xf32>
    %83 = vector.shape_cast %82 : vector<80x64xf32> to vector<1x80x64xf32>
    %84 = arith.truncf %83 : vector<1x80x64xf32> to vector<1x80x64xbf16>
    %c0_145 = arith.constant 0 : index
    %c0_146 = arith.constant 0 : index
    %c0_147 = arith.constant 0 : index
    %85 = vector.load %arg17[%c0_145, %c0_146, %c0_147] : memref<1x80x64xbf16, #tpu.memory_space<vmem>>, vector<1x80x64xbf16>
    tpu.vector_store %arg17[%c0_145, %c0_146, %c0_147], %84 {strides = array<i32>} : memref<1x80x64xbf16, #tpu.memory_space<vmem>>, vector<1x80x64xbf16>,
    %c0_148 = arith.constant 0 : index
    %c0_149 = arith.constant 0 : index
    %c0_150 = arith.constant 0 : index
    %86 = vector.load %arg17[%c0_148, %c0_149, %c0_150] : memref<1x80x64xbf16, #tpu.memory_space<vmem>>, vector<1x7x64xbf16>
    %87 = vector.extract_strided_slice %86 {offsets = [0, 0, 0], sizes = [1, 1, 64], strides = [1, 1, 1]} : vector<1x7x64xbf16> to vector<1x1x64xbf16>
    %88 = vector.shape_cast %87 : vector<1x1x64xbf16> to vector<1x64xbf16>
    %c0_151 = arith.constant 0 : index
    %c0_152 = arith.constant 0 : index
    %89 = vector.load %arg18[%c0_151, %c0_152] : memref<1x3136xbf16, #tpu.memory_space<vmem>>, vector<1x64xbf16>
    tpu.vector_store %arg18[%c0_151, %c0_152], %88 {strides = array<i32>} : memref<1x3136xbf16, #tpu.memory_space<vmem>>, vector<1x64xbf16>,
    %90 = vector.extract_strided_slice %86 {offsets = [0, 1, 0], sizes = [1, 1, 64], strides = [1, 1, 1]} : vector<1x7x64xbf16> to vector<1x1x64xbf16>
    %91 = vector.shape_cast %90 : vector<1x1x64xbf16> to vector<1x64xbf16>
    %c0_153 = arith.constant 0 : index
    %c64_154 = arith.constant 64 : index
    %92 = vector.load %arg18[%c0_153, %c64_154] : memref<1x3136xbf16, #tpu.memory_space<vmem>>, vector<1x64xbf16>
    tpu.vector_store %arg18[%c0_153, %c64_154], %91 {strides = array<i32>} : memref<1x3136xbf16, #tpu.memory_space<vmem>>, vector<1x64xbf16>,
    %93 = vector.extract_strided_slice %86 {offsets = [0, 2, 0], sizes = [1, 1, 64], strides = [1, 1, 1]} : vector<1x7x64xbf16> to vector<1x1x64xbf16>
    %94 = vector.shape_cast %93 : vector<1x1x64xbf16> to vector<1x64xbf16>
    %c0_155 = arith.constant 0 : index
    %c128_156 = arith.constant 128 : index
    %95 = vector.load %arg18[%c0_155, %c128_156] : memref<1x3136xbf16, #tpu.memory_space<vmem>>, vector<1x64xbf16>
    tpu.vector_store %arg18[%c0_155, %c128_156], %94 {strides = array<i32>} : memref<1x3136xbf16, #tpu.memory_space<vmem>>, vector<1x64xbf16>,
    %96 = vector.extract_strided_slice %86 {offsets = [0, 3, 0], sizes = [1, 1, 64], strides = [1, 1, 1]} : vector<1x7x64xbf16> to vector<1x1x64xbf16>
    %97 = vector.shape_cast %96 : vector<1x1x64xbf16> to vector<1x64xbf16>
    %c0_157 = arith.constant 0 : index
    %c192_158 = arith.constant 192 : index
    %98 = vector.load %arg18[%c0_157, %c192_158] : memref<1x3136xbf16, #tpu.memory_space<vmem>>, vector<1x64xbf16>
    tpu.vector_store %arg18[%c0_157, %c192_158], %97 {strides = array<i32>} : memref<1x3136xbf16, #tpu.memory_space<vmem>>, vector<1x64xbf16>,
    %99 = vector.extract_strided_slice %86 {offsets = [0, 4, 0], sizes = [1, 1, 64], strides = [1, 1, 1]} : vector<1x7x64xbf16> to vector<1x1x64xbf16>
    %100 = vector.shape_cast %99 : vector<1x1x64xbf16> to vector<1x64xbf16>
    %c0_159 = arith.constant 0 : index
    %c256_160 = arith.constant 256 : index
    %101 = vector.load %arg18[%c0_159, %c256_160] : memref<1x3136xbf16, #tpu.memory_space<vmem>>, vector<1x64xbf16>
    tpu.vector_store %arg18[%c0_159, %c256_160], %100 {strides = array<i32>} : memref<1x3136xbf16, #tpu.memory_space<vmem>>, vector<1x64xbf16>,
    %102 = vector.extract_strided_slice %86 {offsets = [0, 5, 0], sizes = [1, 1, 64], strides = [1, 1, 1]} : vector<1x7x64xbf16> to vector<1x1x64xbf16>
    %103 = vector.shape_cast %102 : vector<1x1x64xbf16> to vector<1x64xbf16>
    %c0_161 = arith.constant 0 : index
    %c320_162 = arith.constant 320 : index
    %104 = vector.load %arg18[%c0_161, %c320_162] : memref<1x3136xbf16, #tpu.memory_space<vmem>>, vector<1x64xbf16>
    tpu.vector_store %arg18[%c0_161, %c320_162], %103 {strides = array<i32>} : memref<1x3136xbf16, #tpu.memory_space<vmem>>, vector<1x64xbf16>,
    %105 = vector.extract_strided_slice %86 {offsets = [0, 6, 0], sizes = [1, 1, 64], strides = [1, 1, 1]} : vector<1x7x64xbf16> to vector<1x1x64xbf16>
    %106 = vector.shape_cast %105 : vector<1x1x64xbf16> to vector<1x64xbf16>
    %c0_163 = arith.constant 0 : index
    %c384_164 = arith.constant 384 : index
    %107 = vector.load %arg18[%c0_163, %c384_164] : memref<1x3136xbf16, #tpu.memory_space<vmem>>, vector<1x64xbf16>
    tpu.vector_store %arg18[%c0_163, %c384_164], %106 {strides = array<i32>} : memref<1x3136xbf16, #tpu.memory_space<vmem>>, vector<1x64xbf16>,
    %c0_165 = arith.constant 0 : index
    %c10_166 = arith.constant 10 : index
    %c0_167 = arith.constant 0 : index
    %108 = vector.load %arg17[%c0_165, %c10_166, %c0_167] : memref<1x80x64xbf16, #tpu.memory_space<vmem>>, vector<1x7x64xbf16>
    %109 = vector.extract_strided_slice %108 {offsets = [0, 0, 0], sizes = [1, 1, 64], strides = [1, 1, 1]} : vector<1x7x64xbf16> to vector<1x1x64xbf16>
    %110 = vector.shape_cast %109 : vector<1x1x64xbf16> to vector<1x64xbf16>
    %c0_168 = arith.constant 0 : index
    %c448_169 = arith.constant 448 : index
    %111 = vector.load %arg18[%c0_168, %c448_169] : memref<1x3136xbf16, #tpu.memory_space<vmem>>, vector<1x64xbf16>
    tpu.vector_store %arg18[%c0_168, %c448_169], %110 {strides = array<i32>} : memref<1x3136xbf16, #tpu.memory_space<vmem>>, vector<1x64xbf16>,
    %112 = vector.extract_strided_slice %108 {offsets = [0, 1, 0], sizes = [1, 1, 64], strides = [1, 1, 1]} : vector<1x7x64xbf16> to vector<1x1x64xbf16>
    %113 = vector.shape_cast %112 : vector<1x1x64xbf16> to vector<1x64xbf16>
    %c0_170 = arith.constant 0 : index
    %c512_171 = arith.constant 512 : index
    %114 = vector.load %arg18[%c0_170, %c512_171] : memref<1x3136xbf16, #tpu.memory_space<vmem>>, vector<1x64xbf16>
    tpu.vector_store %arg18[%c0_170, %c512_171], %113 {strides = array<i32>} : memref<1x3136xbf16, #tpu.memory_space<vmem>>, vector<1x64xbf16>,
    %115 = vector.extract_strided_slice %108 {offsets = [0, 2, 0], sizes = [1, 1, 64], strides = [1, 1, 1]} : vector<1x7x64xbf16> to vector<1x1x64xbf16>
    %116 = vector.shape_cast %115 : vector<1x1x64xbf16> to vector<1x64xbf16>
    %c0_172 = arith.constant 0 : index
    %c576 = arith.constant 576 : index
    %117 = vector.load %arg18[%c0_172, %c576] : memref<1x3136xbf16, #tpu.memory_space<vmem>>, vector<1x64xbf16>
    tpu.vector_store %arg18[%c0_172, %c576], %116 {strides = array<i32>} : memref<1x3136xbf16, #tpu.memory_space<vmem>>, vector<1x64xbf16>,
    %118 = vector.extract_strided_slice %108 {offsets = [0, 3, 0], sizes = [1, 1, 64], strides = [1, 1, 1]} : vector<1x7x64xbf16> to vector<1x1x64xbf16>
    %119 = vector.shape_cast %118 : vector<1x1x64xbf16> to vector<1x64xbf16>
    %c0_173 = arith.constant 0 : index
    %c640 = arith.constant 640 : index
    %120 = vector.load %arg18[%c0_173, %c640] : memref<1x3136xbf16, #tpu.memory_space<vmem>>, vector<1x64xbf16>
    tpu.vector_store %arg18[%c0_173, %c640], %119 {strides = array<i32>} : memref<1x3136xbf16, #tpu.memory_space<vmem>>, vector<1x64xbf16>,
    %121 = vector.extract_strided_slice %108 {offsets = [0, 4, 0], sizes = [1, 1, 64], strides = [1, 1, 1]} : vector<1x7x64xbf16> to vector<1x1x64xbf16>
    %122 = vector.shape_cast %121 : vector<1x1x64xbf16> to vector<1x64xbf16>
    %c0_174 = arith.constant 0 : index
    %c704 = arith.constant 704 : index
    %123 = vector.load %arg18[%c0_174, %c704] : memref<1x3136xbf16, #tpu.memory_space<vmem>>, vector<1x64xbf16>
    tpu.vector_store %arg18[%c0_174, %c704], %122 {strides = array<i32>} : memref<1x3136xbf16, #tpu.memory_space<vmem>>, vector<1x64xbf16>,
    %124 = vector.extract_strided_slice %108 {offsets = [0, 5, 0], sizes = [1, 1, 64], strides = [1, 1, 1]} : vector<1x7x64xbf16> to vector<1x1x64xbf16>
    %125 = vector.shape_cast %124 : vector<1x1x64xbf16> to vector<1x64xbf16>
    %c0_175 = arith.constant 0 : index
    %c768 = arith.constant 768 : index
    %126 = vector.load %arg18[%c0_175, %c768] : memref<1x3136xbf16, #tpu.memory_space<vmem>>, vector<1x64xbf16>
    tpu.vector_store %arg18[%c0_175, %c768], %125 {strides = array<i32>} : memref<1x3136xbf16, #tpu.memory_space<vmem>>, vector<1x64xbf16>,
    %127 = vector.extract_strided_slice %108 {offsets = [0, 6, 0], sizes = [1, 1, 64], strides = [1, 1, 1]} : vector<1x7x64xbf16> to vector<1x1x64xbf16>
    %128 = vector.shape_cast %127 : vector<1x1x64xbf16> to vector<1x64xbf16>
    %c0_176 = arith.constant 0 : index
    %c832 = arith.constant 832 : index
    %129 = vector.load %arg18[%c0_176, %c832] : memref<1x3136xbf16, #tpu.memory_space<vmem>>, vector<1x64xbf16>
    tpu.vector_store %arg18[%c0_176, %c832], %128 {strides = array<i32>} : memref<1x3136xbf16, #tpu.memory_space<vmem>>, vector<1x64xbf16>,
    %c0_177 = arith.constant 0 : index
    %c20_178 = arith.constant 20 : index
    %c0_179 = arith.constant 0 : index
    %130 = vector.load %arg17[%c0_177, %c20_178, %c0_179] : memref<1x80x64xbf16, #tpu.memory_space<vmem>>, vector<1x7x64xbf16>
    %131 = vector.extract_strided_slice %130 {offsets = [0, 0, 0], sizes = [1, 1, 64], strides = [1, 1, 1]} : vector<1x7x64xbf16> to vector<1x1x64xbf16>
    %132 = vector.shape_cast %131 : vector<1x1x64xbf16> to vector<1x64xbf16>
    %c0_180 = arith.constant 0 : index
    %c896 = arith.constant 896 : index
    %133 = vector.load %arg18[%c0_180, %c896] : memref<1x3136xbf16, #tpu.memory_space<vmem>>, vector<1x64xbf16>
    tpu.vector_store %arg18[%c0_180, %c896], %132 {strides = array<i32>} : memref<1x3136xbf16, #tpu.memory_space<vmem>>, vector<1x64xbf16>,
    %134 = vector.extract_strided_slice %130 {offsets = [0, 1, 0], sizes = [1, 1, 64], strides = [1, 1, 1]} : vector<1x7x64xbf16> to vector<1x1x64xbf16>
    %135 = vector.shape_cast %134 : vector<1x1x64xbf16> to vector<1x64xbf16>
    %c0_181 = arith.constant 0 : index
    %c960 = arith.constant 960 : index
    %136 = vector.load %arg18[%c0_181, %c960] : memref<1x3136xbf16, #tpu.memory_space<vmem>>, vector<1x64xbf16>
    tpu.vector_store %arg18[%c0_181, %c960], %135 {strides = array<i32>} : memref<1x3136xbf16, #tpu.memory_space<vmem>>, vector<1x64xbf16>,
    %137 = vector.extract_strided_slice %130 {offsets = [0, 2, 0], sizes = [1, 1, 64], strides = [1, 1, 1]} : vector<1x7x64xbf16> to vector<1x1x64xbf16>
    %138 = vector.shape_cast %137 : vector<1x1x64xbf16> to vector<1x64xbf16>
    %c0_182 = arith.constant 0 : index
    %c1024 = arith.constant 1024 : index
    %139 = vector.load %arg18[%c0_182, %c1024] : memref<1x3136xbf16, #tpu.memory_space<vmem>>, vector<1x64xbf16>
    tpu.vector_store %arg18[%c0_182, %c1024], %138 {strides = array<i32>} : memref<1x3136xbf16, #tpu.memory_space<vmem>>, vector<1x64xbf16>,
    %140 = vector.extract_strided_slice %130 {offsets = [0, 3, 0], sizes = [1, 1, 64], strides = [1, 1, 1]} : vector<1x7x64xbf16> to vector<1x1x64xbf16>
    %141 = vector.shape_cast %140 : vector<1x1x64xbf16> to vector<1x64xbf16>
    %c0_183 = arith.constant 0 : index
    %c1088 = arith.constant 1088 : index
    %142 = vector.load %arg18[%c0_183, %c1088] : memref<1x3136xbf16, #tpu.memory_space<vmem>>, vector<1x64xbf16>
    tpu.vector_store %arg18[%c0_183, %c1088], %141 {strides = array<i32>} : memref<1x3136xbf16, #tpu.memory_space<vmem>>, vector<1x64xbf16>,
    %143 = vector.extract_strided_slice %130 {offsets = [0, 4, 0], sizes = [1, 1, 64], strides = [1, 1, 1]} : vector<1x7x64xbf16> to vector<1x1x64xbf16>
    %144 = vector.shape_cast %143 : vector<1x1x64xbf16> to vector<1x64xbf16>
    %c0_184 = arith.constant 0 : index
    %c1152 = arith.constant 1152 : index
    %145 = vector.load %arg18[%c0_184, %c1152] : memref<1x3136xbf16, #tpu.memory_space<vmem>>, vector<1x64xbf16>
    tpu.vector_store %arg18[%c0_184, %c1152], %144 {strides = array<i32>} : memref<1x3136xbf16, #tpu.memory_space<vmem>>, vector<1x64xbf16>,
    %146 = vector.extract_strided_slice %130 {offsets = [0, 5, 0], sizes = [1, 1, 64], strides = [1, 1, 1]} : vector<1x7x64xbf16> to vector<1x1x64xbf16>
    %147 = vector.shape_cast %146 : vector<1x1x64xbf16> to vector<1x64xbf16>
    %c0_185 = arith.constant 0 : index
    %c1216 = arith.constant 1216 : index
    %148 = vector.load %arg18[%c0_185, %c1216] : memref<1x3136xbf16, #tpu.memory_space<vmem>>, vector<1x64xbf16>
    tpu.vector_store %arg18[%c0_185, %c1216], %147 {strides = array<i32>} : memref<1x3136xbf16, #tpu.memory_space<vmem>>, vector<1x64xbf16>,
    %149 = vector.extract_strided_slice %130 {offsets = [0, 6, 0], sizes = [1, 1, 64], strides = [1, 1, 1]} : vector<1x7x64xbf16> to vector<1x1x64xbf16>
    %150 = vector.shape_cast %149 : vector<1x1x64xbf16> to vector<1x64xbf16>
    %c0_186 = arith.constant 0 : index
    %c1280 = arith.constant 1280 : index
    %151 = vector.load %arg18[%c0_186, %c1280] : memref<1x3136xbf16, #tpu.memory_space<vmem>>, vector<1x64xbf16>
    tpu.vector_store %arg18[%c0_186, %c1280], %150 {strides = array<i32>} : memref<1x3136xbf16, #tpu.memory_space<vmem>>, vector<1x64xbf16>,
    %c0_187 = arith.constant 0 : index
    %c30 = arith.constant 30 : index
    %c0_188 = arith.constant 0 : index
    %152 = vector.load %arg17[%c0_187, %c30, %c0_188] : memref<1x80x64xbf16, #tpu.memory_space<vmem>>, vector<1x7x64xbf16>
    %153 = vector.extract_strided_slice %152 {offsets = [0, 0, 0], sizes = [1, 1, 64], strides = [1, 1, 1]} : vector<1x7x64xbf16> to vector<1x1x64xbf16>
    %154 = vector.shape_cast %153 : vector<1x1x64xbf16> to vector<1x64xbf16>
    %c0_189 = arith.constant 0 : index
    %c1344 = arith.constant 1344 : index
    %155 = vector.load %arg18[%c0_189, %c1344] : memref<1x3136xbf16, #tpu.memory_space<vmem>>, vector<1x64xbf16>
    tpu.vector_store %arg18[%c0_189, %c1344], %154 {strides = array<i32>} : memref<1x3136xbf16, #tpu.memory_space<vmem>>, vector<1x64xbf16>,
    %156 = vector.extract_strided_slice %152 {offsets = [0, 1, 0], sizes = [1, 1, 64], strides = [1, 1, 1]} : vector<1x7x64xbf16> to vector<1x1x64xbf16>
    %157 = vector.shape_cast %156 : vector<1x1x64xbf16> to vector<1x64xbf16>
    %c0_190 = arith.constant 0 : index
    %c1408 = arith.constant 1408 : index
    %158 = vector.load %arg18[%c0_190, %c1408] : memref<1x3136xbf16, #tpu.memory_space<vmem>>, vector<1x64xbf16>
    tpu.vector_store %arg18[%c0_190, %c1408], %157 {strides = array<i32>} : memref<1x3136xbf16, #tpu.memory_space<vmem>>, vector<1x64xbf16>,
    %159 = vector.extract_strided_slice %152 {offsets = [0, 2, 0], sizes = [1, 1, 64], strides = [1, 1, 1]} : vector<1x7x64xbf16> to vector<1x1x64xbf16>
    %160 = vector.shape_cast %159 : vector<1x1x64xbf16> to vector<1x64xbf16>
    %c0_191 = arith.constant 0 : index
    %c1472 = arith.constant 1472 : index
    %161 = vector.load %arg18[%c0_191, %c1472] : memref<1x3136xbf16, #tpu.memory_space<vmem>>, vector<1x64xbf16>
    tpu.vector_store %arg18[%c0_191, %c1472], %160 {strides = array<i32>} : memref<1x3136xbf16, #tpu.memory_space<vmem>>, vector<1x64xbf16>,
    %162 = vector.extract_strided_slice %152 {offsets = [0, 3, 0], sizes = [1, 1, 64], strides = [1, 1, 1]} : vector<1x7x64xbf16> to vector<1x1x64xbf16>
    %163 = vector.shape_cast %162 : vector<1x1x64xbf16> to vector<1x64xbf16>
    %c0_192 = arith.constant 0 : index
    %c1536 = arith.constant 1536 : index
    %164 = vector.load %arg18[%c0_192, %c1536] : memref<1x3136xbf16, #tpu.memory_space<vmem>>, vector<1x64xbf16>
    tpu.vector_store %arg18[%c0_192, %c1536], %163 {strides = array<i32>} : memref<1x3136xbf16, #tpu.memory_space<vmem>>, vector<1x64xbf16>,
    %165 = vector.extract_strided_slice %152 {offsets = [0, 4, 0], sizes = [1, 1, 64], strides = [1, 1, 1]} : vector<1x7x64xbf16> to vector<1x1x64xbf16>
    %166 = vector.shape_cast %165 : vector<1x1x64xbf16> to vector<1x64xbf16>
    %c0_193 = arith.constant 0 : index
    %c1600 = arith.constant 1600 : index
    %167 = vector.load %arg18[%c0_193, %c1600] : memref<1x3136xbf16, #tpu.memory_space<vmem>>, vector<1x64xbf16>
    tpu.vector_store %arg18[%c0_193, %c1600], %166 {strides = array<i32>} : memref<1x3136xbf16, #tpu.memory_space<vmem>>, vector<1x64xbf16>,
    %168 = vector.extract_strided_slice %152 {offsets = [0, 5, 0], sizes = [1, 1, 64], strides = [1, 1, 1]} : vector<1x7x64xbf16> to vector<1x1x64xbf16>
    %169 = vector.shape_cast %168 : vector<1x1x64xbf16> to vector<1x64xbf16>
    %c0_194 = arith.constant 0 : index
    %c1664 = arith.constant 1664 : index
    %170 = vector.load %arg18[%c0_194, %c1664] : memref<1x3136xbf16, #tpu.memory_space<vmem>>, vector<1x64xbf16>
    tpu.vector_store %arg18[%c0_194, %c1664], %169 {strides = array<i32>} : memref<1x3136xbf16, #tpu.memory_space<vmem>>, vector<1x64xbf16>,
    %171 = vector.extract_strided_slice %152 {offsets = [0, 6, 0], sizes = [1, 1, 64], strides = [1, 1, 1]} : vector<1x7x64xbf16> to vector<1x1x64xbf16>
    %172 = vector.shape_cast %171 : vector<1x1x64xbf16> to vector<1x64xbf16>
    %c0_195 = arith.constant 0 : index
    %c1728 = arith.constant 1728 : index
    %173 = vector.load %arg18[%c0_195, %c1728] : memref<1x3136xbf16, #tpu.memory_space<vmem>>, vector<1x64xbf16>
    tpu.vector_store %arg18[%c0_195, %c1728], %172 {strides = array<i32>} : memref<1x3136xbf16, #tpu.memory_space<vmem>>, vector<1x64xbf16>,
    %c0_196 = arith.constant 0 : index
    %c40 = arith.constant 40 : index
    %c0_197 = arith.constant 0 : index
    %174 = vector.load %arg17[%c0_196, %c40, %c0_197] : memref<1x80x64xbf16, #tpu.memory_space<vmem>>, vector<1x7x64xbf16>
    %175 = vector.extract_strided_slice %174 {offsets = [0, 0, 0], sizes = [1, 1, 64], strides = [1, 1, 1]} : vector<1x7x64xbf16> to vector<1x1x64xbf16>
    %176 = vector.shape_cast %175 : vector<1x1x64xbf16> to vector<1x64xbf16>
    %c0_198 = arith.constant 0 : index
    %c1792 = arith.constant 1792 : index
    %177 = vector.load %arg18[%c0_198, %c1792] : memref<1x3136xbf16, #tpu.memory_space<vmem>>, vector<1x64xbf16>
    tpu.vector_store %arg18[%c0_198, %c1792], %176 {strides = array<i32>} : memref<1x3136xbf16, #tpu.memory_space<vmem>>, vector<1x64xbf16>,
    %178 = vector.extract_strided_slice %174 {offsets = [0, 1, 0], sizes = [1, 1, 64], strides = [1, 1, 1]} : vector<1x7x64xbf16> to vector<1x1x64xbf16>
    %179 = vector.shape_cast %178 : vector<1x1x64xbf16> to vector<1x64xbf16>
    %c0_199 = arith.constant 0 : index
    %c1856 = arith.constant 1856 : index
    %180 = vector.load %arg18[%c0_199, %c1856] : memref<1x3136xbf16, #tpu.memory_space<vmem>>, vector<1x64xbf16>
    tpu.vector_store %arg18[%c0_199, %c1856], %179 {strides = array<i32>} : memref<1x3136xbf16, #tpu.memory_space<vmem>>, vector<1x64xbf16>,
    %181 = vector.extract_strided_slice %174 {offsets = [0, 2, 0], sizes = [1, 1, 64], strides = [1, 1, 1]} : vector<1x7x64xbf16> to vector<1x1x64xbf16>
    %182 = vector.shape_cast %181 : vector<1x1x64xbf16> to vector<1x64xbf16>
    %c0_200 = arith.constant 0 : index
    %c1920 = arith.constant 1920 : index
    %183 = vector.load %arg18[%c0_200, %c1920] : memref<1x3136xbf16, #tpu.memory_space<vmem>>, vector<1x64xbf16>
    tpu.vector_store %arg18[%c0_200, %c1920], %182 {strides = array<i32>} : memref<1x3136xbf16, #tpu.memory_space<vmem>>, vector<1x64xbf16>,
    %184 = vector.extract_strided_slice %174 {offsets = [0, 3, 0], sizes = [1, 1, 64], strides = [1, 1, 1]} : vector<1x7x64xbf16> to vector<1x1x64xbf16>
    %185 = vector.shape_cast %184 : vector<1x1x64xbf16> to vector<1x64xbf16>
    %c0_201 = arith.constant 0 : index
    %c1984 = arith.constant 1984 : index
    %186 = vector.load %arg18[%c0_201, %c1984] : memref<1x3136xbf16, #tpu.memory_space<vmem>>, vector<1x64xbf16>
    tpu.vector_store %arg18[%c0_201, %c1984], %185 {strides = array<i32>} : memref<1x3136xbf16, #tpu.memory_space<vmem>>, vector<1x64xbf16>,
    %187 = vector.extract_strided_slice %174 {offsets = [0, 4, 0], sizes = [1, 1, 64], strides = [1, 1, 1]} : vector<1x7x64xbf16> to vector<1x1x64xbf16>
    %188 = vector.shape_cast %187 : vector<1x1x64xbf16> to vector<1x64xbf16>
    %c0_202 = arith.constant 0 : index
    %c2048 = arith.constant 2048 : index
    %189 = vector.load %arg18[%c0_202, %c2048] : memref<1x3136xbf16, #tpu.memory_space<vmem>>, vector<1x64xbf16>
    tpu.vector_store %arg18[%c0_202, %c2048], %188 {strides = array<i32>} : memref<1x3136xbf16, #tpu.memory_space<vmem>>, vector<1x64xbf16>,
    %190 = vector.extract_strided_slice %174 {offsets = [0, 5, 0], sizes = [1, 1, 64], strides = [1, 1, 1]} : vector<1x7x64xbf16> to vector<1x1x64xbf16>
    %191 = vector.shape_cast %190 : vector<1x1x64xbf16> to vector<1x64xbf16>
    %c0_203 = arith.constant 0 : index
    %c2112 = arith.constant 2112 : index
    %192 = vector.load %arg18[%c0_203, %c2112] : memref<1x3136xbf16, #tpu.memory_space<vmem>>, vector<1x64xbf16>
    tpu.vector_store %arg18[%c0_203, %c2112], %191 {strides = array<i32>} : memref<1x3136xbf16, #tpu.memory_space<vmem>>, vector<1x64xbf16>,
    %193 = vector.extract_strided_slice %174 {offsets = [0, 6, 0], sizes = [1, 1, 64], strides = [1, 1, 1]} : vector<1x7x64xbf16> to vector<1x1x64xbf16>
    %194 = vector.shape_cast %193 : vector<1x1x64xbf16> to vector<1x64xbf16>
    %c0_204 = arith.constant 0 : index
    %c2176 = arith.constant 2176 : index
    %195 = vector.load %arg18[%c0_204, %c2176] : memref<1x3136xbf16, #tpu.memory_space<vmem>>, vector<1x64xbf16>
    tpu.vector_store %arg18[%c0_204, %c2176], %194 {strides = array<i32>} : memref<1x3136xbf16, #tpu.memory_space<vmem>>, vector<1x64xbf16>,
    %c0_205 = arith.constant 0 : index
    %c50 = arith.constant 50 : index
    %c0_206 = arith.constant 0 : index
    %196 = vector.load %arg17[%c0_205, %c50, %c0_206] : memref<1x80x64xbf16, #tpu.memory_space<vmem>>, vector<1x7x64xbf16>
    %197 = vector.extract_strided_slice %196 {offsets = [0, 0, 0], sizes = [1, 1, 64], strides = [1, 1, 1]} : vector<1x7x64xbf16> to vector<1x1x64xbf16>
    %198 = vector.shape_cast %197 : vector<1x1x64xbf16> to vector<1x64xbf16>
    %c0_207 = arith.constant 0 : index
    %c2240 = arith.constant 2240 : index
    %199 = vector.load %arg18[%c0_207, %c2240] : memref<1x3136xbf16, #tpu.memory_space<vmem>>, vector<1x64xbf16>
    tpu.vector_store %arg18[%c0_207, %c2240], %198 {strides = array<i32>} : memref<1x3136xbf16, #tpu.memory_space<vmem>>, vector<1x64xbf16>,
    %200 = vector.extract_strided_slice %196 {offsets = [0, 1, 0], sizes = [1, 1, 64], strides = [1, 1, 1]} : vector<1x7x64xbf16> to vector<1x1x64xbf16>
    %201 = vector.shape_cast %200 : vector<1x1x64xbf16> to vector<1x64xbf16>
    %c0_208 = arith.constant 0 : index
    %c2304 = arith.constant 2304 : index
    %202 = vector.load %arg18[%c0_208, %c2304] : memref<1x3136xbf16, #tpu.memory_space<vmem>>, vector<1x64xbf16>
    tpu.vector_store %arg18[%c0_208, %c2304], %201 {strides = array<i32>} : memref<1x3136xbf16, #tpu.memory_space<vmem>>, vector<1x64xbf16>,
    %203 = vector.extract_strided_slice %196 {offsets = [0, 2, 0], sizes = [1, 1, 64], strides = [1, 1, 1]} : vector<1x7x64xbf16> to vector<1x1x64xbf16>
    %204 = vector.shape_cast %203 : vector<1x1x64xbf16> to vector<1x64xbf16>
    %c0_209 = arith.constant 0 : index
    %c2368 = arith.constant 2368 : index
    %205 = vector.load %arg18[%c0_209, %c2368] : memref<1x3136xbf16, #tpu.memory_space<vmem>>, vector<1x64xbf16>
    tpu.vector_store %arg18[%c0_209, %c2368], %204 {strides = array<i32>} : memref<1x3136xbf16, #tpu.memory_space<vmem>>, vector<1x64xbf16>,
    %206 = vector.extract_strided_slice %196 {offsets = [0, 3, 0], sizes = [1, 1, 64], strides = [1, 1, 1]} : vector<1x7x64xbf16> to vector<1x1x64xbf16>
    %207 = vector.shape_cast %206 : vector<1x1x64xbf16> to vector<1x64xbf16>
    %c0_210 = arith.constant 0 : index
    %c2432 = arith.constant 2432 : index
    %208 = vector.load %arg18[%c0_210, %c2432] : memref<1x3136xbf16, #tpu.memory_space<vmem>>, vector<1x64xbf16>
    tpu.vector_store %arg18[%c0_210, %c2432], %207 {strides = array<i32>} : memref<1x3136xbf16, #tpu.memory_space<vmem>>, vector<1x64xbf16>,
    %209 = vector.extract_strided_slice %196 {offsets = [0, 4, 0], sizes = [1, 1, 64], strides = [1, 1, 1]} : vector<1x7x64xbf16> to vector<1x1x64xbf16>
    %210 = vector.shape_cast %209 : vector<1x1x64xbf16> to vector<1x64xbf16>
    %c0_211 = arith.constant 0 : index
    %c2496 = arith.constant 2496 : index
    %211 = vector.load %arg18[%c0_211, %c2496] : memref<1x3136xbf16, #tpu.memory_space<vmem>>, vector<1x64xbf16>
    tpu.vector_store %arg18[%c0_211, %c2496], %210 {strides = array<i32>} : memref<1x3136xbf16, #tpu.memory_space<vmem>>, vector<1x64xbf16>,
    %212 = vector.extract_strided_slice %196 {offsets = [0, 5, 0], sizes = [1, 1, 64], strides = [1, 1, 1]} : vector<1x7x64xbf16> to vector<1x1x64xbf16>
    %213 = vector.shape_cast %212 : vector<1x1x64xbf16> to vector<1x64xbf16>
    %c0_212 = arith.constant 0 : index
    %c2560 = arith.constant 2560 : index
    %214 = vector.load %arg18[%c0_212, %c2560] : memref<1x3136xbf16, #tpu.memory_space<vmem>>, vector<1x64xbf16>
    tpu.vector_store %arg18[%c0_212, %c2560], %213 {strides = array<i32>} : memref<1x3136xbf16, #tpu.memory_space<vmem>>, vector<1x64xbf16>,
    %215 = vector.extract_strided_slice %196 {offsets = [0, 6, 0], sizes = [1, 1, 64], strides = [1, 1, 1]} : vector<1x7x64xbf16> to vector<1x1x64xbf16>
    %216 = vector.shape_cast %215 : vector<1x1x64xbf16> to vector<1x64xbf16>
    %c0_213 = arith.constant 0 : index
    %c2624 = arith.constant 2624 : index
    %217 = vector.load %arg18[%c0_213, %c2624] : memref<1x3136xbf16, #tpu.memory_space<vmem>>, vector<1x64xbf16>
    tpu.vector_store %arg18[%c0_213, %c2624], %216 {strides = array<i32>} : memref<1x3136xbf16, #tpu.memory_space<vmem>>, vector<1x64xbf16>,
    %c0_214 = arith.constant 0 : index
    %c60 = arith.constant 60 : index
    %c0_215 = arith.constant 0 : index
    %218 = vector.load %arg17[%c0_214, %c60, %c0_215] : memref<1x80x64xbf16, #tpu.memory_space<vmem>>, vector<1x7x64xbf16>
    %219 = vector.extract_strided_slice %218 {offsets = [0, 0, 0], sizes = [1, 1, 64], strides = [1, 1, 1]} : vector<1x7x64xbf16> to vector<1x1x64xbf16>
    %220 = vector.shape_cast %219 : vector<1x1x64xbf16> to vector<1x64xbf16>
    %c0_216 = arith.constant 0 : index
    %c2688 = arith.constant 2688 : index
    %221 = vector.load %arg18[%c0_216, %c2688] : memref<1x3136xbf16, #tpu.memory_space<vmem>>, vector<1x64xbf16>
    tpu.vector_store %arg18[%c0_216, %c2688], %220 {strides = array<i32>} : memref<1x3136xbf16, #tpu.memory_space<vmem>>, vector<1x64xbf16>,
    %222 = vector.extract_strided_slice %218 {offsets = [0, 1, 0], sizes = [1, 1, 64], strides = [1, 1, 1]} : vector<1x7x64xbf16> to vector<1x1x64xbf16>
    %223 = vector.shape_cast %222 : vector<1x1x64xbf16> to vector<1x64xbf16>
    %c0_217 = arith.constant 0 : index
    %c2752 = arith.constant 2752 : index
    %224 = vector.load %arg18[%c0_217, %c2752] : memref<1x3136xbf16, #tpu.memory_space<vmem>>, vector<1x64xbf16>
    tpu.vector_store %arg18[%c0_217, %c2752], %223 {strides = array<i32>} : memref<1x3136xbf16, #tpu.memory_space<vmem>>, vector<1x64xbf16>,
    %225 = vector.extract_strided_slice %218 {offsets = [0, 2, 0], sizes = [1, 1, 64], strides = [1, 1, 1]} : vector<1x7x64xbf16> to vector<1x1x64xbf16>
    %226 = vector.shape_cast %225 : vector<1x1x64xbf16> to vector<1x64xbf16>
    %c0_218 = arith.constant 0 : index
    %c2816 = arith.constant 2816 : index
    %227 = vector.load %arg18[%c0_218, %c2816] : memref<1x3136xbf16, #tpu.memory_space<vmem>>, vector<1x64xbf16>
    tpu.vector_store %arg18[%c0_218, %c2816], %226 {strides = array<i32>} : memref<1x3136xbf16, #tpu.memory_space<vmem>>, vector<1x64xbf16>,
    %228 = vector.extract_strided_slice %218 {offsets = [0, 3, 0], sizes = [1, 1, 64], strides = [1, 1, 1]} : vector<1x7x64xbf16> to vector<1x1x64xbf16>
    %229 = vector.shape_cast %228 : vector<1x1x64xbf16> to vector<1x64xbf16>
    %c0_219 = arith.constant 0 : index
    %c2880 = arith.constant 2880 : index
    %230 = vector.load %arg18[%c0_219, %c2880] : memref<1x3136xbf16, #tpu.memory_space<vmem>>, vector<1x64xbf16>
    tpu.vector_store %arg18[%c0_219, %c2880], %229 {strides = array<i32>} : memref<1x3136xbf16, #tpu.memory_space<vmem>>, vector<1x64xbf16>,
    %231 = vector.extract_strided_slice %218 {offsets = [0, 4, 0], sizes = [1, 1, 64], strides = [1, 1, 1]} : vector<1x7x64xbf16> to vector<1x1x64xbf16>
    %232 = vector.shape_cast %231 : vector<1x1x64xbf16> to vector<1x64xbf16>
    %c0_220 = arith.constant 0 : index
    %c2944 = arith.constant 2944 : index
    %233 = vector.load %arg18[%c0_220, %c2944] : memref<1x3136xbf16, #tpu.memory_space<vmem>>, vector<1x64xbf16>
    tpu.vector_store %arg18[%c0_220, %c2944], %232 {strides = array<i32>} : memref<1x3136xbf16, #tpu.memory_space<vmem>>, vector<1x64xbf16>,
    %234 = vector.extract_strided_slice %218 {offsets = [0, 5, 0], sizes = [1, 1, 64], strides = [1, 1, 1]} : vector<1x7x64xbf16> to vector<1x1x64xbf16>
    %235 = vector.shape_cast %234 : vector<1x1x64xbf16> to vector<1x64xbf16>
    %c0_221 = arith.constant 0 : index
    %c3008 = arith.constant 3008 : index
    %236 = vector.load %arg18[%c0_221, %c3008] : memref<1x3136xbf16, #tpu.memory_space<vmem>>, vector<1x64xbf16>
    tpu.vector_store %arg18[%c0_221, %c3008], %235 {strides = array<i32>} : memref<1x3136xbf16, #tpu.memory_space<vmem>>, vector<1x64xbf16>,
    %237 = vector.extract_strided_slice %218 {offsets = [0, 6, 0], sizes = [1, 1, 64], strides = [1, 1, 1]} : vector<1x7x64xbf16> to vector<1x1x64xbf16>
    %238 = vector.shape_cast %237 : vector<1x1x64xbf16> to vector<1x64xbf16>
    %c0_222 = arith.constant 0 : index
    %c3072 = arith.constant 3072 : index
    %239 = vector.load %arg18[%c0_222, %c3072] : memref<1x3136xbf16, #tpu.memory_space<vmem>>, vector<1x64xbf16>
    tpu.vector_store %arg18[%c0_222, %c3072], %238 {strides = array<i32>} : memref<1x3136xbf16, #tpu.memory_space<vmem>>, vector<1x64xbf16>,
    %c0_223 = arith.constant 0 : index
    %c0_224 = arith.constant 0 : index
    %240 = vector.load %arg18[%c0_223, %c0_224] : memref<1x3136xbf16, #tpu.memory_space<vmem>>, vector<1x3136xbf16>
    %c0_225 = arith.constant 0 : index
    %c0_226 = arith.constant 0 : index
    %241 = vector.load %arg8[%c0_225, %c0_226] : memref<3136x256xbf16, #tpu.memory_space<vmem>>, vector<3136x256xbf16>
    %cst_227 = arith.constant dense<0.000000e+00> : vector<1x256xf32>
    %242 = tpu.matmul %240, %241, %cst_227 {dimension_numbers = #tpu.dot_dimension_numbers<[1], [0], [0], [1], [0, 0, 1, 1], [], []>} : vector<1x3136xbf16>, vector<3136x256xbf16>, vector<1x256xf32> -> vector<1x256xf32>
    %c0_228 = arith.constant 0 : index
    %c0_229 = arith.constant 0 : index
    %243 = vector.load %arg9[%c0_228, %c0_229] : memref<1x256xf32, #tpu.memory_space<vmem>>, vector<1x256xf32>
    %244 = arith.addf %242, %243 : vector<1x256xf32>
    %cst_230 = arith.constant 0.000000e+00 : f32
    %245 = vector.broadcast %cst_230 : f32 to vector<1x256xf32>
    %246 = arith.maximumf %244, %245 : vector<1x256xf32>
    %247 = arith.truncf %246 : vector<1x256xf32> to vector<1x256xbf16>
    %c0_231 = arith.constant 0 : index
    %c0_232 = arith.constant 0 : index
    %248 = vector.load %arg10[%c0_231, %c0_232] : memref<256x128xbf16, #tpu.memory_space<vmem>>, vector<256x128xbf16>
    %cst_233 = arith.constant dense<0.000000e+00> : vector<1x128xf32>
    %249 = tpu.matmul %247, %248, %cst_233 {dimension_numbers = #tpu.dot_dimension_numbers<[1], [0], [0], [1], [0, 0, 1, 1], [], []>} : vector<1x256xbf16>, vector<256x128xbf16>, vector<1x128xf32> -> vector<1x128xf32>
    %c0_234 = arith.constant 0 : index
    %c0_235 = arith.constant 0 : index
    %250 = vector.load %arg11[%c0_234, %c0_235] : memref<1x128xf32, #tpu.memory_space<vmem>>, vector<1x128xf32>
    %251 = arith.addf %249, %250 : vector<1x128xf32>
    %252 = vector.shape_cast %251 : vector<1x128xf32> to vector<1x1x128xf32>
    %c0_236 = arith.constant 0 : index
    %c0_237 = arith.constant 0 : index
    %c0_238 = arith.constant 0 : index
    %253 = vector.load %arg12[%c0_236, %c0_237, %c0_238] : memref<1x1x128xf32, #tpu.memory_space<vmem>>, vector<1x1x128xf32>
    tpu.vector_store %arg12[%c0_236, %c0_237, %c0_238], %252 {strides = array<i32>} : memref<1x1x128xf32, #tpu.memory_space<vmem>>, vector<1x1x128xf32>,
    return
  }
  func.func @transform_0(%arg0: i32) -> (i32, i32, i32) {
    %c0_i32 = arith.constant 0 : i32
    %c0_i32_0 = arith.constant 0 : i32
    %c0_i32_1 = arith.constant 0 : i32
    return %arg0, %c0_i32, %c0_i32_0 : i32, i32, i32
  }
  func.func @transform_1(%arg0: i32) -> (i32, i32) {
    %c0_i32 = arith.constant 0 : i32
    %c0_i32_0 = arith.constant 0 : i32
    %c0_i32_1 = arith.constant 0 : i32
    return %c0_i32, %c0_i32_0 : i32, i32
  }
  func.func @transform_2(%arg0: i32) -> (i32, i32) {
    %c0_i32 = arith.constant 0 : i32
    %c0_i32_0 = arith.constant 0 : i32
    %c0_i32_1 = arith.constant 0 : i32
    return %c0_i32, %c0_i32_0 : i32, i32
  }
  func.func @transform_3(%arg0: i32) -> (i32, i32) {
    %c0_i32 = arith.constant 0 : i32
    %c0_i32_0 = arith.constant 0 : i32
    %c0_i32_1 = arith.constant 0 : i32
    return %c0_i32, %c0_i32_0 : i32, i32
  }
  func.func @transform_4(%arg0: i32) -> (i32, i32) {
    %c0_i32 = arith.constant 0 : i32
    %c0_i32_0 = arith.constant 0 : i32
    %c0_i32_1 = arith.constant 0 : i32
    return %c0_i32, %c0_i32_0 : i32, i32
  }
  func.func @transform_5(%arg0: i32) -> (i32, i32) {
    %c0_i32 = arith.constant 0 : i32
    %c0_i32_0 = arith.constant 0 : i32
    %c0_i32_1 = arith.constant 0 : i32
    return %c0_i32, %c0_i32_0 : i32, i32
  }
  func.func @transform_6(%arg0: i32) -> (i32, i32) {
    %c0_i32 = arith.constant 0 : i32
    %c0_i32_0 = arith.constant 0 : i32
    %c0_i32_1 = arith.constant 0 : i32
    return %c0_i32, %c0_i32_0 : i32, i32
  }
  func.func @transform_7(%arg0: i32) -> (i32, i32) {
    %c0_i32 = arith.constant 0 : i32
    %c0_i32_0 = arith.constant 0 : i32
    %c0_i32_1 = arith.constant 0 : i32
    return %c0_i32, %c0_i32_0 : i32, i32
  }
  func.func @transform_8(%arg0: i32) -> (i32, i32) {
    %c0_i32 = arith.constant 0 : i32
    %c0_i32_0 = arith.constant 0 : i32
    %c0_i32_1 = arith.constant 0 : i32
    return %c0_i32, %c0_i32_0 : i32, i32
  }
  func.func @transform_9(%arg0: i32) -> (i32, i32) {
    %c0_i32 = arith.constant 0 : i32
    %c0_i32_0 = arith.constant 0 : i32
    %c0_i32_1 = arith.constant 0 : i32
    return %c0_i32, %c0_i32_0 : i32, i32
  }
  func.func @transform_10(%arg0: i32) -> (i32, i32) {
    %c0_i32 = arith.constant 0 : i32
    %c0_i32_0 = arith.constant 0 : i32
    %c0_i32_1 = arith.constant 0 : i32
    return %c0_i32, %c0_i32_0 : i32, i32
  }
  func.func @transform_11(%arg0: i32) -> (i32, i32, i32) {
    %c0_i32 = arith.constant 0 : i32
    %c0_i32_0 = arith.constant 0 : i32
    %c0_i32_1 = arith.constant 0 : i32
    return %arg0, %c0_i32, %c0_i32_0 : i32, i32, i32
  }
}

</mosaic_0001>

<bundles_post_ra>
// kernel: _lambda_.1
= control target key start
LH: loop header
LB: loop body
LE: loop exit
PB: predicated region body
PF: predicated region fallthrough
CT: control target
= control target key end

     0   :  { %s12260_s0 = inlined_call_operand.vmem [shape: bf16[2,400,64], index: 0, kind: input, shape index: {}]   ;;  %s12261_s1 = inlined_call_operand.vmem [shape: bf16[64,32], index: 1, kind: input, shape index: {}]   ;;  %s12262_s2 = inlined_call_operand.vmem [shape: f32[1,32], index: 2, kind: input, shape index: {}]   ;;  %s12263_s3 = inlined_call_operand.vmem [shape: bf16[512,64], index: 3, kind: input, shape index: {}]   ;;  %s12264_s4 = inlined_call_operand.vmem [shape: f32[1,64], index: 4, kind: input, shape index: {}]   ;;  %s12265_s5 = inlined_call_operand.vmem [shape: bf16[576,64], index: 5, kind: input, shape index: {}]   ;;  %s12266_s6 = inlined_call_operand.vmem [shape: f32[1,64], index: 6, kind: input, shape index: {}]   ;;  %s12267_s7 = inlined_call_operand.vmem [shape: bf16[3136,256], index: 7, kind: input, shape index: {}]   ;;  %s12268_s8 = inlined_call_operand.vmem [shape: f32[1,256], index: 8, kind: input, shape index: {}]   ;;  %s12269_s9 = inlined_call_operand.vmem [shape: bf16[256,128], index: 9, kind: input, shape index: {}]   ;;  %s12270_s10 = inlined_call_operand.vmem [shape: f32[1,128], index: 10, kind: input, shape index: {}]   ;;  %s12271_s11 = inlined_call_operand.hbm [shape: f32[2,1,128], index: 11, kind: output, shape index: {}]  }
   0x1   :  { %12280 = sst [smem:[#allocation11_spill]] %s12260_s0 }
   0x2   :  { %16 = vsyncpa [#allocation9], 0 }
   0x3   :  { %18 = vsyncpa [#allocation9 + $0x1], 0  ;;  %s9379_s17 = smov 0   ;;  %s9381_s18 = smov 0  }
   0x4   :  { %s9383_s19 = smov 0   ;;  %s9385_s20 = smov 0  }
   0x5 LB: > { %s9400_s21 = sadd.s32 4294967295, %s9309_s20   ;;  %s7480_s22 = sadd.s32 4294967294, %s9309_s20   ;;  %s9309_s20 = sphi %s9385_s20, %s12319_s20   ;;  %s9305_s19 = sphi %s9383_s19, %s12318_s19   ;;  %s9301_s18 = sphi %s9381_s18, %s12317_s18   ;;  %s9297_s17 = sphi %s9379_s17, %s12316_s17  }
   0x6   : > { %s9404_s23 = sadd.s32 1, %s9309_s20   ;;  %s267_s24 = sadd.s32 1, %s9305_s19 }
   0x7   : > { %s264_s25 = ssub.s32 %s9309_s20, %s9404_s23  ;;  %p277_p0 = scmp.ne.s32.totalorder %s9305_s19, %s9301_s18 }
   0x8   : > { %p265_p1 = scmp.eq.s32.totalorder %s264_s25, 0  ;;  %p278_p2 = scmp.eq.s32.totalorder %s9400_s21, 1 }
   0x9   : > { %p283_p3 = scmp.ne.s32.totalorder %s9301_s18, %s9297_s17  ;;  %p284_p4 = scmp.eq.s32.totalorder %s7480_s22, 1 }
   0xa   : > { %s9415_s26 = scalar_select %p265_p1, %s9305_s19, %s267_s24  }
   0xb   : > { %p9417_p5 = por %p278_p2, %p277_p0  ;;  %p9421_p6 = por %p284_p4, %p283_p3 }
   0xc   : > { %p7483_p7 = scmp.ge.s32.totalorder %s9309_s20, 1  ;;  %p340_p8 = scmp.lt.s32.totalorder %s9309_s20, 3 }
   0xe   : > { %p341_p9 = pnand %p7483_p7, %p340_p8 }
   0xf   : > { %v8536_v0 = vld [vmem:[%s12261_s1] sm:$0xff] (!%p341_p9)   ;;  %v9311_v1 = vmov (!%p341_p9), 0.0   ;;  %v8537_v2 = vld [vmem:[%s12261_s1 + $0x8] sm:$0xff] (!%p341_p9)   ;;  %vm12273_vm0 = vmmov (!%p341_p9), 0   ;;  %p379_p10 = scmp.lt.s32.totalorder (!%p341_p9), %s9400_s21, 1  ;;  %v8538_v3 = vld [vmem:[%s12261_s1 + $0x10] sm:$0xff] (!%p341_p9)  }
  0x10   : > { %344 = sbr.rel (%p341_p9) target bundleno = 2428 (0x97c), region = 64  ;;  %8307 = vmatprep.subr.bf16.mxu1 (!%p341_p9), %v9311_v1  ;;  %8415 = vmatprep.subr.bf16.mxu0 (!%p341_p9), %v9311_v1  ;;  %s12283_s0 = sld [smem:[#allocation11_spill]] (!%p341_p9)  ;;  %v8539_v4 = vld [vmem:[%s12261_s1 + $0x18] sm:$0xff] (!%p341_p9)   ;;  %vm599_vm1 = vcmask (!%p341_p9), 523264   ;;  %v8565_v30 = vld [vmem:[%s12263_s3 + $0x40] sm:$0xff] (!%p341_p9)   ;;  %vm983_vm2 = vcmask (!%p341_p9), 261120  }
  0x11   : > { %8308 = vmatpush3.bf16.msra.mxu1 (!%p341_p9), %v8536_v0  ;;  %8315 = vmatprep.mubr.msk.bf16.mxu1 (!%p341_p9), %vm12273_vm0, %v9311_v1  ;;  %v8566_v31 = vld [vmem:[%s12263_s3] sm:$0xff] (!%p341_p9)   ;;  %v8567_v55 = vld [vmem:[%s12263_s3 + $0x48] sm:$0xff] (!%p341_p9)   ;;  %vm1553_vm3 = vcmask (!%p341_p9), 1042432   ;;  %vm1085_vm4 = vsmask.f32 (!%p341_p9), 7424  ;;  %s12278_s13 = smov (!%p341_p9), 64  }
  0x12   : > { %8309 = vmatprep.subr.bf16.mxu1 (!%p341_p9), %v9311_v1  ;;  %8423 = vmatprep.mubr.msk.bf16.mxu0 (!%p341_p9), %vm12273_vm0, %v9311_v1  ;;  %v9562_v32 = vld [vmem:[%s12262_s2] ss:$0 sm:$0xff] (!%p341_p9)  ;;  %v8568_v60 = vld [vmem:[%s12263_s3 + $0x8] sm:$0xff] (!%p341_p9)   ;;  %vm1642_vm5 = vsmask.f32 (!%p341_p9), 2304  ;;  %vm1020_vm6 = vcmask (!%p341_p9), 258048  }
  0x13   : > { %vm1021_vm7 = vsmask.f32 (!%p341_p9), 4352  ;;  %vm12275_vm9 = vcmask (!%p341_p9), 1045504   ;;  %s9314_s12 = smov (!%p341_p9), 32   ;;  %vm12272_vm10 = vsmask.f32 (!%p341_p9), 5376 }
  0x14   : > { %vm9628_vm8 = vmand (!%p341_p9), %vm1020_vm6, %vm1021_vm7  ;;  %s9315_s14 = smov (!%p341_p9), 96   ;;  %vm1595_vm11 = vcmask (!%p341_p9), 1040384   ;;  %vm12277_vm12 = vsmask.f32 (!%p341_p9), 256  ;;  %vm1265_vm13 = vcmask (!%p341_p9), 1043456   ;;  %vm1829_vm15 = vcmask (!%p341_p9), 1046528  }
  0x15   : > { %8310 = vmatpush3.bf16.msra.mxu1 (!%p341_p9), %v8537_v2  ;;  %vm1354_vm14 = vsmask.f32 (!%p341_p9), 3328  ;;  %vm1911_vm6 = vsmask.f32 (!%p341_p9), 6400  ;;  %s377_s24 = sand.u32 (!%p341_p9), 1, %s9301_s18   ;;  %s8048_s30 = sshll.u32 (!%p341_p9), %s9400_s21, 4 }
  0x16   : > { %8311 = vmatprep.subr.bf16.mxu1 (!%p341_p9), %v9311_v1  ;;  %s12218_s15 = scalar_lea.hbm (!%p341_p9), %s12271_s11, %s8048_s30 }
  0x17   : > { %s380_s16 = scalar_select %p379_p10, %s9400_s21, 1 }
  0x18   : > { %s9318_s21 = smov [#allocation8]  }
  0x19   : > { %s8489_s22 = smul.u32 200, %s380_s16  ;;  %8312 = vmatpush3.bf16.msra.mxu1 %v8538_v3  ;;  %s7413_s16 = scalar_lea.sflag [#allocation9], %s377_s24 }
  0x1a   : > { %8313 = vmatprep.subr.bf16.mxu1 %v9311_v1  ;;  %s9251_s25 = sshll.u32 %s9318_s21, 4  ;;  %s9252_s25 = int_to_ptr.vmem [resolvable:$false] %s9251_s25 }
  0x1b   : > { %s9449_s29 = scalar_lea.vmem %s12283_s0, %s8489_s22  ;;  %s378_s0 = scalar_lea.vmem [#allocation8], %s377_s24 }
  0x1c   : > { %v8540_v5 = vld [vmem:[%s9449_s29] sm:$0xff]   ;;  %v8541_v6 = vld [vmem:[%s9449_s29 + $0x8] sm:$0xff]   ;;  %v8542_v7 = vld [vmem:[%s9449_s29 + $0x10] sm:$0xff]  }
  0x1d   : > { %8314 = vmatpush3.bf16.msra.mxu1 %v8539_v4  ;;  %v8543_v8 = vld [vmem:[%s9449_s29 + $0x18] sm:$0xff]   ;;  %v8544_v9 = vld [vmem:[%s9449_s29 + $0x20] sm:$0xff]   ;;  %v8545_v10 = vld [vmem:[%s9449_s29 + $0x28] sm:$0xff]  }
  0x1e   : > { %v8546_v11 = vld [vmem:[%s9449_s29 + $0x30] sm:$0xff]   ;;  %v8547_v12 = vld [vmem:[%s9449_s29 + $0x38] sm:$0xff]   ;;  %v8548_v13 = vld [vmem:[%s9449_s29 + $0x40] sm:$0xff]   ;;  %8080 = vmatprep.subr.bf16.mxu1 %v8565_v30 }
  0x1f   : > { %v8549_v14 = vld [vmem:[%s9449_s29 + $0x48] sm:$0xff]   ;;  %v8550_v15 = vld [vmem:[%s9449_s29 + $0x50] sm:$0xff]   ;;  %v8551_v16 = vld [vmem:[%s9449_s29 + $0x58] sm:$0xff]  }
  0x20   : > { %8316 = vmatmul.mubr.msk.bf16.vlgmr.msra.gmra.mrb[0].mxu1 %vm599_vm1, %v8540_v5  ;;  %v8552_v17 = vld [vmem:[%s9449_s29 + $0x60] sm:$0xff]   ;;  %v8553_v18 = vld [vmem:[%s9449_s29 + $0x68] sm:$0xff]   ;;  %v8554_v19 = vld [vmem:[%s9449_s29 + $0x70] sm:$0xff]  }
  0x21   : > { %8319 = vmatprep.mubr.msk.bf16.mxu1 %vm12273_vm0, %v9311_v1  ;;  %v8555_v20 = vld [vmem:[%s9449_s29 + $0x78] sm:$0xff]   ;;  %v8556_v21 = vld [vmem:[%s9449_s29 + $0x80] sm:$0xff]   ;;  %v8557_v22 = vld [vmem:[%s9449_s29 + $0x88] sm:$0xff]   ;;  %8081 = vmatpush3.bf16.msra.mxu1 %v8566_v31 }
  0x22   : > { %v8558_v23 = vld [vmem:[%s9449_s29 + $0x90] sm:$0xff]   ;;  %v8559_v24 = vld [vmem:[%s9449_s29 + $0x98] sm:$0xff]   ;;  %v8560_v25 = vld [vmem:[%s9449_s29 + $0xa0] sm:$0xff]   ;;  %8082 = vmatprep.subr.bf16.mxu1 %v8567_v55 }
  0x23   : > { %v8561_v26 = vld [vmem:[%s9449_s29 + $0xa8] sm:$0xff]   ;;  %v8562_v27 = vld [vmem:[%s9449_s29 + $0xb0] sm:$0xff]   ;;  %v8563_v28 = vld [vmem:[%s9449_s29 + $0xb8] sm:$0xff]  }
  0x24   : > { %v8564_v29 = vld [vmem:[%s9449_s29 + $0xc0] sm:$0xff]   ;;  %s9253_s29 = scalar_lea.vmem %s9252_s25, 32 }
  0x25   : > { %8083 = vmatpush3.bf16.msra.mxu1 %v8568_v60 }
  0x28   : > { %8320 = vmatmul.mubr.msk.bf16.gmra.mrb[4].mxu1 %vm599_vm1, %v8541_v6 }
  0x29   : > { %8323 = vmatprep.mubr.msk.bf16.mxu1 %vm12273_vm0, %v9311_v1 }
  0x30   : > { %8324 = vmatmul.mubr.msk.bf16.gmra.mrb[8].mxu1 %vm599_vm1, %v8542_v7 }
  0x31   : > { %8327 = vmatprep.mubr.msk.bf16.mxu1 %vm12273_vm0, %v9311_v1 }
  0x38   : > { %8328 = vmatmul.mubr.msk.bf16.gmra.mrb[12].mxu1 %vm599_vm1, %v8543_v8 }
  0x39   : > { %8331 = vmatprep.mubr.msk.bf16.mxu1 %vm12273_vm0, %v9311_v1 }
  0x40   : > { %8332 = vmatmul.mubr.msk.bf16.gmra.mrb[16].mxu1 %vm599_vm1, %v8544_v9 }
  0x41   : > { %8335 = vmatprep.mubr.msk.bf16.mxu1 %vm12273_vm0, %v9311_v1 }
  0x48   : > { %8336 = vmatmul.mubr.msk.bf16.gmra.mrb[20].mxu1 %vm599_vm1, %v8545_v10 }
  0x49   : > { %8339 = vmatprep.mubr.msk.bf16.mxu1 %vm12273_vm0, %v9311_v1 }
  0x50   : > { %8340 = vmatmul.mubr.msk.bf16.gmra.mrb[24].mxu1 %vm599_vm1, %v8546_v11 }
  0x51   : > { %8343 = vmatprep.mubr.msk.bf16.mxu1 %vm12273_vm0, %v9311_v1 }
  0x58   : > { %8344 = vmatmul.mubr.msk.bf16.gmra.mrb[28].mxu1 %vm599_vm1, %v8547_v12 }
  0x59   : > { %8347 = vmatprep.mubr.msk.bf16.mxu1 %vm12273_vm0, %v9311_v1 }
  0x60   : > { %8348 = vmatmul.mubr.msk.bf16.gmra.mrb[32].mxu1 %vm599_vm1, %v8548_v13 }
  0x61   : > { %8351 = vmatprep.mubr.msk.bf16.mxu1 %vm12273_vm0, %v9311_v1 }
  0x68   : > { %8352 = vmatmul.mubr.msk.bf16.gmra.mrb[36].mxu1 %vm599_vm1, %v8549_v14 }
  0x69   : > { %8355 = vmatprep.mubr.msk.bf16.mxu1 %vm12273_vm0, %v9311_v1 }
  0x70   : > { %8356 = vmatmul.mubr.msk.bf16.gmra.mrb[40].mxu1 %vm599_vm1, %v8550_v15 }
  0x71   : > { %8359 = vmatprep.mubr.msk.bf16.mxu1 %vm12273_vm0, %v9311_v1 }
  0x78   : > { %8360 = vmatmul.mubr.msk.bf16.gmra.mrb[44].mxu1 %vm599_vm1, %v8551_v16 }
  0x79   : > { %8363 = vmatprep.mubr.msk.bf16.mxu1 %vm12273_vm0, %v9311_v1 }
  0x80   : > { %8364 = vmatmul.mubr.msk.bf16.gmra.mrb[48].mxu1 %vm599_vm1, %v8552_v17 }
  0x81   : > { %8367 = vmatprep.mubr.msk.bf16.mxu1 %vm12273_vm0, %v9311_v1 }
  0x88   : > { %8368 = vmatmul.mubr.msk.bf16.gmra.mrb[52].mxu1 %vm599_vm1, %v8553_v18 }
  0x89   : > { %8371 = vmatprep.mubr.msk.bf16.mxu1 %vm12273_vm0, %v9311_v1 }
  0x90   : > { %8372 = vmatmul.mubr.msk.bf16.gmra.mrb[56].mxu1 %vm599_vm1, %v8554_v19 }
  0x91   : > { %8375 = vmatprep.mubr.msk.bf16.mxu1 %vm12273_vm0, %v9311_v1 }
  0x98   : > { %8376 = vmatmul.mubr.msk.bf16.gmra.mrb[60].mxu1 %vm599_vm1, %v8555_v20 }
  0x99   : > { %8379 = vmatprep.mubr.msk.bf16.mxu1 %vm12273_vm0, %v9311_v1 }
  0xa0   : > { %8380 = vmatmul.mubr.msk.bf16.gmra.mrb[64].mxu1 %vm599_vm1, %v8556_v21 }
  0xa1   : > { %8383 = vmatprep.mubr.msk.bf16.mxu1 %vm12273_vm0, %v9311_v1 }
  0xa8   : > { %8384 = vmatmul.mubr.msk.bf16.gmra.mrb[68].mxu1 %vm599_vm1, %v8557_v22 }
  0xa9   : > { %8387 = vmatprep.mubr.msk.bf16.mxu1 %vm12273_vm0, %v9311_v1 }
  0xb0   : > { %8388 = vmatmul.mubr.msk.bf16.gmra.mrb[72].mxu1 %vm599_vm1, %v8558_v23 }
  0xb1   : > { %8391 = vmatprep.mubr.msk.bf16.mxu1 %vm12273_vm0, %v9311_v1 }
  0xb8   : > { %8392 = vmatmul.mubr.msk.bf16.gmra.mrb[76].mxu1 %vm599_vm1, %v8559_v24 }
  0xb9   : > { %8395 = vmatprep.mubr.msk.bf16.mxu1 %vm12273_vm0, %v9311_v1 }
  0xc0   : > { %8396 = vmatmul.mubr.msk.bf16.gmra.mrb[80].mxu1 %vm599_vm1, %v8560_v25 }
  0xc1   : > { %8399 = vmatprep.mubr.msk.bf16.mxu1 %vm12273_vm0, %v9311_v1 }
  0xc8   : > { %8400 = vmatmul.mubr.msk.bf16.gmra.mrb[84].mxu1 %vm599_vm1, %v8561_v26 }
  0xc9   : > { %8403 = vmatprep.mubr.msk.bf16.mxu1 %vm12273_vm0, %v9311_v1 }
  0xd0   : > { %8404 = vmatmul.mubr.msk.bf16.gmra.mrb[88].mxu1 %vm599_vm1, %v8562_v27 }
  0xd1   : > { %8407 = vmatprep.mubr.msk.bf16.mxu1 %vm12273_vm0, %v9311_v1 }
  0xd8   : > { %8408 = vmatmul.mubr.msk.bf16.gmra.mrb[92].mxu1 %vm599_vm1, %v8563_v28 }
  0xd9   : > { %8411 = vmatprep.mubr.msk.bf16.mxu1 %vm12273_vm0, %v9311_v1  ;;  %vm1151_vm0 = vcmask 785920  }
  0xe0   : > { %8412 = vmatmul.mubr.msk.bf16.gmra.mrb[96].mxu1 %vm599_vm1, %v8564_v29 }
  0xf3   : > { %v709_v33 = vpop.f32.mrb[0].mxu1 }
  0xf4   : > { %v710_v34 = vadd.f32 %v9562_v32, %v709_v33  ;;  %v8317_v35 = vpop.f32.mrb[1].mxu1 }
  0xf5   : > { %v712_v36 = vpop.f32.mrb[2].mxu1 }
  0xf6   : > { %v713_v37 = vadd.f32 %v9562_v32, %v712_v36  ;;  %v8318_v38 = vpop.f32.mrb[3].mxu1  ;;  %v908_v39 = vmax.f32 %v710_v34, 0.0 }
  0xf8   : > { %v909_v40 = vmax.f32 %v713_v37, 0.0 }
  0xfa   : > { %v958_v41 = vpack.c.bf16 %v909_v40, %v908_v39 }
  0xfb   : > { %v717_v42 = vpop.f32.mrb[4].mxu1 }
  0xfc   : > { %984 = vst.msk [vmem:[#allocation2] sm:$0xff] %vm983_vm2, %v958_v41  ;;  %v718_v43 = vadd.f32 %v9562_v32, %v717_v42  ;;  %v8321_v44 = vpop.f32.mrb[5].mxu1 }
  0xfd   : > { %v720_v45 = vpop.f32.mrb[6].mxu1 }
  0xfe   : > { %v721_v46 = vadd.f32 %v9562_v32, %v720_v45  ;;  %v8322_v47 = vpop.f32.mrb[7].mxu1  ;;  %v910_v48 = vmax.f32 %v718_v43, 0.0 }
 0x100   : > { %v911_v49 = vmax.f32 %v721_v46, 0.0 }
 0x102   : > { %v959_v50 = vpack.c.bf16 %v911_v49, %v910_v48 }
 0x103   : > { %v725_v51 = vpop.f32.mrb[8].mxu1  ;;  %v1079_v52 = vld [vmem:[#allocation2] sm:$0xff] }
 0x104   : > { %985 = vst.msk [vmem:[#allocation2 + $0x8] sm:$0xff] %vm983_vm2, %v959_v50  ;;  %v726_v53 = vadd.f32 %v9562_v32, %v725_v51  ;;  %v8325_v54 = vpop.f32.mrb[9].mxu1  ;;  %1015 = vst.msk [vmem:[#allocation3] sm:$0xff] %vm983_vm2, %v1079_v52  ;;  %v1089_v59 = vshll.u32 %v1079_v52, 16  ;;  %v1539_v2 = vld [vmem:[#allocation2] sm:$0xe0] }
 0x105   : > { %v728_v56 = vpop.f32.mrb[10].mxu1  ;;  %v1087_v5 = vshrl.u32 %v1079_v52, 16  ;;  %v1554_v13 = vrot.slane %v1539_v2, 5 }
 0x106   : > { %v729_v57 = vadd.f32 %v9562_v32, %v728_v56  ;;  %v8326_v58 = vpop.f32.mrb[11].mxu1  ;;  %v912_v61 = vmax.f32 %v726_v53, 0.0  ;;  %v1091_v0 = vrot.slane %v1089_v59, 1 }
 0x108   : > { %v913_v62 = vmax.f32 %v729_v57, 0.0  ;;  %v1092_v16 = vor.u32 %v1091_v0, %v1087_v5 }
 0x10a   : > { %v960_v63 = vpack.c.bf16 %v913_v62, %v912_v61  ;;  %v8569_v62 = vld [vmem:[%s12263_s3 + $0x50] sm:$0xff]  }
 0x10b   : > { %v733_v3 = vpop.f32.mrb[12].mxu1  ;;  %v1080_v4 = vld [vmem:[#allocation2 + $0x8] sm:$0xff]  ;;  %8084 = vmatprep.subr.bf16.mxu1 %v8569_v62 }
 0x10c   : > { %v1010_v6 = vld [vmem:[#allocation2 + $0x8] sm:$0xff]  ;;  %986 = vst.msk [vmem:[#allocation2 + $0x10] sm:$0xff] %vm983_vm2, %v960_v63  ;;  %v734_v7 = vadd.f32 %v9562_v32, %v733_v3  ;;  %v8329_v8 = vpop.f32.mrb[13].mxu1  ;;  %v1094_v9 = vshll.u32 %v1080_v4, 16  ;;  %v1098_v10 = vshrl.u32 %v1080_v4, 16 }
 0x10d   : > { %1016 = vst.msk [vmem:[#allocation3 + $0x20] sm:$0xff] %vm983_vm2, %v1010_v6  ;;  %v1555_v11 = vrot.slane %v1010_v6, 5  ;;  %v736_v12 = vpop.f32.mrb[14].mxu1 }
 0x10e   : > { %v737_v14 = vadd.f32 %v9562_v32, %v736_v12  ;;  %v8330_v15 = vpop.f32.mrb[15].mxu1  ;;  %v1096_v17 = vrot.slane %v1094_v9, 1  ;;  %v1654_v18 = vrot.slane %v1098_v10, 5  ;;  %v1657_v19 = vrot.slane %v1094_v9, 6 }
 0x10f   : > { %v1556_v20 = vsel %vm1553_vm3, %v1554_v13, %v1555_v11  ;;  %v914_v21 = vmax.f32 %v734_v7, 0.0  ;;  %v8570_v15 = vld [vmem:[%s12263_s3 + $0x10] sm:$0xff]  }
 0x110   : > { %v915_v22 = vmax.f32 %v737_v14, 0.0  ;;  %v1097_v23 = vsel %vm1085_vm4, %v1092_v16, %v1096_v17  ;;  %1573 = vst.msk [vmem:[#allocation3 + $0x10] sm:$0xff] %vm983_vm2, %v1556_v20  ;;  %v9587_v24 = vor.u32 %v1657_v19, %v1654_v18  ;;  %v1100_v38 = vor.u32 %v1098_v10, %v1096_v17  ;;  %8085 = vmatpush3.bf16.msra.mxu1 %v8570_v15 }
 0x111   : > { %1133 = vrot.lane.b32.xlu1 %v1097_v23, %s12278_s13 }
 0x112   : > { %v961_v25 = vpack.c.bf16 %v915_v22, %v914_v21 }
 0x113   : > { %v741_v26 = vpop.f32.mrb[16].mxu1  ;;  %v1081_v27 = vld [vmem:[#allocation2 + $0x10] sm:$0xff] }
 0x114   : > { %v1011_v28 = vld [vmem:[#allocation2 + $0x10] sm:$0xff]  ;;  %987 = vst.msk [vmem:[#allocation2 + $0x18] sm:$0xff] %vm983_vm2, %v961_v25  ;;  %v742_v29 = vadd.f32 %v9562_v32, %v741_v26  ;;  %v8333_v30 = vpop.f32.mrb[17].mxu1  ;;  %v1102_v31 = vshll.u32 %v1081_v27, 16  ;;  %v1106_v33 = vshrl.u32 %v1081_v27, 16 }
 0x115   : > { %1017 = vst.msk [vmem:[#allocation3 + $0x40] sm:$0xff] %vm983_vm2, %v1011_v28  ;;  %v1557_v34 = vrot.slane %v1011_v28, 5  ;;  %v744_v35 = vpop.f32.mrb[18].mxu1 }
 0x116   : > { %v745_v36 = vadd.f32 %v9562_v32, %v744_v35  ;;  %v8334_v37 = vpop.f32.mrb[19].mxu1  ;;  %v1104_v39 = vrot.slane %v1102_v31, 1  ;;  %v1663_v40 = vrot.slane %v1106_v33, 5  ;;  %v1666_v41 = vrot.slane %v1102_v31, 6 }
 0x117   : > { %v1558_v42 = vsel %vm1553_vm3, %v1555_v11, %v1557_v34  ;;  %v916_v43 = vmax.f32 %v742_v29, 0.0 }
 0x118   : > { %v917_v44 = vmax.f32 %v745_v36, 0.0  ;;  %v1105_v45 = vsel %vm1085_vm4, %v1100_v38, %v1104_v39  ;;  %1574 = vst.msk [vmem:[#allocation3 + $0x30] sm:$0xff] %vm983_vm2, %v1558_v42  ;;  %v1667_v46 = vor.u32 %v1666_v41, %v1663_v40  ;;  %v1108_v60 = vor.u32 %v1106_v33, %v1104_v39  ;;  %v1023_v36 = vld [vmem:[#allocation3 + $0xa0] sm:$0x1f] }
 0x119   : > { %1135 = vrot.lane.b32.xlu1 %v1105_v45, %s12278_s13 }
 0x11a   : > { %v962_v47 = vpack.c.bf16 %v917_v44, %v916_v43  ;;  %v9599_v50 = vsel %vm1642_vm5, %v9587_v24, %v1667_v46 }
 0x11b   : > { %v749_v48 = vpop.f32.mrb[20].mxu1  ;;  %v1082_v49 = vld [vmem:[#allocation2 + $0x18] sm:$0xff] }
 0x11c   : > { %v1012_v51 = vld [vmem:[#allocation2 + $0x18] sm:$0xff]  ;;  %988 = vst.msk [vmem:[#allocation2 + $0x20] sm:$0xff] %vm983_vm2, %v962_v47  ;;  %v750_v52 = vadd.f32 %v9562_v32, %v749_v48  ;;  %v8337_v53 = vpop.f32.mrb[21].mxu1  ;;  %v1110_v54 = vshll.u32 %v1082_v49, 16  ;;  %v1114_v55 = vshrl.u32 %v1082_v49, 16 }
 0x11d   : > { %1018 = vst.msk [vmem:[#allocation3 + $0x60] sm:$0xff] %vm983_vm2, %v1012_v51  ;;  %v1559_v56 = vrot.slane %v1012_v51, 5  ;;  %v752_v57 = vpop.f32.mrb[22].mxu1 }
 0x11e   : > { %v753_v58 = vadd.f32 %v9562_v32, %v752_v57  ;;  %v8338_v59 = vpop.f32.mrb[23].mxu1  ;;  %v1112_v61 = vrot.slane %v1110_v54, 1  ;;  %v1672_v63 = vrot.slane %v1114_v55, 5  ;;  %v1675_v0 = vrot.slane %v1110_v54, 6 }
 0x11f   : > { %v1560_v2 = vsel %vm1553_vm3, %v1557_v34, %v1559_v56  ;;  %v918_v3 = vmax.f32 %v750_v52, 0.0 }
 0x120   : > { %v919_v4 = vmax.f32 %v753_v58, 0.0  ;;  %v1113_v5 = vsel %vm1085_vm4, %v1108_v60, %v1112_v61  ;;  %1575 = vst.msk [vmem:[#allocation3 + $0x50] sm:$0xff] %vm983_vm2, %v1560_v2  ;;  %v1676_v6 = vor.u32 %v1675_v0, %v1672_v63  ;;  %v1116_v17 = vor.u32 %v1114_v55, %v1112_v61 }
 0x121   : > { %1137 = vrot.lane.b32.xlu1 %v1113_v5, %s12278_s13 }
 0x122   : > { %v963_v7 = vpack.c.bf16 %v919_v4, %v918_v3  ;;  %v9613_v10 = vsel %vm1642_vm5, %v1667_v46, %v1676_v6  ;;  %v8571_v4 = vld [vmem:[%s12263_s3 + $0x58] sm:$0xff]  }
 0x123   : > { %v757_v8 = vpop.f32.mrb[24].mxu1  ;;  %v1083_v9 = vld [vmem:[#allocation2 + $0x20] sm:$0xff]  ;;  %8086 = vmatprep.subr.bf16.mxu1 %v8571_v4 }
 0x124   : > { %v1639_v11 = vld [vmem:[#allocation2 + $0x20] sm:$0xff]  ;;  %989 = vst.msk [vmem:[#allocation2 + $0x28] sm:$0xff] %vm983_vm2, %v963_v7  ;;  %v758_v12 = vadd.f32 %v9562_v32, %v757_v8  ;;  %v8341_v13 = vpop.f32.mrb[25].mxu1  ;;  %v1118_v14 = vshll.u32 %v1083_v9, 16  ;;  %v1122_v22 = vshrl.u32 %v1083_v9, 16 }
 0x125   : > { %1019 = vst.msk [vmem:[#allocation3 + $0x80] sm:$0xff] %vm983_vm2, %v1639_v11  ;;  %v760_v16 = vpop.f32.mrb[26].mxu1  ;;  %v1679_v18 = vshrl.u32 %v1639_v11, 16  ;;  %v1682_v23 = vshll.u32 %v1639_v11, 16  ;;  %v1561_v26 = vrot.slane %v1639_v11, 5 }
 0x126   : > { %v761_v19 = vadd.f32 %v9562_v32, %v760_v16  ;;  %v8342_v20 = vpop.f32.mrb[27].mxu1  ;;  %v1120_v21 = vrot.slane %v1118_v14, 1  ;;  %v920_v27 = vmax.f32 %v758_v12, 0.0  ;;  %v1578_v14 = vld [vmem:[#allocation3 + $0xb0] sm:$0x1f] }
 0x127   : > { %v1681_v25 = vrot.slane %v1679_v18, 5  ;;  %v1684_v31 = vrot.slane %v1682_v23, 6  ;;  %v1562_v33 = vsel %vm1553_vm3, %v1559_v56, %v1561_v26 }
 0x128   : > { %v921_v28 = vmax.f32 %v761_v19, 0.0  ;;  %v1121_v29 = vsel %vm1085_vm4, %v1116_v17, %v1120_v21  ;;  %v9623_v30 = vor.u32 %v1122_v22, %v1120_v21  ;;  %1576 = vst.msk [vmem:[#allocation3 + $0x70] sm:$0xff] %vm983_vm2, %v1562_v33 }
 0x129   : > { %1139 = vrot.lane.b32.xlu1 %v1121_v29, %s12278_s13  ;;  %v1685_v38 = vor.u32 %v1684_v31, %v1681_v25  ;;  %v8572_v25 = vld [vmem:[%s12263_s3 + $0x18] sm:$0xff]  }
 0x12a   : > { %v964_v34 = vpack.c.bf16 %v921_v28, %v920_v27  ;;  %8087 = vmatpush3.bf16.msra.mxu1 %v8572_v25 }
 0x12b   : > { %v765_v37 = vpop.f32.mrb[28].mxu1  ;;  %v1640_v39 = vld [vmem:[#allocation2 + $0x28] sm:$0xff]  ;;  %v9636_v45 = vsel %vm1642_vm5, %v1676_v6, %v1685_v38 }
 0x12c   : > { %v1014_v40 = vld [vmem:[#allocation2 + $0x28] sm:$0x1f]  ;;  %990 = vst.msk [vmem:[#allocation2 + $0x30] sm:$0xff] %vm983_vm2, %v964_v34  ;;  %v766_v41 = vadd.f32 %v9562_v32, %v765_v37  ;;  %v8345_v42 = vpop.f32.mrb[29].mxu1  ;;  %v1688_v43 = vshrl.u32 %v1640_v39, 16  ;;  %v1691_v46 = vshll.u32 %v1640_v39, 16 }
 0x12d   : > { %v768_v44 = vpop.f32.mrb[30].mxu1  ;;  %v1024_v47 = vsel %vm9628_vm8, %v1014_v40, %v1023_v36  ;;  %v1563_v48 = vrot.slane %v1640_v39, 5 }
 0x12e   : > { %v769_v49 = vadd.f32 %v9562_v32, %v768_v44  ;;  %v8346_v51 = vpop.f32.mrb[31].mxu1  ;;  %v1690_v52 = vrot.slane %v1688_v43, 5  ;;  %1025 = vst [vmem:[#allocation3 + $0xa0] sm:$0x1f] %v1024_v47  ;;  %v1693_v53 = vrot.slane %v1691_v46, 6  ;;  %v922_v55 = vmax.f32 %v766_v41, 0.0 }
 0x12f   : > { %v1564_v54 = vsel %vm1553_vm3, %v1561_v26, %v1563_v48 }
 0x130   : > { %v923_v56 = vmax.f32 %v769_v49, 0.0  ;;  %1577 = vst.msk [vmem:[#allocation3 + $0x90] sm:$0xff] %vm983_vm2, %v1564_v54  ;;  %v9643_v57 = vor.u32 %v1693_v53, %v1690_v52 }
 0x132   : > { %v965_v58 = vpack.c.bf16 %v923_v56, %v922_v55  ;;  %v9647_v60 = vsel %vm1642_vm5, %v1685_v38, %v9643_v57 }
 0x133   : > { %v773_v59 = vpop.f32.mrb[32].mxu1  ;;  %v1162_v3 = vld [vmem:[#allocation2 + $0x30] sm:$0xfc]  ;;  %v1545_v8 = vld [vmem:[#allocation2 + $0x30] sm:$0x3] }
 0x134   : > { %991 = vst.msk [vmem:[#allocation2 + $0x38] sm:$0xff] %vm983_vm2, %v965_v58  ;;  %v774_v61 = vadd.f32 %v9562_v32, %v773_v59  ;;  %v8349_v62 = vpop.f32.mrb[33].mxu1  ;;  %v1026_v7 = vld [vmem:[#allocation2 + $0x30] sm:$0xfc]  ;;  %v1170_v9 = vshrl.u32 %v1162_v3, 16  ;;  %v1173_v11 = vshll.u32 %v1162_v3, 16 }
 0x135   : > { %v776_v63 = vpop.f32.mrb[34].mxu1  ;;  %v1565_v12 = vrot.slane %v1545_v8, 5  ;;  %v1039_v17 = vrot.slane %v1026_v7, 2 }
 0x136   : > { %v777_v0 = vadd.f32 %v9562_v32, %v776_v63  ;;  %v8350_v2 = vpop.f32.mrb[35].mxu1  ;;  %v924_v5 = vmax.f32 %v774_v61, 0.0  ;;  %v1172_v27 = vrot.slane %v1170_v9, 2  ;;  %v1175_v28 = vrot.slane %v1173_v11, 3 }
 0x137   : > { %v1566_v18 = vsel %vm1553_vm3, %v1563_v48, %v1565_v12 }
 0x138   : > { %v925_v6 = vmax.f32 %v777_v0, 0.0  ;;  %v1579_v29 = vsel %vm9628_vm8, %v1566_v18, %v1578_v14  ;;  %v1176_v41 = vor.u32 %v1175_v28, %v1172_v27 }
 0x139   : > { %1580 = vst [vmem:[#allocation3 + $0xb0] sm:$0x1f] %v1579_v29 }
 0x13a   : > { %v966_v13 = vpack.c.bf16 %v925_v6, %v924_v5 }
 0x13b   : > { %v781_v15 = vpop.f32.mrb[36].mxu1  ;;  %v9655_v16 = vld [vmem:[#allocation2 + $0x38] sm:$0xff] }
 0x13c   : > { %992 = vst.msk [vmem:[#allocation2 + $0x40] sm:$0xff] %vm983_vm2, %v966_v13  ;;  %v782_v19 = vadd.f32 %v9562_v32, %v781_v15  ;;  %v8353_v20 = vpop.f32.mrb[37].mxu1  ;;  %v1040_v21 = vrot.slane %v9655_v16, 2  ;;  %v1178_v22 = vshrl.u32 %v9655_v16, 16  ;;  %v1181_v23 = vshll.u32 %v9655_v16, 16 }
 0x13d   : > { %v784_v26 = vpop.f32.mrb[38].mxu1  ;;  %v1597_v56 = vrot.slane %v9655_v16, 7  ;;  %v8573_v20 = vld [vmem:[%s12263_s3 + $0x60] sm:$0xff]  }
 0x13e   : > { %v785_v31 = vadd.f32 %v9562_v32, %v784_v26  ;;  %v8354_v33 = vpop.f32.mrb[39].mxu1  ;;  %v1041_v34 = vsel %vm12275_vm9, %v1039_v17, %v1040_v21  ;;  %v1180_v36 = vrot.slane %v1178_v22, 2  ;;  %v1183_v37 = vrot.slane %v1181_v23, 3  ;;  %8088 = vmatprep.subr.bf16.mxu1 %v8573_v20 }
 0x13f   : > { %1050 = vrot.lane.b32.xlu0 %v1041_v34, %s9314_s12  ;;  %v1746_v38 = vrot.slane %v1178_v22, 7  ;;  %v926_v39 = vmax.f32 %v782_v19, 0.0 }
 0x140   : > { %v927_v40 = vmax.f32 %v785_v31, 0.0  ;;  %v1184_v42 = vor.u32 %v1183_v37, %v1180_v36 }
 0x141   : > { %v9671_v43 = vor.u32 %v1746_v38, %v1181_v23 }
 0x142   : > { %v967_v44 = vpack.c.bf16 %v927_v40, %v926_v39  ;;  %v1185_v46 = vsel %vm12272_vm10, %v1176_v41, %v1184_v42 }
 0x143   : > { %v789_v47 = vpop.f32.mrb[40].mxu1  ;;  %v1028_v48 = vld [vmem:[#allocation2 + $0x40] sm:$0xff]  ;;  %1222 = vrot.lane.b32.xlu1 %v1185_v46, %s9315_s14 }
 0x144   : > { %993 = vst.msk [vmem:[#allocation2 + $0x48] sm:$0xff] %vm983_vm2, %v967_v44  ;;  %v790_v49 = vadd.f32 %v9562_v32, %v789_v47  ;;  %v8357_v51 = vpop.f32.mrb[41].mxu1  ;;  %v1042_v52 = vrot.slane %v1028_v48, 2  ;;  %v1187_v53 = vshrl.u32 %v1028_v48, 16  ;;  %v1190_v54 = vshll.u32 %v1028_v48, 16 }
 0x145   : > { %v792_v55 = vpop.f32.mrb[42].mxu1  ;;  %v1599_v58 = vrot.slane %v1028_v48, 7 }
 0x146   : > { %v793_v59 = vadd.f32 %v9562_v32, %v792_v55  ;;  %v8358_v61 = vpop.f32.mrb[43].mxu1  ;;  %v1043_v62 = vsel %vm12275_vm9, %v1040_v21, %v1042_v52  ;;  %v1189_v63 = vrot.slane %v1187_v53, 2  ;;  %v1192_v0 = vrot.slane %v1190_v54, 3  ;;  %v8574_v21 = vld [vmem:[%s12263_s3 + $0x20] sm:$0xff]  }
 0x147   : > { %v9683_v2 = vsel %vm1595_vm11, %v1597_v56, %v1599_v58  ;;  %v1754_v3 = vrot.slane %v1187_v53, 7  ;;  %v928_v4 = vmax.f32 %v790_v49, 0.0  ;;  %1052 = vrot.lane.b32.xlu1 %v1043_v62, %s9314_s12  ;;  %8089 = vmatpush3.bf16.msra.mxu1 %v8574_v21 }
 0x148   : > { %v929_v5 = vmax.f32 %v793_v59, 0.0  ;;  %v1193_v6 = vor.u32 %v1192_v0, %v1189_v63 }
 0x149   : > { %v1757_v7 = vor.u32 %v1754_v3, %v1190_v54 }
 0x14a   : > { %v968_v8 = vpack.c.bf16 %v929_v5, %v928_v4  ;;  %v1194_v9 = vsel %vm12272_vm10, %v1184_v42, %v1193_v6 }
 0x14b   : > { %v797_v11 = vpop.f32.mrb[44].mxu1  ;;  %v1029_v12 = vld [vmem:[#allocation2 + $0x48] sm:$0xff]  ;;  %v9688_v13 = vsel %vm12277_vm12, %v1746_v38, %v1757_v7  ;;  %1224 = vrot.lane.b32.xlu1 %v1194_v9, %s9315_s14 }
 0x14c   : > { %994 = vst.msk [vmem:[#allocation2 + $0x50] sm:$0xff] %vm983_vm2, %v968_v8  ;;  %v798_v14 = vadd.f32 %v9562_v32, %v797_v11  ;;  %v8361_v15 = vpop.f32.mrb[45].mxu1  ;;  %v1044_v17 = vrot.slane %v1029_v12, 2  ;;  %v1196_v18 = vshrl.u32 %v1029_v12, 16  ;;  %v1199_v19 = vshll.u32 %v1029_v12, 16 }
 0x14d   : > { %v800_v22 = vpop.f32.mrb[46].mxu1  ;;  %v1601_v23 = vrot.slane %v1029_v12, 7 }
 0x14e   : > { %v801_v25 = vadd.f32 %v9562_v32, %v800_v22  ;;  %v8362_v26 = vpop.f32.mrb[47].mxu1  ;;  %v1045_v27 = vsel %vm12275_vm9, %v1042_v52, %v1044_v17  ;;  %v1198_v28 = vrot.slane %v1196_v18, 2  ;;  %v1201_v29 = vrot.slane %v1199_v19, 3 }
 0x14f   : > { %v9702_v31 = vsel %vm1595_vm11, %v1599_v58, %v1601_v23  ;;  %v1762_v33 = vrot.slane %v1196_v18, 7  ;;  %v930_v34 = vmax.f32 %v798_v14, 0.0  ;;  %1054 = vrot.lane.b32.xlu1 %v1045_v27, %s9314_s12 }
 0x150   : > { %v931_v36 = vmax.f32 %v801_v25, 0.0  ;;  %v9705_v37 = vor.u32 %v1201_v29, %v1198_v28  ;;  %v8575_v29 = vld [vmem:[%s12263_s3 + $0x68] sm:$0xff]  }
 0x151   : > { %v1765_v38 = vor.u32 %v1762_v33, %v1199_v19  ;;  %8090 = vmatprep.subr.bf16.mxu1 %v8575_v29 }
 0x152   : > { %v969_v39 = vpack.c.bf16 %v931_v36, %v930_v34  ;;  %v1203_v40 = vsel %vm12272_vm10, %v1193_v6, %v9705_v37 }
 0x153   : > { %v805_v41 = vpop.f32.mrb[48].mxu1  ;;  %v9709_v42 = vld [vmem:[#allocation2 + $0x50] sm:$0xff]  ;;  %v9712_v44 = vsel %vm12277_vm12, %v1754_v3, %v1765_v38  ;;  %1226 = vrot.lane.b32.xlu1 %v1203_v40, %s9315_s14 }
 0x154   : > { %995 = vst.msk [vmem:[#allocation2 + $0x58] sm:$0xff] %vm983_vm2, %v969_v39  ;;  %v806_v46 = vadd.f32 %v9562_v32, %v805_v41  ;;  %v8365_v47 = vpop.f32.mrb[49].mxu1  ;;  %v1046_v48 = vrot.slane %v9709_v42, 2  ;;  %v1205_v49 = vshrl.u32 %v9709_v42, 16  ;;  %v1603_v52 = vrot.slane %v9709_v42, 7  ;;  %v8576_v41 = vld [vmem:[%s12263_s3 + $0x28] sm:$0xff]  }
 0x155   : > { %v808_v51 = vpop.f32.mrb[50].mxu1  ;;  %v1208_v58 = vshll.u32 %v9709_v42, 16  ;;  %8091 = vmatpush3.bf16.msra.mxu1 %v8576_v41 }
 0x156   : > { %v809_v53 = vadd.f32 %v9562_v32, %v808_v51  ;;  %v8366_v54 = vpop.f32.mrb[51].mxu1  ;;  %v1047_v55 = vsel %vm12275_vm9, %v1044_v17, %v1046_v48  ;;  %v9724_v59 = vsel %vm1595_vm11, %v1601_v23, %v1603_v52  ;;  %v9728_v61 = vrot.slane %v1205_v49, 7 }
 0x157   : > { %v932_v62 = vmax.f32 %v806_v46, 0.0  ;;  %1056 = vrot.lane.b32.xlu1 %v1047_v55, %s9314_s12 }
 0x158   : > { %v933_v63 = vmax.f32 %v809_v53, 0.0  ;;  %v1773_v0 = vor.u32 %v9728_v61, %v1208_v58 }
 0x15a   : > { %v970_v3 = vpack.c.bf16 %v933_v63, %v932_v62  ;;  %v9733_v6 = vsel %vm12277_vm12, %v1762_v33, %v1773_v0 }
 0x15b   : > { %v813_v4 = vpop.f32.mrb[52].mxu1  ;;  %v1031_v5 = vld [vmem:[#allocation2 + $0x58] sm:$0x7f] }
 0x15c   : > { %v9735_v7 = vld [vmem:[#allocation2 + $0x58] sm:$0xff]  ;;  %996 = vst.msk [vmem:[#allocation2 + $0x60] sm:$0xff] %vm983_vm2, %v970_v3  ;;  %v814_v8 = vadd.f32 %v9562_v32, %v813_v4  ;;  %v8369_v9 = vpop.f32.mrb[53].mxu1  ;;  %v1048_v11 = vrot.slane %v1031_v5, 2  ;;  %v1084_v3 = vld [vmem:[#allocation2 + $0x28] sm:$0x1f] }
 0x15d   : > { %v816_v12 = vpop.f32.mrb[54].mxu1  ;;  %v1605_v14 = vrot.slane %v9735_v7, 7  ;;  %v1207_v5 = vrot.slane %v1205_v49, 2 }
 0x15e   : > { %v817_v15 = vadd.f32 %v9562_v32, %v816_v12  ;;  %1060 = vrot.lane.b32.xlu1 %v1048_v11, %s9314_s12  ;;  %v8370_v17 = vpop.f32.mrb[55].mxu1  ;;  %v1049_v18 = vsel %vm12275_vm9, %v1046_v48, %v1048_v11  ;;  %v934_v20 = vmax.f32 %v814_v8, 0.0  ;;  %v1210_v8 = vrot.slane %v1208_v58, 3 }
 0x15f   : > { %1058 = vrot.lane.b32.xlu0 %v1049_v18, %s9314_s12  ;;  %v9747_v19 = vsel %vm1595_vm11, %v1603_v52, %v1605_v14  ;;  %vm1240_vm9 = vcmask 1048320  }
 0x160   : > { %v935_v21 = vmax.f32 %v817_v15, 0.0  ;;  %v9765_v42 = vor.u32 %v1210_v8, %v1207_v5 }
 0x162   : > { %v971_v22 = vpack.c.bf16 %v935_v21, %v934_v20  ;;  %v1126_v20 = vshll.u32 %v1084_v3, 16 }
 0x163   : > { %v821_v23 = vpop.f32.mrb[56].mxu1  ;;  %v1347_v27 = vld [vmem:[#allocation2 + $0x60] sm:$0xf0] }
 0x164   : > { %997 = vst.msk [vmem:[#allocation2 + $0x68] sm:$0xff] %vm983_vm2, %v971_v22  ;;  %v822_v25 = vadd.f32 %v9562_v32, %v821_v23  ;;  %v8373_v26 = vpop.f32.mrb[57].mxu1  ;;  %v1356_v36 = vshrl.u32 %v1347_v27, 16  ;;  %v1359_v40 = vshll.u32 %v1347_v27, 16  ;;  %v1251_v47 = vld [vmem:[#allocation2 + $0x60] sm:$0xf0] }
 0x165   : > { %v824_v28 = vpop.f32.mrb[58].mxu1  ;;  %v1266_v9 = vrot.slane %v1251_v47, 4  ;;  %v1167_v27 = vld [vmem:[#allocation2 + $0x58] sm:$0x7f] }
 0x166   : > { %v825_v33 = vadd.f32 %v9562_v32, %v824_v28  ;;  %v8374_v34 = vpop.f32.mrb[59].mxu1  ;;  %v936_v38 = vmax.f32 %v822_v25, 0.0  ;;  %v1358_v52 = vrot.slane %v1356_v36, 4  ;;  %v1361_v62 = vrot.slane %v1359_v40, 5 }
 0x167   : > { %v1130_v34 = vshrl.u32 %v1084_v3, 16  ;;  %v1217_v3 = vshll.u32 %v1167_v27, 16 }
 0x168   : > { %v937_v39 = vmax.f32 %v825_v33, 0.0  ;;  %v1362_v25 = vor.u32 %v1361_v62, %v1358_v52  ;;  %v1128_v33 = vrot.slane %v1126_v20, 1  ;;  %v1214_v52 = vshrl.u32 %v1167_v27, 16 }
 0x16a   : > { %v972_v46 = vpack.c.bf16 %v937_v39, %v936_v38 }
 0x16b   : > { %v829_v48 = vpop.f32.mrb[60].mxu1  ;;  %v1348_v51 = vld [vmem:[#allocation2 + $0x68] sm:$0xff] }
 0x16c   : > { %v1252_v53 = vld [vmem:[#allocation2 + $0x68] sm:$0xff]  ;;  %998 = vst.msk [vmem:[#allocation2 + $0x70] sm:$0xff] %vm983_vm2, %v972_v46  ;;  %v830_v54 = vadd.f32 %v9562_v32, %v829_v48  ;;  %v8377_v55 = vpop.f32.mrb[61].mxu1  ;;  %v1364_v63 = vshrl.u32 %v1348_v51, 16  ;;  %v1367_v0 = vshll.u32 %v1348_v51, 16  ;;  %v1212_v51 = vsel %vm12272_vm10, %v9705_v37, %v9765_v42 }
 0x16d   : > { %v832_v4 = vpop.f32.mrb[62].mxu1  ;;  %v1267_v11 = vrot.slane %v1252_v53, 4  ;;  %v1817_v28 = vld [vmem:[#allocation2 + $0x68] sm:$0xfe] }
 0x16e   : > { %v833_v12 = vadd.f32 %v9562_v32, %v832_v4  ;;  %v8378_v15 = vpop.f32.mrb[63].mxu1  ;;  %v1366_v17 = vrot.slane %v1364_v63, 4  ;;  %v1369_v18 = vrot.slane %v1367_v0, 5  ;;  %v938_v22 = vmax.f32 %v830_v54, 0.0 }
 0x16f   : > { %v1268_v21 = vsel %vm1265_vm13, %v1266_v9, %v1267_v11  ;;  %v1830_v53 = vrot.slane %v1817_v28, 1 }
 0x170   : > { %v939_v23 = vmax.f32 %v833_v12, 0.0  ;;  %v1370_v26 = vor.u32 %v1369_v18, %v1366_v17  ;;  %1285 = vst.msk [vmem:[#allocation3 + $0x8] sm:$0xff] %vm983_vm2, %v1268_v21  ;;  %v1132_v17 = vor.u32 %v1130_v34, %v1128_v33 }
 0x172   : > { %v973_v49 = vpack.c.bf16 %v939_v23, %v938_v22  ;;  %v1371_v58 = vsel %vm1354_vm14, %v1362_v25, %v1370_v26  ;;  %v1216_v22 = vrot.slane %v1214_v52, 2  ;;  %v1219_v23 = vrot.slane %v1217_v3, 3 }
 0x173   : > { %1417 = vrot.lane.b32.xlu1 %v1371_v58, %s12278_s13  ;;  %v837_v29 = vpop.f32.mrb[64].mxu1  ;;  %v1349_v36 = vld [vmem:[#allocation2 + $0x70] sm:$0xff] }
 0x174   : > { %v1253_v38 = vld [vmem:[#allocation2 + $0x70] sm:$0xff]  ;;  %999 = vst.msk [vmem:[#allocation2 + $0x78] sm:$0xff] %vm983_vm2, %v973_v49  ;;  %v838_v39 = vadd.f32 %v9562_v32, %v837_v29  ;;  %v8381_v40 = vpop.f32.mrb[65].mxu1  ;;  %v1373_v41 = vshrl.u32 %v1349_v36, 16  ;;  %v1376_v46 = vshll.u32 %v1349_v36, 16 }
 0x175   : > { %v1269_v47 = vrot.slane %v1253_v38, 4  ;;  %v840_v48 = vpop.f32.mrb[66].mxu1  ;;  %v1831_v54 = vrot.slane %v1253_v38, 1 }
 0x176   : > { %v841_v55 = vadd.f32 %v9562_v32, %v840_v48  ;;  %v8382_v62 = vpop.f32.mrb[67].mxu1  ;;  %v1375_v63 = vrot.slane %v1373_v41, 4  ;;  %v1378_v0 = vrot.slane %v1376_v46, 5  ;;  %v1923_v4 = vrot.slane %v1373_v41, 1 }
 0x177   : > { %1228 = vrot.lane.b32.xlu1 %v1212_v51, %s9315_s14  ;;  %v1926_v5 = vrot.slane %v1376_v46, 2  ;;  %v1270_v8 = vsel %vm1265_vm13, %v1267_v11, %v1269_v47  ;;  %v1832_v9 = vsel %vm1829_vm15, %v1830_v53, %v1831_v54  ;;  %v940_v12 = vmax.f32 %v838_v39, 0.0 }
 0x178   : > { %v941_v15 = vmax.f32 %v841_v55, 0.0  ;;  %v1379_v37 = vor.u32 %v1378_v0, %v1375_v63  ;;  %1286 = vst.msk [vmem:[#allocation3 + $0x28] sm:$0xff] %vm983_vm2, %v1270_v8  ;;  %1847 = vst.msk [vmem:[#allocation3 + $0x18] sm:$0xff] %vm983_vm2, %v1832_v9  ;;  %v1220_v41 = vor.u32 %v1219_v23, %v1216_v22  ;;  %v1581_v22 = vld [vmem:[#allocation2 + $0x30] sm:$0x80] }
 0x179   : > { %v9780_v18 = vor.u32 %v1926_v5, %v1923_v4 }
 0x17a   : > { %v974_v20 = vpack.c.bf16 %v941_v15, %v940_v12  ;;  %v1380_v21 = vsel %vm1354_vm14, %v1370_v26, %v1379_v37  ;;  %v1129_v26 = vsel %vm1085_vm4, %v9623_v30, %v1128_v33  ;;  %v8577_v30 = vld [vmem:[%s12263_s3 + $0x70] sm:$0xff]  }
 0x17b   : > { %1143 = vrot.lane.b32.xlu1 %v1132_v17, %s12278_s13  ;;  %1419 = vrot.lane.b32.xlu0 %v1380_v21, %s12278_s13  ;;  %v845_v11 = vpop.f32.mrb[68].mxu1  ;;  %v1350_v25 = vld [vmem:[#allocation2 + $0x78] sm:$0xff]  ;;  %v8578_v33 = vld [vmem:[%s12263_s3 + $0x30] sm:$0xff]  }
 0x17c   : > { %v1254_v49 = vld [vmem:[#allocation2 + $0x78] sm:$0xff]  ;;  %1000 = vst.msk [vmem:[#allocation2 + $0x80] sm:$0xff] %vm983_vm2, %v974_v20  ;;  %v846_v58 = vadd.f32 %v9562_v32, %v845_v11  ;;  %v8385_v27 = vpop.f32.mrb[69].mxu1  ;;  %v1382_v28 = vshrl.u32 %v1350_v25, 16  ;;  %v1385_v29 = vshll.u32 %v1350_v25, 16  ;;  %8092 = vmatprep.subr.bf16.mxu1 %v8577_v30 }
 0x17d   : > { %v1271_v34 = vrot.slane %v1254_v49, 4  ;;  %v848_v36 = vpop.f32.mrb[70].mxu1  ;;  %v1833_v38 = vrot.slane %v1254_v49, 1  ;;  %8093 = vmatpush3.bf16.msra.mxu1 %v8578_v33 }
 0x17e   : > { %v849_v39 = vadd.f32 %v9562_v32, %v848_v36  ;;  %v8386_v40 = vpop.f32.mrb[71].mxu1  ;;  %v1384_v46 = vrot.slane %v1382_v28, 4  ;;  %v1387_v48 = vrot.slane %v1385_v29, 5  ;;  %v1932_v51 = vrot.slane %v1382_v28, 1 }
 0x17f   : > { %1141 = vrot.lane.b32.xlu1 %v1129_v26, %s12278_s13  ;;  %v1935_v52 = vrot.slane %v1385_v29, 2  ;;  %v1272_v53 = vsel %vm1265_vm13, %v1269_v47, %v1271_v34  ;;  %v1834_v55 = vsel %vm1829_vm15, %v1831_v54, %v1833_v38  ;;  %v942_v62 = vmax.f32 %v846_v58, 0.0 }
 0x180   : > { %v943_v63 = vmax.f32 %v849_v39, 0.0  ;;  %v1388_v0 = vor.u32 %v1387_v48, %v1384_v46  ;;  %1287 = vst.msk [vmem:[#allocation3 + $0x48] sm:$0xff] %vm983_vm2, %v1272_v53  ;;  %1848 = vst.msk [vmem:[#allocation3 + $0x38] sm:$0xff] %vm983_vm2, %v1834_v55  ;;  %v1221_v47 = vsel %vm12272_vm10, %v9765_v42, %v1220_v41  ;;  %v1596_v40 = vrot.slane %v1581_v22, 7  ;;  %v1635_v53 = vld [vmem:[#allocation2] sm:$0xe0] }
 0x181   : > { %v1936_v3 = vor.u32 %v1935_v52, %v1932_v51  ;;  %vm12276_vm10 = vcmask 1041408  }
 0x182   : > { %v975_v4 = vpack.c.bf16 %v943_v63, %v942_v62  ;;  %v1389_v54 = vsel %vm1354_vm14, %v1379_v37, %v1388_v0 }
 0x183   : > { %1230 = vrot.lane.b32.xlu1 %v1221_v47, %s9315_s14  ;;  %1421 = vrot.lane.b32.xlu0 %v1389_v54, %s12278_s13  ;;  %v853_v5 = vpop.f32.mrb[72].mxu1  ;;  %v1351_v8 = vld [vmem:[#allocation2 + $0x80] sm:$0xff]  ;;  %v9808_v9 = vsel %vm1911_vm6, %v9780_v18, %v1936_v3 }
 0x184   : > { %v1255_v12 = vld [vmem:[#allocation2 + $0x80] sm:$0xff]  ;;  %1001 = vst.msk [vmem:[#allocation2 + $0x88] sm:$0xff] %vm983_vm2, %v975_v4  ;;  %v854_v15 = vadd.f32 %v9562_v32, %v853_v5  ;;  %v8389_v42 = vpop.f32.mrb[73].mxu1  ;;  %v1391_v17 = vshrl.u32 %v1351_v8, 16  ;;  %v1394_v37 = vshll.u32 %v1351_v8, 16  ;;  %v1644_v4 = vshrl.u32 %v1635_v53, 16 }
 0x185   : > { %v1273_v20 = vrot.slane %v1255_v12, 4  ;;  %v856_v21 = vpop.f32.mrb[74].mxu1  ;;  %v1835_v23 = vrot.slane %v1255_v12, 1 }
 0x186   : > { %v857_v11 = vadd.f32 %v9562_v32, %v856_v21  ;;  %v8390_v25 = vpop.f32.mrb[75].mxu1  ;;  %v1393_v49 = vrot.slane %v1391_v17, 4  ;;  %v1396_v58 = vrot.slane %v1394_v37, 5  ;;  %v1941_v27 = vrot.slane %v1391_v17, 1 }
 0x187   : > { %1232 = vrot.lane.b32.xlu1 %v1220_v41, %s9315_s14  ;;  %v1944_v28 = vrot.slane %v1394_v37, 2  ;;  %v1274_v29 = vsel %vm1265_vm13, %v1271_v34, %v1273_v20  ;;  %v1836_v36 = vsel %vm1829_vm15, %v1833_v38, %v1835_v23  ;;  %v944_v26 = vmax.f32 %v854_v15, 0.0 }
 0x188   : > { %v945_v39 = vmax.f32 %v857_v11, 0.0  ;;  %v1397_v46 = vor.u32 %v1396_v58, %v1393_v49  ;;  %1288 = vst.msk [vmem:[#allocation3 + $0x68] sm:$0xff] %vm983_vm2, %v1274_v29  ;;  %1849 = vst.msk [vmem:[#allocation3 + $0x58] sm:$0xff] %vm983_vm2, %v1836_v36  ;;  %v1598_v41 = vsel %vm1595_vm11, %v1596_v40, %v1597_v56 }
 0x189   : > { %v1945_v48 = vor.u32 %v1944_v28, %v1941_v27  ;;  %v1646_v28 = vrot.slane %v1644_v4, 5 }
 0x18a   : > { %v976_v51 = vpack.c.bf16 %v945_v39, %v944_v26  ;;  %v1398_v52 = vsel %vm1354_vm14, %v1388_v0, %v1397_v46 }
 0x18b   : > { %1609 = vrot.lane.b32.xlu1 %v1598_v41, %s9314_s12  ;;  %1423 = vrot.lane.b32.xlu0 %v1398_v52, %s12278_s13  ;;  %v861_v34 = vpop.f32.mrb[76].mxu1  ;;  %v1352_v38 = vld [vmem:[#allocation2 + $0x88] sm:$0xff]  ;;  %v9825_v55 = vsel %vm1911_vm6, %v1936_v3, %v1945_v48  ;;  %v9836_v3 = vld [vmem:[%s12262_s2] ss:$0 sm:$0xff] }
 0x18c   : > { %v9827_v62 = vld [vmem:[#allocation2 + $0x88] sm:$0xff]  ;;  %1002 = vst.msk [vmem:[#allocation2 + $0x90] sm:$0xff] %vm983_vm2, %v976_v51  ;;  %v862_v16 = vadd.f32 %v9562_v32, %v861_v34  ;;  %v8393_v63 = vpop.f32.mrb[77].mxu1  ;;  %v1400_v56 = vshrl.u32 %v1352_v38, 16  ;;  %v1403_v30 = vshll.u32 %v1352_v38, 16  ;;  %v1647_v32 = vshll.u32 %v1635_v53, 16 }
 0x18d   : > { %v1275_v0 = vrot.slane %v9827_v62, 4  ;;  %v864_v33 = vpop.f32.mrb[78].mxu1  ;;  %v1837_v47 = vrot.slane %v9827_v62, 1  ;;  %v1852_v63 = vld [vmem:[#allocation3 + $0xb8] sm:$0x1f] }
 0x18e   : > { %v865_v54 = vadd.f32 %v9836_v3, %v864_v33  ;;  %v8394_v5 = vpop.f32.mrb[79].mxu1  ;;  %v1402_v8 = vrot.slane %v1400_v56, 4  ;;  %v1405_v12 = vrot.slane %v1403_v30, 5  ;;  %v1950_v15 = vrot.slane %v1400_v56, 1  ;;  %v8579_v33 = vld [vmem:[%s12263_s3 + $0x78] sm:$0xff]  }
 0x18f   : > { %v1953_v42 = vrot.slane %v1403_v30, 2  ;;  %v1276_v17 = vsel %vm1265_vm13, %v1273_v20, %v1275_v0  ;;  %v1838_v37 = vsel %vm1829_vm15, %v1835_v23, %v1837_v47  ;;  %v946_v21 = vmax.f32 %v862_v16, 0.0  ;;  %v1290_v16 = vld [vmem:[#allocation3 + $0xa8] sm:$0x1f]  ;;  %v1731_v30 = vld [vmem:[#allocation2 + $0x30] sm:$0x80]  ;;  %8094 = vmatprep.subr.bf16.mxu1 %v8579_v33 }
 0x190   : > { %v947_v22 = vmax.f32 %v865_v54, 0.0  ;;  %v1406_v11 = vor.u32 %v1405_v12, %v1402_v8  ;;  %1289 = vst.msk [vmem:[#allocation3 + $0x88] sm:$0xff] %vm983_vm2, %v1276_v17  ;;  %1850 = vst.msk [vmem:[#allocation3 + $0x78] sm:$0xff] %vm983_vm2, %v1838_v37  ;;  %v1649_v29 = vrot.slane %v1647_v32, 6 }
 0x191   : > { %v9845_v25 = vor.u32 %v1953_v42, %v1950_v15 }
 0x192   : > { %v977_v49 = vpack.c.bf16 %v947_v22, %v946_v21  ;;  %v1407_v58 = vsel %vm1354_vm14, %v1397_v46, %v1406_v11  ;;  %v1650_v56 = vor.u32 %v1649_v29, %v1646_v28  ;;  %v1740_v21 = vshrl.u32 %v1731_v30, 16 }
 0x193   : > { %1425 = vrot.lane.b32.xlu0 %v1407_v58, %s12278_s13  ;;  %v869_v27 = vpop.f32.mrb[80].mxu1  ;;  %v1353_v20 = vld [vmem:[#allocation2 + $0x90] sm:$0x1]  ;;  %v9851_v23 = vsel %vm1911_vm6, %v1945_v48, %v9845_v25  ;;  %v1443_v41 = vld [vmem:[#allocation2 + $0x90] sm:$0xc0] }
 0x194   : > { %1003 = vst.msk [vmem:[#allocation2 + $0x98] sm:$0xff] %vm983_vm2, %v977_v49  ;;  %v870_v36 = vadd.f32 %v9836_v3, %v869_v27  ;;  %v8397_v26 = vpop.f32.mrb[81].mxu1  ;;  %v1409_v39 = vshrl.u32 %v1353_v20, 16  ;;  %v1412_v40 = vshll.u32 %v1353_v20, 16  ;;  %v1257_v38 = vld [vmem:[#allocation2 + $0x90] sm:$0x1]  ;;  %v1659_v35 = vsel %vm1642_vm5, %v1650_v56, %v9587_v24 }
 0x195   : > { %v872_v51 = vpop.f32.mrb[82].mxu1  ;;  %v1293_v48 = vld [vmem:[#allocation2 + $0x90] sm:$0xc0]  ;;  %v1277_v8 = vrot.slane %v1257_v38, 4  ;;  %v1822_v12 = vld [vmem:[#allocation2 + $0x90] sm:$0x3f] }
 0x196   : > { %v873_v46 = vadd.f32 %v9836_v3, %v872_v51  ;;  %v8398_v52 = vpop.f32.mrb[83].mxu1  ;;  %v1411_v53 = vrot.slane %v1409_v39, 4  ;;  %v1414_v34 = vrot.slane %v1412_v40, 5  ;;  %v948_v4 = vmax.f32 %v870_v36, 0.0  ;;  %v8580_v40 = vld [vmem:[%s12263_s3 + $0x38] sm:$0xff]  }
 0x197   : > { %v1452_v32 = vshrl.u32 %v1443_v41, 16  ;;  %v1455_v15 = vshll.u32 %v1443_v41, 16  ;;  %v1839_v42 = vrot.slane %v1822_v12, 1  ;;  %v1278_v22 = vsel %vm1265_vm13, %v1275_v0, %v1277_v8  ;;  %8095 = vmatpush3.bf16.msra.mxu1 %v8580_v40 }
 0x198   : > { %v949_v54 = vmax.f32 %v873_v46, 0.0  ;;  %v1415_v5 = vor.u32 %v1414_v34, %v1411_v53  ;;  %v1308_v27 = vrot.slane %v1293_v48, 6  ;;  %v1291_v20 = vsel %vm9628_vm8, %v1278_v22, %v1290_v16 }
 0x199   : > { %v1840_v28 = vsel %vm1829_vm15, %v1837_v47, %v1839_v42  ;;  %v1853_v29 = vsel %vm9628_vm8, %v1839_v42, %v1852_v63  ;;  %1292 = vst [vmem:[#allocation3 + $0xa8] sm:$0x1f] %v1291_v20  ;;  %v1454_v47 = vrot.slane %v1452_v32, 6  ;;  %v1457_v51 = vrot.slane %v1455_v15, 7  ;;  %v1134_v42 = vpop.permute.xlu1 %1133 }
 0x19a   : > { %v978_v17 = vpack.c.bf16 %v949_v54, %v948_v4  ;;  %v1416_v37 = vsel %vm1354_vm14, %v1406_v11, %v1415_v5  ;;  %1851 = vst.msk [vmem:[#allocation3 + $0x98] sm:$0xff] %vm983_vm2, %v1840_v28  ;;  %1854 = vst [vmem:[#allocation3 + $0xb8] sm:$0x1f] %v1853_v29  ;;  %v1742_v63 = vrot.slane %v1740_v21, 7  ;;  %vm1450_vm8 = vsmask.f32 1280 }
 0x19b   : > { %1427 = vrot.lane.b32.xlu1 %v1416_v37, %s12278_s13  ;;  %v877_v49 = vpop.f32.mrb[84].mxu1  ;;  %v1294_v58 = vld [vmem:[#allocation2 + $0x98] sm:$0xff]  ;;  %v1458_v48 = vor.u32 %v1457_v51, %v1454_v47  ;;  %vm1867_vm13 = vcmask 1044480   ;;  %vm1068_vm14 = vcmask 523520  }
 0x19c   : > { %1004 = vst.msk [vmem:[#allocation2 + $0xa0] sm:$0xff] %vm983_vm2, %v978_v17  ;;  %v878_v11 = vadd.f32 %v9836_v3, %v877_v49  ;;  %v8401_v0 = vpop.f32.mrb[85].mxu1  ;;  %v1309_v36 = vrot.slane %v1294_v58, 6  ;;  %v1460_v26 = vshrl.u32 %v1294_v58, 16  ;;  %v1463_v39 = vshll.u32 %v1294_v58, 16 }
 0x19d   : > { %v880_v62 = vpop.f32.mrb[86].mxu1  ;;  %v1750_v30 = vsel %vm12277_vm12, %v1742_v63, %v9671_v43  ;;  %v1855_v49 = vld [vmem:[#allocation2 + $0x98] sm:$0xf8] }
 0x19e   : > { %v950_v41 = vmax.f32 %v878_v11, 0.0  ;;  %v881_v46 = vadd.f32 %v9836_v3, %v880_v62  ;;  %v1310_v52 = vsel %vm12276_vm10, %v1308_v27, %v1309_v36  ;;  %v8402_v53 = vpop.f32.mrb[87].mxu1  ;;  %v1462_v34 = vrot.slane %v1460_v26, 6  ;;  %v9903_v11 = vpop.permute.xlu1 %1135 }
 0x19f   : > { %1705 = vrot.lane.b32.xlu1 %v1659_v35, %s12278_s13  ;;  %1321 = vrot.lane.b32.xlu0 %v1310_v52, %s9314_s12  ;;  %v1465_v38 = vrot.slane %v1463_v39, 7  ;;  %v1868_v29 = vrot.slane %v1855_v49, 3 }
 0x1a0   : > { %v951_v16 = vmax.f32 %v881_v46, 0.0 }
 0x1a1   : > { %v1466_v24 = vor.u32 %v1465_v38, %v1462_v34 }
 0x1a2   : > { %v979_v56 = vpack.c.bf16 %v951_v16, %v950_v41  ;;  %v9917_v51 = vpop.permute.xlu1 %1137 }
 0x1a3   : > { %1791 = vrot.lane.b32.xlu1 %v1750_v30, %s9315_s14  ;;  %v1467_v33 = vsel %vm1450_vm8, %v1458_v48, %v1466_v24  ;;  %v885_v4 = vpop.f32.mrb[88].mxu1  ;;  %v9885_v54 = vld [vmem:[#allocation2 + $0xa0] sm:$0xff] }
 0x1a4   : > { %1005 = vst.msk [vmem:[#allocation2 + $0xa8] sm:$0xff] %vm983_vm2, %v979_v56  ;;  %1513 = vrot.lane.b32.xlu0 %v1467_v33, %s9315_s14  ;;  %v886_v5 = vadd.f32 %v9836_v3, %v885_v4  ;;  %v8405_v8 = vpop.f32.mrb[89].mxu1  ;;  %v1311_v12 = vrot.slane %v9885_v54, 6  ;;  %v1469_v32 = vshrl.u32 %v9885_v54, 16  ;;  %v1472_v43 = vshll.u32 %v9885_v54, 16 }
 0x1a5   : > { %v888_v15 = vpop.f32.mrb[90].mxu1  ;;  %v1869_v58 = vrot.slane %v9885_v54, 3 }
 0x1a6   : > { %v952_v17 = vmax.f32 %v886_v5, 0.0  ;;  %v889_v37 = vadd.f32 %v9836_v3, %v888_v15  ;;  %v1312_v21 = vsel %vm12276_vm10, %v1309_v36, %v1311_v12  ;;  %v8406_v22 = vpop.f32.mrb[91].mxu1  ;;  %v1471_v27 = vrot.slane %v1469_v32, 6  ;;  %v9929_v56 = vpop.permute.xlu1 %1139  ;;  %v8581_v5 = vld [vmem:[%s12263_s3 + $0xc0] sm:$0xff]  }
 0x1a7   : > { %1611 = vrot.lane.b32.xlu1 %v9683_v2, %s9314_s12  ;;  %v1474_v20 = vrot.slane %v1472_v43, 7  ;;  %v1870_v2 = vsel %vm1867_vm13, %v1868_v29, %v1869_v58  ;;  %8132 = vmatprep.subr.bf16.mxu1 %v8581_v5 }
 0x1a8   : > { %v953_v28 = vmax.f32 %v889_v37, 0.0  ;;  %1323 = vrot.lane.b32.xlu0 %v1312_v21, %s9314_s12 }
 0x1a9   : > { %v1475_v26 = vor.u32 %v1474_v20, %v1471_v27 }
 0x1aa   : > { %v980_v0 = vpack.c.bf16 %v953_v28, %v952_v17 }
 0x1ab   : > { %1707 = vrot.lane.b32.xlu1 %v9599_v50, %s12278_s13  ;;  %v893_v36 = vpop.f32.mrb[92].mxu1  ;;  %v9910_v39 = vld [vmem:[#allocation2 + $0xa8] sm:$0xff]  ;;  %v1476_v53 = vsel %vm1450_vm8, %v1466_v24, %v1475_v26 }
 0x1ac   : > { %1006 = vst.msk [vmem:[#allocation2 + $0xb0] sm:$0xff] %vm983_vm2, %v980_v0  ;;  %1879 = vrot.lane.b32.xlu0 %v1870_v2, %s9314_s12  ;;  %v894_v40 = vadd.f32 %v9836_v3, %v893_v36  ;;  %v8409_v62 = vpop.f32.mrb[93].mxu1  ;;  %v1478_v35 = vshrl.u32 %v9910_v39, 16  ;;  %v1481_v47 = vshll.u32 %v9910_v39, 16  ;;  %v1313_v34 = vrot.slane %v9910_v39, 6 }
 0x1ad   : > { %v896_v50 = vpop.f32.mrb[94].mxu1 }
 0x1ae   : > { %v954_v41 = vmax.f32 %v894_v40, 0.0  ;;  %v897_v46 = vadd.f32 %v9836_v3, %v896_v50  ;;  %v8410_v52 = vpop.f32.mrb[95].mxu1  ;;  %v1480_v38 = vrot.slane %v1478_v35, 6  ;;  %v1483_v16 = vrot.slane %v1481_v47, 7 }
 0x1af   : > { %1793 = vrot.lane.b32.xlu1 %v9688_v13, %s9315_s14  ;;  %v1314_v13 = vsel %vm12276_vm10, %v1311_v12, %v1313_v34  ;;  %v1905_v52 = vld [vmem:[#allocation2 + $0x68] sm:$0xfe]  ;;  %v2020_v54 = vrot.slane %v1481_v47, 4 }
 0x1b0   : > { %v955_v63 = vmax.f32 %v897_v46, 0.0  ;;  %1515 = vrot.lane.b32.xlu0 %v1476_v53, %s9315_s14  ;;  %v1484_v33 = vor.u32 %v1483_v16, %v1480_v38  ;;  %v1913_v38 = vshrl.u32 %v1905_v52, 16  ;;  %v1916_v16 = vshll.u32 %v1905_v52, 16 }
 0x1b1   : > { %v1051_v48 = vpop.permute.xlu0 %1050 }
 0x1b2   : > { %v981_v30 = vpack.c.bf16 %v955_v63, %v954_v41  ;;  %1069 = vst.msk [vmem:[#allocation3] sm:$0xff] %vm1068_vm14, %v1051_v48  ;;  %v1485_v49 = vsel %vm1450_vm8, %v1475_v26, %v1484_v33  ;;  %v1776_v48 = vshrl.u32 %v9735_v7, 16 }
 0x1b3   : > { %1613 = vrot.lane.b32.xlu1 %v9702_v31, %s9314_s12  ;;  %v901_v24 = vpop.f32.mrb[96].mxu1  ;;  %1152 = vst.msk [vmem:[#allocation3] sm:$0xff] %vm1151_vm0, %v1134_v42  ;;  %v9936_v4 = vld [vmem:[#allocation2 + $0xb0] sm:$0xff] }
 0x1b4   : > { %1007 = vst.msk [vmem:[#allocation2 + $0xb8] sm:$0xff] %vm983_vm2, %v981_v30  ;;  %1325 = vrot.lane.b32.xlu0 %v1314_v13, %s9314_s12  ;;  %v902_v8 = vadd.f32 %v9836_v3, %v901_v24  ;;  %v8413_v15 = vpop.f32.mrb[97].mxu1  ;;  %v1487_v31 = vshrl.u32 %v9936_v4, 16  ;;  %v1490_v12 = vshll.u32 %v9936_v4, 16  ;;  %v1315_v27 = vrot.slane %v9936_v4, 6 }
 0x1b5   : > { %v904_v42 = vpop.f32.mrb[98].mxu1  ;;  %v1223_v37 = vpop.permute.xlu1 %1222  ;;  %v1991_v30 = vld [vmem:[#allocation2 + $0x98] sm:$0xf8]  ;;  %v1918_v24 = vrot.slane %v1916_v16, 2  ;;  %v1778_v15 = vrot.slane %v1776_v48, 7 }
 0x1b6   : > { %v956_v17 = vmax.f32 %v902_v8, 0.0  ;;  %v905_v21 = vadd.f32 %v9836_v3, %v904_v42  ;;  %v8414_v22 = vpop.f32.mrb[99].mxu1  ;;  %1241 = vst.msk [vmem:[#allocation3] sm:$0xff] %vm1240_vm9, %v1223_v37  ;;  %v1489_v20 = vrot.slane %v1487_v31, 6  ;;  %v1492_v28 = vrot.slane %v1490_v12, 7 }
 0x1b7   : > { %1709 = vrot.lane.b32.xlu1 %v9613_v10, %s12278_s13  ;;  %v1316_v10 = vsel %vm12276_vm10, %v1313_v34, %v1315_v27  ;;  %v2001_v5 = vshll.u32 %v1991_v30, 16  ;;  %v1641_v42 = vld [vmem:[#allocation2 + $0x30] sm:$0x3]  ;;  %v2011_v37 = vrot.slane %v1472_v43, 4  ;;  %v2026_v47 = vrot.slane %v1487_v31, 3 }
 0x1b8   : > { %v957_v29 = vmax.f32 %v905_v21, 0.0  ;;  %1517 = vrot.lane.b32.xlu0 %v1485_v49, %s9315_s14  ;;  %v1493_v2 = vor.u32 %v1492_v28, %v1489_v20  ;;  %v1779_v21 = vshll.u32 %v9735_v7, 16  ;;  %v1697_v20 = vshrl.u32 %v1641_v42, 16 }
 0x1b9   : > { %v1053_v0 = vpop.permute.xlu1 %1052 }
 0x1ba   : > { %v982_v3 = vpack.c.bf16 %v957_v29, %v956_v17  ;;  %1070 = vst.msk [vmem:[#allocation3 + $0x20] sm:$0xff] %vm1068_vm14, %v1053_v0  ;;  %v2008_v17 = vrot.slane %v1469_v32, 3  ;;  %v1781_v32 = vor.u32 %v1779_v21, %v1778_v15  ;;  %v1700_v29 = vshll.u32 %v1641_v42, 16 }
 0x1bb   : > { %1795 = vrot.lane.b32.xlu1 %v9712_v44, %s9315_s14  ;;  %v9961_v36 = vld [vmem:[#allocation2 + $0xb8] sm:$0xff]  ;;  %1153 = vst.msk [vmem:[#allocation3 + $0x20] sm:$0xff] %vm1151_vm0, %v9903_v11  ;;  %v1494_v44 = vsel %vm1450_vm8, %v1484_v33, %v1493_v2  ;;  %v1998_v33 = vshrl.u32 %v1991_v30, 16 }
 0x1bc   : > { %1008 = vst.msk [vmem:[#allocation2 + $0xc0] sm:$0xff] %vm983_vm2, %v982_v3  ;;  %1327 = vrot.lane.b32.xlu0 %v1316_v10, %s9314_s12  ;;  %v1496_v26 = vshrl.u32 %v9961_v36, 16  ;;  %v1499_v40 = vshll.u32 %v9961_v36, 16  ;;  %v1317_v50 = vrot.slane %v9961_v36, 6  ;;  %vm1074_vm2 = vcmask 520448  }
 0x1bd   : > { %v1225_v62 = vpop.permute.xlu1 %1224  ;;  %v1587_v3 = vld [vmem:[#allocation2 + $0x60] sm:$0xf]  ;;  %v1702_v52 = vrot.slane %v1700_v29, 6 }
 0x1be   : > { %1242 = vst.msk [vmem:[#allocation3 + $0x20] sm:$0xff] %vm1240_vm9, %v1225_v62  ;;  %v1498_v41 = vrot.slane %v1496_v26, 6  ;;  %v1501_v11 = vrot.slane %v1499_v40, 7  ;;  %v1076_v62 = vld [vmem:[#allocation3 + $0xa0] sm:$0x1f] }
 0x1bf   : > { %1615 = vrot.lane.b32.xlu1 %v9724_v59, %s9314_s12  ;;  %v1318_v59 = vsel %vm12276_vm10, %v1315_v27, %v1317_v50  ;;  %v2000_v27 = vrot.slane %v1998_v33, 3 }
 0x1c0   : > { %1519 = vrot.lane.b32.xlu0 %v1494_v44, %s9315_s14  ;;  %v9983_v53 = vor.u32 %v1501_v11, %v1498_v41 }
 0x1c1   : > { %v1055_v46 = vpop.permute.xlu1 %1054 }
 0x1c2   : > { %1071 = vst.msk [vmem:[#allocation3 + $0x40] sm:$0xff] %vm1068_vm14, %v1055_v46  ;;  %v1699_v46 = vrot.slane %v1697_v20, 5 }
 0x1c3   : > { %1711 = vrot.lane.b32.xlu1 %v9636_v45, %s12278_s13  ;;  %1154 = vst.msk [vmem:[#allocation3 + $0x40] sm:$0xff] %vm1151_vm0, %v9917_v51  ;;  %v1299_v34 = vld [vmem:[#allocation2 + $0xc0] sm:$0x7]  ;;  %v1503_v45 = vsel %vm1450_vm8, %v1493_v2, %v9983_v53  ;;  %v1915_v51 = vrot.slane %v1913_v38, 1  ;;  %v1871_v38 = vrot.slane %v9910_v39, 3 }
 0x1c4   : > { %1329 = vrot.lane.b32.xlu0 %v1318_v59, %s9314_s12  ;;  %v1319_v13 = vrot.slane %v1299_v34, 6  ;;  %v1449_v22 = vld [vmem:[#allocation2 + $0xc0] sm:$0x7]  ;;  %v1703_v30 = vor.u32 %v1702_v52, %v1699_v46 }
 0x1c5   : > { %v1227_v63 = vpop.permute.xlu1 %1226  ;;  %v1919_v49 = vor.u32 %v1918_v24, %v1915_v51  ;;  %v1505_v0 = vshrl.u32 %v1449_v22, 16  ;;  %v1508_v10 = vshll.u32 %v1449_v22, 16  ;;  %v1737_v2 = vld [vmem:[#allocation2 + $0x60] sm:$0xf]  ;;  %v2038_v22 = vrot.slane %v1499_v40, 4 }
 0x1c6   : > { %1243 = vst.msk [vmem:[#allocation3 + $0x40] sm:$0xff] %vm1240_vm9, %v1227_v63  ;;  %v1784_v59 = vshrl.u32 %v1737_v2, 16  ;;  %v1787_v51 = vshll.u32 %v1737_v2, 16  ;;  %v1704_v24 = vsel %vm1642_vm5, %v9643_v57, %v1703_v30 }
 0x1c7   : > { %1797 = vrot.lane.b32.xlu1 %v9733_v6, %s9315_s14  ;;  %v1320_v6 = vsel %vm12276_vm10, %v1317_v50, %v1319_v13  ;;  %vm10008_vm10 = vmand %vm1074_vm2, %vm1021_vm7  ;;  %v1928_v43 = vsel %vm1911_vm6, %v1919_v49, %v9780_v18  ;;  %v1607_v18 = vrot.slane %v1587_v3, 7  ;;  %v1507_v16 = vrot.slane %v1505_v0, 6  ;;  %v1910_v49 = vld [vmem:[#allocation2 + $0x90] sm:$0x3f] }
 0x1c8   : > { %1521 = vrot.lane.b32.xlu0 %v1503_v45, %s9315_s14  ;;  %v1510_v63 = vrot.slane %v1508_v10, 7  ;;  %v1786_v45 = vrot.slane %v1784_v59, 7  ;;  %v1960_v20 = vshll.u32 %v1910_v49, 16 }
 0x1c9   : > { %v1057_v8 = vpop.permute.xlu1 %1056  ;;  %v1608_v48 = vsel %vm1595_vm11, %v1605_v14, %v1607_v18  ;;  %v2017_v14 = vrot.slane %v1478_v35, 3  ;;  %vm1157_vm11 = vcmask 782848  }
 0x1ca   : > { %1072 = vst.msk [vmem:[#allocation3 + $0x60] sm:$0xff] %vm1068_vm14, %v1057_v8  ;;  %v1511_v13 = vor.u32 %v1510_v63, %v1507_v16  ;;  %v1789_v33 = vor.u32 %v1787_v51, %v1786_v45  ;;  %v2029_v8 = vrot.slane %v1490_v12, 4  ;;  %vm10061_vm2 = vmand %vm1157_vm11, %vm1021_vm7  ;;  %vm1246_vm11 = vcmask 1045248   ;;  %v8582_v51 = vld [vmem:[%s12263_s3 + $0x80] sm:$0xff]  }
 0x1cb   : > { %1617 = vrot.lane.b32.xlu1 %v9747_v19, %s9314_s12  ;;  %1155 = vst.msk [vmem:[#allocation3 + $0x60] sm:$0xff] %vm1151_vm0, %v9929_v56  ;;  %v2003_v19 = vrot.slane %v2001_v5, 4  ;;  %v2012_v56 = vor.u32 %v2011_v37, %v2008_v17  ;;  %v2021_v5 = vor.u32 %v2020_v54, %v2017_v14  ;;  %v1875_v17 = vrot.slane %v9961_v36, 3  ;;  %v1860_v36 = vld [vmem:[#allocation2 + $0xc0] sm:$0xff]  ;;  %v2076_v14 = vld [vmem:[#allocation3] sm:$0xff] }
 0x1cc   : > { %1331 = vrot.lane.b32.xlu0 %v1320_v6, %s9314_s12  ;;  %v1512_v7 = vsel %vm1450_vm8, %v9983_v53, %v1511_v13  ;;  %v1873_v53 = vrot.slane %v9936_v4, 3  ;;  %v2030_v42 = vor.u32 %v2029_v8, %v2026_v47  ;;  %v1962_v3 = vrot.slane %v1960_v20, 2  ;;  %v8587_v47 = vld [vmem:[%s12263_s3 + $0xd8] sm:$0xff]  }
 0x1cd   : > { %v2004_v11 = vor.u32 %v2003_v19, %v2000_v27  ;;  %v2022_v57 = vsel %vm1021_vm7, %v2012_v56, %v2021_v5  ;;  %v1957_v19 = vshrl.u32 %v1910_v49, 16  ;;  %v1877_v10 = vrot.slane %v1860_v36, 3  ;;  %v2084_v20 = vld [vmem:[#allocation3 + $0x40] sm:$0xff] }
 0x1ce   : > { %v1874_v39 = vsel %vm1867_vm13, %v1871_v38, %v1873_v53  ;;  %v2031_v12 = vsel %vm1021_vm7, %v2021_v5, %v2030_v42  ;;  %v1876_v21 = vsel %vm1867_vm13, %v1873_v53, %v1875_v17  ;;  %v2042_v2 = vshrl.u32 %v1860_v36, 16 }
 0x1cf   : > { %1713 = vrot.lane.b32.xlu1 %v9647_v60, %s12278_s13  ;;  %v1782_v60 = vsel %vm12277_vm12, %v9728_v61, %v1781_v32  ;;  %v2013_v34 = vsel %vm1021_vm7, %v2004_v11, %v2012_v56  ;;  %v1872_v61 = vsel %vm1867_vm13, %v1869_v58, %v1871_v38  ;;  %v1790_v58 = vsel %vm12277_vm12, %v1778_v15, %v1789_v33  ;;  %vm10081_vm12 = vmand %vm1246_vm11, %vm1021_vm7  ;;  %v8598_v15 = vld [vmem:[%s12265_s5 + $0x108] sm:$0xff]   ;;  %v8599_v32 = vld [vmem:[%s12265_s5 + $0x110] sm:$0xff]  }
 0x1d0   : > { %1965 = vrot.lane.b32.xlu0 %v1928_v43, %s12278_s13  ;;  %v1061_v44 = vpop.permute.xlu1 %1060  ;;  %v1959_v56 = vrot.slane %v1957_v19, 1  ;;  %v8593_v19 = vld [vmem:[%s12263_s3 + $0xf0] sm:$0xff]  }
 0x1d1   : > { %v1077_v50 = vsel %vm10008_vm10, %v1061_v44, %v1076_v62  ;;  %v1059_v41 = vpop.permute.xlu0 %1058  ;;  %v2045_v62 = vshll.u32 %v1860_v36, 16  ;;  %v8594_v36 = vld [vmem:[%s12263_s3 + $0xb0] sm:$0xff]  }
 0x1d2   : > { %1078 = vst [vmem:[#allocation3 + $0xa0] sm:$0x1f] %v1077_v50  ;;  %1073 = vst.msk [vmem:[#allocation3 + $0x80] sm:$0xff] %vm1068_vm14, %v1059_v41  ;;  %v1963_v50 = vor.u32 %v1962_v3, %v1959_v56  ;;  %v2044_v41 = vrot.slane %v2042_v2, 3  ;;  %v8596_v56 = vld [vmem:[%s12263_s3 + $0xb8] sm:$0xff]  }
 0x1d3   : > { %1799 = vrot.lane.b32.xlu1 %v1782_v60, %s9315_s14  ;;  %v2047_v11 = vrot.slane %v2045_v62, 4  ;;  %v1344_v62 = vld [vmem:[#allocation3 + $0xa8] sm:$0x1f] }
 0x1d4   : > { %2050 = vrot.lane.b32.xlu0 %v2013_v34, %s9315_s14  ;;  %v1964_v60 = vsel %vm1911_vm6, %v9845_v25, %v1963_v50 }
 0x1d5   : > { %v2048_v18 = vor.u32 %v2047_v11, %v2044_v41 }
 0x1d7   : > { %1619 = vrot.lane.b32.xlu1 %v1608_v48, %s9314_s12 }
 0x1d8   : > { %1881 = vrot.lane.b32.xlu0 %v1872_v61, %s9314_s12 }
 0x1d9   : > { %v1159_v6 = vld [vmem:[#allocation3 + $0xa0] sm:$0x1f] }
 0x1db   : > { %1715 = vrot.lane.b32.xlu1 %v1704_v24, %s12278_s13 }
 0x1dc   : > { %1523 = vrot.lane.b32.xlu0 %v1512_v7, %s9315_s14  ;;  %v8583_v7 = vld [vmem:[%s12263_s3 + $0xc8] sm:$0xff]  }
 0x1df   : > { %1801 = vrot.lane.b32.xlu1 %v1790_v58, %s9315_s14  ;;  %v8584_v58 = vld [vmem:[%s12263_s3 + $0x88] sm:$0xff]  }
 0x1e0   : > { %1967 = vrot.lane.b32.xlu0 %v9808_v9, %s12278_s13 }
 0x1e4   : > { %2052 = vrot.lane.b32.xlu0 %v2022_v57, %s9315_s14  ;;  %v8585_v57 = vld [vmem:[%s12263_s3 + $0xd0] sm:$0xff]  }
 0x1e5   : > { %v10051_v35 = vpop.permute.xlu1 %1417 }
 0x1e8   : > { %1883 = vrot.lane.b32.xlu0 %v1874_v39, %s9314_s12 }
 0x1e9   : > { %v1229_v9 = vpop.permute.xlu1 %1228 }
 0x1ea   : > { %1244 = vst.msk [vmem:[#allocation3 + $0x60] sm:$0xff] %vm1240_vm9, %v1229_v9  ;;  %v8588_v9 = vld [vmem:[%s12263_s3 + $0x98] sm:$0xff]  }
 0x1ec   : > { %1969 = vrot.lane.b32.xlu0 %v9825_v55, %s12278_s13  ;;  %v2035_v55 = vrot.slane %v1496_v26, 3 }
 0x1ed   : > { %v1144_v31 = vpop.permute.xlu1 %1143  ;;  %v1420_v46 = vpop.permute.xlu0 %1419 }
 0x1ee   : > { %v1160_v4 = vsel %vm10061_vm2, %v1144_v31, %v1159_v6  ;;  %v2039_v29 = vor.u32 %v2038_v22, %v2035_v55  ;;  %v8589_v31 = vld [vmem:[%s12263_s3 + $0xe0] sm:$0xff]   ;;  %v8592_v22 = vld [vmem:[%s12263_s3 + $0xa8] sm:$0xff]  }
 0x1ef   : > { %1161 = vst [vmem:[#allocation3 + $0xa0] sm:$0x1f] %v1160_v4  ;;  %v2080_v4 = vld [vmem:[#allocation3 + $0x20] sm:$0xff] }
 0x1f0   : > { %2054 = vrot.lane.b32.xlu0 %v2031_v12, %s9315_s14  ;;  %v2040_v0 = vsel %vm1021_vm7, %v2030_v42, %v2039_v29  ;;  %v2049_v59 = vsel %vm1021_vm7, %v2039_v29, %v2048_v18 }
 0x1f1   : > { %v1142_v37 = vpop.permute.xlu1 %1141 }
 0x1f2   : > { %1156 = vst.msk [vmem:[#allocation3 + $0x80] sm:$0xff] %vm1151_vm0, %v1142_v37 }
 0x1f4   : > { %1885 = vrot.lane.b32.xlu0 %v1876_v21, %s9314_s12  ;;  %v8591_v21 = vld [vmem:[%s12263_s3 + $0xe8] sm:$0xff]  }
 0x1f5   : > { %v1231_v27 = vpop.permute.xlu1 %1230  ;;  %v1422_v52 = vpop.permute.xlu0 %1421 }
 0x1f6   : > { %1245 = vst.msk [vmem:[#allocation3 + $0x80] sm:$0xff] %vm1240_vm9, %v1231_v27  ;;  %v1248_v26 = vld [vmem:[#allocation3 + $0xa0] sm:$0x1f] }
 0x1f8   : > { %1971 = vrot.lane.b32.xlu0 %v9851_v23, %s12278_s13  ;;  %v1878_v23 = vsel %vm1867_vm13, %v1875_v17, %v1877_v10  ;;  %v8590_v17 = vld [vmem:[%s12263_s3 + $0xa0] sm:$0xff]  }
 0x1f9   : > { %v1233_v40 = vpop.permute.xlu1 %1232 }
 0x1fa   : > { %v1249_v43 = vsel %vm10081_vm12, %v1233_v40, %v1248_v26  ;;  %v8595_v40 = vld [vmem:[%s12263_s3 + $0xf8] sm:$0xff]  }
 0x1fb   : > { %1250 = vst [vmem:[#allocation3 + $0xa0] sm:$0x1f] %v1249_v43 }
 0x1fc   : > { %2056 = vrot.lane.b32.xlu0 %v2040_v0, %s9315_s14 }
 0x1fd   : > { %v1610_v44 = vpop.permute.xlu1 %1609  ;;  %v10099_v34 = vpop.permute.xlu0 %1423 }
 0x1fe   : > { %1627 = vst.msk [vmem:[#allocation3 + $0x10] sm:$0xff] %vm1068_vm14, %v1610_v44 }
 0x200   : > { %1887 = vrot.lane.b32.xlu0 %v1878_v23, %s9314_s12 }
 0x204   : > { %1973 = vrot.lane.b32.xlu0 %v1964_v60, %s12278_s13 }
 0x205   : > { %v10102_v38 = vpop.permute.xlu0 %1425 }
 0x208   : > { %2058 = vrot.lane.b32.xlu0 %v2049_v59, %s9315_s14 }
 0x20c   : > { %1889 = vrot.lane.b32.xlu0 %v1877_v10, %s9314_s12  ;;  %v2088_v10 = vld [vmem:[#allocation3 + $0x60] sm:$0xff]  ;;  %s12292_s12 = smov 64  }
 0x20d   : > { %v10104_v16 = vpop.permute.xlu1 %1427 }
 0x210   : > { %1975 = vrot.lane.b32.xlu0 %v1963_v50, %s12278_s13 }
 0x211   : > { %v1706_v63 = vpop.permute.xlu1 %1705  ;;  %v1322_v25 = vpop.permute.xlu0 %1321 }
 0x212   : > { %1723 = vst.msk [vmem:[#allocation3 + $0x10] sm:$0xff] %vm1151_vm0, %v1706_v63 }
 0x213   : > { %1339 = vst.msk [vmem:[#allocation3 + $0x8] sm:$0xff] %vm1068_vm14, %v1322_v25 }
 0x214   : > { %1435 = vst.msk [vmem:[#allocation3 + $0x8] sm:$0xff] %vm1151_vm0, %v10051_v35  ;;  %2060 = vrot.lane.b32.xlu0 %v2048_v18, %s9315_s14  ;;  %v8586_v35 = vld [vmem:[%s12263_s3 + $0x90] sm:$0xff]  }
 0x215   : > { %v1792_v48 = vpop.permute.xlu1 %1791 }
 0x216   : > { %1809 = vst.msk [vmem:[#allocation3 + $0x10] sm:$0xff] %vm1240_vm9, %v1792_v48  ;;  %v1514_v30 = vpop.permute.xlu0 %1513 }
 0x217   : > { %1531 = vst.msk [vmem:[#allocation3 + $0x8] sm:$0xff] %vm1240_vm9, %v1514_v30 }
 0x219   : > { %v1612_v45 = vpop.permute.xlu1 %1611 }
 0x21a   : > { %1628 = vst.msk [vmem:[#allocation3 + $0x30] sm:$0xff] %vm1068_vm14, %v1612_v45  ;;  %v1324_v61 = vpop.permute.xlu0 %1323 }
 0x21b   : > { %1340 = vst.msk [vmem:[#allocation3 + $0x28] sm:$0xff] %vm1068_vm14, %v1324_v61 }
 0x21c   : > { %1436 = vst.msk [vmem:[#allocation3 + $0x28] sm:$0xff] %vm1151_vm0, %v1420_v46  ;;  %v2092_v46 = vld [vmem:[#allocation3 + $0x80] sm:$0xff] }
 0x21d   : > { %v1708_v13 = vpop.permute.xlu1 %1707 }
 0x21e   : > { %1724 = vst.msk [vmem:[#allocation3 + $0x30] sm:$0xff] %vm1151_vm0, %v1708_v13  ;;  %v1880_v24 = vpop.permute.xlu0 %1879  ;;  %v2077_v33 = vld [vmem:[#allocation3 + $0x8] sm:$0xff] }
 0x21f   : > { %1897 = vst.msk [vmem:[#allocation3 + $0x18] sm:$0xff] %vm1068_vm14, %v1880_v24  ;;  %2395 = vmatprep.mubr.bf16.mxu1 %v2077_v33 }
 0x220   : > { %2396 = vmatmul.mubr.bf16.vlgmr.msra.gmra.mrb[100].mxu1 %v2076_v14  ;;  %v2096_v14 = vld [vmem:[#allocation3 + $0xa0] sm:$0xff] }
 0x221   : > { %v1794_v54 = vpop.permute.xlu1 %1793  ;;  %8133 = vmatpush3.bf16.msra.mxu1 %v8582_v51 }
 0x222   : > { %1810 = vst.msk [vmem:[#allocation3 + $0x30] sm:$0xff] %vm1240_vm9, %v1794_v54  ;;  %v1516_v5 = vpop.permute.xlu0 %1515  ;;  %8134 = vmatprep.subr.bf16.mxu1 %v8583_v7 }
 0x223   : > { %1532 = vst.msk [vmem:[#allocation3 + $0x28] sm:$0xff] %vm1240_vm9, %v1516_v5 }
 0x225   : > { %v1614_v53 = vpop.permute.xlu1 %1613  ;;  %8135 = vmatpush3.bf16.msra.mxu1 %v8584_v58 }
 0x226   : > { %1629 = vst.msk [vmem:[#allocation3 + $0x50] sm:$0xff] %vm1068_vm14, %v1614_v53  ;;  %v1326_v39 = vpop.permute.xlu0 %1325  ;;  %8136 = vmatprep.subr.bf16.mxu1 %v8585_v57 }
 0x227   : > { %1341 = vst.msk [vmem:[#allocation3 + $0x48] sm:$0xff] %vm1068_vm14, %v1326_v39  ;;  %v2078_v39 = vld [vmem:[#allocation3 + $0x10] sm:$0xff] }
 0x228   : > { %1437 = vst.msk [vmem:[#allocation3 + $0x48] sm:$0xff] %vm1151_vm0, %v1422_v52 }
 0x229   : > { %v1710_v8 = vpop.permute.xlu1 %1709  ;;  %8137 = vmatpush3.bf16.msra.mxu1 %v8586_v35 }
 0x22a   : > { %1725 = vst.msk [vmem:[#allocation3 + $0x50] sm:$0xff] %vm1151_vm0, %v1710_v8  ;;  %v1518_v42 = vpop.permute.xlu0 %1517  ;;  %v2081_v6 = vld [vmem:[#allocation3 + $0x28] sm:$0xff]  ;;  %8138 = vmatprep.subr.bf16.mxu1 %v8587_v47 }
 0x22b   : > { %1533 = vst.msk [vmem:[#allocation3 + $0x48] sm:$0xff] %vm1240_vm9, %v1518_v42  ;;  %2403 = vmatprep.mubr.bf16.mxu1 %v2081_v6  ;;  %v2082_v42 = vld [vmem:[#allocation3 + $0x30] sm:$0xff] }
 0x22c   : > { %2404 = vmatmul.mubr.bf16.gmra.mrb[104].mxu1 %v2080_v4 }
 0x22d   : > { %v1796_v12 = vpop.permute.xlu1 %1795  ;;  %8139 = vmatpush3.bf16.msra.mxu1 %v8588_v9 }
 0x22e   : > { %1811 = vst.msk [vmem:[#allocation3 + $0x50] sm:$0xff] %vm1240_vm9, %v1796_v12  ;;  %v1328_v37 = vpop.permute.xlu0 %1327  ;;  %8140 = vmatprep.subr.bf16.mxu1 %v8589_v31 }
 0x22f   : > { %1342 = vst.msk [vmem:[#allocation3 + $0x68] sm:$0xff] %vm1068_vm14, %v1328_v37 }
 0x230   : > { %1438 = vst.msk [vmem:[#allocation3 + $0x68] sm:$0xff] %vm1151_vm0, %v10099_v34  ;;  %v1632_v34 = vld [vmem:[#allocation3 + $0xb0] sm:$0x1f] }
 0x231   : > { %v1616_v55 = vpop.permute.xlu1 %1615  ;;  %8141 = vmatpush3.bf16.msra.mxu1 %v8590_v17 }
 0x232   : > { %1630 = vst.msk [vmem:[#allocation3 + $0x70] sm:$0xff] %vm1068_vm14, %v1616_v55  ;;  %v1520_v49 = vpop.permute.xlu0 %1519  ;;  %v2085_v27 = vld [vmem:[#allocation3 + $0x48] sm:$0xff]  ;;  %8142 = vmatprep.subr.bf16.mxu1 %v8591_v21 }
 0x233   : > { %1534 = vst.msk [vmem:[#allocation3 + $0x68] sm:$0xff] %vm1240_vm9, %v1520_v49  ;;  %2411 = vmatprep.mubr.bf16.mxu1 %v2085_v27 }
 0x234   : > { %2412 = vmatmul.mubr.bf16.gmra.mrb[108].mxu1 %v2084_v20 }
 0x235   : > { %v1712_v29 = vpop.permute.xlu1 %1711  ;;  %8143 = vmatpush3.bf16.msra.mxu1 %v8592_v22  ;;  %v2086_v12 = vld [vmem:[#allocation3 + $0x50] sm:$0xff]  ;;  %v1902_v22 = vld [vmem:[#allocation3 + $0xb8] sm:$0x1f] }
 0x236   : > { %1726 = vst.msk [vmem:[#allocation3 + $0x70] sm:$0xff] %vm1151_vm0, %v1712_v29  ;;  %v1330_v26 = vpop.permute.xlu0 %1329  ;;  %8144 = vmatprep.subr.bf16.mxu1 %v8593_v19 }
 0x237   : > { %1343 = vst.msk [vmem:[#allocation3 + $0x88] sm:$0xff] %vm1068_vm14, %v1330_v26 }
 0x238   : > { %1439 = vst.msk [vmem:[#allocation3 + $0x88] sm:$0xff] %vm1151_vm0, %v10102_v38 }
 0x239   : > { %v1798_v43 = vpop.permute.xlu1 %1797  ;;  %8145 = vmatpush3.bf16.msra.mxu1 %v8594_v36 }
 0x23a   : > { %1812 = vst.msk [vmem:[#allocation3 + $0x70] sm:$0xff] %vm1240_vm9, %v1798_v43  ;;  %v1522_v3 = vpop.permute.xlu0 %1521  ;;  %v2089_v0 = vld [vmem:[#allocation3 + $0x68] sm:$0xff]  ;;  %8146 = vmatprep.subr.bf16.mxu1 %v8595_v40 }
 0x23b   : > { %1535 = vst.msk [vmem:[#allocation3 + $0x88] sm:$0xff] %vm1240_vm9, %v1522_v3  ;;  %2419 = vmatprep.mubr.bf16.mxu1 %v2089_v0  ;;  %v8597_v0 = vld [vmem:[%s12265_s5 + $0x100] sm:$0xff]  }
 0x23c   : > { %2420 = vmatmul.mubr.bf16.gmra.mrb[112].mxu1 %v2088_v10  ;;  %8416 = vmatpush3.bf16.msra.mxu0 %v8597_v0  ;;  %v8600_v10 = vld [vmem:[%s12265_s5 + $0x118] sm:$0xff]  }
 0x23d   : > { %v1618_v2 = vpop.permute.xlu1 %1617  ;;  %8147 = vmatpush3.bf16.msra.mxu1 %v8596_v56  ;;  %8417 = vmatprep.subr.bf16.mxu0 %v9311_v1 }
 0x23e   : > { %1631 = vst.msk [vmem:[#allocation3 + $0x90] sm:$0xff] %vm1068_vm14, %v1618_v2  ;;  %v1332_v44 = vpop.permute.xlu0 %1331 }
 0x23f   : > { %v1345_v23 = vsel %vm10008_vm10, %v1332_v44, %v1344_v62 }
 0x240   : > { %1346 = vst [vmem:[#allocation3 + $0xa8] sm:$0x1f] %v1345_v23  ;;  %8418 = vmatpush3.bf16.msra.mxu0 %v8598_v15 }
 0x241   : > { %v1714_v50 = vpop.permute.xlu1 %1713  ;;  %v2090_v55 = vld [vmem:[#allocation3 + $0x70] sm:$0xff]  ;;  %8419 = vmatprep.subr.bf16.mxu0 %v9311_v1 }
 0x242   : > { %1727 = vst.msk [vmem:[#allocation3 + $0x90] sm:$0xff] %vm1151_vm0, %v1714_v50  ;;  %v1966_v41 = vpop.permute.xlu0 %1965  ;;  %v2093_v11 = vld [vmem:[#allocation3 + $0x88] sm:$0xff] }
 0x243   : > { %1983 = vst.msk [vmem:[#allocation3 + $0x18] sm:$0xff] %vm1151_vm0, %v1966_v41  ;;  %2427 = vmatprep.mubr.bf16.mxu1 %v2093_v11 }
 0x244   : > { %2428 = vmatmul.mubr.bf16.gmra.mrb[116].mxu1 %v2092_v46  ;;  %8420 = vmatpush3.bf16.msra.mxu0 %v8599_v32 }
 0x245   : > { %v1800_v60 = vpop.permute.xlu1 %1799  ;;  %8421 = vmatprep.subr.bf16.mxu0 %v9311_v1 }
 0x246   : > { %1813 = vst.msk [vmem:[#allocation3 + $0x90] sm:$0xff] %vm1240_vm9, %v1800_v60  ;;  %v2051_v18 = vpop.permute.xlu0 %2050 }
 0x247   : > { %v1440_v52 = vld [vmem:[#allocation3 + $0xa8] sm:$0x1f]  ;;  %2068 = vst.msk [vmem:[#allocation3 + $0x18] sm:$0xff] %vm1240_vm9, %v2051_v18 }
 0x248   : > { %v1441_v59 = vsel %vm10061_vm2, %v10104_v16, %v1440_v52  ;;  %8422 = vmatpush3.bf16.msra.mxu0 %v8600_v10 }
 0x249   : > { %1442 = vst [vmem:[#allocation3 + $0xa8] sm:$0x1f] %v1441_v59  ;;  %v1620_v38 = vpop.permute.xlu1 %1619 }
 0x24a   : > { %v1633_v63 = vsel %vm10008_vm10, %v1620_v38, %v1632_v34  ;;  %v1882_v25 = vpop.permute.xlu0 %1881 }
 0x24b   : > { %1634 = vst [vmem:[#allocation3 + $0xb0] sm:$0x1f] %v1633_v63  ;;  %1898 = vst.msk [vmem:[#allocation3 + $0x38] sm:$0xff] %vm1068_vm14, %v1882_v25 }
 0x24d   : > { %v1716_v13 = vpop.permute.xlu1 %1715  ;;  %v2094_v20 = vld [vmem:[#allocation3 + $0x90] sm:$0xff] }
 0x24e   : > { %v1524_v48 = vpop.permute.xlu0 %1523  ;;  %v2079_v5 = vld [vmem:[#allocation3 + $0x18] sm:$0xff] }
 0x250   : > { %v1536_v30 = vld [vmem:[#allocation3 + $0xa8] sm:$0x1f] }
 0x251   : > { %v1537_v45 = vsel %vm10081_vm12, %v1524_v48, %v1536_v30  ;;  %v1802_v58 = vpop.permute.xlu1 %1801 }
 0x252   : > { %v1728_v61 = vld [vmem:[#allocation3 + $0xb0] sm:$0x1f]  ;;  %1538 = vst [vmem:[#allocation3 + $0xa8] sm:$0x1f] %v1537_v45  ;;  %v1968_v51 = vpop.permute.xlu0 %1967 }
 0x253   : > { %v1729_v16 = vsel %vm10061_vm2, %v1716_v13, %v1728_v61  ;;  %1984 = vst.msk [vmem:[#allocation3 + $0x38] sm:$0xff] %vm1151_vm0, %v1968_v51 }
 0x254   : > { %1730 = vst [vmem:[#allocation3 + $0xb0] sm:$0x1f] %v1729_v16 }
 0x256   : > { %v2053_v24 = vpop.permute.xlu0 %2052 }
 0x257   : > { %2069 = vst.msk [vmem:[#allocation3 + $0x38] sm:$0xff] %vm1240_vm9, %v2053_v24 }
 0x259   : > { %v2097_v33 = vld [vmem:[#allocation3 + $0xa8] sm:$0xff] }
 0x25a   : > { %2435 = vmatprep.mubr.bf16.mxu1 %v2097_v33  ;;  %v1884_v7 = vpop.permute.xlu0 %1883  ;;  %v8601_v33 = vld [vmem:[%s12265_s5 + $0x40] sm:$0xff]  }
 0x25b   : > { %v1814_v54 = vld [vmem:[#allocation3 + $0xb0] sm:$0x1f]  ;;  %1899 = vst.msk [vmem:[#allocation3 + $0x58] sm:$0xff] %vm1068_vm14, %v1884_v7  ;;  %2436 = vmatmul.mubr.bf16.gmra.mrb[120].mxu1 %v2096_v14  ;;  %v8602_v7 = vld [vmem:[%s12265_s5] sm:$0xff]   ;;  %v8603_v14 = vld [vmem:[%s12265_s5 + $0x48] sm:$0xff]   ;;  %8184 = vmatprep.subr.bf16.mxu1 %v8601_v33 }
 0x25c   : > { %v1815_v57 = vsel %vm10081_vm12, %v1802_v58, %v1814_v54  ;;  %2476 = vmatprep.mubr.bf16.mxu1 %v2079_v5  ;;  %v8604_v5 = vld [vmem:[%s12265_s5 + $0x8] sm:$0xff]  }
 0x25d   : > { %1816 = vst [vmem:[#allocation3 + $0xb0] sm:$0x1f] %v1815_v57 }
 0x25e   : > { %v1970_v53 = vpop.permute.xlu0 %1969  ;;  %v2083_v47 = vld [vmem:[#allocation3 + $0x38] sm:$0xff] }
 0x25f   : > { %1985 = vst.msk [vmem:[#allocation3 + $0x58] sm:$0xff] %vm1151_vm0, %v1970_v53 }
 0x262   : > { %v2055_v35 = vpop.permute.xlu0 %2054 }
 0x263   : > { %2070 = vst.msk [vmem:[#allocation3 + $0x58] sm:$0xff] %vm1240_vm9, %v2055_v35  ;;  %2477 = vmatmul.mubr.bf16.vlgmr.msra.gmra.mrb[124].mxu1 %v2078_v39  ;;  %v8605_v35 = vld [vmem:[%s12265_s5 + $0x50] sm:$0xff]  }
 0x264   : > { %2484 = vmatprep.mubr.bf16.mxu1 %v2083_v47  ;;  %v2098_v28 = vld [vmem:[#allocation3 + $0xb0] sm:$0xff]  ;;  %8185 = vmatpush3.bf16.msra.mxu1 %v8602_v7 }
 0x265   : > { %8186 = vmatprep.subr.bf16.mxu1 %v8603_v14 }
 0x266   : > { %v1886_v8 = vpop.permute.xlu0 %1885 }
 0x267   : > { %1900 = vst.msk [vmem:[#allocation3 + $0x78] sm:$0xff] %vm1068_vm14, %v1886_v8  ;;  %v8606_v8 = vld [vmem:[%s12265_s5 + $0x10] sm:$0xff]  }
 0x268   : > { %8187 = vmatpush3.bf16.msra.mxu1 %v8604_v5 }
 0x269   : > { %8188 = vmatprep.subr.bf16.mxu1 %v8605_v35 }
 0x26a   : > { %v1972_v9 = vpop.permute.xlu0 %1971  ;;  %v2087_v6 = vld [vmem:[#allocation3 + $0x58] sm:$0xff] }
 0x26b   : > { %1986 = vst.msk [vmem:[#allocation3 + $0x78] sm:$0xff] %vm1151_vm0, %v1972_v9  ;;  %2485 = vmatmul.mubr.bf16.gmra.mrb[128].mxu1 %v2082_v42  ;;  %v8607_v9 = vld [vmem:[%s12265_s5 + $0x58] sm:$0xff]  }
 0x26c   : > { %2492 = vmatprep.mubr.bf16.mxu1 %v2087_v6  ;;  %8189 = vmatpush3.bf16.msra.mxu1 %v8606_v8  ;;  %v8608_v42 = vld [vmem:[%s12265_s5 + $0x18] sm:$0xff]   ;;  %v8609_v6 = vld [vmem:[%s12265_s5 + $0x60] sm:$0xff]  }
 0x26d   : > { %8190 = vmatprep.subr.bf16.mxu1 %v8607_v9 }
 0x26e   : > { %v2057_v31 = vpop.permute.xlu0 %2056 }
 0x26f   : > { %2071 = vst.msk [vmem:[#allocation3 + $0x78] sm:$0xff] %vm1240_vm9, %v2057_v31  ;;  %v8610_v31 = vld [vmem:[%s12265_s5 + $0x20] sm:$0xff]  }
 0x270   : > { %8191 = vmatpush3.bf16.msra.mxu1 %v8608_v42 }
 0x271   : > { %8192 = vmatprep.subr.bf16.mxu1 %v8609_v6 }
 0x272   : > { %v1888_v4 = vpop.permute.xlu0 %1887 }
 0x273   : > { %1901 = vst.msk [vmem:[#allocation3 + $0x98] sm:$0xff] %vm1068_vm14, %v1888_v4  ;;  %2493 = vmatmul.mubr.bf16.gmra.mrb[132].mxu1 %v2086_v12  ;;  %v8611_v4 = vld [vmem:[%s12265_s5 + $0x68] sm:$0xff]  }
 0x274   : > { %8193 = vmatpush3.bf16.msra.mxu1 %v8610_v31  ;;  %v8612_v12 = vld [vmem:[%s12265_s5 + $0x28] sm:$0xff]  }
 0x275   : > { %8194 = vmatprep.subr.bf16.mxu1 %v8611_v4 }
 0x276   : > { %v1974_v17 = vpop.permute.xlu0 %1973  ;;  %v2091_v37 = vld [vmem:[#allocation3 + $0x78] sm:$0xff] }
 0x277   : > { %1987 = vst.msk [vmem:[#allocation3 + $0x98] sm:$0xff] %vm1151_vm0, %v1974_v17  ;;  %2500 = vmatprep.mubr.bf16.mxu1 %v2091_v37  ;;  %v8613_v17 = vld [vmem:[%s12265_s5 + $0x70] sm:$0xff]   ;;  %vm12293_vm0 = vcmask 1045504  }
 0x278   : > { %8195 = vmatpush3.bf16.msra.mxu1 %v8612_v12  ;;  %v8614_v37 = vld [vmem:[%s12265_s5 + $0x30] sm:$0xff]   ;;  %vm12294_vm7 = vmmov %vm12293_vm0 }
 0x279   : > { %8196 = vmatprep.subr.bf16.mxu1 %v8613_v17  ;;  %vm12305_vm11 = vmmov %vm12293_vm0 }
 0x27a   : > { %v2059_v21 = vpop.permute.xlu0 %2058 }
 0x27b   : > { %2072 = vst.msk [vmem:[#allocation3 + $0x98] sm:$0xff] %vm1240_vm9, %v2059_v21  ;;  %2501 = vmatmul.mubr.bf16.gmra.mrb[136].mxu1 %v2090_v55  ;;  %vm2558_vm9 = vcmask 517120  }
 0x27c   : > { %8197 = vmatpush3.bf16.msra.mxu1 %v8614_v37 }
 0x27e   : > { %v1890_v49 = vpop.permute.xlu0 %1889 }
 0x27f   : > { %v1903_v27 = vsel %vm10008_vm10, %v1890_v49, %v1902_v22  ;;  %vm12295_vm10 = vmmov 0  }
 0x280   : > { %1904 = vst [vmem:[#allocation3 + $0xb8] sm:$0x1f] %v1903_v27 }
 0x282   : > { %v2095_v19 = vld [vmem:[#allocation3 + $0x98] sm:$0xff]  ;;  %v1976_v36 = vpop.permute.xlu0 %1975 }
 0x283   : > { %2508 = vmatprep.mubr.bf16.mxu1 %v2095_v19 }
 0x284   : > { %2509 = vmatmul.mubr.bf16.gmra.mrb[140].mxu1 %v2094_v20  ;;  %v10303_v20 = vld [vmem:[%s12264_s4] ss:$0 sm:$0xff] }
 0x286   : > { %v2061_v43 = vpop.permute.xlu0 %2060 }
 0x287   : > { %v1988_v29 = vld [vmem:[#allocation3 + $0xb8] sm:$0x1f] }
 0x288   : > { %v1989_v26 = vsel %vm10061_vm2, %v1976_v36, %v1988_v29 }
 0x289   : > { %1990 = vst [vmem:[#allocation3 + $0xb8] sm:$0x1f] %v1989_v26 }
 0x290   : > { %v2073_v40 = vld [vmem:[#allocation3 + $0xb8] sm:$0x1f] }
 0x291   : > { %v2074_v56 = vsel %vm10081_vm12, %v2061_v43, %v2073_v40  ;;  %vm10418_vm12 = vmand %vm2558_vm9, %vm1450_vm8  ;;  %vm12308_vm9 = vsmask.f32 256 }
 0x292   : > { %2075 = vst [vmem:[#allocation3 + $0xb8] sm:$0x1f] %v2074_v56 }
 0x299   : > { %v2099_v3 = vld [vmem:[#allocation3 + $0xb8] sm:$0xff] }
 0x29a   : > { %2516 = vmatprep.mubr.bf16.mxu1 %v2099_v3 }
 0x29b   : > { %2517 = vmatmul.mubr.bf16.gmra.mrb[144].mxu1 %v2098_v28 }
 0x2f3   : > { %v8096_v2 = vpop.f32.mrb[100].mxu1 }
 0x2f4   : > { %v8097_v62 = vpop.f32.mrb[101].mxu1 }
 0x2f5   : > { %v10234_v44 = vadd.f32 %v8097_v62, %v8096_v2  ;;  %v8099_v23 = vpop.f32.mrb[102].mxu1 }
 0x2f6   : > { %v8100_v50 = vpop.f32.mrb[103].mxu1 }
 0x2f7   : > { %v10236_v41 = vadd.f32 %v8100_v50, %v8099_v23  ;;  %v2398_v26 = vadd.f32 %v10234_v44, %v10303_v20 }
 0x2f9   : > { %v2401_v3 = vadd.f32 %v10236_v41, %v10303_v20 }
 0x2ff   : > { %v8102_v11 = vpop.f32.mrb[104].mxu1 }
 0x300   : > { %v8103_v46 = vpop.f32.mrb[105].mxu1 }
 0x301   : > { %v10238_v60 = vadd.f32 %v8103_v46, %v8102_v11  ;;  %v8105_v18 = vpop.f32.mrb[106].mxu1 }
 0x302   : > { %v8106_v52 = vpop.f32.mrb[107].mxu1 }
 0x303   : > { %v10240_v59 = vadd.f32 %v8106_v52, %v8105_v18  ;;  %v2406_v23 = vadd.f32 %v10238_v60, %v10303_v20 }
 0x305   : > { %v2409_v18 = vadd.f32 %v10240_v59, %v10303_v20 }
 0x307   : > { %v8108_v34 = vpop.f32.mrb[108].mxu1 }
 0x308   : > { %v8109_v38 = vpop.f32.mrb[109].mxu1 }
 0x309   : > { %v10242_v63 = vadd.f32 %v8109_v38, %v8108_v34  ;;  %v8111_v25 = vpop.f32.mrb[110].mxu1 }
 0x30a   : > { %v8112_v48 = vpop.f32.mrb[111].mxu1 }
 0x30b   : > { %v10244_v30 = vadd.f32 %v8112_v48, %v8111_v25 }
 0x30d   : > { %v2417_v59 = vadd.f32 %v10244_v30, %v10303_v20 }
 0x30f   : > { %v8114_v45 = vpop.f32.mrb[112].mxu1 }
 0x310   : > { %v8115_v61 = vpop.f32.mrb[113].mxu1 }
 0x311   : > { %v10246_v13 = vadd.f32 %v8115_v61, %v8114_v45  ;;  %v8117_v51 = vpop.f32.mrb[114].mxu1  ;;  %v2414_v61 = vadd.f32 %v10242_v63, %v10303_v20  ;;  %v8616_v63 = vld [vmem:[%s12265_s5 + $0x38] sm:$0xff]  }
 0x312   : > { %v8118_v16 = vpop.f32.mrb[115].mxu1 }
 0x313   : > { %v10248_v24 = vadd.f32 %v8118_v16, %v8117_v51  ;;  %v2422_v42 = vadd.f32 %v10246_v13, %v10303_v20 }
 0x315   : > { %v2425_v17 = vadd.f32 %v10248_v24, %v10303_v20  ;;  %v8617_v24 = vld [vmem:[%s12265_s5 + $0xc0] sm:$0xff]  }
 0x317   : > { %v8120_v54 = vpop.f32.mrb[116].mxu1 }
 0x318   : > { %v8121_v58 = vpop.f32.mrb[117].mxu1 }
 0x319   : > { %v10262_v57 = vadd.f32 %v8121_v58, %v8120_v54  ;;  %v8123_v53 = vpop.f32.mrb[118].mxu1  ;;  %v8615_v58 = vld [vmem:[%s12265_s5 + $0x78] sm:$0xff]  }
 0x31a   : > { %v8124_v39 = vpop.f32.mrb[119].mxu1  ;;  %8198 = vmatprep.subr.bf16.mxu1 %v8615_v58 }
 0x31b   : > { %v10267_v47 = vadd.f32 %v8124_v39, %v8123_v53  ;;  %8199 = vmatpush3.bf16.msra.mxu1 %v8616_v63 }
 0x31c   : > { %8230 = vmatprep.subr.bf16.mxu1 %v8617_v24 }
 0x32e   : > { %v8126_v21 = vpop.f32.mrb[120].mxu1 }
 0x32f   : > { %v8127_v55 = vpop.f32.mrb[121].mxu1 }
 0x330   : > { %v10296_v22 = vadd.f32 %v8127_v55, %v8126_v21  ;;  %v8129_v49 = vpop.f32.mrb[122].mxu1 }
 0x331   : > { %v8130_v27 = vpop.f32.mrb[123].mxu1 }
 0x332   : > { %v10298_v19 = vadd.f32 %v8130_v27, %v8129_v49 }
 0x336   : > { %v8148_v29 = vpop.f32.mrb[124].mxu1 }
 0x337   : > { %v8149_v36 = vpop.f32.mrb[125].mxu1 }
 0x338   : > { %v8150_v40 = vadd.f32 %v8149_v36, %v8148_v29  ;;  %v8151_v43 = vpop.f32.mrb[126].mxu1 }
 0x339   : > { %v8152_v56 = vpop.f32.mrb[127].mxu1 }
 0x33a   : > { %v2479_v28 = vadd.f32 %v8150_v40, %v2398_v26  ;;  %v8153_v0 = vadd.f32 %v8152_v56, %v8151_v43 }
 0x33c   : > { %v2482_v15 = vadd.f32 %v8153_v0, %v2401_v3  ;;  %v2525_v32 = vmax.f32 %v2479_v28, 0.0 }
 0x33e   : > { %v2526_v10 = vmax.f32 %v2482_v15, 0.0  ;;  %v8154_v2 = vpop.f32.mrb[128].mxu1 }
 0x33f   : > { %v8155_v62 = vpop.f32.mrb[129].mxu1 }
 0x340   : > { %v2537_v50 = vpack.c.bf16 %v2526_v10, %v2525_v32  ;;  %v8156_v11 = vadd.f32 %v8155_v62, %v8154_v2  ;;  %v8157_v46 = vpop.f32.mrb[130].mxu1 }
 0x341   : > { %v8158_v44 = vpop.f32.mrb[131].mxu1 }
 0x342   : > { %2543 = vst.msk [vmem:[#allocation4] sm:$0xff] %vm599_vm1, %v2537_v50  ;;  %v2487_v41 = vadd.f32 %v8156_v11, %v2406_v23  ;;  %v8159_v52 = vadd.f32 %v8158_v44, %v8157_v46 }
 0x344   : > { %v2490_v34 = vadd.f32 %v8159_v52, %v2409_v18  ;;  %v2527_v38 = vmax.f32 %v2487_v41, 0.0  ;;  %v2430_v18 = vadd.f32 %v10262_v57, %v10303_v20  ;;  %v2433_v41 = vadd.f32 %v10267_v47, %v10303_v20 }
 0x346   : > { %v2528_v25 = vmax.f32 %v2490_v34, 0.0  ;;  %v8160_v48 = vpop.f32.mrb[132].mxu1 }
 0x347   : > { %v8161_v45 = vpop.f32.mrb[133].mxu1 }
 0x348   : > { %v2538_v60 = vpack.c.bf16 %v2528_v25, %v2527_v38  ;;  %v8162_v51 = vadd.f32 %v8161_v45, %v8160_v48  ;;  %v8163_v16 = vpop.f32.mrb[134].mxu1 }
 0x349   : > { %v8164_v33 = vpop.f32.mrb[135].mxu1  ;;  %v2563_v7 = vld [vmem:[#allocation4] sm:$0xff] }
 0x34a   : > { %2544 = vst.msk [vmem:[#allocation4 + $0x8] sm:$0xff] %vm599_vm1, %v2538_v60  ;;  %v2495_v14 = vadd.f32 %v8162_v51, %v2414_v61  ;;  %v8165_v54 = vadd.f32 %v8164_v33, %v8163_v16  ;;  %2554 = vst.msk [vmem:[#allocation5] sm:$0xff] %vm599_vm1, %v2563_v7  ;;  %v2571_v53 = vshll.u32 %v2563_v7, 16  ;;  %v2663_v9 = vld [vmem:[#allocation4] sm:$0xe0]  ;;  %v2569_v13 = vshrl.u32 %v2563_v7, 16 }
 0x34b   : > { %v2632_v12 = vld [vmem:[#allocation4] sm:$0xfe]  ;;  %v2673_v36 = vrot.slane %v2663_v9, 5 }
 0x34c   : > { %v2498_v5 = vadd.f32 %v8165_v54, %v2417_v59  ;;  %v2529_v35 = vmax.f32 %v2495_v14, 0.0  ;;  %v2573_v55 = vrot.slane %v2571_v53, 1  ;;  %v2704_v49 = vld [vmem:[#allocation4] sm:$0xe0]  ;;  %v2642_v3 = vrot.slane %v2632_v12, 1 }
 0x34d   : > { %v2710_v28 = vshrl.u32 %v2704_v49, 16  ;;  %v2713_v10 = vshll.u32 %v2704_v49, 16 }
 0x34e   : > { %v2530_v39 = vmax.f32 %v2498_v5, 0.0  ;;  %v8166_v30 = vpop.f32.mrb[136].mxu1  ;;  %v2574_v0 = vor.u32 %v2573_v55, %v2569_v13 }
 0x34f   : > { %v8167_v8 = vpop.f32.mrb[137].mxu1  ;;  %v2712_v61 = vrot.slane %v2710_v28, 5  ;;  %v2715_v60 = vrot.slane %v2713_v10, 6 }
 0x350   : > { %v2539_v6 = vpack.c.bf16 %v2530_v39, %v2529_v35  ;;  %v8168_v31 = vadd.f32 %v8167_v8, %v8166_v30  ;;  %v8169_v4 = vpop.f32.mrb[138].mxu1 }
 0x351   : > { %v8170_v37 = vpop.f32.mrb[139].mxu1  ;;  %v10330_v21 = vld [vmem:[#allocation4 + $0x8] sm:$0xff]  ;;  %v2716_v12 = vor.u32 %v2715_v60, %v2712_v61  ;;  %v2438_v60 = vadd.f32 %v10296_v22, %v10303_v20 }
 0x352   : > { %2545 = vst.msk [vmem:[#allocation4 + $0x10] sm:$0xff] %vm599_vm1, %v2539_v6  ;;  %v2503_v27 = vadd.f32 %v8168_v31, %v2422_v42  ;;  %v8171_v29 = vadd.f32 %v8170_v37, %v8169_v4  ;;  %v2674_v26 = vrot.slane %v10330_v21, 5  ;;  %2555 = vst.msk [vmem:[#allocation5 + $0x28] sm:$0xff] %vm599_vm1, %v10330_v21  ;;  %v2576_v40 = vshll.u32 %v10330_v21, 16  ;;  %v2908_v2 = vld [vmem:[#allocation4 + $0x8] sm:$0xf8] }
 0x353   : > { %v2643_v32 = vrot.slane %v10330_v21, 1  ;;  %v2580_v50 = vshrl.u32 %v10330_v21, 16  ;;  %v2918_v38 = vrot.slane %v2908_v2, 3  ;;  %v2806_v54 = vld [vmem:[#allocation4 + $0x8] sm:$0xfc] }
 0x354   : > { %v2506_v43 = vadd.f32 %v8171_v29, %v2425_v17  ;;  %v2675_v56 = vsel %vm1553_vm3, %v2673_v36, %v2674_v26  ;;  %v2578_v15 = vrot.slane %v2576_v40, 1  ;;  %v2531_v62 = vmax.f32 %v2503_v27, 0.0 }
 0x355   : > { %2682 = vrot.lane.b32.xlu0 %v2675_v56, %s12292_s12  ;;  %v2644_v44 = vsel %vm1829_vm15, %v2642_v3, %v2643_v32  ;;  %v2720_v33 = vrot.slane %v2580_v50, 5  ;;  %v2723_v58 = vrot.slane %v2576_v40, 6  ;;  %v2816_v42 = vrot.slane %v2806_v54, 2 }
 0x356   : > { %v2532_v23 = vmax.f32 %v2506_v43, 0.0  ;;  %v2579_v46 = vsel %vm1085_vm4, %v2574_v0, %v2578_v15  ;;  %2656 = vst.msk [vmem:[#allocation5 + $0x8] sm:$0xff] %vm599_vm1, %v2644_v44  ;;  %v2582_v5 = vor.u32 %v2580_v50, %v2578_v15  ;;  %v2837_v43 = vld [vmem:[#allocation4 + $0x8] sm:$0xfc] }
 0x357   : > { %v8172_v11 = vpop.f32.mrb[140].mxu1  ;;  %2607 = vrot.lane.b32.xlu1 %v2579_v46, %s12292_s12  ;;  %v2724_v17 = vor.u32 %v2723_v58, %v2720_v33  ;;  %v2843_v2 = vshrl.u32 %v2837_v43, 16 }
 0x358   : > { %v2540_v52 = vpack.c.bf16 %v2532_v23, %v2531_v62  ;;  %v8173_v34 = vpop.f32.mrb[141].mxu1  ;;  %v2846_v62 = vshll.u32 %v2837_v43, 16 }
 0x359   : > { %v10352_v25 = vld [vmem:[#allocation4 + $0x10] sm:$0xff]  ;;  %v8174_v48 = vadd.f32 %v8173_v34, %v8172_v11  ;;  %v8175_v45 = vpop.f32.mrb[142].mxu1  ;;  %v2725_v27 = vsel %vm1642_vm5, %v2716_v12, %v2724_v17  ;;  %v10422_v34 = vrot.slane %v2843_v2, 2 }
 0x35a   : > { %v2919_v51 = vrot.slane %v10352_v25, 3  ;;  %2546 = vst.msk [vmem:[#allocation4 + $0x18] sm:$0xff] %vm599_vm1, %v2540_v52  ;;  %v8176_v57 = vpop.f32.mrb[143].mxu1  ;;  %v2676_v47 = vrot.slane %v10352_v25, 5  ;;  %v10358_v16 = vshll.u32 %v10352_v25, 16  ;;  %2556 = vst.msk [vmem:[#allocation5 + $0x50] sm:$0xff] %vm599_vm1, %v10352_v25 }
 0x35b   : > { %v2511_v7 = vadd.f32 %v8174_v48, %v2430_v18  ;;  %v8177_v59 = vadd.f32 %v8176_v57, %v8175_v45  ;;  %v2645_v14 = vrot.slane %v10352_v25, 1  ;;  %v10369_v30 = vshrl.u32 %v10352_v25, 16  ;;  %2758 = vst.msk [vmem:[#allocation5 + $0x10] sm:$0xff] %vm599_vm1, %v2725_v27  ;;  %v2660_v48 = vld [vmem:[#allocation5 + $0xa8] sm:$0x3] }
 0x35c   : > { %v2677_v63 = vsel %vm1553_vm3, %v2674_v26, %v2676_v47  ;;  %v2586_v53 = vrot.slane %v10358_v16, 1  ;;  %v2920_v35 = vsel %vm1867_vm13, %v2918_v38, %v2919_v51  ;;  %v2817_v6 = vrot.slane %v10352_v25, 2  ;;  %v2560_v45 = vld [vmem:[#allocation5 + $0xa0] sm:$0x3] }
 0x35d   : > { %v2514_v39 = vadd.f32 %v8177_v59, %v2433_v41  ;;  %2684 = vrot.lane.b32.xlu0 %v2677_v63, %s12292_s12  ;;  %2932 = vst.msk [vmem:[#allocation5 + $0x20] sm:$0xff] %vm599_vm1, %v2920_v35  ;;  %v2646_v9 = vsel %vm1829_vm15, %v2643_v32, %v2645_v14  ;;  %v2533_v31 = vmax.f32 %v2511_v7, 0.0  ;;  %v2729_v29 = vrot.slane %v10369_v30, 5 }
 0x35e   : > { %v2587_v8 = vsel %vm1085_vm4, %v2582_v5, %v2586_v53  ;;  %2657 = vst.msk [vmem:[#allocation5 + $0x30] sm:$0xff] %vm599_vm1, %v2646_v9  ;;  %v2818_v37 = vsel %vm12293_vm0, %v2816_v42, %v2817_v6  ;;  %v2732_v36 = vrot.slane %v10358_v16, 6  ;;  %v2590_v15 = vor.u32 %v10369_v30, %v2586_v53 }
 0x35f   : > { %v2534_v4 = vmax.f32 %v2514_v39, 0.0  ;;  %2609 = vrot.lane.b32.xlu1 %v2587_v8, %s12292_s12  ;;  %2830 = vst.msk [vmem:[#allocation5 + $0x18] sm:$0xff] %vm599_vm1, %v2818_v37  ;;  %v10424_v38 = vrot.slane %v2846_v62, 3  ;;  %v2853_v33 = vrot.slane %v10369_v30, 2  ;;  %v2856_v54 = vrot.slane %v10358_v16, 3 }
 0x360   : > { %v2733_v46 = vor.u32 %v2732_v36, %v2729_v29  ;;  %v2441_v63 = vadd.f32 %v10298_v19, %v10303_v20 }
 0x361   : > { %v10377_v55 = vld [vmem:[#allocation4 + $0x18] sm:$0xff]  ;;  %v2541_v49 = vpack.c.bf16 %v2534_v4, %v2533_v31  ;;  %v2849_v9 = vor.u32 %v10424_v38, %v10422_v34 }
 0x362   : > { %v2921_v26 = vrot.slane %v10377_v55, 3  ;;  %v2678_v13 = vrot.slane %v10377_v55, 5  ;;  %v10386_v40 = vshll.u32 %v10377_v55, 16  ;;  %v10389_v24 = vshrl.u32 %v10377_v55, 16  ;;  %2557 = vst.msk [vmem:[#allocation5 + $0x78] sm:$0xff] %vm599_vm1, %v10377_v55 }
 0x363   : > { %2547 = vst.msk [vmem:[#allocation4 + $0x20] sm:$0xff] %vm599_vm1, %v2541_v49  ;;  %v2647_v56 = vrot.slane %v10377_v55, 1  ;;  %v2819_v3 = vrot.slane %v10377_v55, 2  ;;  %v2734_v41 = vsel %vm1642_vm5, %v2724_v17, %v2733_v46  ;;  %v2857_v17 = vor.u32 %v2856_v54, %v2853_v33 }
 0x364   : > { %v2943_v28 = vld [vmem:[#allocation5 + $0x20] sm:$0xff]  ;;  %v2679_v0 = vsel %vm1553_vm3, %v2676_v47, %v2678_v13  ;;  %v2594_v32 = vrot.slane %v10386_v40, 1  ;;  %v2922_v10 = vsel %vm1867_vm13, %v2919_v51, %v2921_v26  ;;  %v2738_v44 = vrot.slane %v10389_v24, 5  ;;  %2759 = vst.msk [vmem:[#allocation5 + $0x38] sm:$0xff] %vm599_vm1, %v2734_v41 }
 0x365   : > { %8424 = vmatmul.mubr.msk.bf16.vlgmr.msra.gmra.mrb[0].mxu0 %vm599_vm1, %v2943_v28  ;;  %2686 = vrot.lane.b32.xlu0 %v2679_v0, %s12292_s12  ;;  %2933 = vst.msk [vmem:[#allocation5 + $0x48] sm:$0xff] %vm599_vm1, %v2922_v10  ;;  %v2648_v23 = vsel %vm1829_vm15, %v2645_v14, %v2647_v56  ;;  %v2820_v50 = vsel %vm12294_vm7, %v2817_v6, %v2819_v3  ;;  %v2741_v18 = vrot.slane %v10386_v40, 6  ;;  %v2862_v37 = vrot.slane %v10389_v24, 2 }
 0x366   : > { %v2595_v11 = vsel %vm1085_vm4, %v2590_v15, %v2594_v32  ;;  %8427 = vmatprep.mubr.msk.bf16.mxu0 %vm12295_vm10, %v9311_v1  ;;  %2658 = vst.msk [vmem:[#allocation5 + $0x58] sm:$0xff] %vm599_vm1, %v2648_v23  ;;  %2831 = vst.msk [vmem:[#allocation5 + $0x40] sm:$0xff] %vm599_vm1, %v2820_v50  ;;  %v2598_v53 = vor.u32 %v10389_v24, %v2594_v32  ;;  %v2865_v28 = vrot.slane %v10386_v40, 3  ;;  %v2776_v40 = vrot.slane %v10330_v21, 6 }
 0x367   : > { %2611 = vrot.lane.b32.xlu1 %v2595_v11, %s12292_s12  ;;  %v10427_v61 = vor.u32 %v2741_v18, %v2738_v44  ;;  %v2762_v44 = vld [vmem:[#allocation5 + $0xb0] sm:$0x3] }
 0x369   : > { %v2743_v39 = vsel %vm1642_vm5, %v2733_v46, %v10427_v61 }
 0x36a   : > { %v10431_v51 = vld [vmem:[#allocation4 + $0x20] sm:$0xff]  ;;  %2760 = vst.msk [vmem:[#allocation5 + $0x60] sm:$0xff] %vm599_vm1, %v2743_v39  ;;  %v2834_v39 = vld [vmem:[#allocation5 + $0xb8] sm:$0x3] }
 0x36b   : > { %v2667_v57 = vld [vmem:[#allocation4 + $0x20] sm:$0x7f]  ;;  %v2923_v7 = vrot.slane %v10431_v51, 3  ;;  %v2821_v49 = vrot.slane %v10431_v51, 2  ;;  %v2869_v0 = vshrl.u32 %v10431_v51, 16  ;;  %v2872_v24 = vshll.u32 %v10431_v51, 16 }
 0x36c   : > { %v2567_v47 = vld [vmem:[#allocation4 + $0x20] sm:$0x3]  ;;  %v2680_v59 = vrot.slane %v2667_v57, 5  ;;  %v2948_v5 = vld [vmem:[#allocation5 + $0x48] sm:$0xff] }
 0x36d   : > { %v2600_v14 = vshll.u32 %v2567_v47, 16  ;;  %v2636_v58 = vld [vmem:[#allocation4 + $0x20] sm:$0x7]  ;;  %8428 = vmatmul.mubr.msk.bf16.gmra.mrb[4].mxu0 %vm599_vm1, %v2948_v5  ;;  %v2924_v16 = vsel %vm1867_vm13, %v2921_v26, %v2923_v7  ;;  %v2604_v36 = vshrl.u32 %v2567_v47, 16  ;;  %v2871_v41 = vrot.slane %v2869_v0, 2  ;;  %v8626_v0 = vld [vmem:[%s12265_s5 + $0xa0] sm:$0xff]  }
 0x36e   : > { %v2649_v22 = vrot.slane %v2636_v58, 1  ;;  %v2553_v35 = vld [vmem:[#allocation4 + $0x20] sm:$0x3]  ;;  %v2681_v30 = vsel %vm1553_vm3, %v2678_v13, %v2680_v59  ;;  %v8178_v20 = vpop.f32.mrb[144].mxu1  ;;  %8431 = vmatprep.mubr.msk.bf16.mxu0 %vm12295_vm10, %v9311_v1  ;;  %2934 = vst.msk [vmem:[#allocation5 + $0x70] sm:$0xff] %vm599_vm1, %v2924_v16  ;;  %vm12298_vm3 = vmmov %vm12293_vm0  ;;  %v2874_v34 = vrot.slane %v2872_v24, 3 }
 0x36f   : > { %v2602_v8 = vrot.slane %v2600_v14, 1  ;;  %v2561_v19 = vsel %vm10418_vm12, %v2553_v35, %v2560_v45  ;;  %2688 = vrot.lane.b32.xlu0 %v2681_v30, %s12292_s12  ;;  %v2708_v31 = vld [vmem:[#allocation4 + $0x20] sm:$0x7f]  ;;  %v8179_v4 = vpop.f32.mrb[145].mxu1  ;;  %v2822_v15 = vsel %vm12298_vm3, %v2819_v3, %v2821_v49  ;;  %v2866_v3 = vor.u32 %v2865_v28, %v2862_v37  ;;  %v2936_v5 = vld [vmem:[#allocation5 + $0xc0] sm:$0x3] }
 0x370   : > { %v2650_v42 = vsel %vm1829_vm15, %v2647_v56, %v2649_v22  ;;  %v2661_v6 = vsel %vm10418_vm12, %v2649_v22, %v2660_v48  ;;  %2562 = vst [vmem:[#allocation5 + $0xa0] sm:$0x3] %v2561_v19  ;;  %v8180_v27 = vadd.f32 %v8179_v4, %v8178_v20  ;;  %v8181_v29 = vpop.f32.mrb[146].mxu1  ;;  %v2745_v26 = vshrl.u32 %v2708_v31, 16  ;;  %v2765_v56 = vld [vmem:[#allocation4] sm:$0xc0] }
 0x371   : > { %v2603_v12 = vsel %vm1085_vm4, %v2598_v53, %v2602_v8  ;;  %2659 = vst.msk [vmem:[#allocation5 + $0x80] sm:$0xff] %vm599_vm1, %v2650_v42  ;;  %2662 = vst [vmem:[#allocation5 + $0xa8] sm:$0x3] %v2661_v6  ;;  %v2748_v13 = vshll.u32 %v2708_v31, 16  ;;  %v8182_v43 = vpop.f32.mrb[147].mxu1  ;;  %v2606_v2 = vor.u32 %v2604_v36, %v2602_v8  ;;  %v2775_v46 = vrot.slane %v2765_v56, 6 }
 0x372   : > { %2613 = vrot.lane.b32.xlu1 %v2603_v12, %s12292_s12  ;;  %v2519_v32 = vadd.f32 %v8180_v27, %v2438_v60  ;;  %v8183_v10 = vadd.f32 %v8182_v43, %v8181_v29  ;;  %2832 = vst.msk [vmem:[#allocation5 + $0x68] sm:$0xff] %vm599_vm1, %v2822_v15  ;;  %v2747_v62 = vrot.slane %v2745_v26, 5  ;;  %vm12299_vm4 = vsmask.f32 5376  ;;  %v8618_v6 = vld [vmem:[%s12265_s5 + $0x80] sm:$0xff]   ;;  %v8619_v31 = vld [vmem:[%s12265_s5 + $0xc8] sm:$0xff]  }
 0x373   : > { %2690 = vrot.lane.b32.xlu0 %v2680_v59, %s12292_s12  ;;  %v2750_v23 = vrot.slane %v2748_v13, 6  ;;  %v2858_v11 = vsel %vm12299_vm4, %v2849_v9, %v2857_v17  ;;  %vm12300_vm15 = vcmask 1041408   ;;  %v2778_v60 = vrot.slane %v10352_v25, 6  ;;  %vm12301_vm6 = vmmov %vm12299_vm4  ;;  %v8620_v12 = vld [vmem:[%s12265_s5 + $0x88] sm:$0xff]   ;;  %v8622_v27 = vld [vmem:[%s12265_s5 + $0x90] sm:$0xff]  }
 0x374   : > { %v2522_v50 = vadd.f32 %v8183_v10, %v2441_v63  ;;  %v2535_v48 = vmax.f32 %v2519_v32, 0.0  ;;  %v2777_v21 = vsel %vm12300_vm15, %v2775_v46, %v2776_v40  ;;  %v2867_v59 = vsel %vm12301_vm6, %v2857_v17, %v2866_v3  ;;  %vm12302_vm14 = vmmov %vm12300_vm15  ;;  %v8621_v17 = vld [vmem:[%s12265_s5 + $0xd0] sm:$0xff]   ;;  %v8623_v26 = vld [vmem:[%s12265_s5 + $0xd8] sm:$0xff]  }
 0x375   : > { %v2953_v18 = vld [vmem:[#allocation5 + $0x70] sm:$0xff]  ;;  %v2751_v38 = vor.u32 %v2750_v23, %v2747_v62  ;;  %v10489_v14 = vor.u32 %v2874_v34, %v2871_v41  ;;  %v2779_v25 = vsel %vm12302_vm14, %v2776_v40, %v2778_v60  ;;  %vm12304_vm2 = vmmov %vm12302_vm14  ;;  %v8624_v13 = vld [vmem:[%s12265_s5 + $0x98] sm:$0xff]   ;;  %vm2627_vm0 = vcmask 1041920  }
 0x376   : > { %2615 = vrot.lane.b32.xlu1 %v2606_v2, %s12292_s12  ;;  %v2536_v45 = vmax.f32 %v2522_v50, 0.0  ;;  %8432 = vmatmul.mubr.msk.bf16.gmra.mrb[8].mxu0 %vm599_vm1, %v2953_v18  ;;  %v8625_v43 = vld [vmem:[%s12265_s5 + $0xe0] sm:$0xff]   ;;  %v8627_v15 = vld [vmem:[%s12265_s5 + $0xe8] sm:$0xff]   ;;  %vm10557_vm7 = vmand %vm2627_vm0, %vm1450_vm8  ;;  %vm3514_vm8 = vcmask 516096  }
 0x377   : > { %2886 = vrot.lane.b32.xlu0 %v2858_v11, %s12292_s12  ;;  %8435 = vmatprep.mubr.msk.bf16.mxu0 %vm12295_vm10, %v9311_v1  ;;  %v2752_v57 = vsel %vm1642_vm5, %v10427_v61, %v2751_v38  ;;  %v2763_v47 = vsel %vm10418_vm12, %v2751_v38, %v2762_v44  ;;  %v2780_v61 = vrot.slane %v10377_v55, 6  ;;  %vm12303_vm5 = vmmov %vm12299_vm4  ;;  %v8628_v40 = vld [vmem:[%s12265_s5 + $0xa8] sm:$0xff]   ;;  %v8629_v50 = vld [vmem:[%s12265_s5 + $0xf0] sm:$0xff]  }
 0x378   : > { %v2542_v33 = vpack.c.bf16 %v2536_v45, %v2535_v48  ;;  %2761 = vst.msk [vmem:[#allocation5 + $0x88] sm:$0xff] %vm599_vm1, %v2752_v57  ;;  %2764 = vst [vmem:[#allocation5 + $0xb0] sm:$0x3] %v2763_v47  ;;  %v2876_v54 = vsel %vm12303_vm5, %v2866_v3, %v10489_v14  ;;  %v2701_v2 = vld [vmem:[#allocation5 + $0xa8] sm:$0x3]  ;;  %v8630_v41 = vld [vmem:[%s12265_s5 + $0xb0] sm:$0xff]  }
 0x379   : > { %v2781_v58 = vsel %vm12304_vm2, %v2778_v60, %v2780_v61  ;;  %v2629_v11 = vld [vmem:[#allocation5 + $0xa0] sm:$0x3]  ;;  %vm12312_vm3 = vmmov %vm12304_vm2 }
 0x37a   : > { %2784 = vrot.lane.b32.xlu1 %v2777_v21, %s12292_s12  ;;  %2548 = vst.msk [vmem:[#allocation4 + $0x28] sm:$0xff] %vm599_vm1, %v2542_v33  ;;  %v8631_v34 = vld [vmem:[%s12265_s5 + $0xf8] sm:$0xff]   ;;  %vm12313_vm15 = vmmov %vm12308_vm9 }
 0x37b   : > { %2888 = vrot.lane.b32.xlu0 %v2867_v59, %s12292_s12  ;;  %v8632_v21 = vld [vmem:[%s12265_s5 + $0xb8] sm:$0xff]  }
 0x37c   : > { %v8721_v55 = vld [vmem:[%s12267_s7 + $0xd0] ss:$8 sps:$4 sm:$0xff]  }
 0x37e   : > { %2786 = vrot.lane.b32.xlu1 %v2779_v25, %s12292_s12 }
 0x37f   : > { %2890 = vrot.lane.b32.xlu0 %v2876_v54, %s12292_s12 }
 0x381   : > { %v2912_v63 = vld [vmem:[#allocation4 + $0x28] sm:$0x1f] }
 0x382   : > { %2788 = vrot.lane.b32.xlu1 %v2781_v58, %s12292_s12  ;;  %v2810_v53 = vld [vmem:[#allocation4 + $0x28] sm:$0xf]  ;;  %v2925_v22 = vrot.slane %v2912_v63, 3 }
 0x383   : > { %v2823_v35 = vrot.slane %v2810_v53, 2 }
 0x384   : > { %v2926_v30 = vsel %vm1867_vm13, %v2923_v7, %v2925_v22  ;;  %v2937_v8 = vsel %vm10418_vm12, %v2925_v22, %v2936_v5  ;;  %vm2622_vm13 = vcmask 1048064  }
 0x385   : > { %2935 = vst.msk [vmem:[#allocation5 + $0x98] sm:$0xff] %vm599_vm1, %v2926_v30  ;;  %2938 = vst [vmem:[#allocation5 + $0xc0] sm:$0x3] %v2937_v8  ;;  %v2824_v16 = vsel %vm12305_vm11, %v2821_v49, %v2823_v35  ;;  %v2835_v19 = vsel %vm10418_vm12, %v2823_v35, %v2834_v39 }
 0x386   : > { %2833 = vst.msk [vmem:[#allocation5 + $0x90] sm:$0xff] %vm599_vm1, %v2824_v16  ;;  %2836 = vst [vmem:[#allocation5 + $0xb8] sm:$0x3] %v2835_v19 }
 0x387   : > { %vm12311_vm12 = vmmov %vm12299_vm4  ;;  %vm3542_vm4 = vcmask 1040896  }
 0x388   : > { %vm10972_vm6 = vmand %vm3542_vm4, %vm12313_vm15 }
 0x38c   : > { %v2958_v20 = vld [vmem:[#allocation5 + $0x98] sm:$0xff]  ;;  %v2963_v7 = vld [vmem:[#allocation5 + $0xc0] sm:$0xff] }
 0x38d   : > { %8436 = vmatmul.mubr.msk.bf16.gmra.mrb[12].mxu0 %vm599_vm1, %v2958_v20 }
 0x38e   : > { %8439 = vmatprep.mubr.msk.bf16.mxu0 %vm12295_vm10, %v9311_v1  ;;  %vm10739_vm10 = vmand %vm3514_vm8, %vm12308_vm9 }
 0x395   : > { %8440 = vmatmul.mubr.msk.bf16.gmra.mrb[16].mxu0 %vm599_vm1, %v2963_v7 }
 0x3c7   : > { %v2683_v9 = vpop.permute.xlu0 %2682 }
 0x3c8   : > { %2697 = vst.msk [vmem:[#allocation5 + $0x8] sm:$0xff] %vm2622_vm13, %v2683_v9 }
 0x3c9   : > { %v2608_v51 = vpop.permute.xlu1 %2607 }
 0x3ca   : > { %2623 = vst.msk [vmem:[#allocation5] sm:$0xff] %vm2622_vm13, %v2608_v51 }
 0x3cf   : > { %v2685_v52 = vpop.permute.xlu0 %2684  ;;  %v2940_v42 = vld [vmem:[#allocation5 + $0x8] sm:$0xff] }
 0x3d0   : > { %2698 = vst.msk [vmem:[#allocation5 + $0x30] sm:$0xff] %vm2622_vm13, %v2685_v52  ;;  %3306 = vmatprep.mubr.bf16.mxu1 %v2940_v42 }
 0x3d1   : > { %v2610_v1 = vpop.permute.xlu1 %2609  ;;  %v2939_v4 = vld [vmem:[#allocation5] sm:$0xff] }
 0x3d2   : > { %2624 = vst.msk [vmem:[#allocation5 + $0x28] sm:$0xff] %vm2622_vm13, %v2610_v1  ;;  %3307 = vmatmul.mubr.bf16.vlgmr.msra.gmra.mrb[148].mxu1 %v2939_v4 }
 0x3d3   : > { %8231 = vmatpush3.bf16.msra.mxu1 %v8618_v6 }
 0x3d4   : > { %8232 = vmatprep.subr.bf16.mxu1 %v8619_v31 }
 0x3d7   : > { %v2687_v37 = vpop.permute.xlu0 %2686  ;;  %v2945_v49 = vld [vmem:[#allocation5 + $0x30] sm:$0xff]  ;;  %8233 = vmatpush3.bf16.msra.mxu1 %v8620_v12 }
 0x3d8   : > { %2699 = vst.msk [vmem:[#allocation5 + $0x58] sm:$0xff] %vm2622_vm13, %v2687_v37  ;;  %3314 = vmatprep.mubr.bf16.mxu1 %v2945_v49  ;;  %8234 = vmatprep.subr.bf16.mxu1 %v8621_v17  ;;  %v8637_v49 = vld [vmem:[%s12267_s7 + $0x300] ss:$8 sps:$4 sm:$0xff]  }
 0x3d9   : > { %v2612_v29 = vpop.permute.xlu1 %2611  ;;  %v2944_v36 = vld [vmem:[#allocation5 + $0x28] sm:$0xff] }
 0x3da   : > { %2625 = vst.msk [vmem:[#allocation5 + $0x50] sm:$0xff] %vm2622_vm13, %v2612_v29  ;;  %3315 = vmatmul.mubr.bf16.gmra.mrb[152].mxu1 %v2944_v36  ;;  %v8642_v29 = vld [vmem:[%s12267_s7 + $0x314] ss:$8 sps:$4 sm:$0xff]   ;;  %v8643_v36 = vld [vmem:[%s12267_s7] ss:$8 sps:$4 sm:$0xff]  }
 0x3db   : > { %8235 = vmatpush3.bf16.msra.mxu1 %v8622_v27  ;;  %v8639_v27 = vld [vmem:[%s12267_s7 + $0x304] ss:$8 sps:$4 sm:$0xff]  }
 0x3dc   : > { %8236 = vmatprep.subr.bf16.mxu1 %v8623_v26  ;;  %v8645_v26 = vld [vmem:[%s12267_s7 + $0x4] ss:$8 sps:$4 sm:$0xff]   ;;  %6828 = vmatprep.subr.bf16.mxu0 %v8639_v27 }
 0x3dd   : > { %6829 = vmatpush1.bf16.msra.mxu0 %v8637_v49  ;;  %v10696_v49 = vld [vmem:[%s12266_s6] ss:$0 sm:$0xff] }
 0x3de   : > { %6830 = vmatprep.subr.bf16.mxu0 %v8642_v29 }
 0x3df   : > { %v2950_v56 = vld [vmem:[#allocation5 + $0x58] sm:$0xff]  ;;  %8237 = vmatpush3.bf16.msra.mxu1 %v8624_v13 }
 0x3e0   : > { %3322 = vmatprep.mubr.bf16.mxu1 %v2950_v56  ;;  %8238 = vmatprep.subr.bf16.mxu1 %v8625_v43  ;;  %v8640_v13 = vld [vmem:[%s12267_s7 + $0x310] ss:$8 sps:$4 sm:$0xff]   ;;  %v8651_v43 = vld [vmem:[%s12267_s7 + $0x14] ss:$8 sps:$4 sm:$0xff]   ;;  %v8648_v56 = vld [vmem:[%s12267_s7 + $0x324] ss:$8 sps:$4 sm:$0xff]  }
 0x3e1   : > { %v2689_v28 = vpop.permute.xlu0 %2688  ;;  %v2949_v24 = vld [vmem:[#allocation5 + $0x50] sm:$0xff]  ;;  %6831 = vmatpush1.bf16.msra.mxu0 %v8640_v13 }
 0x3e2   : > { %2700 = vst.msk [vmem:[#allocation5 + $0x80] sm:$0xff] %vm2622_vm13, %v2689_v28  ;;  %3323 = vmatmul.mubr.bf16.gmra.mrb[156].mxu1 %v2949_v24  ;;  %v8649_v28 = vld [vmem:[%s12267_s7 + $0x10] ss:$8 sps:$4 sm:$0xff]   ;;  %v8646_v24 = vld [vmem:[%s12267_s7 + $0x320] ss:$8 sps:$4 sm:$0xff]   ;;  %6832 = vmatprep.subr.bf16.mxu0 %v8648_v56 }
 0x3e3   : > { %8239 = vmatpush3.bf16.msra.mxu1 %v8626_v0  ;;  %v8657_v0 = vld [vmem:[%s12267_s7 + $0x24] ss:$8 sps:$4 sm:$0xff]  }
 0x3e4   : > { %v2614_v32 = vpop.permute.xlu1 %2613  ;;  %8240 = vmatprep.subr.bf16.mxu1 %v8627_v15  ;;  %v8654_v15 = vld [vmem:[%s12267_s7 + $0x334] ss:$8 sps:$4 sm:$0xff]  }
 0x3e5   : > { %2626 = vst.msk [vmem:[#allocation5 + $0x78] sm:$0xff] %vm2622_vm13, %v2614_v32  ;;  %v2691_v62 = vpop.permute.xlu0 %2690  ;;  %v8655_v32 = vld [vmem:[%s12267_s7 + $0x20] ss:$8 sps:$4 sm:$0xff]   ;;  %6833 = vmatpush1.bf16.msra.mxu0 %v8646_v24 }
 0x3e6   : > { %v2702_v23 = vsel %vm10557_vm7, %v2691_v62, %v2701_v2  ;;  %v8663_v2 = vld [vmem:[%s12267_s7 + $0x34] ss:$8 sps:$4 sm:$0xff]   ;;  %v8652_v62 = vld [vmem:[%s12267_s7 + $0x330] ss:$8 sps:$4 sm:$0xff]   ;;  %6834 = vmatprep.subr.bf16.mxu0 %v8654_v15 }
 0x3e7   : > { %2703 = vst [vmem:[#allocation5 + $0xa8] sm:$0x3] %v2702_v23  ;;  %8241 = vmatpush3.bf16.msra.mxu1 %v8628_v40  ;;  %v8660_v40 = vld [vmem:[%s12267_s7 + $0x344] ss:$8 sps:$4 sm:$0xff]   ;;  %v8661_v23 = vld [vmem:[%s12267_s7 + $0x30] ss:$8 sps:$4 sm:$0xff]  }
 0x3e8   : > { %v2616_v46 = vpop.permute.xlu1 %2615  ;;  %8242 = vmatprep.subr.bf16.mxu1 %v8629_v50  ;;  %v8669_v50 = vld [vmem:[%s12267_s7 + $0x44] ss:$8 sps:$4 sm:$0xff]  }
 0x3e9   : > { %v2630_v44 = vsel %vm10557_vm7, %v2616_v46, %v2629_v11  ;;  %v2887_v18 = vpop.permute.xlu0 %2886  ;;  %v2955_v3 = vld [vmem:[#allocation5 + $0x80] sm:$0xff]  ;;  %6835 = vmatpush1.bf16.msra.mxu0 %v8652_v62  ;;  %v8658_v11 = vld [vmem:[%s12267_s7 + $0x340] ss:$8 sps:$4 sm:$0xff]  }
 0x3ea   : > { %2631 = vst [vmem:[#allocation5 + $0xa0] sm:$0x3] %v2630_v44  ;;  %2901 = vst.msk [vmem:[#allocation5 + $0x18] sm:$0xff] %vm2622_vm13, %v2887_v18  ;;  %3330 = vmatprep.mubr.bf16.mxu1 %v2955_v3  ;;  %6836 = vmatprep.subr.bf16.mxu0 %v8660_v40  ;;  %v8666_v46 = vld [vmem:[%s12267_s7 + $0x354] ss:$8 sps:$4 sm:$0xff]  }
 0x3eb   : > { %8243 = vmatpush3.bf16.msra.mxu1 %v8630_v41  ;;  %v8667_v44 = vld [vmem:[%s12267_s7 + $0x40] ss:$8 sps:$4 sm:$0xff]   ;;  %v8675_v18 = vld [vmem:[%s12267_s7 + $0x54] ss:$8 sps:$4 sm:$0xff]   ;;  %v8664_v3 = vld [vmem:[%s12267_s7 + $0x350] ss:$8 sps:$4 sm:$0xff]  }
 0x3ec   : > { %v2785_v38 = vpop.permute.xlu1 %2784  ;;  %v2954_v48 = vld [vmem:[#allocation5 + $0x78] sm:$0xff]  ;;  %8244 = vmatprep.subr.bf16.mxu1 %v8631_v34  ;;  %v8672_v34 = vld [vmem:[%s12267_s7 + $0x364] ss:$8 sps:$4 sm:$0xff]  }
 0x3ed   : > { %2799 = vst.msk [vmem:[#allocation5 + $0x10] sm:$0xff] %vm2622_vm13, %v2785_v38  ;;  %3331 = vmatmul.mubr.bf16.gmra.mrb[160].mxu1 %v2954_v48  ;;  %v2889_v45 = vpop.permute.xlu0 %2888  ;;  %6837 = vmatpush1.bf16.msra.mxu0 %v8658_v11  ;;  %v8673_v38 = vld [vmem:[%s12267_s7 + $0x50] ss:$8 sps:$4 sm:$0xff]  }
 0x3ee   : > { %2902 = vst.msk [vmem:[#allocation5 + $0x40] sm:$0xff] %vm2622_vm13, %v2889_v45  ;;  %v2960_v60 = vld [vmem:[#allocation5 + $0xa8] sm:$0xff]  ;;  %6838 = vmatprep.subr.bf16.mxu0 %v8666_v46 }
 0x3ef   : > { %3338 = vmatprep.mubr.bf16.mxu1 %v2960_v60  ;;  %8245 = vmatpush3.bf16.msra.mxu1 %v8632_v21 }
 0x3f0   : > { %v2787_v57 = vpop.permute.xlu1 %2786  ;;  %6705 = vmatprep.subr.bf16.mxu1 %v8645_v26 }
 0x3f1   : > { %2800 = vst.msk [vmem:[#allocation5 + $0x38] sm:$0xff] %vm2622_vm13, %v2787_v57  ;;  %v2891_v47 = vpop.permute.xlu0 %2890  ;;  %v2959_v59 = vld [vmem:[#allocation5 + $0xa0] sm:$0xff]  ;;  %v2942_v25 = vld [vmem:[#allocation5 + $0x18] sm:$0xff]  ;;  %6839 = vmatpush1.bf16.msra.mxu0 %v8664_v3  ;;  %v8670_v57 = vld [vmem:[%s12267_s7 + $0x360] ss:$8 sps:$4 sm:$0xff]  }
 0x3f2   : > { %2903 = vst.msk [vmem:[#allocation5 + $0x68] sm:$0xff] %vm2622_vm13, %v2891_v47  ;;  %6840 = vmatprep.subr.bf16.mxu0 %v8672_v34 }
 0x3f4   : > { %v2789_v33 = vpop.permute.xlu1 %2788  ;;  %v2941_v54 = vld [vmem:[#allocation5 + $0x10] sm:$0xff] }
 0x3f5   : > { %2801 = vst.msk [vmem:[#allocation5 + $0x60] sm:$0xff] %vm2622_vm13, %v2789_v33  ;;  %3339 = vmatmul.mubr.bf16.gmra.mrb[164].mxu1 %v2959_v59  ;;  %v2947_v58 = vld [vmem:[#allocation5 + $0x40] sm:$0xff]  ;;  %6841 = vmatpush1.bf16.msra.mxu0 %v8670_v57  ;;  %v3523_v57 = vlaneseq }
 0x3f6   : > { %3379 = vmatprep.mubr.bf16.mxu1 %v2942_v25  ;;  %v8678_v33 = vld [vmem:[%s12267_s7 + $0x374] ss:$8 sps:$4 sm:$0xff]   ;;  %v8676_v59 = vld [vmem:[%s12267_s7 + $0x370] ss:$8 sps:$4 sm:$0xff]  }
 0x3f7   : > { %6842 = vmatprep.subr.bf16.mxu0 %v8678_v33 }
 0x3f8   : > { %v2946_v63 = vld [vmem:[#allocation5 + $0x38] sm:$0xff] }
 0x3f9   : > { %v2952_v5 = vld [vmem:[#allocation5 + $0x68] sm:$0xff]  ;;  %6843 = vmatpush1.bf16.msra.mxu0 %v8676_v59 }
 0x3fc   : > { %v2951_v53 = vld [vmem:[#allocation5 + $0x60] sm:$0xff] }
 0x3fd   : > { %3380 = vmatmul.mubr.bf16.vlgmr.msra.gmra.mrb[168].mxu1 %v2941_v54 }
 0x3fe   : > { %3387 = vmatprep.mubr.bf16.mxu1 %v2947_v58  ;;  %6706 = vmatpush1.bf16.msra.mxu1 %v8643_v36 }
 0x3ff   : > { %6707 = vmatprep.subr.bf16.mxu1 %v8651_v43 }
 0x402   : > { %6708 = vmatpush1.bf16.msra.mxu1 %v8649_v28 }
 0x403   : > { %6709 = vmatprep.subr.bf16.mxu1 %v8657_v0 }
 0x405   : > { %3388 = vmatmul.mubr.bf16.gmra.mrb[172].mxu1 %v2946_v63 }
 0x406   : > { %3395 = vmatprep.mubr.bf16.mxu1 %v2952_v5  ;;  %6710 = vmatpush1.bf16.msra.mxu1 %v8655_v32 }
 0x407   : > { %6711 = vmatprep.subr.bf16.mxu1 %v8663_v2 }
 0x40a   : > { %6712 = vmatpush1.bf16.msra.mxu1 %v8661_v23 }
 0x40b   : > { %6713 = vmatprep.subr.bf16.mxu1 %v8669_v50 }
 0x40d   : > { %3396 = vmatmul.mubr.bf16.gmra.mrb[176].mxu1 %v2951_v53 }
 0x40e   : > { %6714 = vmatpush1.bf16.msra.mxu1 %v8667_v44 }
 0x40f   : > { %6715 = vmatprep.subr.bf16.mxu1 %v8675_v18 }
 0x412   : > { %6716 = vmatpush1.bf16.msra.mxu1 %v8673_v38 }
 0x438   : > { %v10587_v22 = vpop.f32.mrb[0].mxu0 }
 0x439   : > { %v8425_v35 = vpop.f32.mrb[1].mxu0 }
 0x43a   : > { %v10589_v39 = vpop.f32.mrb[2].mxu0 }
 0x43b   : > { %v8426_v30 = vpop.f32.mrb[3].mxu0 }
 0x440   : > { %v10591_v8 = vpop.f32.mrb[4].mxu0 }
 0x441   : > { %v8429_v16 = vpop.f32.mrb[5].mxu0 }
 0x442   : > { %v10593_v19 = vpop.f32.mrb[6].mxu0 }
 0x443   : > { %v8430_v20 = vpop.f32.mrb[7].mxu0 }
 0x449   : > { %v10595_v7 = vpop.f32.mrb[8].mxu0 }
 0x44a   : > { %v8433_v9 = vpop.f32.mrb[9].mxu0 }
 0x44b   : > { %v10597_v51 = vpop.f32.mrb[10].mxu0 }
 0x44c   : > { %v8434_v52 = vpop.f32.mrb[11].mxu0 }
 0x460   : > { %v10599_v42 = vpop.f32.mrb[12].mxu0 }
 0x461   : > { %v8437_v6 = vpop.f32.mrb[13].mxu0 }
 0x462   : > { %v10601_v1 = vpop.f32.mrb[14].mxu0 }
 0x463   : > { %v8438_v31 = vpop.f32.mrb[15].mxu0 }
 0x468   : > { %v10603_v4 = vpop.f32.mrb[16].mxu0 }
 0x469   : > { %v8441_v12 = vpop.f32.mrb[17].mxu0 }
 0x46a   : > { %v10605_v17 = vpop.f32.mrb[18].mxu0 }
 0x46b   : > { %v8442_v37 = vpop.f32.mrb[19].mxu0 }
 0x4a5   : > { %v8200_v41 = vpop.f32.mrb[148].mxu1 }
 0x4a6   : > { %v8201_v48 = vpop.f32.mrb[149].mxu1 }
 0x4a7   : > { %v8202_v45 = vadd.f32 %v8201_v48, %v8200_v41  ;;  %v8203_v21 = vpop.f32.mrb[150].mxu1 }
 0x4a8   : > { %v8204_v60 = vpop.f32.mrb[151].mxu1 }
 0x4a9   : > { %v8205_v47 = vadd.f32 %v8204_v60, %v8203_v21  ;;  %v3309_v40 = vadd.f32 %v8202_v45, %v10696_v49  ;;  %v9316_v21 = vmov 1966171168  }
 0x4aa   : > { %v3521_v60 = vunpack.c.l.s4 %v9316_v21  ;;  %v10764_v21 = vld [vmem:[#allocation4 + $0x28] sm:$0xf] }
 0x4ab   : > { %v3312_v46 = vadd.f32 %v8205_v47, %v10696_v49 }
 0x4ad   : > { %v8206_v25 = vpop.f32.mrb[152].mxu1 }
 0x4ae   : > { %v8207_v54 = vpop.f32.mrb[153].mxu1 }
 0x4af   : > { %v8208_v58 = vadd.f32 %v8207_v54, %v8206_v25  ;;  %v8209_v63 = vpop.f32.mrb[154].mxu1 }
 0x4b0   : > { %v8210_v5 = vpop.f32.mrb[155].mxu1 }
 0x4b1   : > { %v8211_v53 = vadd.f32 %v8210_v5, %v8209_v63  ;;  %v3317_v33 = vadd.f32 %v8208_v58, %v10696_v49 }
 0x4b3   : > { %v3320_v47 = vadd.f32 %v8211_v53, %v10696_v49  ;;  %v8681_v53 = vld [vmem:[%s12267_s7 + $0x64] ss:$8 sps:$4 sm:$0xff]  }
 0x4b4   : > { %6717 = vmatprep.subr.bf16.mxu1 %v8681_v53  ;;  %v3622_v53 = vld [vmem:[#allocation7 + $0x4] sm:$0x1] }
 0x4b5   : > { %v8212_v35 = vpop.f32.mrb[156].mxu1 }
 0x4b6   : > { %v8213_v30 = vpop.f32.mrb[157].mxu1 }
 0x4b7   : > { %v8214_v16 = vadd.f32 %v8213_v30, %v8212_v35  ;;  %v8215_v20 = vpop.f32.mrb[158].mxu1  ;;  %v3522_v30 = vunpack.c.0.s8 %v3521_v60  ;;  %v8693_v60 = vld [vmem:[%s12267_s7 + $0x84] ss:$8 sps:$4 sm:$0xff]  }
 0x4b8   : > { %v8216_v9 = vpop.f32.mrb[159].mxu1 }
 0x4b9   : > { %v10691_v52 = vadd.f32 %v8216_v9, %v8215_v20  ;;  %v10716_v20 = vshrl.u32 %v3523_v57, 7 }
 0x4c0   : > { %v8218_v6 = vpop.f32.mrb[160].mxu1 }
 0x4c1   : > { %v8219_v31 = vpop.f32.mrb[161].mxu1 }
 0x4c2   : > { %v8220_v12 = vadd.f32 %v8219_v31, %v8218_v6  ;;  %v8221_v37 = vpop.f32.mrb[162].mxu1  ;;  %v8679_v31 = vld [vmem:[%s12267_s7 + $0x60] ss:$8 sps:$4 sm:$0xff]  }
 0x4c3   : > { %v8222_v27 = vpop.f32.mrb[163].mxu1  ;;  %6718 = vmatpush1.bf16.msra.mxu1 %v8679_v31  ;;  %v2881_v31 = vshll.u32 %v10764_v21, 16 }
 0x4c4   : > { %v10699_v29 = vadd.f32 %v8220_v12, %v10696_v49  ;;  %v8223_v36 = vadd.f32 %v8222_v27, %v8221_v37  ;;  %v10728_v37 = vsub.s32 %v3522_v30, %v10716_v20  ;;  %v3325_v27 = vadd.f32 %v8214_v16, %v10696_v49 }
 0x4c5   : > { %v2878_v30 = vshrl.u32 %v10764_v21, 16 }
 0x4c6   : > { %v10702_v26 = vadd.f32 %v8223_v36, %v10696_v49 }
 0x4c8   : > { %v8224_v13 = vpop.f32.mrb[164].mxu1 }
 0x4c9   : > { %v8225_v43 = vpop.f32.mrb[165].mxu1 }
 0x4ca   : > { %v8226_v56 = vadd.f32 %v8225_v43, %v8224_v13  ;;  %v8227_v28 = vpop.f32.mrb[166].mxu1 }
 0x4cb   : > { %v8228_v0 = vpop.f32.mrb[167].mxu1 }
 0x4cc   : > { %v10705_v24 = vadd.f32 %v8226_v56, %v10696_v49  ;;  %v8229_v15 = vadd.f32 %v8228_v0, %v8227_v28  ;;  %v9033_v28 = vld [vmem:[%s12267_s7 + $0x7e4] ss:$8 sps:$4 sm:$0xff]  }
 0x4ce   : > { %v10708_v32 = vadd.f32 %v8229_v15, %v10696_v49  ;;  %v3516_v15 = vld [vmem:[#allocation7] sm:$0x1] }
 0x4d0   : > { %v8246_v2 = vpop.f32.mrb[168].mxu1 }
 0x4d1   : > { %v8247_v62 = vpop.f32.mrb[169].mxu1 }
 0x4d2   : > { %v8248_v23 = vadd.f32 %v8247_v62, %v8246_v2  ;;  %v8249_v50 = vpop.f32.mrb[170].mxu1  ;;  %v3328_v2 = vadd.f32 %v10691_v52, %v10696_v49  ;;  %v8690_v52 = vld [vmem:[%s12267_s7 + $0x394] ss:$8 sps:$4 sm:$0xff]  }
 0x4d3   : > { %v8250_v11 = vpop.f32.mrb[171].mxu1 }
 0x4d4   : > { %v3382_v44 = vadd.f32 %v8248_v23, %v3309_v40  ;;  %v8251_v18 = vadd.f32 %v8250_v11, %v8249_v50  ;;  %v8685_v23 = vld [vmem:[%s12267_s7 + $0x70] ss:$8 sps:$4 sm:$0xff]   ;;  %v8687_v50 = vld [vmem:[%s12267_s7 + $0x74] ss:$8 sps:$4 sm:$0xff]  }
 0x4d5   : > { %v8688_v11 = vld [vmem:[%s12267_s7 + $0x390] ss:$8 sps:$4 sm:$0xff]   ;;  %6719 = vmatprep.subr.bf16.mxu1 %v8687_v50 }
 0x4d6   : > { %v3455_v3 = vadd.f32 %v10587_v22, %v3382_v44  ;;  %v3385_v41 = vadd.f32 %v8251_v18, %v3312_v46  ;;  %6720 = vmatpush1.bf16.msra.mxu1 %v8685_v23 }
 0x4d7   : > { %6721 = vmatprep.subr.bf16.mxu1 %v8693_v60  ;;  %v8703_v60 = vld [vmem:[%s12267_s7 + $0xa0] ss:$8 sps:$4 sm:$0xff]  }
 0x4d8   : > { %v3458_v34 = vadd.f32 %v10589_v39, %v3385_v41  ;;  %v8252_v38 = vpop.f32.mrb[172].mxu1  ;;  %v3493_v45 = vmax.f32 %v3455_v3, 0.0 }
 0x4d9   : > { %v8253_v48 = vpop.f32.mrb[173].mxu1 }
 0x4da   : > { %v3494_v59 = vmax.f32 %v3458_v34, 0.0  ;;  %v8254_v25 = vadd.f32 %v8253_v48, %v8252_v38  ;;  %v8255_v54 = vpop.f32.mrb[174].mxu1 }
 0x4db   : > { %v8256_v63 = vpop.f32.mrb[175].mxu1 }
 0x4dc   : > { %v3503_v5 = vpack.c.bf16 %v3494_v59, %v3493_v45  ;;  %v3390_v35 = vadd.f32 %v8254_v25, %v3317_v33  ;;  %v8257_v22 = vadd.f32 %v8256_v63, %v8255_v54  ;;  %v8696_v45 = vld [vmem:[%s12267_s7 + $0x3a4] ss:$8 sps:$4 sm:$0xff]  }
 0x4de   : > { %3508 = vst.msk [vmem:[#allocation6] sm:$0xff] %vm599_vm1, %v3503_v5  ;;  %v3463_v39 = vadd.f32 %v10591_v8, %v3390_v35  ;;  %v3393_v9 = vadd.f32 %v8257_v22, %v3320_v47  ;;  %v8682_v8 = vld [vmem:[%s12267_s7 + $0x380] ss:$8 sps:$4 sm:$0xff]  }
 0x4df   : > { %v3556_v47 = vld [vmem:[#allocation7 + $0x1] sm:$0x1]  ;;  %v3572_v5 = vld [vmem:[#allocation7 + $0x2] sm:$0x1] }
 0x4e0   : > { %v3466_v58 = vadd.f32 %v10593_v19, %v3393_v9  ;;  %v8258_v6 = vpop.f32.mrb[176].mxu1  ;;  %v8684_v19 = vld [vmem:[%s12267_s7 + $0x384] ss:$8 sps:$4 sm:$0xff]   ;;  %v3495_v36 = vmax.f32 %v3463_v39, 0.0  ;;  %v3588_v39 = vld [vmem:[#allocation7 + $0x3] sm:$0x1] }
 0x4e1   : > { %v8259_v12 = vpop.f32.mrb[177].mxu1  ;;  %6844 = vmatprep.subr.bf16.mxu0 %v8684_v19 }
 0x4e2   : > { %v3496_v13 = vmax.f32 %v3466_v58, 0.0  ;;  %v8260_v43 = vadd.f32 %v8259_v12, %v8258_v6  ;;  %v8261_v56 = vpop.f32.mrb[178].mxu1  ;;  %6845 = vmatpush1.bf16.msra.mxu0 %v8682_v8  ;;  %v8699_v12 = vld [vmem:[%s12267_s7 + $0x94] ss:$8 sps:$4 sm:$0xff]  }
 0x4e3   : > { %v8262_v0 = vpop.f32.mrb[179].mxu1  ;;  %6846 = vmatprep.subr.bf16.mxu0 %v8690_v52  ;;  %v3703_v52 = vld [vmem:[#allocation7 + $0x7] sm:$0x1] }
 0x4e4   : > { %v3504_v62 = vpack.c.bf16 %v3496_v13, %v3495_v36  ;;  %v3398_v16 = vadd.f32 %v8260_v43, %v3325_v27  ;;  %v8263_v40 = vadd.f32 %v8262_v0, %v8261_v56  ;;  %v3645_v43 = vld [vmem:[#allocation7 + $0x5] sm:$0x1]  ;;  %v8697_v56 = vld [vmem:[%s12267_s7 + $0x90] ss:$8 sps:$4 sm:$0xff]  }
 0x4e5   : > { %v3513_v46 = vld [vmem:[#allocation6] sm:$0xf]  ;;  %v8633_v3 = vld [vmem:[#allocation6 + $0x4] ss:$0 sps:$4 sm:$0xee]  }
 0x4e6   : > { %3509 = vst.msk [vmem:[#allocation6 + $0x8] sm:$0xff] %vm599_vm1, %v3504_v62  ;;  %v3471_v49 = vadd.f32 %v10595_v7, %v3398_v16  ;;  %v3401_v44 = vadd.f32 %v8263_v40, %v3328_v2  ;;  %v3526_v18 = vrot.slane %v3513_v46, %v10728_v37  ;;  %v3517_v41 = vsel %vm10739_vm10, %v3513_v46, %v3516_v15  ;;  %v8691_v7 = vld [vmem:[%s12267_s7 + $0x80] ss:$8 sps:$4 sm:$0xff]   ;;  %v3661_v40 = vld [vmem:[#allocation7 + $0x6] sm:$0x1] }
 0x4e7   : > { %3518 = vst [vmem:[#allocation7] sm:$0x1] %v3517_v41  ;;  %6847 = vmatpush1.bf16.msra.mxu0 %v8688_v11  ;;  %v3601_v33 = vrot.slane %v8633_v3, %v10728_v37  ;;  %6722 = vmatpush1.bf16.msra.mxu1 %v8691_v7  ;;  %v8700_v41 = vld [vmem:[%s12267_s7 + $0x3b0] ss:$8 sps:$4 sm:$0xff]  }
 0x4e8   : > { %v3474_v34 = vadd.f32 %v10597_v51, %v3401_v44  ;;  %v3533_v38 = vrot.slane %v3526_v18, %v10728_v37  ;;  %v3547_v48 = vcombine.high %v3526_v18, %v3526_v18  ;;  %v3497_v57 = vmax.f32 %v3471_v49, 0.0  ;;  %v8694_v51 = vld [vmem:[%s12267_s7 + $0x3a0] ss:$8 sps:$4 sm:$0xff]   ;;  %6848 = vmatprep.subr.bf16.mxu0 %v8696_v45  ;;  %6723 = vmatprep.subr.bf16.mxu1 %v8699_v12 }
 0x4e9   : > { %v3602_v35 = vcombine.high %v3601_v33, %v3601_v33  ;;  %v3631_v22 = vrot.slane %v3601_v33, %v10728_v37 }
 0x4ea   : > { %v3498_v59 = vmax.f32 %v3474_v34, 0.0  ;;  %v3535_v25 = vshrl.u32 %v3533_v38, 16  ;;  %v3554_v54 = vrot.slane %v3547_v48, %v10728_v37  ;;  %v3570_v63 = vcombine.high %v3533_v38, %v3533_v38  ;;  %v8702_v34 = vld [vmem:[%s12267_s7 + $0x3b4] ss:$8 sps:$4 sm:$0xff]   ;;  %v8705_v38 = vld [vmem:[%s12267_s7 + $0xa4] ss:$8 sps:$4 sm:$0xff]  }
 0x4eb   : > { %6849 = vmatpush1.bf16.msra.mxu0 %v8694_v51  ;;  %v3609_v8 = vrot.slane %v3602_v35, %v10728_v37  ;;  %v3632_v19 = vcombine.high %v3631_v22, %v3631_v22  ;;  %6724 = vmatpush1.bf16.msra.mxu1 %v8697_v56  ;;  %v3727_v35 = vld [vmem:[#allocation7 + $0x8] sm:$0x1]  ;;  %v3780_v22 = vld [vmem:[#allocation7 + $0xa] sm:$0x1] }
 0x4ec   : > { %v3505_v9 = vpack.c.bf16 %v3498_v59, %v3497_v57  ;;  %3539 = vrot.lane.b32.xlu0 %v3535_v25, %s12292_s12  ;;  %v3560_v58 = vshrl.u32 %v3554_v54, 16  ;;  %v3586_v6 = vcombine.high %v3554_v54, %v3554_v54  ;;  %v3557_v36 = vsel %vm10739_vm10, %v3554_v54, %v3556_v47  ;;  %v8708_v57 = vld [vmem:[%s12267_s7 + $0x3c4] ss:$8 sps:$4 sm:$0xff]   ;;  %v3757_v25 = vld [vmem:[#allocation7 + $0x9] sm:$0x1]  ;;  %6850 = vmatprep.subr.bf16.mxu0 %v8702_v34 }
 0x4ed   : > { %v3685_v27 = vld [vmem:[#allocation6 + $0x8] sm:$0x3c]  ;;  %v3573_v13 = vsel %vm10739_vm10, %v3570_v63, %v3572_v5  ;;  %v3576_v0 = vshrl.u32 %v3570_v63, 16  ;;  %3558 = vst [vmem:[#allocation7 + $0x1] sm:$0x1] %v3557_v36  ;;  %v3617_v23 = vshrl.u32 %v3609_v8, 16  ;;  %v3648_v11 = vcombine.high %v3609_v8, %v3609_v8  ;;  %6725 = vmatprep.subr.bf16.mxu1 %v8705_v38 }
 0x4ee   : > { %3510 = vst.msk [vmem:[#allocation6 + $0x10] sm:$0xff] %vm599_vm1, %v3505_v9  ;;  %3564 = vrot.lane.b32.xlu1 %v3560_v58, %s12292_s12  ;;  %v3693_v15 = vrot.slane %v3685_v27, %v10728_v37  ;;  %v3741_v2 = vcombine.high %v3685_v27, %v3685_v27  ;;  %v8635_v62 = vld [vmem:[#allocation6 + $0xc] ss:$0 sps:$4 sm:$0x88]   ;;  %3574 = vst [vmem:[#allocation7 + $0x2] sm:$0x1] %v3573_v13  ;;  %v3589_v16 = vsel %vm10739_vm10, %v3586_v6, %v3588_v39 }
 0x4ef   : > { %v3640_v50 = vshrl.u32 %v3632_v19, 16  ;;  %v10800_v46 = vld.sshfl [vmem:[#allocation6 + $0x8] sm:$0x1 pattern:$0x75316420]  ;;  %v3793_v3 = vrot.slane %v8635_v62, %v10728_v37  ;;  %v3656_v48 = vshrl.u32 %v3648_v11, 16  ;;  %v3623_v21 = vsel %vm10739_vm10, %v3617_v23, %v3622_v53  ;;  %6851 = vmatpush1.bf16.msra.mxu0 %v8700_v41  ;;  %6726 = vmatpush1.bf16.msra.mxu1 %v8703_v60 }
 0x4f0   : > { %3590 = vst [vmem:[#allocation7 + $0x3] sm:$0x1] %v3589_v16  ;;  %3580 = vrot.lane.b32.xlu0 %v3576_v0, %s12292_s12  ;;  %v3700_v49 = vrot.slane %v3693_v15, %v10728_v37  ;;  %v3717_v44 = vcombine.high %v3693_v15, %v3693_v15  ;;  %v3748_v18 = vrot.slane %v3741_v2, %v10728_v37  ;;  %3624 = vst [vmem:[#allocation7 + $0x4] sm:$0x1] %v3623_v21  ;;  %v8706_v58 = vld [vmem:[%s12267_s7 + $0x3c0] ss:$8 sps:$4 sm:$0xff]  }
 0x4f1   : > { %v3646_v7 = vsel %vm10739_vm10, %v3640_v50, %v3645_v43  ;;  %v2880_v54 = vrot.slane %v2878_v30, 2  ;;  %v2883_v63 = vrot.slane %v2881_v31, 3  ;;  %v3794_v47 = vcombine.high %v3793_v3, %v3793_v3  ;;  %v8709_v6 = vld [vmem:[%s12267_s7 + $0xb0] ss:$8 sps:$4 sm:$0xff]   ;;  %v8711_v31 = vld [vmem:[%s12267_s7 + $0xb4] ss:$8 sps:$4 sm:$0xff]   ;;  %6852 = vmatprep.subr.bf16.mxu0 %v8708_v57 }
 0x4f2   : > { %3610 = vrot.lane.b32.xlu1 %v3609_v8, %s12292_s12  ;;  %v3701_v33 = vcombine.high %v3700_v49, %v3700_v49  ;;  %v3724_v51 = vrot.slane %v3717_v44, %v10728_v37  ;;  %v10828_v45 = vrot.slane %v3748_v18, %v10728_v37  ;;  %v3771_v59 = vcombine.high %v3748_v18, %v3748_v18  ;;  %v10854_v27 = vld [vmem:[#allocation4 + $0x20] sm:$0xff]  ;;  %v3815_v62 = vld [vmem:[#allocation7 + $0xb] sm:$0x1]  ;;  %v3845_v16 = vld [vmem:[#allocation7 + $0xc] sm:$0x1] }
 0x4f3   : > { %3647 = vst [vmem:[#allocation7 + $0x5] sm:$0x1] %v3646_v7  ;;  %v3662_v5 = vsel %vm10739_vm10, %v3656_v48, %v3661_v40  ;;  %v3678_v39 = vrot.slane %v10800_v46, %v10728_v37  ;;  %v3801_v53 = vrot.slane %v3794_v47, %v10728_v37  ;;  %6727 = vmatprep.subr.bf16.mxu1 %v8711_v31  ;;  %v8712_v46 = vld [vmem:[%s12267_s7 + $0x3d0] ss:$8 sps:$4 sm:$0xff]   ;;  %v2782_v49 = vrot.slane %v10854_v27, 6 }
 0x4f4   : > { %3633 = vrot.lane.b32.xlu0 %v3632_v19, %s12292_s12  ;;  %v10835_v9 = vcombine.high %v3724_v51, %v3724_v51  ;;  %3663 = vst [vmem:[#allocation7 + $0x6] sm:$0x1] %v3662_v5  ;;  %v3704_v30 = vsel %vm10739_vm10, %v3701_v33, %v3703_v52  ;;  %v3758_v8 = vsel %vm10739_vm10, %v10828_v45, %v3757_v25  ;;  %v3707_v40 = vshrl.u32 %v3701_v33, 16  ;;  %v8714_v52 = vld [vmem:[%s12267_s7 + $0x3d4] ss:$8 sps:$4 sm:$0xff]  }
 0x4f5   : > { %v7626_v12 = vld.sshfl [vmem:[#allocation6 + $0x10] sm:$0x13 pattern:$0x75316420]  ;;  %3705 = vst [vmem:[#allocation7 + $0x7] sm:$0x1] %v3704_v30  ;;  %v3778_v19 = vrot.slane %v3771_v59, %v10728_v37  ;;  %v2884_v0 = vor.u32 %v2883_v63, %v2880_v54  ;;  %v10862_v15 = vcombine.high %v3801_v53, %v3801_v53  ;;  %6853 = vmatpush1.bf16.msra.mxu0 %v8706_v58 }
 0x4f6   : > { %3649 = vrot.lane.b32.xlu1 %v3648_v11, %s12292_s12  ;;  %v10857_v36 = vrot.slane %v7626_v12, %v10728_v37  ;;  %v3848_v13 = vcombine.high %v7626_v12, %v7626_v12  ;;  %v8636_v43 = vld [vmem:[#allocation6 + $0x14] ss:$0 sps:$4 sm:$0xff]   ;;  %v3728_v56 = vsel %vm10739_vm10, %v10835_v9, %v3727_v35  ;;  %3759 = vst [vmem:[#allocation7 + $0x9] sm:$0x1] %v3758_v8  ;;  %v3868_v18 = vld [vmem:[#allocation7 + $0xd] sm:$0x1] }
 0x4f7   : > { %3729 = vst [vmem:[#allocation7 + $0x8] sm:$0x1] %v3728_v56  ;;  %v3781_v2 = vsel %vm10739_vm10, %v3778_v19, %v3780_v22  ;;  %v3887_v11 = vrot.slane %v8636_v43, %v10728_v37  ;;  %v3810_v44 = vshrl.u32 %v10862_v15, 16  ;;  %6728 = vmatpush1.bf16.msra.mxu1 %v8709_v6  ;;  %v3896_v3 = vld [vmem:[#allocation7 + $0xe] sm:$0x1]  ;;  %6854 = vmatprep.subr.bf16.mxu0 %v8714_v52  ;;  %v3731_v8 = vshrl.u32 %v10835_v9, 16 }
 0x4f8   : > { %3679 = vrot.lane.b32.xlu0 %v3678_v39, %s12292_s12  ;;  %v3840_v23 = vshrl.u32 %v10857_v36, 16  ;;  %v10869_v50 = vrot.slane %v3848_v13, %v10728_v37  ;;  %3782 = vst [vmem:[#allocation7 + $0xa] sm:$0x1] %v3781_v2  ;;  %v8715_v48 = vld [vmem:[%s12267_s7 + $0xc0] ss:$8 sps:$4 sm:$0xff]   ;;  %v2885_v60 = vsel %vm12311_vm12, %v10489_v14, %v2884_v0  ;;  %v2783_v47 = vsel %vm12312_vm3, %v2780_v61, %v2782_v49 }
 0x4f9   : > { %v10883_v34 = vrot.slane %v3887_v11, %v10728_v37  ;;  %v3910_v38 = vcombine.high %v3887_v11, %v3887_v11  ;;  %v8717_v21 = vld [vmem:[%s12267_s7 + $0xc4] ss:$8 sps:$4 sm:$0xff]   ;;  %v3816_v33 = vsel %vm10739_vm10, %v3810_v44, %v3815_v62  ;;  %v3919_v51 = vld [vmem:[#allocation7 + $0xf] sm:$0x1]  ;;  %v3935_v59 = vld [vmem:[#allocation7 + $0x10] sm:$0x1]  ;;  %6855 = vmatpush1.bf16.msra.mxu0 %v8712_v46  ;;  %v3871_v43 = vcombine.high %v10857_v36, %v10857_v36 }
 0x4fa   : > { %3711 = vrot.lane.b32.xlu1 %v3707_v40, %s12292_s12  ;;  %v3863_v41 = vshrl.u32 %v10869_v50, 16  ;;  %v3846_v7 = vsel %vm10739_vm10, %v3840_v23, %v3845_v16  ;;  %v8720_v57 = vld [vmem:[%s12267_s7 + $0x3e4] ss:$8 sps:$4 sm:$0xff]   ;;  %v8718_v14 = vld [vmem:[%s12267_s7 + $0x3e0] ss:$8 sps:$4 sm:$0xff]   ;;  %6729 = vmatprep.subr.bf16.mxu1 %v8717_v21  ;;  %v3761_v27 = vshrl.u32 %v10828_v45, 16 }
 0x4fb   : > { %3847 = vst [vmem:[#allocation7 + $0xc] sm:$0x1] %v3846_v7  ;;  %v3917_v25 = vrot.slane %v3910_v38, %v10728_v37  ;;  %v3933_v54 = vcombine.high %v10883_v34, %v10883_v34  ;;  %3817 = vst [vmem:[#allocation7 + $0xb] sm:$0x1] %v3816_v33  ;;  %6856 = vmatprep.subr.bf16.mxu0 %v8720_v57  ;;  %v8723_v5 = vld [vmem:[%s12267_s7 + $0xd4] ss:$8 sps:$4 sm:$0xff]   ;;  %v3897_v35 = vsel %vm10739_vm10, %v10883_v34, %v3896_v3 }
 0x4fc   : > { %2892 = vrot.lane.b32.xlu0 %v2885_v60, %s12292_s12  ;;  %v3869_v63 = vsel %vm10739_vm10, %v3863_v41, %v3868_v18  ;;  %6730 = vmatpush1.bf16.msra.mxu1 %v8715_v48  ;;  %v8726_v61 = vld [vmem:[%s12267_s7 + $0x3f4] ss:$8 sps:$4 sm:$0xff]   ;;  %3898 = vst [vmem:[#allocation7 + $0xe] sm:$0x1] %v3897_v35  ;;  %v3951_v30 = vld [vmem:[#allocation7 + $0x11] sm:$0x1] }
 0x4fd   : > { %3870 = vst [vmem:[#allocation7 + $0xd] sm:$0x1] %v3869_v63  ;;  %v3920_v22 = vsel %vm10739_vm10, %v3917_v25, %v3919_v51  ;;  %v3936_v39 = vsel %vm10739_vm10, %v3933_v54, %v3935_v59  ;;  %6731 = vmatprep.subr.bf16.mxu1 %v8723_v5  ;;  %v3949_v58 = vcombine.high %v3917_v25, %v3917_v25  ;;  %v8724_v6 = vld [vmem:[%s12267_s7 + $0x3f0] ss:$8 sps:$4 sm:$0xff]   ;;  %v8729_v31 = vld [vmem:[%s12267_s7 + $0xe4] ss:$8 sps:$4 sm:$0xff]  }
 0x4fe   : > { %2790 = vrot.lane.b32.xlu1 %v2783_v47, %s12292_s12  ;;  %3921 = vst [vmem:[#allocation7 + $0xf] sm:$0x1] %v3920_v22  ;;  %3937 = vst [vmem:[#allocation7 + $0x10] sm:$0x1] %v3936_v39  ;;  %6857 = vmatpush1.bf16.msra.mxu0 %v8718_v14  ;;  %v8732_v53 = vld [vmem:[%s12267_s7 + $0x404] ss:$8 sps:$4 sm:$0xff]  }
 0x4ff   : > { %6858 = vmatprep.subr.bf16.mxu0 %v8726_v61  ;;  %v3952_v12 = vsel %vm10739_vm10, %v3949_v58, %v3951_v30  ;;  %v8727_v19 = vld [vmem:[%s12267_s7 + $0xe0] ss:$8 sps:$4 sm:$0xff]   ;;  %v8736_v13 = vld [vmem:[%s12267_s7 + $0xf4] ss:$8 sps:$4 sm:$0xff]   ;;  %v8734_v9 = vld [vmem:[%s12267_s7 + $0xf0] ss:$8 sps:$4 sm:$0xff]  }
 0x500   : > { %2894 = vrot.lane.b32.xlu0 %v2884_v0, %s12292_s12  ;;  %6732 = vmatpush1.bf16.msra.mxu1 %v8721_v55  ;;  %3953 = vst [vmem:[#allocation7 + $0x11] sm:$0x1] %v3952_v12  ;;  %v8742_v45 = vld [vmem:[%s12267_s7 + $0x104] ss:$8 sps:$4 sm:$0xff]   ;;  %v3900_v56 = vshrl.u32 %v10883_v34, 16  ;;  %v3923_v0 = vshrl.u32 %v3917_v25, 16 }
 0x501   : > { %6733 = vmatprep.subr.bf16.mxu1 %v8729_v31  ;;  %v3567_v23 = vld [vmem:[#allocation7 + $0x1] sm:$0x1]  ;;  %v3583_v11 = vld [vmem:[#allocation7 + $0x2] sm:$0x1]  ;;  %v3636_v3 = vld [vmem:[#allocation7 + $0x4] sm:$0x1] }
 0x502   : > { %2792 = vrot.lane.b32.xlu1 %v2782_v49, %s12292_s12  ;;  %6859 = vmatpush1.bf16.msra.mxu0 %v8724_v6  ;;  %v3613_v49 = vld [vmem:[#allocation7 + $0x3] sm:$0x1]  ;;  %v3652_v38 = vld [vmem:[#allocation7 + $0x5] sm:$0x1]  ;;  %v3682_v7 = vld [vmem:[#allocation7 + $0x6] sm:$0x1] }
 0x503   : > { %6869 = vmatprep.subr.bf16.mxu0 %v8732_v53  ;;  %v3714_v33 = vld [vmem:[#allocation7 + $0x7] sm:$0x1]  ;;  %v2905_v14 = vld [vmem:[#allocation5 + $0xb8] sm:$0x3]  ;;  %v2803_v5 = vld [vmem:[#allocation5 + $0xb0] sm:$0x3] }
 0x504   : > { %3735 = vrot.lane.b32.xlu0 %v3731_v8, %s12292_s12  ;;  %6734 = vmatpush1.bf16.msra.mxu1 %v8727_v19  ;;  %v3738_v22 = vld [vmem:[#allocation7 + $0x8] sm:$0x1]  ;;  %v3768_v31 = vld [vmem:[#allocation7 + $0x9] sm:$0x1]  ;;  %v9090_v2 = vld [vmem:[%s12267_s7 + $0x914] ss:$8 sps:$4 sm:$0xff]  }
 0x505   : > { %6735 = vmatprep.subr.bf16.mxu1 %v8736_v13 }
 0x506   : > { %3765 = vrot.lane.b32.xlu1 %v3761_v27, %s12292_s12  ;;  %v3806_v27 = vld [vmem:[#allocation7 + $0xa] sm:$0x1] }
 0x508   : > { %3803 = vrot.lane.b32.xlu0 %v10862_v15, %s12292_s12  ;;  %6736 = vmatpush1.bf16.msra.mxu1 %v8734_v9  ;;  %v3939_v15 = vshrl.u32 %v3933_v54, 16 }
 0x509   : > { %6746 = vmatprep.subr.bf16.mxu1 %v8742_v45 }
 0x50a   : > { %3833 = vrot.lane.b32.xlu1 %v10857_v36, %s12292_s12  ;;  %v3544_v36 = vld [vmem:[#allocation7] sm:$0x1] }
 0x50c   : > { %3856 = vrot.lane.b32.xlu0 %v10869_v50, %s12292_s12 }
 0x50e   : > { %3872 = vrot.lane.b32.xlu1 %v3871_v43, %s12292_s12 }
 0x510   : > { %3904 = vrot.lane.b32.xlu0 %v3900_v56, %s12292_s12 }
 0x512   : > { %3927 = vrot.lane.b32.xlu1 %v3923_v0, %s12292_s12  ;;  %v3836_v0 = vld [vmem:[#allocation7 + $0xb] sm:$0x1] }
 0x514   : > { %3943 = vrot.lane.b32.xlu0 %v3939_v15, %s12292_s12 }
 0x55e   : > { %v3540_v62 = vpop.permute.xlu0 %3539 }
 0x55f   : > { %v3545_v16 = vsel %vm10972_vm6, %v3540_v62, %v3544_v36 }
 0x560   : > { %3546 = vst [vmem:[#allocation7] sm:$0x1] %v3545_v16  ;;  %v3565_v40 = vpop.permute.xlu1 %3564 }
 0x561   : > { %v3568_v50 = vsel %vm10972_vm6, %v3565_v40, %v3567_v23  ;;  %v3859_v40 = vld [vmem:[#allocation7 + $0xc] sm:$0x1] }
 0x562   : > { %3569 = vst [vmem:[#allocation7 + $0x1] sm:$0x1] %v3568_v50  ;;  %v3581_v46 = vpop.permute.xlu0 %3580  ;;  %v8730_v50 = vld [vmem:[%s12267_s7 + $0x400] ss:$8 sps:$4 sm:$0xff]  }
 0x563   : > { %v3584_v52 = vsel %vm10972_vm6, %v3581_v46, %v3583_v11 }
 0x564   : > { %3585 = vst [vmem:[#allocation7 + $0x2] sm:$0x1] %v3584_v52  ;;  %v3611_v44 = vpop.permute.xlu1 %3610 }
 0x565   : > { %v3614_v18 = vsel %vm10972_vm6, %v3611_v44, %v3613_v49  ;;  %v8739_v49 = vld [vmem:[%s12267_s7 + $0x414] ss:$8 sps:$4 sm:$0xff]  }
 0x566   : > { %3615 = vst [vmem:[#allocation7 + $0x3] sm:$0x1] %v3614_v18  ;;  %v3634_v41 = vpop.permute.xlu0 %3633  ;;  %v3875_v44 = vld [vmem:[#allocation7 + $0xd] sm:$0x1] }
 0x567   : > { %v3637_v34 = vsel %vm10972_vm6, %v3634_v41, %v3636_v3 }
 0x568   : > { %3638 = vst [vmem:[#allocation7 + $0x4] sm:$0x1] %v3637_v34  ;;  %v3650_v48 = vpop.permute.xlu1 %3649 }
 0x569   : > { %v3653_v21 = vsel %vm10972_vm6, %v3650_v48, %v3652_v38  ;;  %v3907_v38 = vld [vmem:[#allocation7 + $0xe] sm:$0x1] }
 0x56a   : > { %3654 = vst [vmem:[#allocation7 + $0x5] sm:$0x1] %v3653_v21  ;;  %v3680_v60 = vpop.permute.xlu0 %3679  ;;  %v8737_v21 = vld [vmem:[%s12267_s7 + $0x410] ss:$8 sps:$4 sm:$0xff]  }
 0x56b   : > { %v3683_v57 = vsel %vm10972_vm6, %v3680_v60, %v3682_v7  ;;  %v8745_v60 = vld [vmem:[%s12267_s7 + $0x424] ss:$8 sps:$4 sm:$0xff]  }
 0x56c   : > { %3684 = vst [vmem:[#allocation7 + $0x6] sm:$0x1] %v3683_v57  ;;  %v3712_v51 = vpop.permute.xlu1 %3711  ;;  %v3930_v57 = vld [vmem:[#allocation7 + $0xf] sm:$0x1] }
 0x56d   : > { %v3715_v59 = vsel %vm10972_vm6, %v3712_v51, %v3714_v33 }
 0x56e   : > { %3716 = vst [vmem:[#allocation7 + $0x7] sm:$0x1] %v3715_v59  ;;  %v2893_v25 = vpop.permute.xlu0 %2892  ;;  %v3946_v59 = vld [vmem:[#allocation7 + $0x10] sm:$0x1] }
 0x56f   : > { %2904 = vst.msk [vmem:[#allocation5 + $0x90] sm:$0xff] %vm2622_vm13, %v2893_v25 }
 0x570   : > { %v2791_v54 = vpop.permute.xlu1 %2790 }
 0x571   : > { %2802 = vst.msk [vmem:[#allocation5 + $0x88] sm:$0xff] %vm2622_vm13, %v2791_v54  ;;  %v8740_v54 = vld [vmem:[%s12267_s7 + $0x100] ss:$8 sps:$4 sm:$0xff]  }
 0x572   : > { %v2895_v63 = vpop.permute.xlu0 %2894 }
 0x573   : > { %v2906_v47 = vsel %vm10557_vm7, %v2895_v63, %v2905_v14  ;;  %v8743_v14 = vld [vmem:[%s12267_s7 + $0x420] ss:$8 sps:$4 sm:$0xff]  }
 0x574   : > { %2907 = vst [vmem:[#allocation5 + $0xb8] sm:$0x3] %v2906_v47  ;;  %v2793_v35 = vpop.permute.xlu1 %2792 }
 0x575   : > { %v2804_v55 = vsel %vm10557_vm7, %v2793_v35, %v2803_v5  ;;  %v4145_v61 = vld [vmem:[#allocation7] sm:$0xff]  ;;  %v8748_v5 = vld [vmem:[%s12267_s7 + $0x114] ss:$8 sps:$4 sm:$0xff]  }
 0x576   : > { %2805 = vst [vmem:[#allocation5 + $0xb0] sm:$0x3] %v2804_v55  ;;  %v3736_v39 = vpop.permute.xlu0 %3735  ;;  %v2957_v30 = vld [vmem:[#allocation5 + $0x90] sm:$0xff]  ;;  %v4546_v58 = vcombine.high %v4145_v61, %v4145_v61  ;;  %v4553_v19 = vrot.slane %v4145_v61, %v10728_v37  ;;  %v8751_v35 = vld [vmem:[%s12267_s7 + $0x434] ss:$8 sps:$4 sm:$0xff]  }
 0x577   : > { %v3739_v6 = vsel %vm10972_vm6, %v3736_v39, %v3738_v22  ;;  %3403 = vmatprep.mubr.bf16.mxu1 %v2957_v30  ;;  %v8746_v61 = vld [vmem:[%s12267_s7 + $0x110] ss:$8 sps:$4 sm:$0xff]   ;;  %v8754_v39 = vld [vmem:[%s12267_s7 + $0x124] ss:$8 sps:$4 sm:$0xff]  }
 0x578   : > { %3740 = vst [vmem:[#allocation7 + $0x8] sm:$0x1] %v3739_v6  ;;  %v3766_v53 = vpop.permute.xlu1 %3765  ;;  %v2956_v12 = vld [vmem:[#allocation5 + $0x88] sm:$0xff]  ;;  %v4560_v8 = vrot.slane %v4546_v58, %v10728_v37  ;;  %v4561_v36 = vcombine.high %v4553_v19, %v4553_v19  ;;  %v11046_v63 = vrot.slane %v4553_v19, %v10728_v37  ;;  %v8749_v22 = vld [vmem:[%s12267_s7 + $0x430] ss:$8 sps:$4 sm:$0xff]  }
 0x579   : > { %v3769_v10 = vsel %vm10972_vm6, %v3766_v53, %v3768_v31  ;;  %3404 = vmatmul.mubr.bf16.gmra.mrb[180].mxu1 %v2956_v12  ;;  %v8757_v30 = vld [vmem:[%s12267_s7 + $0x444] ss:$8 sps:$4 sm:$0xff]   ;;  %v8752_v6 = vld [vmem:[%s12267_s7 + $0x120] ss:$8 sps:$4 sm:$0xff]   ;;  %v8760_v12 = vld [vmem:[%s12267_s7 + $0x134] ss:$8 sps:$4 sm:$0xff]  }
 0x57a   : > { %3770 = vst [vmem:[#allocation7 + $0x9] sm:$0x1] %v3769_v10  ;;  %v3804_v13 = vpop.permute.xlu0 %3803  ;;  %v4562_v9 = vcombine.high %v4560_v8, %v4560_v8  ;;  %v11007_v56 = vrot.slane %v4560_v8, %v10728_v37  ;;  %v4583_v41 = vrot.slane %v4561_v36, %v10728_v37  ;;  %v8755_v31 = vld [vmem:[%s12267_s7 + $0x440] ss:$8 sps:$4 sm:$0xff]   ;;  %v8763_v8 = vld [vmem:[%s12267_s7 + $0x454] ss:$8 sps:$4 sm:$0xff]  }
 0x57b   : > { %v3807_v45 = vsel %vm10972_vm6, %v3804_v13, %v3806_v27  ;;  %v2962_v43 = vld [vmem:[#allocation5 + $0xb8] sm:$0xff] }
 0x57c   : > { %3808 = vst [vmem:[#allocation7 + $0xa] sm:$0x1] %v3807_v45  ;;  %v3834_v15 = vpop.permute.xlu1 %3833  ;;  %3411 = vmatprep.mubr.bf16.mxu1 %v2962_v43  ;;  %v11010_v62 = vrot.slane %v4562_v9, %v10728_v37  ;;  %v4592_v52 = vcombine.high %v11007_v56, %v11007_v56  ;;  %v4593_v55 = vcombine.high %v4583_v41, %v4583_v41  ;;  %v8758_v10 = vld [vmem:[%s12267_s7 + $0x130] ss:$8 sps:$4 sm:$0xff]   ;;  %v8766_v9 = vld [vmem:[%s12267_s7 + $0x144] ss:$8 sps:$4 sm:$0xff]  }
 0x57d   : > { %v3837_v16 = vsel %vm10972_vm6, %v3834_v15, %v3836_v0  ;;  %v2961_v3 = vld [vmem:[#allocation5 + $0xb0] sm:$0xff]  ;;  %v8761_v27 = vld [vmem:[%s12267_s7 + $0x450] ss:$8 sps:$4 sm:$0xff]   ;;  %v8772_v15 = vld [vmem:[%s12267_s7 + $0x154] ss:$8 sps:$4 sm:$0xff]  }
 0x57e   : > { %3838 = vst [vmem:[#allocation7 + $0xb] sm:$0x1] %v3837_v16  ;;  %v3857_v23 = vpop.permute.xlu0 %3856  ;;  %v4594_v11 = vcombine.high %v11010_v62, %v11010_v62  ;;  %v8769_v45 = vld [vmem:[%s12267_s7 + $0x464] ss:$8 sps:$4 sm:$0xff]   ;;  %v8764_v43 = vld [vmem:[%s12267_s7 + $0x140] ss:$8 sps:$4 sm:$0xff]  }
 0x57f   : > { %v3860_v46 = vsel %vm10972_vm6, %v3857_v23, %v3859_v40  ;;  %v8767_v0 = vld [vmem:[%s12267_s7 + $0x460] ss:$8 sps:$4 sm:$0xff]   ;;  %v8775_v36 = vld [vmem:[%s12267_s7 + $0x474] ss:$8 sps:$4 sm:$0xff]   ;;  %v8770_v16 = vld [vmem:[%s12267_s7 + $0x150] ss:$8 sps:$4 sm:$0xff]  }
 0x580   : > { %3861 = vst [vmem:[#allocation7 + $0xc] sm:$0x1] %v3860_v46  ;;  %v3873_v18 = vpop.permute.xlu1 %3872  ;;  %6860 = vmatprep.mubr.bf16.mxu0 %v4594_v11  ;;  %v8773_v40 = vld [vmem:[%s12267_s7 + $0x470] ss:$8 sps:$4 sm:$0xff]   ;;  %v8778_v23 = vld [vmem:[%s12267_s7 + $0x164] ss:$8 sps:$4 sm:$0xff]  }
 0x581   : > { %v3876_v34 = vsel %vm10972_vm6, %v3873_v18, %v3875_v44  ;;  %3412 = vmatmul.mubr.bf16.gmra.mrb[184].mxu1 %v2961_v3  ;;  %6861 = vmatmul.mubr.bf16.vlgmr.msra.gmra.mrb[20].mxu0 %v4592_v52  ;;  %v8776_v11 = vld [vmem:[%s12267_s7 + $0x160] ss:$8 sps:$4 sm:$0xff]   ;;  %v8784_v52 = vld [vmem:[%s12267_s7 + $0x174] ss:$8 sps:$4 sm:$0xff]   ;;  %v8782_v44 = vld [vmem:[%s12267_s7 + $0x170] ss:$8 sps:$4 sm:$0xff]  }
 0x582   : > { %3877 = vst [vmem:[#allocation7 + $0xd] sm:$0x1] %v3876_v34  ;;  %6870 = vmatpush1.bf16.msra.mxu0 %v8730_v50  ;;  %v3905_v48 = vpop.permute.xlu0 %3904  ;;  %6737 = vmatprep.mubr.bf16.mxu1 %v4583_v41  ;;  %v8781_v50 = vld [vmem:[%s12267_s7 + $0x484] ss:$8 sps:$4 sm:$0xff]   ;;  %v8779_v46 = vld [vmem:[%s12267_s7 + $0x480] ss:$8 sps:$4 sm:$0xff]  }
 0x583   : > { %v3908_v7 = vsel %vm10972_vm6, %v3905_v48, %v3907_v38  ;;  %6871 = vmatprep.subr.bf16.mxu0 %v8739_v49  ;;  %v8787_v49 = vld [vmem:[%s12267_s7 + $0x494] ss:$8 sps:$4 sm:$0xff]   ;;  %v8785_v18 = vld [vmem:[%s12267_s7 + $0x490] ss:$8 sps:$4 sm:$0xff]   ;;  %v8790_v3 = vld [vmem:[%s12267_s7 + $0x184] ss:$8 sps:$4 sm:$0xff]  }
 0x584   : > { %3909 = vst [vmem:[#allocation7 + $0xe] sm:$0x1] %v3908_v7  ;;  %v3928_v33 = vpop.permute.xlu1 %3927  ;;  %v8793_v41 = vld [vmem:[%s12267_s7 + $0x4a4] ss:$8 sps:$4 sm:$0xff]   ;;  %v8788_v34 = vld [vmem:[%s12267_s7 + $0x180] ss:$8 sps:$4 sm:$0xff]  }
 0x585   : > { %v3931_v51 = vsel %vm10972_vm6, %v3928_v33, %v3930_v57  ;;  %v8791_v38 = vld [vmem:[%s12267_s7 + $0x4a0] ss:$8 sps:$4 sm:$0xff]   ;;  %v8796_v48 = vld [vmem:[%s12267_s7 + $0x194] ss:$8 sps:$4 sm:$0xff]   ;;  %v8794_v7 = vld [vmem:[%s12267_s7 + $0x190] ss:$8 sps:$4 sm:$0xff]  }
 0x586   : > { %3932 = vst [vmem:[#allocation7 + $0xf] sm:$0x1] %v3931_v51  ;;  %6872 = vmatpush1.bf16.msra.mxu0 %v8737_v21  ;;  %v3944_v25 = vpop.permute.xlu0 %3943  ;;  %v8799_v21 = vld [vmem:[%s12267_s7 + $0x4b4] ss:$8 sps:$4 sm:$0xff]   ;;  %v8802_v57 = vld [vmem:[%s12267_s7 + $0x1a4] ss:$8 sps:$4 sm:$0xff]  }
 0x587   : > { %v3947_v47 = vsel %vm10972_vm6, %v3944_v25, %v3946_v59  ;;  %6873 = vmatprep.subr.bf16.mxu0 %v8745_v60  ;;  %v8797_v60 = vld [vmem:[%s12267_s7 + $0x4b0] ss:$8 sps:$4 sm:$0xff]   ;;  %v8805_v33 = vld [vmem:[%s12267_s7 + $0x4c4] ss:$8 sps:$4 sm:$0xff]   ;;  %v8800_v51 = vld [vmem:[%s12267_s7 + $0x1a0] ss:$8 sps:$4 sm:$0xff]  }
 0x588   : > { %3948 = vst [vmem:[#allocation7 + $0x10] sm:$0x1] %v3947_v47  ;;  %v8803_v59 = vld [vmem:[%s12267_s7 + $0x4c0] ss:$8 sps:$4 sm:$0xff]   ;;  %v8808_v25 = vld [vmem:[%s12267_s7 + $0x1b4] ss:$8 sps:$4 sm:$0xff]  }
 0x589   : > { %6738 = vmatmul.mubr.bf16.vlgmr.msra.gmra.mrb[188].mxu1 %v11046_v63  ;;  %v8809_v47 = vld [vmem:[%s12267_s7 + $0x4d0] ss:$8 sps:$4 sm:$0xff]  }
 0x58a   : > { %6747 = vmatpush1.bf16.msra.mxu1 %v8740_v54  ;;  %6874 = vmatpush1.bf16.msra.mxu0 %v8743_v14  ;;  %v8811_v54 = vld [vmem:[%s12267_s7 + $0x4d4] ss:$8 sps:$4 sm:$0xff]   ;;  %v8806_v14 = vld [vmem:[%s12267_s7 + $0x1b0] ss:$8 sps:$4 sm:$0xff]  }
 0x58b   : > { %6778 = vmatprep.mubr.bf16.mxu1 %v4593_v55  ;;  %6748 = vmatprep.subr.bf16.mxu1 %v8748_v5  ;;  %v8814_v5 = vld [vmem:[%s12267_s7 + $0x1c4] ss:$8 sps:$4 sm:$0xff]   ;;  %v8812_v55 = vld [vmem:[%s12267_s7 + $0x1c0] ss:$8 sps:$4 sm:$0xff]  }
 0x58c   : > { %6875 = vmatprep.subr.bf16.mxu0 %v8751_v35  ;;  %v8817_v35 = vld [vmem:[%s12267_s7 + $0x4e4] ss:$8 sps:$4 sm:$0xff]  }
 0x58d   : > { %v11069_v58 = vld [vmem:[#allocation7 + $0x8] sm:$0xff] }
 0x58e   : > { %6749 = vmatpush1.bf16.msra.mxu1 %v8746_v61  ;;  %6876 = vmatpush1.bf16.msra.mxu0 %v8749_v22  ;;  %v11079_v53 = vrot.slane %v11069_v58, %v10728_v37  ;;  %v8815_v61 = vld [vmem:[%s12267_s7 + $0x4e0] ss:$8 sps:$4 sm:$0xff]   ;;  %v8820_v22 = vld [vmem:[%s12267_s7 + $0x1d4] ss:$8 sps:$4 sm:$0xff]  }
 0x58f   : > { %6750 = vmatprep.subr.bf16.mxu1 %v8754_v39  ;;  %6877 = vmatprep.subr.bf16.mxu0 %v8757_v30  ;;  %v8823_v39 = vld [vmem:[%s12267_s7 + $0x4f4] ss:$8 sps:$4 sm:$0xff]   ;;  %v8818_v30 = vld [vmem:[%s12267_s7 + $0x1d0] ss:$8 sps:$4 sm:$0xff]  }
 0x590   : > { %v4610_v19 = vcombine.high %v11079_v53, %v11079_v53 }
 0x592   : > { %6751 = vmatpush1.bf16.msra.mxu1 %v8752_v6  ;;  %6878 = vmatpush1.bf16.msra.mxu0 %v8755_v31  ;;  %v11096_v13 = vrot.slane %v4610_v19, %v10728_v37  ;;  %v8821_v6 = vld [vmem:[%s12267_s7 + $0x4f0] ss:$8 sps:$4 sm:$0xff]   ;;  %v8826_v31 = vld [vmem:[%s12267_s7 + $0x1e4] ss:$8 sps:$4 sm:$0xff]   ;;  %v8827_v19 = vld [vmem:[%s12267_s7 + $0x500] ss:$8 sps:$4 sm:$0xff]  }
 0x593   : > { %6752 = vmatprep.subr.bf16.mxu1 %v8760_v12  ;;  %6879 = vmatprep.subr.bf16.mxu0 %v8763_v8  ;;  %v8829_v12 = vld [vmem:[%s12267_s7 + $0x504] ss:$8 sps:$4 sm:$0xff]   ;;  %v8824_v8 = vld [vmem:[%s12267_s7 + $0x1e0] ss:$8 sps:$4 sm:$0xff]  }
 0x594   : > { %6901 = vmatprep.mubr.bf16.mxu0 %v11096_v13 }
 0x596   : > { %6753 = vmatpush1.bf16.msra.mxu1 %v8758_v10  ;;  %6880 = vmatpush1.bf16.msra.mxu0 %v8761_v27  ;;  %v11233_v10 = vrot.slane %v11079_v53, %v10728_v37  ;;  %v8832_v27 = vld [vmem:[%s12267_s7 + $0x1f4] ss:$8 sps:$4 sm:$0xff]   ;;  %v8830_v53 = vld [vmem:[%s12267_s7 + $0x1f0] ss:$8 sps:$4 sm:$0xff]  }
 0x597   : > { %6754 = vmatprep.subr.bf16.mxu1 %v8766_v9  ;;  %6881 = vmatprep.subr.bf16.mxu0 %v8769_v45  ;;  %v8835_v9 = vld [vmem:[%s12267_s7 + $0x514] ss:$8 sps:$4 sm:$0xff]   ;;  %v4642_v45 = vcombine.high %v11096_v13, %v11096_v13  ;;  %v8841_v13 = vld [vmem:[%s12267_s7 + $0x524] ss:$8 sps:$4 sm:$0xff]  }
 0x59a   : > { %6755 = vmatpush1.bf16.msra.mxu1 %v8764_v43  ;;  %6882 = vmatpush1.bf16.msra.mxu0 %v8767_v0  ;;  %v8833_v43 = vld [vmem:[%s12267_s7 + $0x510] ss:$8 sps:$4 sm:$0xff]   ;;  %v8838_v0 = vld [vmem:[%s12267_s7 + $0x204] ss:$8 sps:$4 sm:$0xff]  }
 0x59b   : > { %6756 = vmatprep.subr.bf16.mxu1 %v8772_v15  ;;  %6883 = vmatprep.subr.bf16.mxu0 %v8775_v36  ;;  %v8836_v15 = vld [vmem:[%s12267_s7 + $0x200] ss:$8 sps:$4 sm:$0xff]   ;;  %v4591_v36 = vcombine.high %v11046_v63, %v11046_v63  ;;  %v8842_v63 = vld [vmem:[%s12267_s7 + $0x210] ss:$8 sps:$4 sm:$0xff]  }
 0x59e   : > { %6757 = vmatpush1.bf16.msra.mxu1 %v8770_v16  ;;  %6884 = vmatpush1.bf16.msra.mxu0 %v8773_v40  ;;  %v8839_v16 = vld [vmem:[%s12267_s7 + $0x520] ss:$8 sps:$4 sm:$0xff]   ;;  %v8844_v40 = vld [vmem:[%s12267_s7 + $0x214] ss:$8 sps:$4 sm:$0xff]  }
 0x59f   : > { %6758 = vmatprep.subr.bf16.mxu1 %v8778_v23  ;;  %6885 = vmatprep.subr.bf16.mxu0 %v8781_v50  ;;  %v8847_v23 = vld [vmem:[%s12267_s7 + $0x534] ss:$8 sps:$4 sm:$0xff]   ;;  %v8845_v50 = vld [vmem:[%s12267_s7 + $0x530] ss:$8 sps:$4 sm:$0xff]  }
 0x5a2   : > { %6759 = vmatpush1.bf16.msra.mxu1 %v8776_v11  ;;  %6886 = vmatpush1.bf16.msra.mxu0 %v8779_v46  ;;  %v8850_v11 = vld [vmem:[%s12267_s7 + $0x224] ss:$8 sps:$4 sm:$0xff]  }
 0x5a3   : > { %6760 = vmatprep.subr.bf16.mxu1 %v8784_v52  ;;  %6887 = vmatprep.subr.bf16.mxu0 %v8787_v49  ;;  %v8853_v46 = vld [vmem:[%s12267_s7 + $0x544] ss:$8 sps:$4 sm:$0xff]   ;;  %v8851_v52 = vld [vmem:[%s12267_s7 + $0x540] ss:$8 sps:$4 sm:$0xff]   ;;  %v8856_v49 = vld [vmem:[%s12267_s7 + $0x234] ss:$8 sps:$4 sm:$0xff]  }
 0x5a6   : > { %6761 = vmatpush1.bf16.msra.mxu1 %v8782_v44  ;;  %6888 = vmatpush1.bf16.msra.mxu0 %v8785_v18  ;;  %v8859_v44 = vld [vmem:[%s12267_s7 + $0x554] ss:$8 sps:$4 sm:$0xff]   ;;  %v8854_v18 = vld [vmem:[%s12267_s7 + $0x230] ss:$8 sps:$4 sm:$0xff]  }
 0x5a7   : > { %6762 = vmatprep.subr.bf16.mxu1 %v8790_v3  ;;  %6889 = vmatprep.subr.bf16.mxu0 %v8793_v41  ;;  %v8857_v3 = vld [vmem:[%s12267_s7 + $0x550] ss:$8 sps:$4 sm:$0xff]   ;;  %v8862_v41 = vld [vmem:[%s12267_s7 + $0x244] ss:$8 sps:$4 sm:$0xff]  }
 0x5aa   : > { %6763 = vmatpush1.bf16.msra.mxu1 %v8788_v34  ;;  %6890 = vmatpush1.bf16.msra.mxu0 %v8791_v38  ;;  %v8865_v34 = vld [vmem:[%s12267_s7 + $0x564] ss:$8 sps:$4 sm:$0xff]   ;;  %v8860_v38 = vld [vmem:[%s12267_s7 + $0x240] ss:$8 sps:$4 sm:$0xff]  }
 0x5ab   : > { %6764 = vmatprep.subr.bf16.mxu1 %v8796_v48  ;;  %6891 = vmatprep.subr.bf16.mxu0 %v8799_v21  ;;  %v8863_v48 = vld [vmem:[%s12267_s7 + $0x560] ss:$8 sps:$4 sm:$0xff]   ;;  %v8868_v21 = vld [vmem:[%s12267_s7 + $0x254] ss:$8 sps:$4 sm:$0xff]  }
 0x5ae   : > { %6765 = vmatpush1.bf16.msra.mxu1 %v8794_v7  ;;  %6892 = vmatpush1.bf16.msra.mxu0 %v8797_v60  ;;  %v8871_v7 = vld [vmem:[%s12267_s7 + $0x574] ss:$8 sps:$4 sm:$0xff]   ;;  %v8866_v60 = vld [vmem:[%s12267_s7 + $0x250] ss:$8 sps:$4 sm:$0xff]  }
 0x5af   : > { %6766 = vmatprep.subr.bf16.mxu1 %v8802_v57  ;;  %6893 = vmatprep.subr.bf16.mxu0 %v8805_v33  ;;  %v8869_v57 = vld [vmem:[%s12267_s7 + $0x570] ss:$8 sps:$4 sm:$0xff]   ;;  %v8874_v33 = vld [vmem:[%s12267_s7 + $0x264] ss:$8 sps:$4 sm:$0xff]  }
 0x5b2   : > { %6767 = vmatpush1.bf16.msra.mxu1 %v8800_v51  ;;  %6894 = vmatpush1.bf16.msra.mxu0 %v8803_v59  ;;  %v8877_v51 = vld [vmem:[%s12267_s7 + $0x584] ss:$8 sps:$4 sm:$0xff]   ;;  %v8872_v59 = vld [vmem:[%s12267_s7 + $0x260] ss:$8 sps:$4 sm:$0xff]  }
 0x5b3   : > { %6768 = vmatprep.subr.bf16.mxu1 %v8808_v25  ;;  %6895 = vmatprep.subr.bf16.mxu0 %v8811_v54  ;;  %v8875_v25 = vld [vmem:[%s12267_s7 + $0x580] ss:$8 sps:$4 sm:$0xff]   ;;  %v8880_v54 = vld [vmem:[%s12267_s7 + $0x274] ss:$8 sps:$4 sm:$0xff]  }
 0x5b6   : > { %6769 = vmatpush1.bf16.msra.mxu1 %v8806_v14  ;;  %6896 = vmatpush1.bf16.msra.mxu0 %v8809_v47  ;;  %v8883_v14 = vld [vmem:[%s12267_s7 + $0x594] ss:$8 sps:$4 sm:$0xff]   ;;  %v8878_v47 = vld [vmem:[%s12267_s7 + $0x270] ss:$8 sps:$4 sm:$0xff]  }
 0x5b7   : > { %6770 = vmatprep.subr.bf16.mxu1 %v8814_v5  ;;  %6897 = vmatprep.subr.bf16.mxu0 %v8817_v35  ;;  %v8881_v5 = vld [vmem:[%s12267_s7 + $0x590] ss:$8 sps:$4 sm:$0xff]   ;;  %v8886_v35 = vld [vmem:[%s12267_s7 + $0x284] ss:$8 sps:$4 sm:$0xff]  }
 0x5ba   : > { %6771 = vmatpush1.bf16.msra.mxu1 %v8812_v55  ;;  %6898 = vmatpush1.bf16.msra.mxu0 %v8815_v61  ;;  %v8889_v55 = vld [vmem:[%s12267_s7 + $0x5a4] ss:$8 sps:$4 sm:$0xff]   ;;  %v8884_v61 = vld [vmem:[%s12267_s7 + $0x280] ss:$8 sps:$4 sm:$0xff]  }
 0x5bb   : > { %6772 = vmatprep.subr.bf16.mxu1 %v8820_v22  ;;  %6899 = vmatprep.subr.bf16.mxu0 %v8823_v39  ;;  %v8887_v22 = vld [vmem:[%s12267_s7 + $0x5a0] ss:$8 sps:$4 sm:$0xff]   ;;  %v8892_v39 = vld [vmem:[%s12267_s7 + $0x294] ss:$8 sps:$4 sm:$0xff]  }
 0x5be   : > { %6773 = vmatpush1.bf16.msra.mxu1 %v8818_v30  ;;  %6900 = vmatpush1.bf16.msra.mxu0 %v8821_v6  ;;  %v8895_v30 = vld [vmem:[%s12267_s7 + $0x5b4] ss:$8 sps:$4 sm:$0xff]   ;;  %v8890_v6 = vld [vmem:[%s12267_s7 + $0x290] ss:$8 sps:$4 sm:$0xff]  }
 0x5bf   : > { %6774 = vmatprep.subr.bf16.mxu1 %v8826_v31  ;;  %6910 = vmatprep.subr.bf16.mxu0 %v8829_v12  ;;  %v8893_v31 = vld [vmem:[%s12267_s7 + $0x5b0] ss:$8 sps:$4 sm:$0xff]   ;;  %v8898_v12 = vld [vmem:[%s12267_s7 + $0x2a4] ss:$8 sps:$4 sm:$0xff]  }
 0x5c1   : > { %6902 = vmatmul.mubr.bf16.vlgmr.msra.gmra.mrb[20].mxu0 %v11233_v10 }
 0x5c2   : > { %6775 = vmatpush1.bf16.msra.mxu1 %v8824_v8  ;;  %6911 = vmatpush1.bf16.msra.mxu0 %v8827_v19  ;;  %v8901_v8 = vld [vmem:[%s12267_s7 + $0x5c4] ss:$8 sps:$4 sm:$0xff]   ;;  %v8896_v19 = vld [vmem:[%s12267_s7 + $0x2a0] ss:$8 sps:$4 sm:$0xff]  }
 0x5c3   : > { %6942 = vmatprep.mubr.bf16.mxu0 %v4642_v45  ;;  %6776 = vmatprep.subr.bf16.mxu1 %v8832_v27  ;;  %v8899_v27 = vld [vmem:[%s12267_s7 + $0x5c0] ss:$8 sps:$4 sm:$0xff]   ;;  %v8907_v45 = vld [vmem:[%s12267_s7 + $0x5d4] ss:$8 sps:$4 sm:$0xff]  }
 0x5c4   : > { %6912 = vmatprep.subr.bf16.mxu0 %v8835_v9  ;;  %v8904_v9 = vld [vmem:[%s12267_s7 + $0x2b4] ss:$8 sps:$4 sm:$0xff]  }
 0x5c6   : > { %6777 = vmatpush1.bf16.msra.mxu1 %v8830_v53  ;;  %6913 = vmatpush1.bf16.msra.mxu0 %v8833_v43  ;;  %v8902_v53 = vld [vmem:[%s12267_s7 + $0x2b0] ss:$8 sps:$4 sm:$0xff]  }
 0x5c7   : > { %6787 = vmatprep.subr.bf16.mxu1 %v8838_v0  ;;  %6914 = vmatprep.subr.bf16.mxu0 %v8841_v13  ;;  %v8905_v43 = vld [vmem:[%s12267_s7 + $0x5d0] ss:$8 sps:$4 sm:$0xff]   ;;  %v8910_v0 = vld [vmem:[%s12267_s7 + $0x2c4] ss:$8 sps:$4 sm:$0xff]  }
 0x5c8   : > { %v8913_v13 = vld [vmem:[%s12267_s7 + $0x5e4] ss:$8 sps:$4 sm:$0xff]  }
 0x5c9   : > { %6779 = vmatmul.mubr.bf16.vlgmr.msra.gmra.mrb[188].mxu1 %v4591_v36  ;;  %v8908_v36 = vld [vmem:[%s12267_s7 + $0x2c0] ss:$8 sps:$4 sm:$0xff]  }
 0x5ca   : > { %6788 = vmatpush1.bf16.msra.mxu1 %v8836_v15  ;;  %6819 = vmatprep.mubr.bf16.mxu1 %v11010_v62  ;;  %v8848_v62 = vld [vmem:[%s12267_s7 + $0x220] ss:$8 sps:$4 sm:$0xff]   ;;  %v4595_v15 = vcombine.high %v11069_v58, %v11069_v58  ;;  %v8919_v58 = vld [vmem:[%s12267_s7 + $0x5f4] ss:$8 sps:$4 sm:$0xff]  }
 0x5cb   : > { %6915 = vmatpush1.bf16.msra.mxu0 %v8839_v16  ;;  %6789 = vmatprep.subr.bf16.mxu1 %v8844_v40  ;;  %v8911_v16 = vld [vmem:[%s12267_s7 + $0x5e0] ss:$8 sps:$4 sm:$0xff]   ;;  %v8916_v40 = vld [vmem:[%s12267_s7 + $0x2d4] ss:$8 sps:$4 sm:$0xff]  }
 0x5cc   : > { %6916 = vmatprep.subr.bf16.mxu0 %v8847_v23  ;;  %v11418_v23 = vrot.slane %v4595_v15, %v10728_v37  ;;  %v8971_v15 = vld [vmem:[%s12267_s7 + $0x6e4] ss:$8 sps:$4 sm:$0xff]  }
 0x5ce   : > { %6790 = vmatpush1.bf16.msra.mxu1 %v8842_v63  ;;  %v8914_v63 = vld [vmem:[%s12267_s7 + $0x2d0] ss:$8 sps:$4 sm:$0xff]  }
 0x5cf   : > { %6917 = vmatpush1.bf16.msra.mxu0 %v8845_v50  ;;  %6791 = vmatprep.subr.bf16.mxu1 %v8850_v11  ;;  %v8917_v50 = vld [vmem:[%s12267_s7 + $0x5f0] ss:$8 sps:$4 sm:$0xff]   ;;  %v8922_v11 = vld [vmem:[%s12267_s7 + $0x2e4] ss:$8 sps:$4 sm:$0xff]  }
 0x5d0   : > { %6918 = vmatprep.subr.bf16.mxu0 %v8853_v46  ;;  %v8925_v46 = vld [vmem:[%s12267_s7 + $0x604] ss:$8 sps:$4 sm:$0xff]  }
 0x5d2   : > { %6792 = vmatpush1.bf16.msra.mxu1 %v8848_v62  ;;  %v4611_v62 = vcombine.high %v11418_v23, %v11418_v23 }
 0x5d3   : > { %6919 = vmatpush1.bf16.msra.mxu0 %v8851_v52  ;;  %6793 = vmatprep.subr.bf16.mxu1 %v8856_v49  ;;  %v8920_v52 = vld [vmem:[%s12267_s7 + $0x2e0] ss:$8 sps:$4 sm:$0xff]  }
 0x5d4   : > { %6920 = vmatprep.subr.bf16.mxu0 %v8859_v44  ;;  %v8923_v49 = vld [vmem:[%s12267_s7 + $0x600] ss:$8 sps:$4 sm:$0xff]   ;;  %v4640_v44 = vcombine.high %v11233_v10, %v11233_v10  ;;  %v8930_v10 = vld [vmem:[%s12267_s7 + $0x610] ss:$8 sps:$4 sm:$0xff]  }
 0x5d6   : > { %6794 = vmatpush1.bf16.msra.mxu1 %v8854_v18  ;;  %v8929_v18 = vld [vmem:[%s12267_s7 + $0x2f4] ss:$8 sps:$4 sm:$0xff]  }
 0x5d7   : > { %6921 = vmatpush1.bf16.msra.mxu0 %v8857_v3  ;;  %6795 = vmatprep.subr.bf16.mxu1 %v8862_v41  ;;  %v8932_v3 = vld [vmem:[%s12267_s7 + $0x614] ss:$8 sps:$4 sm:$0xff]   ;;  %v11449_v41 = vrot.slane %v4611_v62, %v10728_v37  ;;  %v8978_v62 = vld [vmem:[%s12267_s7 + $0x710] ss:$8 sps:$4 sm:$0xff]  }
 0x5d8   : > { %6922 = vmatprep.subr.bf16.mxu0 %v8865_v34  ;;  %v8927_v34 = vld [vmem:[%s12267_s7 + $0x2f0] ss:$8 sps:$4 sm:$0xff]  }
 0x5da   : > { %6796 = vmatpush1.bf16.msra.mxu1 %v8860_v38  ;;  %v9010_v38 = vld [vmem:[%s12267_s7 + $0xc04] ss:$8 sps:$4 sm:$0xff]  }
 0x5db   : > { %6923 = vmatpush1.bf16.msra.mxu0 %v8863_v48  ;;  %6797 = vmatprep.subr.bf16.mxu1 %v8868_v21  ;;  %v8935_v48 = vld [vmem:[%s12267_s7 + $0x624] ss:$8 sps:$4 sm:$0xff]   ;;  %v9008_v21 = vld [vmem:[%s12267_s7 + $0xc00] ss:$8 sps:$4 sm:$0xff]  }
 0x5dc   : > { %6924 = vmatprep.subr.bf16.mxu0 %v8871_v7  ;;  %v8933_v7 = vld [vmem:[%s12267_s7 + $0x620] ss:$8 sps:$4 sm:$0xff]  }
 0x5de   : > { %6798 = vmatpush1.bf16.msra.mxu1 %v8866_v60  ;;  %v9017_v60 = vld [vmem:[%s12267_s7 + $0xc14] ss:$8 sps:$4 sm:$0xff]  }
 0x5df   : > { %6925 = vmatpush1.bf16.msra.mxu0 %v8869_v57  ;;  %6799 = vmatprep.subr.bf16.mxu1 %v8874_v33  ;;  %v8938_v57 = vld [vmem:[%s12267_s7 + $0x634] ss:$8 sps:$4 sm:$0xff]   ;;  %v9015_v33 = vld [vmem:[%s12267_s7 + $0xc10] ss:$8 sps:$4 sm:$0xff]  }
 0x5e0   : > { %6926 = vmatprep.subr.bf16.mxu0 %v8877_v51  ;;  %v9317_v51 = vmov 0  }
 0x5e2   : > { %6800 = vmatpush1.bf16.msra.mxu1 %v8872_v59  ;;  %v8936_v59 = vld [vmem:[%s12267_s7 + $0x630] ss:$8 sps:$4 sm:$0xff]  }
 0x5e3   : > { %6927 = vmatpush1.bf16.msra.mxu0 %v8875_v25  ;;  %6801 = vmatprep.subr.bf16.mxu1 %v8880_v54  ;;  %v9024_v25 = vld [vmem:[%s12267_s7 + $0xc24] ss:$8 sps:$4 sm:$0xff]   ;;  %v9022_v54 = vld [vmem:[%s12267_s7 + $0xc20] ss:$8 sps:$4 sm:$0xff]  }
 0x5e4   : > { %6928 = vmatprep.subr.bf16.mxu0 %v8883_v14  ;;  %v8939_v14 = vld [vmem:[%s12267_s7 + $0x640] ss:$8 sps:$4 sm:$0xff]  }
 0x5e6   : > { %6802 = vmatpush1.bf16.msra.mxu1 %v8878_v47  ;;  %v9030_v47 = vld [vmem:[%s12267_s7 + $0xc34] ss:$8 sps:$4 sm:$0xff]  }
 0x5e7   : > { %6929 = vmatpush1.bf16.msra.mxu0 %v8881_v5  ;;  %6803 = vmatprep.subr.bf16.mxu1 %v8886_v35  ;;  %v8944_v5 = vld [vmem:[%s12267_s7 + $0x654] ss:$8 sps:$4 sm:$0xff]   ;;  %v9028_v35 = vld [vmem:[%s12267_s7 + $0xc30] ss:$8 sps:$4 sm:$0xff]  }
 0x5e8   : > { %6930 = vmatprep.subr.bf16.mxu0 %v8889_v55  ;;  %v8942_v55 = vld [vmem:[%s12267_s7 + $0x650] ss:$8 sps:$4 sm:$0xff]  }
 0x5ea   : > { %6804 = vmatpush1.bf16.msra.mxu1 %v8884_v61  ;;  %v8947_v61 = vld [vmem:[%s12267_s7 + $0x664] ss:$8 sps:$4 sm:$0xff]  }
 0x5eb   : > { %6931 = vmatpush1.bf16.msra.mxu0 %v8887_v22  ;;  %6805 = vmatprep.subr.bf16.mxu1 %v8892_v39  ;;  %v8945_v22 = vld [vmem:[%s12267_s7 + $0x660] ss:$8 sps:$4 sm:$0xff]   ;;  %v8950_v39 = vld [vmem:[%s12267_s7 + $0x674] ss:$8 sps:$4 sm:$0xff]  }
 0x5ec   : > { %6932 = vmatprep.subr.bf16.mxu0 %v8895_v30  ;;  %v8948_v30 = vld [vmem:[%s12267_s7 + $0x670] ss:$8 sps:$4 sm:$0xff]  }
 0x5ee   : > { %6806 = vmatpush1.bf16.msra.mxu1 %v8890_v6  ;;  %v8953_v6 = vld [vmem:[%s12267_s7 + $0x684] ss:$8 sps:$4 sm:$0xff]  }
 0x5ef   : > { %6933 = vmatpush1.bf16.msra.mxu0 %v8893_v31  ;;  %6807 = vmatprep.subr.bf16.mxu1 %v8898_v12  ;;  %v8951_v31 = vld [vmem:[%s12267_s7 + $0x680] ss:$8 sps:$4 sm:$0xff]   ;;  %v8956_v12 = vld [vmem:[%s12267_s7 + $0x694] ss:$8 sps:$4 sm:$0xff]  }
 0x5f0   : > { %6934 = vmatprep.subr.bf16.mxu0 %v8901_v8  ;;  %v8954_v8 = vld [vmem:[%s12267_s7 + $0x690] ss:$8 sps:$4 sm:$0xff]  }
 0x5f2   : > { %6808 = vmatpush1.bf16.msra.mxu1 %v8896_v19  ;;  %v8959_v19 = vld [vmem:[%s12267_s7 + $0x6a4] ss:$8 sps:$4 sm:$0xff]  }
 0x5f3   : > { %6935 = vmatpush1.bf16.msra.mxu0 %v8899_v27  ;;  %6809 = vmatprep.subr.bf16.mxu1 %v8904_v9  ;;  %v8957_v27 = vld [vmem:[%s12267_s7 + $0x6a0] ss:$8 sps:$4 sm:$0xff]   ;;  %v8962_v9 = vld [vmem:[%s12267_s7 + $0x6b4] ss:$8 sps:$4 sm:$0xff]  }
 0x5f4   : > { %6936 = vmatprep.subr.bf16.mxu0 %v8907_v45  ;;  %v8960_v45 = vld [vmem:[%s12267_s7 + $0x6b0] ss:$8 sps:$4 sm:$0xff]  }
 0x5f6   : > { %6810 = vmatpush1.bf16.msra.mxu1 %v8902_v53  ;;  %v8965_v53 = vld [vmem:[%s12267_s7 + $0x6c4] ss:$8 sps:$4 sm:$0xff]  }
 0x5f7   : > { %6937 = vmatpush1.bf16.msra.mxu0 %v8905_v43  ;;  %6811 = vmatprep.subr.bf16.mxu1 %v8910_v0  ;;  %v8963_v43 = vld [vmem:[%s12267_s7 + $0x6c0] ss:$8 sps:$4 sm:$0xff]   ;;  %v8968_v0 = vld [vmem:[%s12267_s7 + $0x6d4] ss:$8 sps:$4 sm:$0xff]  }
 0x5f8   : > { %6938 = vmatprep.subr.bf16.mxu0 %v8913_v13  ;;  %v8966_v13 = vld [vmem:[%s12267_s7 + $0x6d0] ss:$8 sps:$4 sm:$0xff]  }
 0x5fa   : > { %6812 = vmatpush1.bf16.msra.mxu1 %v8908_v36  ;;  %v8969_v36 = vld [vmem:[%s12267_s7 + $0x6e0] ss:$8 sps:$4 sm:$0xff]  }
 0x5fb   : > { %6939 = vmatpush1.bf16.msra.mxu0 %v8911_v16  ;;  %6813 = vmatprep.subr.bf16.mxu1 %v8916_v40  ;;  %v8974_v16 = vld [vmem:[%s12267_s7 + $0x6f4] ss:$8 sps:$4 sm:$0xff]   ;;  %v8972_v40 = vld [vmem:[%s12267_s7 + $0x6f0] ss:$8 sps:$4 sm:$0xff]  }
 0x5fc   : > { %6940 = vmatprep.subr.bf16.mxu0 %v8919_v58  ;;  %v8977_v58 = vld [vmem:[%s12267_s7 + $0x704] ss:$8 sps:$4 sm:$0xff]  }
 0x5fe   : > { %6814 = vmatpush1.bf16.msra.mxu1 %v8914_v63  ;;  %v8975_v63 = vld [vmem:[%s12267_s7 + $0x700] ss:$8 sps:$4 sm:$0xff]  }
 0x5ff   : > { %6941 = vmatpush1.bf16.msra.mxu0 %v8917_v50  ;;  %6815 = vmatprep.subr.bf16.mxu1 %v8922_v11  ;;  %v11575_v50 = vrot.slane %v11418_v23, %v10728_v37  ;;  %v8980_v11 = vld [vmem:[%s12267_s7 + $0x714] ss:$8 sps:$4 sm:$0xff]   ;;  %v8983_v23 = vld [vmem:[%s12267_s7 + $0x724] ss:$8 sps:$4 sm:$0xff]  }
 0x600   : > { %6951 = vmatprep.subr.bf16.mxu0 %v8925_v46  ;;  %v4643_v46 = vcombine.high %v11449_v41, %v11449_v41 }
 0x602   : > { %6943 = vmatmul.mubr.bf16.vlgmr.msra.gmra.mrb[20].mxu0 %v4640_v44  ;;  %6816 = vmatpush1.bf16.msra.mxu1 %v8920_v52  ;;  %v8981_v52 = vld [vmem:[%s12267_s7 + $0x720] ss:$8 sps:$4 sm:$0xff]   ;;  %v8984_v44 = vld [vmem:[%s12267_s7 + $0x730] ss:$8 sps:$4 sm:$0xff]  }
 0x603   : > { %6952 = vmatpush1.bf16.msra.mxu0 %v8923_v49  ;;  %6983 = vmatprep.mubr.bf16.mxu0 %v11449_v41  ;;  %v8986_v49 = vld [vmem:[%s12267_s7 + $0x734] ss:$8 sps:$4 sm:$0xff]  }
 0x604   : > { %6817 = vmatprep.subr.bf16.mxu1 %v8929_v18  ;;  %6953 = vmatprep.subr.bf16.mxu0 %v8932_v3  ;;  %v8989_v3 = vld [vmem:[%s12267_s7 + $0x744] ss:$8 sps:$4 sm:$0xff]  }
 0x606   : > { %6818 = vmatpush1.bf16.msra.mxu1 %v8927_v34 }
 0x607   : > { %6954 = vmatpush1.bf16.msra.mxu0 %v8930_v10  ;;  %7197 = vmatprep.subr.bf16.mxu1 %v9010_v38 }
 0x608   : > { %6955 = vmatprep.subr.bf16.mxu0 %v8935_v48  ;;  %v8987_v48 = vld [vmem:[%s12267_s7 + $0x740] ss:$8 sps:$4 sm:$0xff]  }
 0x609   : > { %6820 = vmatmul.mubr.bf16.vlgmr.msra.gmra.mrb[188].mxu1 %v11007_v56  ;;  %v8941_v56 = vld [vmem:[%s12267_s7 + $0x644] ss:$8 sps:$4 sm:$0xff]  }
 0x60a   : > { %7198 = vmatpush1.bf16.msra.mxu1 %v9008_v21  ;;  %7229 = vmatprep.mubr.bf16.mxu1 %v9317_v51  ;;  %v8990_v51 = vld [vmem:[%s12267_s7 + $0x750] ss:$8 sps:$4 sm:$0xff]  }
 0x60b   : > { %6956 = vmatpush1.bf16.msra.mxu0 %v8933_v7  ;;  %7199 = vmatprep.subr.bf16.mxu1 %v9017_v60  ;;  %v8992_v60 = vld [vmem:[%s12267_s7 + $0x754] ss:$8 sps:$4 sm:$0xff]  }
 0x60c   : > { %6957 = vmatprep.subr.bf16.mxu0 %v8938_v57 }
 0x60e   : > { %7200 = vmatpush1.bf16.msra.mxu1 %v9015_v33 }
 0x60f   : > { %6958 = vmatpush1.bf16.msra.mxu0 %v8936_v59  ;;  %7201 = vmatprep.subr.bf16.mxu1 %v9024_v25 }
 0x610   : > { %6959 = vmatprep.subr.bf16.mxu0 %v8941_v56 }
 0x612   : > { %7202 = vmatpush1.bf16.msra.mxu1 %v9022_v54 }
 0x613   : > { %6960 = vmatpush1.bf16.msra.mxu0 %v8939_v14  ;;  %7203 = vmatprep.subr.bf16.mxu1 %v9030_v47 }
 0x614   : > { %6961 = vmatprep.subr.bf16.mxu0 %v8944_v5  ;;  %v8993_v5 = vld [vmem:[%s12267_s7 + $0x760] ss:$8 sps:$4 sm:$0xff]  }
 0x616   : > { %7204 = vmatpush1.bf16.msra.mxu1 %v9028_v35 }
 0x617   : > { %6962 = vmatpush1.bf16.msra.mxu0 %v8942_v55 }
 0x618   : > { %6963 = vmatprep.subr.bf16.mxu0 %v8947_v61  ;;  %v8998_v61 = vld [vmem:[%s12267_s7 + $0x774] ss:$8 sps:$4 sm:$0xff]  }
 0x61b   : > { %6964 = vmatpush1.bf16.msra.mxu0 %v8945_v22 }
 0x61c   : > { %6965 = vmatprep.subr.bf16.mxu0 %v8950_v39 }
 0x61f   : > { %6966 = vmatpush1.bf16.msra.mxu0 %v8948_v30  ;;  %v8996_v30 = vld [vmem:[%s12267_s7 + $0x770] ss:$8 sps:$4 sm:$0xff]  }
 0x620   : > { %6967 = vmatprep.subr.bf16.mxu0 %v8953_v6 }
 0x623   : > { %6968 = vmatpush1.bf16.msra.mxu0 %v8951_v31 }
 0x624   : > { %6969 = vmatprep.subr.bf16.mxu0 %v8956_v12 }
 0x627   : > { %6970 = vmatpush1.bf16.msra.mxu0 %v8954_v8  ;;  %v9004_v8 = vld [vmem:[%s12267_s7 + $0x794] ss:$8 sps:$4 sm:$0xff]  }
 0x628   : > { %6971 = vmatprep.subr.bf16.mxu0 %v8959_v19 }
 0x62b   : > { %6972 = vmatpush1.bf16.msra.mxu0 %v8957_v27 }
 0x62c   : > { %6973 = vmatprep.subr.bf16.mxu0 %v8962_v9 }
 0x62f   : > { %6974 = vmatpush1.bf16.msra.mxu0 %v8960_v45  ;;  %v9002_v45 = vld [vmem:[%s12267_s7 + $0x790] ss:$8 sps:$4 sm:$0xff]  }
 0x630   : > { %6975 = vmatprep.subr.bf16.mxu0 %v8965_v53 }
 0x633   : > { %6976 = vmatpush1.bf16.msra.mxu0 %v8963_v43 }
 0x634   : > { %6977 = vmatprep.subr.bf16.mxu0 %v8968_v0 }
 0x637   : > { %6978 = vmatpush1.bf16.msra.mxu0 %v8966_v13  ;;  %v9007_v13 = vld [vmem:[%s12267_s7 + $0x7a4] ss:$8 sps:$4 sm:$0xff]  }
 0x638   : > { %6979 = vmatprep.subr.bf16.mxu0 %v8971_v15 }
 0x63b   : > { %6980 = vmatpush1.bf16.msra.mxu0 %v8969_v36 }
 0x63c   : > { %6981 = vmatprep.subr.bf16.mxu0 %v8974_v16 }
 0x63f   : > { %6982 = vmatpush1.bf16.msra.mxu0 %v8972_v40 }
 0x640   : > { %6992 = vmatprep.subr.bf16.mxu0 %v8977_v58  ;;  %v9005_v58 = vld [vmem:[%s12267_s7 + $0x7a0] ss:$8 sps:$4 sm:$0xff]  }
 0x642   : > { %6984 = vmatmul.mubr.bf16.vlgmr.msra.gmra.mrb[20].mxu0 %v11575_v50 }
 0x643   : > { %6993 = vmatpush1.bf16.msra.mxu0 %v8975_v63  ;;  %7024 = vmatprep.mubr.bf16.mxu0 %v4643_v46  ;;  %v4066_v46 = vld [vmem:[#allocation7 + $0x15] sm:$0x1] }
 0x644   : > { %6994 = vmatprep.subr.bf16.mxu0 %v8980_v11  ;;  %v3990_v11 = vld [vmem:[#allocation7 + $0x12] sm:$0x1] }
 0x647   : > { %6995 = vmatpush1.bf16.msra.mxu0 %v8978_v62 }
 0x648   : > { %6996 = vmatprep.subr.bf16.mxu0 %v8983_v23 }
 0x64b   : > { %6997 = vmatpush1.bf16.msra.mxu0 %v8981_v52 }
 0x64c   : > { %v8264_v18 = vpop.f32.mrb[180].mxu1  ;;  %6998 = vmatprep.subr.bf16.mxu0 %v8986_v49 }
 0x64d   : > { %v8265_v41 = vpop.f32.mrb[181].mxu1 }
 0x64e   : > { %v8266_v34 = vadd.f32 %v8265_v41, %v8264_v18  ;;  %v8267_v10 = vpop.f32.mrb[182].mxu1  ;;  %v4104_v18 = vld [vmem:[#allocation7 + $0x17] sm:$0x1] }
 0x64f   : > { %6999 = vmatpush1.bf16.msra.mxu0 %v8984_v44  ;;  %v8268_v38 = vpop.f32.mrb[183].mxu1  ;;  %v4006_v44 = vld [vmem:[#allocation7 + $0x13] sm:$0x1]  ;;  %v9014_v41 = vld [vmem:[%s12267_s7 + $0x7b4] ss:$8 sps:$4 sm:$0xff]  }
 0x650   : > { %v3406_v21 = vadd.f32 %v8266_v34, %v10699_v29  ;;  %v8269_v7 = vadd.f32 %v8268_v38, %v8267_v10  ;;  %7000 = vmatprep.subr.bf16.mxu0 %v8989_v3  ;;  %v8995_v29 = vld [vmem:[%s12267_s7 + $0x764] ss:$8 sps:$4 sm:$0xff]   ;;  %v4022_v38 = vld [vmem:[#allocation7 + $0x14] sm:$0x1] }
 0x652   : > { %v3479_v57 = vadd.f32 %v10599_v42, %v3406_v21  ;;  %v3409_v33 = vadd.f32 %v8269_v7, %v10702_v26 }
 0x653   : > { %7001 = vmatpush1.bf16.msra.mxu0 %v8987_v48 }
 0x654   : > { %v3482_v59 = vadd.f32 %v10601_v1, %v3409_v33  ;;  %v8270_v25 = vpop.f32.mrb[184].mxu1  ;;  %7002 = vmatprep.subr.bf16.mxu0 %v8992_v60  ;;  %v3499_v54 = vmax.f32 %v3479_v57, 0.0  ;;  %v4090_v57 = vld [vmem:[#allocation7 + $0x16] sm:$0x1]  ;;  %v9012_v33 = vld [vmem:[%s12267_s7 + $0x7b0] ss:$8 sps:$4 sm:$0xff]  }
 0x655   : > { %v8271_v56 = vpop.f32.mrb[185].mxu1 }
 0x656   : > { %v3500_v14 = vmax.f32 %v3482_v59, 0.0  ;;  %v8272_v47 = vadd.f32 %v8271_v56, %v8270_v25  ;;  %v8273_v42 = vpop.f32.mrb[186].mxu1 }
 0x657   : > { %7003 = vmatpush1.bf16.msra.mxu0 %v8990_v51  ;;  %v8274_v26 = vpop.f32.mrb[187].mxu1 }
 0x658   : > { %v3506_v35 = vpack.c.bf16 %v3500_v14, %v3499_v54  ;;  %v3414_v1 = vadd.f32 %v8272_v47, %v10705_v24  ;;  %v8275_v55 = vadd.f32 %v8274_v26, %v8273_v42  ;;  %7004 = vmatprep.subr.bf16.mxu0 %v8995_v29  ;;  %v9001_v24 = vld [vmem:[%s12267_s7 + $0x784] ss:$8 sps:$4 sm:$0xff]   ;;  %v4142_v14 = vld [vmem:[#allocation7 + $0x18] sm:$0x1] }
 0x659   : > { %v9021_v54 = vld [vmem:[%s12267_s7 + $0x7c4] ss:$8 sps:$4 sm:$0xff]  }
 0x65a   : > { %3511 = vst.msk [vmem:[#allocation6 + $0x18] sm:$0xff] %vm599_vm1, %v3506_v35  ;;  %v3487_v22 = vadd.f32 %v10603_v4, %v3414_v1  ;;  %v3417_v39 = vadd.f32 %v8275_v55, %v10708_v32  ;;  %v8999_v4 = vld [vmem:[%s12267_s7 + $0x780] ss:$8 sps:$4 sm:$0xff]  }
 0x65b   : > { %7005 = vmatpush1.bf16.msra.mxu0 %v8993_v5  ;;  %v9019_v1 = vld [vmem:[%s12267_s7 + $0x7c0] ss:$8 sps:$4 sm:$0xff]  }
 0x65c   : > { %v3490_v6 = vadd.f32 %v10605_v17, %v3417_v39  ;;  %7006 = vmatprep.subr.bf16.mxu0 %v8998_v61  ;;  %v3501_v31 = vmax.f32 %v3487_v22, 0.0  ;;  %v9027_v61 = vld [vmem:[%s12267_s7 + $0x7d4] ss:$8 sps:$4 sm:$0xff]   ;;  %v9025_v39 = vld [vmem:[%s12267_s7 + $0x7d0] ss:$8 sps:$4 sm:$0xff]  }
 0x65e   : > { %v3502_v12 = vmax.f32 %v3490_v6, 0.0 }
 0x65f   : > { %7007 = vmatpush1.bf16.msra.mxu0 %v8996_v30  ;;  %v9031_v30 = vld [vmem:[%s12267_s7 + $0x7e0] ss:$8 sps:$4 sm:$0xff]  }
 0x660   : > { %v3507_v32 = vpack.c.bf16 %v3502_v12, %v3501_v31  ;;  %7008 = vmatprep.subr.bf16.mxu0 %v9001_v24  ;;  %v9036_v24 = vld [vmem:[%s12267_s7 + $0x7f4] ss:$8 sps:$4 sm:$0xff]   ;;  %v9034_v12 = vld [vmem:[%s12267_s7 + $0x7f0] ss:$8 sps:$4 sm:$0xff]  }
 0x661   : > { %v3954_v19 = vld [vmem:[#allocation6 + $0x18] sm:$0x1e] }
 0x662   : > { %3512 = vst.msk [vmem:[#allocation6 + $0x20] sm:$0xff] %vm599_vm1, %v3507_v32  ;;  %v3962_v17 = vrot.slane %v3954_v19, %v10728_v37  ;;  %v4025_v27 = vcombine.high %v3954_v19, %v3954_v19  ;;  %v9018_v9 = vld [vmem:[#allocation6 + $0x1c] ss:$0 sps:$4 sm:$0xcc]   ;;  %v9037_v32 = vld [vmem:[%s12267_s7 + $0x800] ss:$8 sps:$4 sm:$0xff]  }
 0x663   : > { %7009 = vmatpush1.bf16.msra.mxu0 %v8999_v4  ;;  %v4056_v0 = vrot.slane %v9018_v9, %v10728_v37  ;;  %v9039_v4 = vld [vmem:[%s12267_s7 + $0x804] ss:$8 sps:$4 sm:$0xff]   ;;  %v9042_v19 = vld [vmem:[%s12267_s7 + $0x814] ss:$8 sps:$4 sm:$0xff]  }
 0x664   : > { %7010 = vmatprep.subr.bf16.mxu0 %v9004_v8  ;;  %v3970_v53 = vrot.slane %v3962_v17, %v10728_v37  ;;  %v3963_v43 = vcombine.high %v3962_v17, %v3962_v17  ;;  %v4032_v15 = vrot.slane %v4025_v27, %v10728_v37  ;;  %v4641_v8 = vcombine.high %v11575_v50, %v11575_v50  ;;  %v9040_v17 = vld [vmem:[%s12267_s7 + $0x810] ss:$8 sps:$4 sm:$0xff]   ;;  %v9045_v27 = vld [vmem:[%s12267_s7 + $0x824] ss:$8 sps:$4 sm:$0xff]   ;;  %v9043_v50 = vld [vmem:[%s12267_s7 + $0x820] ss:$8 sps:$4 sm:$0xff]  }
 0x665   : > { %v4080_v40 = vcombine.high %v4056_v0, %v4056_v0  ;;  %v4063_v63 = vrot.slane %v4056_v0, %v10728_v37  ;;  %v9048_v9 = vld [vmem:[%s12267_s7 + $0x834] ss:$8 sps:$4 sm:$0xff]  }
 0x666   : > { %v3993_v36 = vcombine.high %v3970_v53, %v3970_v53  ;;  %v3977_v16 = vrot.slane %v3963_v43, %v10728_v37  ;;  %v4039_v3 = vrot.slane %v4032_v15, %v10728_v37  ;;  %v9051_v53 = vld [vmem:[%s12267_s7 + $0x844] ss:$8 sps:$4 sm:$0xff]   ;;  %v9049_v43 = vld [vmem:[%s12267_s7 + $0x840] ss:$8 sps:$4 sm:$0xff]   ;;  %v9054_v0 = vld [vmem:[%s12267_s7 + $0x854] ss:$8 sps:$4 sm:$0xff]  }
 0x667   : > { %7011 = vmatpush1.bf16.msra.mxu0 %v9002_v45  ;;  %v4087_v49 = vrot.slane %v4080_v40, %v10728_v37  ;;  %v4064_v34 = vcombine.high %v4063_v63, %v4063_v63  ;;  %v9046_v45 = vld [vmem:[%s12267_s7 + $0x830] ss:$8 sps:$4 sm:$0xff]   ;;  %v9057_v15 = vld [vmem:[%s12267_s7 + $0x864] ss:$8 sps:$4 sm:$0xff]   ;;  %v9061_v63 = vld [vmem:[%s12267_s7 + $0x880] ss:$8 sps:$4 sm:$0xff]  }
 0x668   : > { %3994 = vrot.lane.b32.xlu0 %v3993_v36, %s12292_s12  ;;  %v4001_v62 = vshrl.u32 %v3993_v36, 16  ;;  %3978 = vrot.lane.b32.xlu1 %v3977_v16, %s12292_s12  ;;  %v3985_v23 = vshrl.u32 %v3977_v16, 16  ;;  %v4009_v52 = vcombine.high %v3977_v16, %v3977_v16  ;;  %v9055_v36 = vld [vmem:[%s12267_s7 + $0x860] ss:$8 sps:$4 sm:$0xff]   ;;  %v9060_v16 = vld [vmem:[%s12267_s7 + $0x874] ss:$8 sps:$4 sm:$0xff]  }
 0x669   : > { %7012 = vmatprep.subr.bf16.mxu0 %v9007_v13  ;;  %v4047_v10 = vld [vmem:[#allocation6 + $0x20] sm:$0x3]  ;;  %v4088_v21 = vcombine.high %v4087_v49, %v4087_v49  ;;  %v4067_v59 = vsel %vm10739_vm10, %v4064_v34, %v4066_v46  ;;  %v4070_v26 = vshrl.u32 %v4064_v34, 16  ;;  %v9052_v13 = vld [vmem:[%s12267_s7 + $0x850] ss:$8 sps:$4 sm:$0xff]  }
 0x66a   : > { %v4017_v48 = vshrl.u32 %v4009_v52, 16  ;;  %v4114_v7 = vrot.slane %v4047_v10, %v10728_v37  ;;  %v3991_v60 = vsel %vm10739_vm10, %v3985_v23, %v3990_v11  ;;  %v4007_v51 = vsel %vm10739_vm10, %v4001_v62, %v4006_v44  ;;  %4068 = vst [vmem:[#allocation7 + $0x15] sm:$0x1] %v4067_v59  ;;  %v9058_v40 = vld [vmem:[%s12267_s7 + $0x870] ss:$8 sps:$4 sm:$0xff]  }
 0x66b   : > { %7013 = vmatpush1.bf16.msra.mxu0 %v9005_v58  ;;  %3992 = vst [vmem:[#allocation7 + $0x12] sm:$0x1] %v3991_v60  ;;  %v4105_v25 = vsel %vm10739_vm10, %v4047_v10, %v4104_v18  ;;  %4008 = vst [vmem:[#allocation7 + $0x13] sm:$0x1] %v4007_v51  ;;  %v4091_v47 = vsel %vm10739_vm10, %v4088_v21, %v4090_v57  ;;  %v4094_v42 = vshrl.u32 %v4088_v21, 16 }
 0x66c   : > { %4040 = vrot.lane.b32.xlu0 %v4039_v3, %s12292_s12  ;;  %4010 = vrot.lane.b32.xlu1 %v4009_v52, %s12292_s12  ;;  %v4133_v29 = vcombine.high %v4114_v7, %v4114_v7  ;;  %v4023_v56 = vsel %vm10739_vm10, %v4017_v48, %v4022_v38  ;;  %4106 = vst [vmem:[#allocation7 + $0x17] sm:$0x1] %v4105_v25  ;;  %4092 = vst [vmem:[#allocation7 + $0x16] sm:$0x1] %v4091_v47  ;;  %v9063_v58 = vld [vmem:[%s12267_s7 + $0x884] ss:$8 sps:$4 sm:$0xff]  }
 0x66d   : > { %7014 = vmatprep.subr.bf16.mxu0 %v9014_v41  ;;  %4024 = vst [vmem:[#allocation7 + $0x14] sm:$0x1] %v4023_v56  ;;  %v4121_v5 = vrot.slane %v4114_v7, %v10728_v37  ;;  %v9066_v11 = vld [vmem:[%s12267_s7 + $0x894] ss:$8 sps:$4 sm:$0xff]   ;;  %v9064_v46 = vld [vmem:[%s12267_s7 + $0x890] ss:$8 sps:$4 sm:$0xff]  }
 0x66e   : > { %v4140_v35 = vrot.slane %v4133_v29, %v10728_v37  ;;  %v9069_v62 = vld [vmem:[%s12267_s7 + $0x8a4] ss:$8 sps:$4 sm:$0xff]   ;;  %v9067_v23 = vld [vmem:[%s12267_s7 + $0x8a0] ss:$8 sps:$4 sm:$0xff]   ;;  %v9072_v52 = vld [vmem:[%s12267_s7 + $0x8b4] ss:$8 sps:$4 sm:$0xff]  }
 0x66f   : > { %7015 = vmatpush1.bf16.msra.mxu0 %v9012_v33  ;;  %v4123_v22 = vshrl.u32 %v4121_v5, 16  ;;  %v9070_v49 = vld [vmem:[%s12267_s7 + $0x8b0] ss:$8 sps:$4 sm:$0xff]   ;;  %v9075_v44 = vld [vmem:[%s12267_s7 + $0x8c4] ss:$8 sps:$4 sm:$0xff]  }
 0x670   : > { %4098 = vrot.lane.b32.xlu0 %v4094_v42, %s12292_s12  ;;  %4074 = vrot.lane.b32.xlu1 %v4070_v26, %s12292_s12  ;;  %v4143_v55 = vsel %vm10739_vm10, %v4140_v35, %v4142_v14  ;;  %v9073_v18 = vld [vmem:[%s12267_s7 + $0x8c0] ss:$8 sps:$4 sm:$0xff]   ;;  %v9078_v3 = vld [vmem:[%s12267_s7 + $0x8d4] ss:$8 sps:$4 sm:$0xff]   ;;  %v3981_v7 = vld [vmem:[#allocation7 + $0x11] sm:$0x1] }
 0x671   : > { %7016 = vmatprep.subr.bf16.mxu0 %v9021_v54  ;;  %4144 = vst [vmem:[#allocation7 + $0x18] sm:$0x1] %v4143_v55  ;;  %v9076_v41 = vld [vmem:[%s12267_s7 + $0x8d0] ss:$8 sps:$4 sm:$0xff]   ;;  %v9081_v34 = vld [vmem:[%s12267_s7 + $0x8e4] ss:$8 sps:$4 sm:$0xff]  }
 0x672   : > { %v9079_v10 = vld [vmem:[%s12267_s7 + $0x8e0] ss:$8 sps:$4 sm:$0xff]   ;;  %v9084_v38 = vld [vmem:[%s12267_s7 + $0x8f4] ss:$8 sps:$4 sm:$0xff]   ;;  %v9082_v48 = vld [vmem:[%s12267_s7 + $0x8f0] ss:$8 sps:$4 sm:$0xff]  }
 0x673   : > { %7017 = vmatpush1.bf16.msra.mxu0 %v9019_v1  ;;  %v9087_v21 = vld [vmem:[%s12267_s7 + $0x904] ss:$8 sps:$4 sm:$0xff]   ;;  %v3997_v57 = vld [vmem:[#allocation7 + $0x12] sm:$0x1]  ;;  %v4013_v54 = vld [vmem:[#allocation7 + $0x13] sm:$0x1] }
 0x674   : > { %4127 = vrot.lane.b32.xlu1 %v4123_v22, %s12292_s12  ;;  %7018 = vmatprep.subr.bf16.mxu0 %v9027_v61  ;;  %v4043_v42 = vld [vmem:[#allocation7 + $0x14] sm:$0x1]  ;;  %v4077_v1 = vld [vmem:[#allocation7 + $0x15] sm:$0x1]  ;;  %v4101_v22 = vld [vmem:[#allocation7 + $0x16] sm:$0x1] }
 0x675   : > { %s7425_s12 = sshll.u32 %s378_s0, 4  ;;  %s12220_s12 = int_to_ptr.vmem [resolvable:$true] %s7425_s12 }
 0x676   : > { %s9247_s22 = scalar_lea.vmem %s12220_s12, 16  ;;  %p9254_p0 = scmp.lt.s32.totalorder %s12220_s12, %s9252_s25 }
 0x677   : > { %7019 = vmatpush1.bf16.msra.mxu0 %v9025_v39  ;;  %p9248_p11 = scmp.ne.s32.totalorder %s12220_s12, %s9247_s22  ;;  %p9255_p1 = scmp.lt.s32.totalorder %s9253_s29, %s9247_s22 }
 0x678   : > { %7020 = vmatprep.subr.bf16.mxu0 %v9033_v28  ;;  %v7638_v6 = vld.sshfl [vmem:[#allocation7 + $0x18] sm:$0x1 pattern:$0x75316420] }
 0x679   : > { %v4706_v31 = vrot.slane %v7638_v6, %v10728_v37  ;;  %v4130_v6 = vld [vmem:[#allocation7 + $0x17] sm:$0x1]  ;;  %p9249_p12 = pnand %p9248_p11, %p9417_p5  ;;  %p9256_p2 = por %p9255_p1, %p9254_p0 }
 0x67b   : > { %7021 = vmatpush1.bf16.msra.mxu0 %v9031_v30  ;;  %8031 = vmatmul.mubr.msk.bf16.vlgmr.msra.gmra.mrb[192].mxu1 %vm599_vm1, %v4706_v31  ;;  %p9250_p13 = pneg %p9249_p12 }
 0x67c   : > { %7022 = vmatprep.subr.bf16.mxu0 %v9036_v24 }
 0x67d   : > { %p9257_p3 = pnand %p9256_p2, %p9250_p13 }
 0x67f   : > { %7023 = vmatpush1.bf16.msra.mxu0 %v9034_v12 }
 0x680   : > { %7033 = vmatprep.subr.bf16.mxu0 %v9039_v4 }
 0x682   : > { %7025 = vmatmul.mubr.bf16.vlgmr.msra.gmra.mrb[20].mxu0 %v4641_v8  ;;  %v9085_v8 = vld [vmem:[%s12267_s7 + $0x900] ss:$8 sps:$4 sm:$0xff]  }
 0x683   : > { %7034 = vmatpush1.bf16.msra.mxu0 %v9037_v32 }
 0x684   : > { %7035 = vmatprep.subr.bf16.mxu0 %v9042_v19 }
 0x687   : > { %7036 = vmatpush1.bf16.msra.mxu0 %v9040_v17 }
 0x688   : > { %7037 = vmatprep.subr.bf16.mxu0 %v9045_v27  ;;  %v9088_v27 = vld [vmem:[%s12267_s7 + $0x910] ss:$8 sps:$4 sm:$0xff]  }
 0x68b   : > { %7038 = vmatpush1.bf16.msra.mxu0 %v9043_v50  ;;  %v9093_v50 = vld [vmem:[%s12267_s7 + $0x924] ss:$8 sps:$4 sm:$0xff]  }
 0x68c   : > { %7039 = vmatprep.subr.bf16.mxu0 %v9048_v9  ;;  %v9091_v9 = vld [vmem:[%s12267_s7 + $0x920] ss:$8 sps:$4 sm:$0xff]  }
 0x68f   : > { %7040 = vmatpush1.bf16.msra.mxu0 %v9046_v45  ;;  %v9096_v45 = vld [vmem:[%s12267_s7 + $0x934] ss:$8 sps:$4 sm:$0xff]  }
 0x690   : > { %7041 = vmatprep.subr.bf16.mxu0 %v9051_v53  ;;  %v9094_v53 = vld [vmem:[%s12267_s7 + $0x930] ss:$8 sps:$4 sm:$0xff]  }
 0x693   : > { %7042 = vmatpush1.bf16.msra.mxu0 %v9049_v43  ;;  %v9099_v43 = vld [vmem:[%s12267_s7 + $0x944] ss:$8 sps:$4 sm:$0xff]  }
 0x694   : > { %7043 = vmatprep.subr.bf16.mxu0 %v9054_v0  ;;  %v9097_v0 = vld [vmem:[%s12267_s7 + $0x940] ss:$8 sps:$4 sm:$0xff]  }
 0x697   : > { %7044 = vmatpush1.bf16.msra.mxu0 %v9052_v13  ;;  %v9102_v13 = vld [vmem:[%s12267_s7 + $0x954] ss:$8 sps:$4 sm:$0xff]  }
 0x698   : > { %7045 = vmatprep.subr.bf16.mxu0 %v9057_v15  ;;  %v9100_v15 = vld [vmem:[%s12267_s7 + $0x950] ss:$8 sps:$4 sm:$0xff]  }
 0x69b   : > { %7046 = vmatpush1.bf16.msra.mxu0 %v9055_v36  ;;  %v9105_v36 = vld [vmem:[%s12267_s7 + $0x964] ss:$8 sps:$4 sm:$0xff]  }
 0x69c   : > { %7047 = vmatprep.subr.bf16.mxu0 %v9060_v16  ;;  %v9103_v16 = vld [vmem:[%s12267_s7 + $0x960] ss:$8 sps:$4 sm:$0xff]  }
 0x69f   : > { %7048 = vmatpush1.bf16.msra.mxu0 %v9058_v40  ;;  %v9108_v40 = vld [vmem:[%s12267_s7 + $0x974] ss:$8 sps:$4 sm:$0xff]  }
 0x6a0   : > { %7049 = vmatprep.subr.bf16.mxu0 %v9063_v58  ;;  %v9106_v58 = vld [vmem:[%s12267_s7 + $0x970] ss:$8 sps:$4 sm:$0xff]  }
 0x6a3   : > { %7050 = vmatpush1.bf16.msra.mxu0 %v9061_v63  ;;  %v9111_v63 = vld [vmem:[%s12267_s7 + $0x984] ss:$8 sps:$4 sm:$0xff]  }
 0x6a4   : > { %7051 = vmatprep.subr.bf16.mxu0 %v9066_v11  ;;  %v9109_v11 = vld [vmem:[%s12267_s7 + $0x980] ss:$8 sps:$4 sm:$0xff]  }
 0x6a7   : > { %7052 = vmatpush1.bf16.msra.mxu0 %v9064_v46  ;;  %v9114_v46 = vld [vmem:[%s12267_s7 + $0x994] ss:$8 sps:$4 sm:$0xff]  }
 0x6a8   : > { %7053 = vmatprep.subr.bf16.mxu0 %v9069_v62  ;;  %v9112_v62 = vld [vmem:[%s12267_s7 + $0x990] ss:$8 sps:$4 sm:$0xff]  }
 0x6ab   : > { %7054 = vmatpush1.bf16.msra.mxu0 %v9067_v23  ;;  %v9117_v23 = vld [vmem:[%s12267_s7 + $0x9a4] ss:$8 sps:$4 sm:$0xff]  }
 0x6ac   : > { %7055 = vmatprep.subr.bf16.mxu0 %v9072_v52  ;;  %v9115_v52 = vld [vmem:[%s12267_s7 + $0x9a0] ss:$8 sps:$4 sm:$0xff]  }
 0x6af   : > { %7056 = vmatpush1.bf16.msra.mxu0 %v9070_v49  ;;  %v9120_v49 = vld [vmem:[%s12267_s7 + $0x9b4] ss:$8 sps:$4 sm:$0xff]  }
 0x6b0   : > { %7057 = vmatprep.subr.bf16.mxu0 %v9075_v44  ;;  %v9118_v44 = vld [vmem:[%s12267_s7 + $0x9b0] ss:$8 sps:$4 sm:$0xff]  }
 0x6b3   : > { %7058 = vmatpush1.bf16.msra.mxu0 %v9073_v18  ;;  %v9123_v18 = vld [vmem:[%s12267_s7 + $0x9c4] ss:$8 sps:$4 sm:$0xff]  }
 0x6b4   : > { %7059 = vmatprep.subr.bf16.mxu0 %v9078_v3  ;;  %v9121_v3 = vld [vmem:[%s12267_s7 + $0x9c0] ss:$8 sps:$4 sm:$0xff]  }
 0x6b7   : > { %7060 = vmatpush1.bf16.msra.mxu0 %v9076_v41  ;;  %v9126_v41 = vld [vmem:[%s12267_s7 + $0x9d4] ss:$8 sps:$4 sm:$0xff]  }
 0x6b8   : > { %7061 = vmatprep.subr.bf16.mxu0 %v9081_v34  ;;  %v9124_v34 = vld [vmem:[%s12267_s7 + $0x9d0] ss:$8 sps:$4 sm:$0xff]  }
 0x6bb   : > { %7062 = vmatpush1.bf16.msra.mxu0 %v9079_v10  ;;  %v9129_v10 = vld [vmem:[%s12267_s7 + $0x9e4] ss:$8 sps:$4 sm:$0xff]  }
 0x6bc   : > { %7063 = vmatprep.subr.bf16.mxu0 %v9084_v38 }
 0x6bf   : > { %7064 = vmatpush1.bf16.msra.mxu0 %v9082_v48  ;;  %v9127_v48 = vld [vmem:[%s12267_s7 + $0x9e0] ss:$8 sps:$4 sm:$0xff]  }
 0x6c0   : > { %7074 = vmatprep.subr.bf16.mxu0 %v9087_v21  ;;  %v9132_v21 = vld [vmem:[%s12267_s7 + $0x9f4] ss:$8 sps:$4 sm:$0xff]  }
 0x6da   : > { %v3979_v60 = vpop.permute.xlu1 %3978  ;;  %v3995_v33 = vpop.permute.xlu0 %3994 }
 0x6db   : > { %v3982_v51 = vsel %vm10972_vm6, %v3979_v60, %v3981_v7  ;;  %v3998_v59 = vsel %vm10972_vm6, %v3995_v33, %v3997_v57  ;;  %v9130_v60 = vld [vmem:[%s12267_s7 + $0x9f0] ss:$8 sps:$4 sm:$0xff]   ;;  %v9135_v57 = vld [vmem:[%s12267_s7 + $0xa04] ss:$8 sps:$4 sm:$0xff]  }
 0x6dc   : > { %3983 = vst [vmem:[#allocation7 + $0x11] sm:$0x1] %v3982_v51  ;;  %3999 = vst [vmem:[#allocation7 + $0x12] sm:$0x1] %v3998_v59  ;;  %v11819_v25 = vpop.f32.mrb[188].mxu1 }
 0x6dd   : > { %v11821_v29 = vpop.f32.mrb[189].mxu1  ;;  %v9133_v51 = vld [vmem:[%s12267_s7 + $0xa00] ss:$8 sps:$4 sm:$0xff]  }
 0x6de   : > { %v6825_v56 = vpop.f32.mrb[190].mxu1  ;;  %v4011_v14 = vpop.permute.xlu1 %4010 }
 0x6df   : > { %v4014_v47 = vsel %vm10972_vm6, %v4011_v14, %v4013_v54  ;;  %v4041_v26 = vpop.permute.xlu0 %4040  ;;  %v6826_v5 = vpop.f32.mrb[191].mxu1  ;;  %v9139_v56 = vld [vmem:[%s12267_s7 + $0xa14] ss:$8 sps:$4 sm:$0xff]   ;;  %v9230_v14 = vld [vmem:[%s12269_s9 + $0x40] sm:$0xff]  }
 0x6e0   : > { %4015 = vst [vmem:[#allocation7 + $0x13] sm:$0x1] %v4014_v47  ;;  %v4044_v35 = vsel %vm10972_vm6, %v4041_v26, %v4043_v42  ;;  %v9231_v47 = vld [vmem:[%s12269_s9] sm:$0xff]   ;;  %v9232_v42 = vld [vmem:[%s12269_s9 + $0x48] sm:$0xff]   ;;  %v9137_v26 = vld [vmem:[%s12267_s7 + $0xa10] ss:$8 sps:$4 sm:$0xff]   ;;  %8285 = vmatprep.subr.bf16.mxu1 %v9230_v14 }
 0x6e1   : > { %4045 = vst [vmem:[#allocation7 + $0x14] sm:$0x1] %v4044_v35  ;;  %v9142_v5 = vld [vmem:[%s12267_s7 + $0xa24] ss:$8 sps:$4 sm:$0xff]   ;;  %8286 = vmatpush3.bf16.msra.mxu1 %v9231_v47  ;;  %v9203_v14 = vld [vmem:[%s12267_s7 + $0xb70] ss:$8 sps:$4 sm:$0xff]  }
 0x6e2   : > { %v4075_v55 = vpop.permute.xlu1 %4074  ;;  %v9233_v35 = vld [vmem:[%s12269_s9 + $0x8] sm:$0xff]   ;;  %8287 = vmatprep.subr.bf16.mxu1 %v9232_v42 }
 0x6e3   : > { %v4078_v61 = vsel %vm10972_vm6, %v4075_v55, %v4077_v1  ;;  %v4099_v39 = vpop.permute.xlu0 %4098  ;;  %v9234_v1 = vld [vmem:[%s12269_s9 + $0x50] sm:$0xff]   ;;  %v9140_v55 = vld [vmem:[%s12267_s7 + $0xa20] ss:$8 sps:$4 sm:$0xff]   ;;  %v9208_v47 = vld [vmem:[%s12267_s7 + $0xb84] ss:$8 sps:$4 sm:$0xff]  }
 0x6e4   : > { %4079 = vst [vmem:[#allocation7 + $0x15] sm:$0x1] %v4078_v61  ;;  %v4102_v28 = vsel %vm10972_vm6, %v4099_v39, %v4101_v22  ;;  %v9145_v61 = vld [vmem:[%s12267_s7 + $0xa34] ss:$8 sps:$4 sm:$0xff]   ;;  %v9206_v42 = vld [vmem:[%s12267_s7 + $0xb80] ss:$8 sps:$4 sm:$0xff]  }
 0x6e5   : > { %4103 = vst [vmem:[#allocation7 + $0x16] sm:$0x1] %v4102_v28  ;;  %8288 = vmatpush3.bf16.msra.mxu1 %v9233_v35  ;;  %v9235_v22 = vld [vmem:[%s12269_s9 + $0x10] sm:$0xff]   ;;  %v9236_v39 = vld [vmem:[%s12269_s9 + $0x58] sm:$0xff]   ;;  %v9214_v35 = vld [vmem:[%s12267_s7 + $0xba4] ss:$8 sps:$4 sm:$0xff]  }
 0x6e6   : > { %v4128_v30 = vpop.permute.xlu1 %4127  ;;  %8289 = vmatprep.subr.bf16.mxu1 %v9234_v1  ;;  %v9143_v28 = vld [vmem:[%s12267_s7 + $0xa30] ss:$8 sps:$4 sm:$0xff]   ;;  %v9212_v1 = vld [vmem:[%s12267_s7 + $0xba0] ss:$8 sps:$4 sm:$0xff]  }
 0x6e7   : > { %v4131_v24 = vsel %vm10972_vm6, %v4128_v30, %v4130_v6  ;;  %v9148_v30 = vld [vmem:[%s12267_s7 + $0xa44] ss:$8 sps:$4 sm:$0xff]   ;;  %v9237_v6 = vld [vmem:[%s12269_s9 + $0x18] sm:$0xff]  }
 0x6e8   : > { %4132 = vst [vmem:[#allocation7 + $0x17] sm:$0x1] %v4131_v24  ;;  %v9238_v24 = vld [vmem:[%s12269_s9 + $0x60] sm:$0xff]  }
 0x6e9   : > { %8290 = vmatpush3.bf16.msra.mxu1 %v9235_v22  ;;  %v9220_v22 = vld [vmem:[%s12267_s7 + $0xbc4] ss:$8 sps:$4 sm:$0xff]  }
 0x6ea   : > { %8291 = vmatprep.subr.bf16.mxu1 %v9236_v39  ;;  %v9218_v39 = vld [vmem:[%s12267_s7 + $0xbc0] ss:$8 sps:$4 sm:$0xff]  }
 0x6ed   : > { %8292 = vmatpush3.bf16.msra.mxu1 %v9237_v6  ;;  %v9226_v6 = vld [vmem:[%s12267_s7 + $0xbe4] ss:$8 sps:$4 sm:$0xff]  }
 0x6ee   : > { %8293 = vmatprep.subr.bf16.mxu1 %v9238_v24  ;;  %v9224_v24 = vld [vmem:[%s12267_s7 + $0xbe0] ss:$8 sps:$4 sm:$0xff]  }
 0x6ef   : > { %v11833_v31 = vld [vmem:[#allocation7 + $0x10] sm:$0xff] }
 0x6f0   : > { %v4651_v12 = vrot.slane %v11833_v31, %v10728_v37  ;;  %v4644_v38 = vcombine.high %v11833_v31, %v11833_v31  ;;  %v9146_v31 = vld [vmem:[%s12267_s7 + $0xa40] ss:$8 sps:$4 sm:$0xff]  }
 0x6f2   : > { %v4659_v4 = vcombine.high %v4651_v12, %v4651_v12  ;;  %v11842_v19 = vrot.slane %v4651_v12, %v10728_v37  ;;  %v11935_v7 = vrot.slane %v4644_v38, %v10728_v37  ;;  %v9151_v12 = vld [vmem:[%s12267_s7 + $0xa54] ss:$8 sps:$4 sm:$0xff]   ;;  %v9185_v38 = vld [vmem:[%s12267_s7 + $0xb10] ss:$8 sps:$4 sm:$0xff]  }
 0x6f4   : > { %v4681_v32 = vrot.slane %v4659_v4, %v10728_v37  ;;  %v4660_v33 = vcombine.high %v11935_v7, %v11935_v7  ;;  %v4689_v59 = vcombine.high %v11842_v19, %v11842_v19  ;;  %v9239_v4 = vld [vmem:[%s12269_s9 + $0x20] sm:$0xff]  }
 0x6f5   : > { %8294 = vmatpush3.bf16.msra.mxu1 %v9239_v4 }
 0x6f6   : > { %7065 = vmatprep.mubr.bf16.mxu0 %v4681_v32  ;;  %v4691_v17 = vcombine.high %v4681_v32, %v4681_v32  ;;  %v11954_v54 = vrot.slane %v4660_v33, %v10728_v37  ;;  %v9240_v32 = vld [vmem:[%s12269_s9 + $0x68] sm:$0xff]   ;;  %v9199_v33 = vld [vmem:[%s12267_s7 + $0xb54] ss:$8 sps:$4 sm:$0xff]  }
 0x6f7   : > { %7066 = vmatmul.mubr.bf16.vlgmr.msra.gmra.mrb[20].mxu0 %v11842_v19  ;;  %v9154_v19 = vld [vmem:[%s12267_s7 + $0xa64] ss:$8 sps:$4 sm:$0xff]   ;;  %8295 = vmatprep.subr.bf16.mxu1 %v9240_v32 }
 0x6f8   : > { %7075 = vmatpush1.bf16.msra.mxu0 %v9085_v8  ;;  %7106 = vmatprep.mubr.bf16.mxu0 %v4691_v17  ;;  %v9149_v8 = vld [vmem:[%s12267_s7 + $0xa50] ss:$8 sps:$4 sm:$0xff]   ;;  %v9157_v17 = vld [vmem:[%s12267_s7 + $0xa74] ss:$8 sps:$4 sm:$0xff]   ;;  %v9241_v32 = vld [vmem:[%s12269_s9 + $0x28] sm:$0xff]  }
 0x6f9   : > { %7076 = vmatprep.subr.bf16.mxu0 %v9090_v2  ;;  %v9152_v2 = vld [vmem:[%s12267_s7 + $0xa60] ss:$8 sps:$4 sm:$0xff]   ;;  %8296 = vmatpush3.bf16.msra.mxu1 %v9241_v32 }
 0x6fc   : > { %7077 = vmatpush1.bf16.msra.mxu0 %v9088_v27 }
 0x6fd   : > { %7078 = vmatprep.subr.bf16.mxu0 %v9093_v50 }
 0x700   : > { %7079 = vmatpush1.bf16.msra.mxu0 %v9091_v9 }
 0x701   : > { %7080 = vmatprep.subr.bf16.mxu0 %v9096_v45  ;;  %v9155_v45 = vld [vmem:[%s12267_s7 + $0xa70] ss:$8 sps:$4 sm:$0xff]  }
 0x704   : > { %7081 = vmatpush1.bf16.msra.mxu0 %v9094_v53 }
 0x705   : > { %7082 = vmatprep.subr.bf16.mxu0 %v9099_v43  ;;  %v9160_v43 = vld [vmem:[%s12267_s7 + $0xa84] ss:$8 sps:$4 sm:$0xff]  }
 0x708   : > { %7083 = vmatpush1.bf16.msra.mxu0 %v9097_v0  ;;  %v9158_v0 = vld [vmem:[%s12267_s7 + $0xa80] ss:$8 sps:$4 sm:$0xff]  }
 0x709   : > { %7084 = vmatprep.subr.bf16.mxu0 %v9102_v13  ;;  %v9163_v13 = vld [vmem:[%s12267_s7 + $0xa94] ss:$8 sps:$4 sm:$0xff]  }
 0x70c   : > { %7085 = vmatpush1.bf16.msra.mxu0 %v9100_v15  ;;  %v9161_v15 = vld [vmem:[%s12267_s7 + $0xa90] ss:$8 sps:$4 sm:$0xff]  }
 0x70d   : > { %7086 = vmatprep.subr.bf16.mxu0 %v9105_v36  ;;  %v9166_v36 = vld [vmem:[%s12267_s7 + $0xaa4] ss:$8 sps:$4 sm:$0xff]  }
 0x710   : > { %7087 = vmatpush1.bf16.msra.mxu0 %v9103_v16  ;;  %v9164_v16 = vld [vmem:[%s12267_s7 + $0xaa0] ss:$8 sps:$4 sm:$0xff]  }
 0x711   : > { %7088 = vmatprep.subr.bf16.mxu0 %v9108_v40  ;;  %v9169_v40 = vld [vmem:[%s12267_s7 + $0xab4] ss:$8 sps:$4 sm:$0xff]  }
 0x714   : > { %7089 = vmatpush1.bf16.msra.mxu0 %v9106_v58  ;;  %v9167_v58 = vld [vmem:[%s12267_s7 + $0xab0] ss:$8 sps:$4 sm:$0xff]  }
 0x715   : > { %7090 = vmatprep.subr.bf16.mxu0 %v9111_v63  ;;  %v9172_v63 = vld [vmem:[%s12267_s7 + $0xac4] ss:$8 sps:$4 sm:$0xff]  }
 0x718   : > { %7091 = vmatpush1.bf16.msra.mxu0 %v9109_v11  ;;  %v9170_v11 = vld [vmem:[%s12267_s7 + $0xac0] ss:$8 sps:$4 sm:$0xff]  }
 0x719   : > { %7092 = vmatprep.subr.bf16.mxu0 %v9114_v46  ;;  %v9175_v46 = vld [vmem:[%s12267_s7 + $0xad4] ss:$8 sps:$4 sm:$0xff]  }
 0x71c   : > { %7093 = vmatpush1.bf16.msra.mxu0 %v9112_v62  ;;  %v9173_v62 = vld [vmem:[%s12267_s7 + $0xad0] ss:$8 sps:$4 sm:$0xff]  }
 0x71d   : > { %7094 = vmatprep.subr.bf16.mxu0 %v9117_v23  ;;  %v9178_v23 = vld [vmem:[%s12267_s7 + $0xae4] ss:$8 sps:$4 sm:$0xff]  }
 0x720   : > { %7095 = vmatpush1.bf16.msra.mxu0 %v9115_v52  ;;  %v9176_v52 = vld [vmem:[%s12267_s7 + $0xae0] ss:$8 sps:$4 sm:$0xff]  }
 0x721   : > { %7096 = vmatprep.subr.bf16.mxu0 %v9120_v49  ;;  %v9181_v49 = vld [vmem:[%s12267_s7 + $0xaf4] ss:$8 sps:$4 sm:$0xff]  }
 0x724   : > { %7097 = vmatpush1.bf16.msra.mxu0 %v9118_v44  ;;  %v9179_v44 = vld [vmem:[%s12267_s7 + $0xaf0] ss:$8 sps:$4 sm:$0xff]  }
 0x725   : > { %7098 = vmatprep.subr.bf16.mxu0 %v9123_v18  ;;  %v9184_v18 = vld [vmem:[%s12267_s7 + $0xb04] ss:$8 sps:$4 sm:$0xff]  }
 0x728   : > { %7099 = vmatpush1.bf16.msra.mxu0 %v9121_v3  ;;  %v9182_v3 = vld [vmem:[%s12267_s7 + $0xb00] ss:$8 sps:$4 sm:$0xff]  }
 0x729   : > { %7100 = vmatprep.subr.bf16.mxu0 %v9126_v41  ;;  %v12089_v41 = vrot.slane %v11935_v7, %v10728_v37  ;;  %v9190_v37 = vld [vmem:[%s12267_s7 + $0xb24] ss:$8 sps:$4 sm:$0xff]   ;;  %v9191_v7 = vld [vmem:[%s12267_s7 + $0xb30] ss:$8 sps:$4 sm:$0xff]  }
 0x72b   : > { %v4690_v4 = vcombine.high %v12089_v41, %v12089_v41 }
 0x72c   : > { %7101 = vmatpush1.bf16.msra.mxu0 %v9124_v34  ;;  %v9187_v34 = vld [vmem:[%s12267_s7 + $0xb14] ss:$8 sps:$4 sm:$0xff]  }
 0x72d   : > { %7102 = vmatprep.subr.bf16.mxu0 %v9129_v10  ;;  %v4692_v10 = vcombine.high %v11954_v54, %v11954_v54 }
 0x730   : > { %7103 = vmatpush1.bf16.msra.mxu0 %v9127_v48  ;;  %v9188_v48 = vld [vmem:[%s12267_s7 + $0xb20] ss:$8 sps:$4 sm:$0xff]  }
 0x731   : > { %7104 = vmatprep.subr.bf16.mxu0 %v9132_v21  ;;  %v9193_v21 = vld [vmem:[%s12267_s7 + $0xb34] ss:$8 sps:$4 sm:$0xff]  }
 0x734   : > { %7105 = vmatpush1.bf16.msra.mxu0 %v9130_v60  ;;  %v9196_v60 = vld [vmem:[%s12267_s7 + $0xb44] ss:$8 sps:$4 sm:$0xff]  }
 0x735   : > { %7115 = vmatprep.subr.bf16.mxu0 %v9135_v57  ;;  %v9194_v57 = vld [vmem:[%s12267_s7 + $0xb40] ss:$8 sps:$4 sm:$0xff]  }
 0x737   : > { %7107 = vmatmul.mubr.bf16.vlgmr.msra.gmra.mrb[20].mxu0 %v4689_v59  ;;  %v9202_v59 = vld [vmem:[%s12267_s7 + $0xb64] ss:$8 sps:$4 sm:$0xff]  }
 0x738   : > { %7116 = vmatpush1.bf16.msra.mxu0 %v9133_v51  ;;  %7147 = vmatprep.mubr.bf16.mxu0 %v11954_v54  ;;  %v9197_v51 = vld [vmem:[%s12267_s7 + $0xb50] ss:$8 sps:$4 sm:$0xff]   ;;  %v9205_v54 = vld [vmem:[%s12267_s7 + $0xb74] ss:$8 sps:$4 sm:$0xff]  }
 0x739   : > { %7117 = vmatprep.subr.bf16.mxu0 %v9139_v56  ;;  %v9200_v56 = vld [vmem:[%s12267_s7 + $0xb60] ss:$8 sps:$4 sm:$0xff]  }
 0x73c   : > { %7118 = vmatpush1.bf16.msra.mxu0 %v9137_v26  ;;  %v9211_v26 = vld [vmem:[%s12267_s7 + $0xb94] ss:$8 sps:$4 sm:$0xff]  }
 0x73d   : > { %7119 = vmatprep.subr.bf16.mxu0 %v9142_v5  ;;  %v9209_v5 = vld [vmem:[%s12267_s7 + $0xb90] ss:$8 sps:$4 sm:$0xff]  }
 0x740   : > { %7120 = vmatpush1.bf16.msra.mxu0 %v9140_v55  ;;  %v9217_v55 = vld [vmem:[%s12267_s7 + $0xbb4] ss:$8 sps:$4 sm:$0xff]  }
 0x741   : > { %7121 = vmatprep.subr.bf16.mxu0 %v9145_v61  ;;  %v9215_v61 = vld [vmem:[%s12267_s7 + $0xbb0] ss:$8 sps:$4 sm:$0xff]  }
 0x744   : > { %7122 = vmatpush1.bf16.msra.mxu0 %v9143_v28  ;;  %v9223_v28 = vld [vmem:[%s12267_s7 + $0xbd4] ss:$8 sps:$4 sm:$0xff]  }
 0x745   : > { %7123 = vmatprep.subr.bf16.mxu0 %v9148_v30  ;;  %v9221_v30 = vld [vmem:[%s12267_s7 + $0xbd0] ss:$8 sps:$4 sm:$0xff]  }
 0x748   : > { %7124 = vmatpush1.bf16.msra.mxu0 %v9146_v31  ;;  %v9229_v31 = vld [vmem:[%s12267_s7 + $0xbf4] ss:$8 sps:$4 sm:$0xff]  }
 0x749   : > { %7125 = vmatprep.subr.bf16.mxu0 %v9151_v12  ;;  %v9227_v12 = vld [vmem:[%s12267_s7 + $0xbf0] ss:$8 sps:$4 sm:$0xff]  }
 0x74c   : > { %7126 = vmatpush1.bf16.msra.mxu0 %v9149_v8  ;;  %v9242_v8 = vld [vmem:[%s12269_s9 + $0x70] sm:$0xff]  }
 0x74d   : > { %7127 = vmatprep.subr.bf16.mxu0 %v9154_v19  ;;  %v9243_v19 = vld [vmem:[%s12269_s9 + $0x30] sm:$0xff]   ;;  %8297 = vmatprep.subr.bf16.mxu1 %v9242_v8 }
 0x74e   : > { %v12026_v27 = vpop.f32.mrb[192].mxu1  ;;  %8298 = vmatpush3.bf16.msra.mxu1 %v9243_v19 }
 0x74f   : > { %v12028_v50 = vpop.f32.mrb[193].mxu1 }
 0x750   : > { %7128 = vmatpush1.bf16.msra.mxu0 %v9152_v2  ;;  %v7235_v9 = vpop.f32.mrb[194].mxu1  ;;  %v9244_v2 = vld [vmem:[%s12269_s9 + $0x78] sm:$0xff]  }
 0x751   : > { %v7236_v53 = vpop.f32.mrb[195].mxu1  ;;  %7129 = vmatprep.subr.bf16.mxu0 %v9157_v17  ;;  %v9245_v17 = vld [vmem:[%s12269_s9 + $0x38] sm:$0xff]   ;;  %8299 = vmatprep.subr.bf16.mxu1 %v9244_v2  ;;  %v6694_v9 = vsub.s32 0, %v10716_v20 }
 0x752   : > { %8300 = vmatpush3.bf16.msra.mxu1 %v9245_v17  ;;  %v6698_v53 = vsub.s32 1, %v10716_v20 }
 0x754   : > { %7130 = vmatpush1.bf16.msra.mxu0 %v9155_v45  ;;  %v4541_v45 = vld [vmem:[%s12268_s8] sm:$0x3] }
 0x755   : > { %7131 = vmatprep.subr.bf16.mxu0 %v9160_v43  ;;  %v6695_v43 = vrot.slane %v4541_v45, %v6694_v9 }
 0x758   : > { %7132 = vmatpush1.bf16.msra.mxu0 %v9158_v0  ;;  %v6699_v0 = vrot.slane %v4541_v45, %v6698_v53 }
 0x759   : > { %7133 = vmatprep.subr.bf16.mxu0 %v9163_v13  ;;  %v8443_v13 = vadd.f32 %v11819_v25, %v6695_v43 }
 0x75c   : > { %7134 = vmatpush1.bf16.msra.mxu0 %v9161_v15  ;;  %v8446_v15 = vadd.f32 %v11821_v29, %v6699_v0  ;;  %v7274_v29 = vld [vmem:[%s12270_s10] sm:$0x1] }
 0x75d   : > { %7135 = vmatprep.subr.bf16.mxu0 %v9166_v36 }
 0x760   : > { %7136 = vmatpush1.bf16.msra.mxu0 %v9164_v16 }
 0x761   : > { %7137 = vmatprep.subr.bf16.mxu0 %v9169_v40 }
 0x764   : > { %7138 = vmatpush1.bf16.msra.mxu0 %v9167_v58 }
 0x765   : > { %7139 = vmatprep.subr.bf16.mxu0 %v9172_v63 }
 0x768   : > { %7140 = vmatpush1.bf16.msra.mxu0 %v9170_v11 }
 0x769   : > { %7141 = vmatprep.subr.bf16.mxu0 %v9175_v46 }
 0x76c   : > { %7142 = vmatpush1.bf16.msra.mxu0 %v9173_v62 }
 0x76d   : > { %7143 = vmatprep.subr.bf16.mxu0 %v9178_v23 }
 0x770   : > { %7144 = vmatpush1.bf16.msra.mxu0 %v9176_v52 }
 0x771   : > { %7145 = vmatprep.subr.bf16.mxu0 %v9181_v49 }
 0x774   : > { %7146 = vmatpush1.bf16.msra.mxu0 %v9179_v44 }
 0x775   : > { %7156 = vmatprep.subr.bf16.mxu0 %v9184_v18 }
 0x777   : > { %7148 = vmatmul.mubr.bf16.vlgmr.msra.gmra.mrb[20].mxu0 %v12089_v41 }
 0x778   : > { %7157 = vmatpush1.bf16.msra.mxu0 %v9182_v3  ;;  %7188 = vmatprep.mubr.bf16.mxu0 %v4692_v10 }
 0x779   : > { %7158 = vmatprep.subr.bf16.mxu0 %v9187_v34 }
 0x77c   : > { %7159 = vmatpush1.bf16.msra.mxu0 %v9185_v38 }
 0x77d   : > { %7160 = vmatprep.subr.bf16.mxu0 %v9190_v37 }
 0x780   : > { %7161 = vmatpush1.bf16.msra.mxu0 %v9188_v48 }
 0x781   : > { %7162 = vmatprep.subr.bf16.mxu0 %v9193_v21 }
 0x784   : > { %7163 = vmatpush1.bf16.msra.mxu0 %v9191_v7 }
 0x785   : > { %7164 = vmatprep.subr.bf16.mxu0 %v9196_v60 }
 0x788   : > { %7165 = vmatpush1.bf16.msra.mxu0 %v9194_v57 }
 0x789   : > { %7166 = vmatprep.subr.bf16.mxu0 %v9199_v33 }
 0x78c   : > { %7167 = vmatpush1.bf16.msra.mxu0 %v9197_v51 }
 0x78d   : > { %7168 = vmatprep.subr.bf16.mxu0 %v9202_v59 }
 0x790   : > { %7169 = vmatpush1.bf16.msra.mxu0 %v9200_v56 }
 0x791   : > { %7170 = vmatprep.subr.bf16.mxu0 %v9205_v54 }
 0x794   : > { %7171 = vmatpush1.bf16.msra.mxu0 %v9203_v14 }
 0x795   : > { %7172 = vmatprep.subr.bf16.mxu0 %v9208_v47 }
 0x798   : > { %7173 = vmatpush1.bf16.msra.mxu0 %v9206_v42 }
 0x799   : > { %7174 = vmatprep.subr.bf16.mxu0 %v9211_v26 }
 0x79c   : > { %7175 = vmatpush1.bf16.msra.mxu0 %v9209_v5 }
 0x79d   : > { %7176 = vmatprep.subr.bf16.mxu0 %v9214_v35 }
 0x7a0   : > { %7177 = vmatpush1.bf16.msra.mxu0 %v9212_v1 }
 0x7a1   : > { %7178 = vmatprep.subr.bf16.mxu0 %v9217_v55 }
 0x7a4   : > { %7179 = vmatpush1.bf16.msra.mxu0 %v9215_v61 }
 0x7a5   : > { %7180 = vmatprep.subr.bf16.mxu0 %v9220_v22 }
 0x7a8   : > { %7181 = vmatpush1.bf16.msra.mxu0 %v9218_v39 }
 0x7a9   : > { %7182 = vmatprep.subr.bf16.mxu0 %v9223_v28 }
 0x7ac   : > { %7183 = vmatpush1.bf16.msra.mxu0 %v9221_v30 }
 0x7ad   : > { %7184 = vmatprep.subr.bf16.mxu0 %v9226_v6 }
 0x7b0   : > { %7185 = vmatpush1.bf16.msra.mxu0 %v9224_v24 }
 0x7b1   : > { %7186 = vmatprep.subr.bf16.mxu0 %v9229_v31 }
 0x7b4   : > { %7187 = vmatpush1.bf16.msra.mxu0 %v9227_v12 }
 0x7b7   : > { %7189 = vmatmul.mubr.bf16.vlgmr.msra.gmra.mrb[20].mxu0 %v4690_v4 }
 0x88a   : > { %v7190_v36 = vpop.f32.mrb[20].mxu0 }
 0x88b   : > { %v8444_v16 = vadd.f32 %v8443_v13, %v7190_v36  ;;  %v7192_v40 = vpop.f32.mrb[21].mxu0 }
 0x88c   : > { %v8447_v58 = vadd.f32 %v8446_v15, %v7192_v40  ;;  %v7194_v63 = vpop.f32.mrb[22].mxu0 }
 0x88d   : > { %v8445_v11 = vadd.f32 %v8444_v16, %v12026_v27  ;;  %v7195_v46 = vpop.f32.mrb[23].mxu0 }
 0x88e   : > { %v8448_v62 = vadd.f32 %v8447_v58, %v12028_v50 }
 0x88f   : > { %v7238_v23 = vmax.f32 %v8445_v11, 0.0 }
 0x890   : > { %v7239_v20 = vmax.f32 %v8448_v62, 0.0 }
 0x891   : > { %v7240_v49 = vpack.c.bf16 %v7238_v23, %v7238_v23 }
 0x892   : > { %v7241_v52 = vpack.c.bf16 %v7239_v20, %v7239_v20 }
 0x894   : > { %7403 = vmatprep.mubr.bf16.mxu1 %v7241_v52 }
 0x895   : > { %7404 = vmatmul.mubr.bf16.vlgmr.msra.gmra.mrb[196].mxu1 %v7240_v49 }
 0x968   : > { %v8301_v25 = vpop.f32.mrb[196].mxu1 }
 0x969   : > { %v8302_v44 = vpop.f32.mrb[197].mxu1 }
 0x96a   : > { %v8303_v27 = vadd.f32 %v8302_v44, %v8301_v25  ;;  %v8304_v18 = vpop.f32.mrb[198].mxu1 }
 0x96b   : > { %v8305_v50 = vpop.f32.mrb[199].mxu1 }
 0x96c   : > { %v7406_v3 = vadd.f32 %v8303_v27, %v7274_v29 }
 0x96e   : > { %7411 = vst [vmem:[%s378_s0] sm:$0x1] %v7406_v3 }
 0x96f   : > { %9260 = shalt.err (!%p9257_p3)
}
 0x970   : > { %s9261_s24 = scalar_lea.hbm %s12218_s15, 16  ;;  %s9265_s13 = scalar_lea.hbm %s12271_s11, 32 }
 0x971   : > { %p9262_p4 = scmp.ne.s32.totalorder %s12218_s15, %s9261_s24  ;;  %p9266_p9 = scmp.lt.u32.totalorder %s12218_s15, %s12271_s11 }
 0x972   : > { %p9267_p10 = scmp.lt.u32.totalorder %s9265_s13, %s9261_s24  ;;  %p9269_p12 = scmp.lt.u32.totalorder %s9261_s24, %s12218_s15 }
 0x973   : > { %p9263_p7 = pnand %p9262_p4, %p9417_p5 }
 0x974   : > { %p9268_p11 = por %p9267_p10, %p9266_p9 }
 0x975   : > { %p9264_p8 = pneg %p9263_p7 }
 0x976   : > { %p9270_p13 = por %p9269_p12, %p9268_p11 }
 0x978   : > { %p9271_p0 = pnand %p9270_p13, %p9264_p8 }
 0x97a   : > { %9274 = shalt.err (!%p9271_p0)
}
 0x97b   : > { %8490 = dma.vmem_to_hbm [thread:$0]  (%p9417_p5), %s12220_s12, 16, %s12218_s15, %s7413_s16  }
 0x97c PF: > { %p8496_p1 = scmp.ge.s32.totalorder %s9309_s20, 2  ;;  %s7437_s22 = sand.u32 1, %s9297_s17  }
 0x97d   : > { %s7438_s25 = scalar_lea.sflag [#allocation9], %s7437_s22 }
 0x97e   : > { %p8493_p2 = pnand %p8496_p1, %p9421_p6 }
 0x980   : > { %9292 = dma.done.wait (!%p8493_p2), %s7438_s25, 16  }
 0x981   : > { %9294 = vsyncadd (!%p8493_p2), %s7438_s25, 4294967280  ;;  %p21_p3 = scmp.ge.s32.totalorder %s9404_s23, 4   ;;  %s12316_s17 = smov %s9301_s18 }
 0x982   : > { %s12317_s18 = smov %s9305_s19  ;;  %s12318_s19 = smov %s9415_s26 }
 0x983   : > { %s12319_s20 = smov %s9404_s23  ;;  %23 = sbr.rel (!%p21_p3) target bundleno = 5 (0x5), region = 99 }
 0x98a   :  { %7442 = vsyncpa [#allocation9], 1 }
 0x98b   :  { %7444 = vsyncpa [#allocation9 + $0x1], 1 }

</bundles_post_ra>
